<compile_context>
chip_gen: v6e
topology: v6e:2x2x1
jax: 0.10.0
libtpu: 0.0.40
codegen_flags: <defaults>
</compile_context>

<pallas_src>
import jax
import jax.numpy as jnp
from jax import lax
from jax.experimental import pallas as pl
from jax.experimental.pallas import tpu as pltpu


# --------------------------------------------------------------------------- #
# Kernel                                                                      #
# --------------------------------------------------------------------------- #
def conv_bilstm_kernel(x_ref, w1_ref, b1_ref, w2_ref, b2_ref,
                       wih_f_ref, whh_f_ref, bg_f_ref,
                       wih_b_ref, whh_b_ref, bg_b_ref,
                       wof_ref, wob_ref, bout_ref,
                       out_ref,
                       pad1_ref, pad2_ref, xgf_ref, xgb_ref, hfs_ref, hbs_ref):
    _, T, Bblk, Hin = x_ref.shape
    N = T * Bblk
    C = w1_ref.shape[2]
    Hp = whh_f_ref.shape[0]          # lane-padded hidden size
    Lp = wof_ref.shape[1]            # lane-padded num_labels
    f32, bf16 = jnp.float32, jnp.bfloat16

    # ---- conv1 -> ReLU -> conv2 -> ReLU (channels-last) --------------------- #
    # kernel_size=3 / padding=1 Conv1d == three shifted (N, Cin)@(Cin, Cout)
    # matmuls.  Shifts use a zero-padded bf16 staging scratch: data lives in
    # rows [Bblk, Bblk+N); one timestep == Bblk rows (time-major flattening), so
    # the zero rows at both ends implement the t-1 / t+1 boundary padding with
    # only sublane-tile-aligned slices (Bblk is a multiple of 16).
    def conv3(pad_ref, w_ref, b_ref):
        xm = pad_ref[pl.ds(0, N), :]             # x[t-1]   (bf16)
        xc = pad_ref[pl.ds(Bblk, N), :]          # x[t]
        xp = pad_ref[pl.ds(2 * Bblk, N), :]      # x[t+1]
        return (jnp.dot(xm, w_ref[0], preferred_element_type=f32)
                + jnp.dot(xc, w_ref[1], preferred_element_type=f32)
                + jnp.dot(xp, w_ref[2], preferred_element_type=f32)
                + b_ref[...])

    pad1_ref[pl.ds(0, Bblk), :] = jnp.zeros((Bblk, Hin), bf16)
    pad1_ref[pl.ds((T + 1) * Bblk, Bblk), :] = jnp.zeros((Bblk, Hin), bf16)
    pad1_ref[pl.ds(Bblk, N), :] = x_ref[...].reshape(N, Hin)
    h1 = jnp.maximum(conv3(pad1_ref, w1_ref, b1_ref), 0.0)        # (N, C) f32

    pad2_ref[pl.ds(0, Bblk), :] = jnp.zeros((Bblk, C), bf16)
    pad2_ref[pl.ds((T + 1) * Bblk, Bblk), :] = jnp.zeros((Bblk, C), bf16)
    pad2_ref[pl.ds(Bblk, N), :] = h1.astype(bf16)
    h2b = jnp.maximum(conv3(pad2_ref, w2_ref, b2_ref), 0.0).astype(bf16)  # (N, C)

    # ---- BiLSTM: hoisted input projections + packed-gate recurrence --------- #
    # One big (N, C)@(C, 4*Hp) matmul per direction (bias folded in), stored as
    # bf16 in VMEM; only the (Bblk, Hp)@(Hp, 4*Hp) recurrent matmul stays in
    # the time loop.  Gate packing order is i | f | o | g.
    xgf_ref[...] = (jnp.dot(h2b, wih_f_ref[...], preferred_element_type=f32)
                    + bg_f_ref[...]).astype(bf16)
    xgb_ref[...] = (jnp.dot(h2b, wih_b_ref[...], preferred_element_type=f32)
                    + bg_b_ref[...]).astype(bf16)

    # recurrent weights loaded once, outside the time loop
    whh_f = whh_f_ref[...]
    whh_b = whh_b_ref[...]

    def lstm_step(xg, h, c, whh):
        z = xg.astype(f32) + jnp.dot(h.astype(bf16), whh,
                                     preferred_element_type=f32)  # (Bblk, 4*Hp)
        sig = jax.nn.sigmoid(z[:, :3 * Hp])        # i | f | o in one EUP pass
        i = sig[:, 0:Hp]
        f = sig[:, Hp:2 * Hp]
        o = sig[:, 2 * Hp:3 * Hp]
        g = jnp.tanh(z[:, 3 * Hp:])
        c_new = f * c + i * g
        h_new = o * jnp.tanh(c_new)
        return h_new, c_new

    def step_pair(rf, rb, carry):
        hf, cf, hb, cb = carry
        hf, cf = lstm_step(xgf_ref[pl.ds(rf, Bblk), :], hf, cf, whh_f)
        hfs_ref[pl.ds(rf, Bblk), :] = hf.astype(bf16)
        hb, cb = lstm_step(xgb_ref[pl.ds(rb, Bblk), :], hb, cb, whh_b)
        hbs_ref[pl.ds(rb, Bblk), :] = hb.astype(bf16)
        return hf, cf, hb, cb

    zero = jnp.zeros((Bblk, Hp), f32)
    carry = (zero, zero, zero, zero)
    if T <= 32:
        # fully unrolled: fwd/bwd chains interleave and hide MXU/EUP latency
        for t in range(T):
            carry = step_pair(t * Bblk, (T - 1 - t) * Bblk, carry)
    else:
        def body(t, c):
            rf = pl.multiple_of(t * Bblk, Bblk)
            rb = pl.multiple_of((T - 1 - t) * Bblk, Bblk)
            return step_pair(rf, rb, c)
        carry = lax.fori_loop(0, T, body, carry, unroll=4)

    # ---- output Linear (eval BatchNorm already folded into wof/wob/bout) ---- #
    logits = (jnp.dot(hfs_ref[...], wof_ref[...], preferred_element_type=f32)
              + jnp.dot(hbs_ref[...], wob_ref[...], preferred_element_type=f32)
              + bout_ref[...])                                    # (N, Lp) f32
    out_ref[...] = logits.reshape(1, T, Bblk, Lp)


# --------------------------------------------------------------------------- #
# Parameter packing (pad/pack/bf16/BN-fold) and wrapper                       #
# --------------------------------------------------------------------------- #
def _round_up(v, m):
    return ((v + m - 1) // m) * m


def _pack_params(p, Hp, Lp):
    """Pack natural (PyTorch-layout) params for the kernel.

    * gates repacked i|f|o|g along the lane dim -> one (K, 4*Hp) matmul and a
      single contiguous sigmoid slice inside the kernel
    * hidden / label dims zero-padded to lane multiples of 128
    * eval-mode BatchNorm folded into the output projection (exact algebra)
    * matmul operands stored in bf16 (f32 accumulation inside the kernel)
    """
    H = p["whh_f"].shape[-1]
    C = p["w1"].shape[-1]
    L = p["wout"].shape[-1]
    bf16, f32 = jnp.bfloat16, jnp.float32
    order = (0, 1, 3, 2)                                  # i,f,g,o -> i,f,o,g

    def pack_w(w, kpad):                                  # (4, K, H) -> (kpad, 4*Hp)
        K = w.shape[1]
        w = jnp.stack([w[k] for k in order])
        wp = jnp.pad(w, ((0, 0), (0, kpad - K), (0, Hp - H)))
        return jnp.transpose(wp, (1, 0, 2)).reshape(kpad, 4 * Hp).astype(bf16)

    def pack_b(b):                                        # (4, 1, H) -> (1, 4*Hp)
        b = jnp.stack([b[k] for k in order])
        bp = jnp.pad(b, ((0, 0), (0, 0), (0, Hp - H)))
        return jnp.transpose(bp, (1, 0, 2)).reshape(1, 4 * Hp).astype(f32)

    # eval BN fold:  (h*sc + sh) @ W + b  ==  h @ (diag(sc) W) + (b + sh @ W)
    sc, sh = p["bn_scale"], p["bn_shift"]
    wout = p["wout"]
    wout_f = sc[:H, None] * wout[:H]
    wout_b = sc[H:, None] * wout[H:]
    bout = p["bout"] + sh[:H] @ wout[:H] + sh[H:] @ wout[H:]

    return {
        "w1": p["w1"].astype(bf16), "b1": p["b1"].astype(f32),
        "w2": p["w2"].astype(bf16), "b2": p["b2"].astype(f32),
        "wih_f": pack_w(p["wih_f"], C), "whh_f": pack_w(p["whh_f"], Hp),
        "bg_f": pack_b(p["bg_f"]),
        "wih_b": pack_w(p["wih_b"], C), "whh_b": pack_w(p["whh_b"], Hp),
        "bg_b": pack_b(p["bg_b"]),
        "wout_f": jnp.pad(wout_f, ((0, Hp - H), (0, Lp - L))).astype(bf16),
        "wout_b": jnp.pad(wout_b, ((0, Hp - H), (0, Lp - L))).astype(bf16),
        "bout": jnp.pad(bout, ((0, 0), (0, Lp - L))).astype(f32),
    }


def conv_bilstm_forward(x, params, block_batch=None):
    B, T, Hin = x.shape
    H = params["whh_f"].shape[-1]
    L = params["wout"].shape[-1]
    C = params["w1"].shape[-1]

    Hp = _round_up(H, 128)                    # lane-dense hidden dim
    Lp = _round_up(L, 128)                    # lane-dense logits slab

    kp = _pack_params(params, Hp, Lp)
    args_w = (kp["w1"], kp["b1"], kp["w2"], kp["b2"],
              kp["wih_f"], kp["whh_f"], kp["bg_f"],
              kp["wih_b"], kp["whh_b"], kp["bg_b"],
              kp["wout_f"], kp["wout_b"], kp["bout"])
    weight_bytes = 2 * sum(int(a.size) * a.dtype.itemsize for a in args_w)

    # Batch block: as large as possible (fills the MXU M dimension), multiple
    # of 16 so every bf16 scratch slice stays sublane-tile aligned.
    if block_batch is None:
        nblk_min = -(-B // 128)
        Bblk = min(128, _round_up(-(-B // nblk_min), 16))
    else:
        Bblk = max(16, _round_up(block_batch, 16))

    try:
        cap = int(pltpu.get_tpu_info().vmem_capacity_bytes)
    except Exception:
        cap = 64 * 1024 * 1024                # conservative v7x floor
    budget = int(0.8 * cap)

    def est_bytes(bb):                        # bf16 scratch + double-buffered I/O
        n = T * bb
        scratch = 2 * ((T + 2) * bb * (Hin + C) + n * (8 * Hp + 2 * Hp))
        io = 2 * (T * bb * Hin * 2 + T * bb * Lp * 4)
        return scratch + io

    # Shrink the batch block until the T-scaled scratches fit the VMEM budget.
    # TODO(synk): for very long sequences, chunk the time axis (HBM staging +
    #   emit_pipeline for gate pre-activations) instead of shrinking Bblk.
    while Bblk > 16 and weight_bytes + est_bytes(Bblk) > budget:
        Bblk = max(16, _round_up(Bblk // 2, 16))

    Bp = _round_up(B, Bblk)
    nblk = Bp // Bblk
    N = T * Bblk

    # Block-major, batch-padded input: each grid step reads one contiguous
    # (T, Bblk, Hin) slab; cast to bf16 up front (matmul operand dtype).
    xp = jnp.pad(x, ((0, Bp - B), (0, 0), (0, 0))) if Bp != B else x
    xb = xp.reshape(nblk, Bblk, T, Hin).transpose(0, 2, 1, 3).astype(jnp.bfloat16)

    def wspec(a):  # full-array block, constant index map (weight stays resident)
        return pl.BlockSpec(a.shape, lambda g, _nd=a.ndim: (0,) * _nd)

    in_specs = [pl.BlockSpec((1, T, Bblk, Hin), lambda g: (g, 0, 0, 0))]
    in_specs += [wspec(a) for a in args_w]
    out_spec = pl.BlockSpec((1, T, Bblk, Lp), lambda g: (g, 0, 0, 0))

    scratch_shapes = [
        pltpu.VMEM(((T + 2) * Bblk, Hin), jnp.bfloat16),   # conv1 shift staging
        pltpu.VMEM(((T + 2) * Bblk, C), jnp.bfloat16),     # conv2 shift staging
        pltpu.VMEM((N, 4 * Hp), jnp.bfloat16),             # fwd gate pre-activations
        pltpu.VMEM((N, 4 * Hp), jnp.bfloat16),             # bwd gate pre-activations
        pltpu.VMEM((N, Hp), jnp.bfloat16),                 # fwd hidden states
        pltpu.VMEM((N, Hp), jnp.bfloat16),                 # bwd hidden states
    ]

    est = weight_bytes + est_bytes(Bblk)
    vmem_limit = int(min(budget, max(16 << 20, est + est // 2 + (4 << 20))))

    out = pl.pallas_call(
        conv_bilstm_kernel,
        out_shape=jax.ShapeDtypeStruct((nblk, T, Bblk, Lp), jnp.float32),
        grid_spec=pltpu.PrefetchScalarGridSpec(
            num_scalar_prefetch=0,
            grid=(nblk,),
            in_specs=in_specs,
            out_specs=out_spec,
            scratch_shapes=scratch_shapes),
        compiler_params=pltpu.CompilerParams(
            dimension_semantics=("parallel",),     # batch blocks -> megacore
            vmem_limit_bytes=vmem_limit),
    )(xb, *args_w)

    # slice the 128-wide logits slab first (tiny), then undo the block layout
    out = out[..., :L]
    out = jnp.transpose(out, (0, 2, 1, 3)).reshape(Bp, T, L)
    return out[:B]


# --------------------------------------------------------------------------- #
# Deterministic parameter init (synthetic; shapes follow the nn.Module)       #
# --------------------------------------------------------------------------- #
def init_params(key, clf_hidden_size, num_labels, conv_channels=128):
    H, C = clf_hidden_size, conv_channels
    keys = jax.random.split(key, 12)

    def rnd(k, shape, scale=0.1):
        return scale * jax.random.normal(k, shape, dtype=jnp.float32)

    p = {}
    # Conv1d(H -> 128, k=3): taps stored as (3, Cin, Cout), order t-1, t, t+1
    p["w1"] = rnd(keys[0], (3, H, C))
    p["b1"] = rnd(keys[1], (1, C))
    p["w2"] = rnd(keys[2], (3, C, C))
    p["b2"] = rnd(keys[3], (1, C))
    # BiLSTM(128 -> H): per-gate weights, gate order i,f,g,o; bias = b_ih + b_hh
    p["wih_f"] = rnd(keys[4], (4, C, H))
    p["whh_f"] = rnd(keys[5], (4, H, H))
    p["bg_f"] = rnd(keys[6], (4, 1, H))
    p["wih_b"] = rnd(keys[7], (4, C, H))
    p["whh_b"] = rnd(keys[8], (4, H, H))
    p["bg_b"] = rnd(keys[9], (4, 1, H))
    # BatchNorm1d(2H), eval mode, folded to scale/shift
    gamma = jnp.ones((2 * H,), jnp.float32)
    beta = jnp.zeros((2 * H,), jnp.float32)
    rmean = jnp.zeros((2 * H,), jnp.float32)
    rvar = jnp.ones((2 * H,), jnp.float32)
    scale = gamma / jnp.sqrt(rvar + 1e-5)
    p["bn_scale"] = scale
    p["bn_shift"] = beta - rmean * scale
    # Linear(2H -> num_labels)
    p["wout"] = rnd(keys[10], (2 * H, num_labels))
    p["bout"] = rnd(keys[11], (1, num_labels))
    return p


# --------------------------------------------------------------------------- #
# Pure-JAX reference (same bf16-matmul / f32-accumulate rounding policy)      #
# --------------------------------------------------------------------------- #
def reference_forward(x, params):
    H = params["whh_f"].shape[-1]
    f32, bf16 = jnp.float32, jnp.bfloat16

    def mm(a, b):
        return jnp.dot(a.astype(bf16), b.astype(bf16), preferred_element_type=f32)

    def conv(xin, W, b):
        z = jnp.zeros_like(xin[:, :1, :])
        xm = jnp.concatenate([z, xin[:, :-1, :]], axis=1)
        xp = jnp.concatenate([xin[:, 1:, :], z], axis=1)
        Bs, T, Cin = xin.shape

        def m(a, w):
            return mm(a.reshape(Bs * T, Cin), w).reshape(Bs, T, w.shape[1])

        return m(xm, W[0]) + m(xin, W[1]) + m(xp, W[2]) + b

    h1 = jax.nn.relu(conv(x, params["w1"], params["b1"]))
    h2 = jax.nn.relu(conv(h1, params["w2"], params["b2"]))

    def lstm_dir(xseq, wih, whh, bg):
        Bs, T, Cin = xseq.shape
        # gate pre-activations rounded to bf16 (matches the kernel's bf16 scratch)
        xg = jnp.stack(
            [(mm(xseq.reshape(Bs * T, Cin), wih[k]).reshape(Bs, T, H) + bg[k]
              ).astype(bf16).astype(f32)
             for k in range(4)], axis=2)                  # (B, T, 4, H)

        def step(carry, xg_t):                            # xg_t: (B, 4, H)
            h, c = carry
            z = [xg_t[:, k] + mm(h, whh[k]) for k in range(4)]
            i, f = jax.nn.sigmoid(z[0]), jax.nn.sigmoid(z[1])
            g, o = jnp.tanh(z[2]), jax.nn.sigmoid(z[3])
            c2 = f * c + i * g
            hn = o * jnp.tanh(c2)
            return (hn, c2), hn

        init = (jnp.zeros((Bs, H), f32), jnp.zeros((Bs, H), f32))
        _, hs = lax.scan(step, init, jnp.swapaxes(xg, 0, 1))
        return jnp.swapaxes(hs, 0, 1)                     # (B, T, H)

    hf = lstm_dir(h2, params["wih_f"], params["whh_f"], params["bg_f"])
    hb = lstm_dir(h2[:, ::-1, :], params["wih_b"], params["whh_b"],
                  params["bg_b"])[:, ::-1, :]

    sc, sh = params["bn_scale"], params["bn_shift"]
    yf = hf * sc[:H] + sh[:H]
    yb = hb * sc[H:] + sh[H:]
    wo = params["wout"]
    Bs, T, _ = yf.shape
    return (mm(yf.reshape(Bs * T, H), wo[:H]).reshape(Bs, T, -1)
            + mm(yb.reshape(Bs * T, H), wo[H:]).reshape(Bs, T, -1)
            + params["bout"])


# --------------------------------------------------------------------------- #
if __name__ == "__main__":
    B, T = 2, 8
    CLF_HIDDEN = 32          # clf_hidden_size (small stand-in for BERT hidden)
    NUM_LABELS = 3

    key = jax.random.PRNGKey(0)
    kx, kp = jax.random.split(key)
    x = jax.random.normal(kx, (B, T, CLF_HIDDEN), dtype=jnp.float32)
    params = init_params(kp, CLF_HIDDEN, NUM_LABELS)

    out = conv_bilstm_forward(x, params)
    out = jax.block_until_ready(out)
    assert out.shape == (B, T, NUM_LABELS)

    ref = reference_forward(x, params)
    if not jnp.allclose(out, ref, atol=5e-3, rtol=5e-3):
        raise AssertionError(
            f"kernel/reference mismatch, max abs err = {jnp.max(jnp.abs(out - ref))}")

    print("KERNEL_OK")
</pallas_src>

<mosaic_0001>
module attributes {stable_mosaic.version = 11 : i64} {
  func.func @conv_bilstm_kernel(%arg0: i32, %arg1: memref<1x8x16x32xbf16, #tpu.memory_space<vmem>>, %arg2: memref<3x32x128xbf16, #tpu.memory_space<vmem>>, %arg3: memref<1x128xf32, #tpu.memory_space<vmem>>, %arg4: memref<3x128x128xbf16, #tpu.memory_space<vmem>>, %arg5: memref<1x128xf32, #tpu.memory_space<vmem>>, %arg6: memref<128x512xbf16, #tpu.memory_space<vmem>>, %arg7: memref<128x512xbf16, #tpu.memory_space<vmem>>, %arg8: memref<1x512xf32, #tpu.memory_space<vmem>>, %arg9: memref<128x512xbf16, #tpu.memory_space<vmem>>, %arg10: memref<128x512xbf16, #tpu.memory_space<vmem>>, %arg11: memref<1x512xf32, #tpu.memory_space<vmem>>, %arg12: memref<128x128xbf16, #tpu.memory_space<vmem>>, %arg13: memref<128x128xbf16, #tpu.memory_space<vmem>>, %arg14: memref<1x128xf32, #tpu.memory_space<vmem>>, %arg15: memref<1x8x16x128xf32, #tpu.memory_space<vmem>>, %arg16: memref<160x32xbf16, #tpu.memory_space<vmem>>, %arg17: memref<160x128xbf16, #tpu.memory_space<vmem>>, %arg18: memref<128x512xbf16, #tpu.memory_space<vmem>>, %arg19: memref<128x512xbf16, #tpu.memory_space<vmem>>, %arg20: memref<128x128xbf16, #tpu.memory_space<vmem>>, %arg21: memref<128x128xbf16, #tpu.memory_space<vmem>>) attributes {dimension_semantics = [#tpu.dimension_semantics<parallel>], iteration_bounds = array<i64: 1>, scalar_prefetch = 0 : i64, scratch_operands = 6 : i64, tpu.core_type = #tpu.core_type<tc>, window_params = [{transform_indices = @transform_0, window_bounds = array<i64: 1, 8, 16, 32>}, {pipeline_mode = #tpu.pipeline_mode<synchronous>, transform_indices = @transform_1, window_bounds = array<i64: 3, 32, 128>}, {pipeline_mode = #tpu.pipeline_mode<synchronous>, transform_indices = @transform_2, window_bounds = array<i64: 1, 128>}, {pipeline_mode = #tpu.pipeline_mode<synchronous>, transform_indices = @transform_3, window_bounds = array<i64: 3, 128, 128>}, {pipeline_mode = #tpu.pipeline_mode<synchronous>, transform_indices = @transform_4, window_bounds = array<i64: 1, 128>}, {pipeline_mode = #tpu.pipeline_mode<synchronous>, transform_indices = @transform_5, window_bounds = array<i64: 128, 512>}, {pipeline_mode = #tpu.pipeline_mode<synchronous>, transform_indices = @transform_6, window_bounds = array<i64: 128, 512>}, {pipeline_mode = #tpu.pipeline_mode<synchronous>, transform_indices = @transform_7, window_bounds = array<i64: 1, 512>}, {pipeline_mode = #tpu.pipeline_mode<synchronous>, transform_indices = @transform_8, window_bounds = array<i64: 128, 512>}, {pipeline_mode = #tpu.pipeline_mode<synchronous>, transform_indices = @transform_9, window_bounds = array<i64: 128, 512>}, {pipeline_mode = #tpu.pipeline_mode<synchronous>, transform_indices = @transform_10, window_bounds = array<i64: 1, 512>}, {pipeline_mode = #tpu.pipeline_mode<synchronous>, transform_indices = @transform_11, window_bounds = array<i64: 128, 128>}, {pipeline_mode = #tpu.pipeline_mode<synchronous>, transform_indices = @transform_12, window_bounds = array<i64: 128, 128>}, {pipeline_mode = #tpu.pipeline_mode<synchronous>, transform_indices = @transform_13, window_bounds = array<i64: 1, 128>}, {transform_indices = @transform_14, window_bounds = array<i64: 1, 8, 16, 128>}]} {
    %cst = arith.constant 0.000000e+00 : bf16
    %0 = vector.broadcast %cst : bf16 to vector<16x32xbf16>
    %c0 = arith.constant 0 : index
    %c0_0 = arith.constant 0 : index
    %1 = vector.load %arg16[%c0, %c0_0] : memref<160x32xbf16, #tpu.memory_space<vmem>>, vector<16x32xbf16>
    tpu.vector_store %arg16[%c0, %c0_0], %0 {strides = array<i32>} : memref<160x32xbf16, #tpu.memory_space<vmem>>, vector<16x32xbf16>,
    %cst_1 = arith.constant 0.000000e+00 : bf16
    %2 = vector.broadcast %cst_1 : bf16 to vector<16x32xbf16>
    %c144 = arith.constant 144 : index
    %c0_2 = arith.constant 0 : index
    %3 = vector.load %arg16[%c144, %c0_2] : memref<160x32xbf16, #tpu.memory_space<vmem>>, vector<16x32xbf16>
    tpu.vector_store %arg16[%c144, %c0_2], %2 {strides = array<i32>} : memref<160x32xbf16, #tpu.memory_space<vmem>>, vector<16x32xbf16>,
    %c0_3 = arith.constant 0 : index
    %c0_4 = arith.constant 0 : index
    %c0_5 = arith.constant 0 : index
    %c0_6 = arith.constant 0 : index
    %4 = vector.load %arg1[%c0_3, %c0_4, %c0_5, %c0_6] : memref<1x8x16x32xbf16, #tpu.memory_space<vmem>>, vector<1x8x16x32xbf16>
    %5 = vector.shape_cast %4 : vector<1x8x16x32xbf16> to vector<128x32xbf16>
    %c16 = arith.constant 16 : index
    %c0_7 = arith.constant 0 : index
    %6 = vector.load %arg16[%c16, %c0_7] : memref<160x32xbf16, #tpu.memory_space<vmem>>, vector<128x32xbf16>
    tpu.vector_store %arg16[%c16, %c0_7], %5 {strides = array<i32>} : memref<160x32xbf16, #tpu.memory_space<vmem>>, vector<128x32xbf16>,
    %c0_8 = arith.constant 0 : index
    %c0_9 = arith.constant 0 : index
    %7 = vector.load %arg16[%c0_8, %c0_9] : memref<160x32xbf16, #tpu.memory_space<vmem>>, vector<128x32xbf16>
    %c16_10 = arith.constant 16 : index
    %c0_11 = arith.constant 0 : index
    %8 = vector.load %arg16[%c16_10, %c0_11] : memref<160x32xbf16, #tpu.memory_space<vmem>>, vector<128x32xbf16>
    %c32 = arith.constant 32 : index
    %c0_12 = arith.constant 0 : index
    %9 = vector.load %arg16[%c32, %c0_12] : memref<160x32xbf16, #tpu.memory_space<vmem>>, vector<128x32xbf16>
    %c0_13 = arith.constant 0 : index
    %c0_14 = arith.constant 0 : index
    %c0_15 = arith.constant 0 : index
    %10 = vector.load %arg2[%c0_13, %c0_14, %c0_15] : memref<3x32x128xbf16, #tpu.memory_space<vmem>>, vector<1x32x128xbf16>
    %11 = vector.shape_cast %10 : vector<1x32x128xbf16> to vector<32x128xbf16>
    %cst_16 = arith.constant dense<0.000000e+00> : vector<128x128xf32>
    %12 = tpu.matmul %7, %11, %cst_16 {dimension_numbers = #tpu.dot_dimension_numbers<[1], [0], [0], [1], [0, 0, 1, 1], [], []>} : vector<128x32xbf16>, vector<32x128xbf16>, vector<128x128xf32> -> vector<128x128xf32>
    %c1 = arith.constant 1 : index
    %c0_17 = arith.constant 0 : index
    %c0_18 = arith.constant 0 : index
    %13 = vector.load %arg2[%c1, %c0_17, %c0_18] : memref<3x32x128xbf16, #tpu.memory_space<vmem>>, vector<1x32x128xbf16>
    %14 = vector.shape_cast %13 : vector<1x32x128xbf16> to vector<32x128xbf16>
    %cst_19 = arith.constant dense<0.000000e+00> : vector<128x128xf32>
    %15 = tpu.matmul %8, %14, %cst_19 {dimension_numbers = #tpu.dot_dimension_numbers<[1], [0], [0], [1], [0, 0, 1, 1], [], []>} : vector<128x32xbf16>, vector<32x128xbf16>, vector<128x128xf32> -> vector<128x128xf32>
    %16 = arith.addf %12, %15 : vector<128x128xf32>
    %c2 = arith.constant 2 : index
    %c0_20 = arith.constant 0 : index
    %c0_21 = arith.constant 0 : index
    %17 = vector.load %arg2[%c2, %c0_20, %c0_21] : memref<3x32x128xbf16, #tpu.memory_space<vmem>>, vector<1x32x128xbf16>
    %18 = vector.shape_cast %17 : vector<1x32x128xbf16> to vector<32x128xbf16>
    %cst_22 = arith.constant dense<0.000000e+00> : vector<128x128xf32>
    %19 = tpu.matmul %9, %18, %cst_22 {dimension_numbers = #tpu.dot_dimension_numbers<[1], [0], [0], [1], [0, 0, 1, 1], [], []>} : vector<128x32xbf16>, vector<32x128xbf16>, vector<128x128xf32> -> vector<128x128xf32>
    %20 = arith.addf %16, %19 : vector<128x128xf32>
    %c0_23 = arith.constant 0 : index
    %c0_24 = arith.constant 0 : index
    %21 = vector.load %arg3[%c0_23, %c0_24] : memref<1x128xf32, #tpu.memory_space<vmem>>, vector<1x128xf32>
    %22 = vector.broadcast %21 : vector<1x128xf32> to vector<128x128xf32>
    %23 = arith.addf %20, %22 : vector<128x128xf32>
    %cst_25 = arith.constant 0.000000e+00 : f32
    %24 = vector.broadcast %cst_25 : f32 to vector<128x128xf32>
    %25 = arith.maximumf %23, %24 : vector<128x128xf32>
    %cst_26 = arith.constant 0.000000e+00 : bf16
    %26 = vector.broadcast %cst_26 : bf16 to vector<16x128xbf16>
    %c0_27 = arith.constant 0 : index
    %c0_28 = arith.constant 0 : index
    %27 = vector.load %arg17[%c0_27, %c0_28] : memref<160x128xbf16, #tpu.memory_space<vmem>>, vector<16x128xbf16>
    tpu.vector_store %arg17[%c0_27, %c0_28], %26 {strides = array<i32>} : memref<160x128xbf16, #tpu.memory_space<vmem>>, vector<16x128xbf16>,
    %cst_29 = arith.constant 0.000000e+00 : bf16
    %28 = vector.broadcast %cst_29 : bf16 to vector<16x128xbf16>
    %c144_30 = arith.constant 144 : index
    %c0_31 = arith.constant 0 : index
    %29 = vector.load %arg17[%c144_30, %c0_31] : memref<160x128xbf16, #tpu.memory_space<vmem>>, vector<16x128xbf16>
    tpu.vector_store %arg17[%c144_30, %c0_31], %28 {strides = array<i32>} : memref<160x128xbf16, #tpu.memory_space<vmem>>, vector<16x128xbf16>,
    %30 = arith.truncf %25 : vector<128x128xf32> to vector<128x128xbf16>
    %c16_32 = arith.constant 16 : index
    %c0_33 = arith.constant 0 : index
    %31 = vector.load %arg17[%c16_32, %c0_33] : memref<160x128xbf16, #tpu.memory_space<vmem>>, vector<128x128xbf16>
    tpu.vector_store %arg17[%c16_32, %c0_33], %30 {strides = array<i32>} : memref<160x128xbf16, #tpu.memory_space<vmem>>, vector<128x128xbf16>,
    %c0_34 = arith.constant 0 : index
    %c0_35 = arith.constant 0 : index
    %32 = vector.load %arg17[%c0_34, %c0_35] : memref<160x128xbf16, #tpu.memory_space<vmem>>, vector<128x128xbf16>
    %c16_36 = arith.constant 16 : index
    %c0_37 = arith.constant 0 : index
    %33 = vector.load %arg17[%c16_36, %c0_37] : memref<160x128xbf16, #tpu.memory_space<vmem>>, vector<128x128xbf16>
    %c32_38 = arith.constant 32 : index
    %c0_39 = arith.constant 0 : index
    %34 = vector.load %arg17[%c32_38, %c0_39] : memref<160x128xbf16, #tpu.memory_space<vmem>>, vector<128x128xbf16>
    %c0_40 = arith.constant 0 : index
    %c0_41 = arith.constant 0 : index
    %c0_42 = arith.constant 0 : index
    %35 = vector.load %arg4[%c0_40, %c0_41, %c0_42] : memref<3x128x128xbf16, #tpu.memory_space<vmem>>, vector<1x128x128xbf16>
    %36 = vector.shape_cast %35 : vector<1x128x128xbf16> to vector<128x128xbf16>
    %cst_43 = arith.constant dense<0.000000e+00> : vector<128x128xf32>
    %37 = tpu.matmul %32, %36, %cst_43 {dimension_numbers = #tpu.dot_dimension_numbers<[1], [0], [0], [1], [0, 0, 1, 1], [], []>} : vector<128x128xbf16>, vector<128x128xbf16>, vector<128x128xf32> -> vector<128x128xf32>
    %c1_44 = arith.constant 1 : index
    %c0_45 = arith.constant 0 : index
    %c0_46 = arith.constant 0 : index
    %38 = vector.load %arg4[%c1_44, %c0_45, %c0_46] : memref<3x128x128xbf16, #tpu.memory_space<vmem>>, vector<1x128x128xbf16>
    %39 = vector.shape_cast %38 : vector<1x128x128xbf16> to vector<128x128xbf16>
    %cst_47 = arith.constant dense<0.000000e+00> : vector<128x128xf32>
    %40 = tpu.matmul %33, %39, %cst_47 {dimension_numbers = #tpu.dot_dimension_numbers<[1], [0], [0], [1], [0, 0, 1, 1], [], []>} : vector<128x128xbf16>, vector<128x128xbf16>, vector<128x128xf32> -> vector<128x128xf32>
    %41 = arith.addf %37, %40 : vector<128x128xf32>
    %c2_48 = arith.constant 2 : index
    %c0_49 = arith.constant 0 : index
    %c0_50 = arith.constant 0 : index
    %42 = vector.load %arg4[%c2_48, %c0_49, %c0_50] : memref<3x128x128xbf16, #tpu.memory_space<vmem>>, vector<1x128x128xbf16>
    %43 = vector.shape_cast %42 : vector<1x128x128xbf16> to vector<128x128xbf16>
    %cst_51 = arith.constant dense<0.000000e+00> : vector<128x128xf32>
    %44 = tpu.matmul %34, %43, %cst_51 {dimension_numbers = #tpu.dot_dimension_numbers<[1], [0], [0], [1], [0, 0, 1, 1], [], []>} : vector<128x128xbf16>, vector<128x128xbf16>, vector<128x128xf32> -> vector<128x128xf32>
    %45 = arith.addf %41, %44 : vector<128x128xf32>
    %c0_52 = arith.constant 0 : index
    %c0_53 = arith.constant 0 : index
    %46 = vector.load %arg5[%c0_52, %c0_53] : memref<1x128xf32, #tpu.memory_space<vmem>>, vector<1x128xf32>
    %47 = vector.broadcast %46 : vector<1x128xf32> to vector<128x128xf32>
    %48 = arith.addf %45, %47 : vector<128x128xf32>
    %cst_54 = arith.constant 0.000000e+00 : f32
    %49 = vector.broadcast %cst_54 : f32 to vector<128x128xf32>
    %50 = arith.maximumf %48, %49 : vector<128x128xf32>
    %51 = arith.truncf %50 : vector<128x128xf32> to vector<128x128xbf16>
    %c0_55 = arith.constant 0 : index
    %c0_56 = arith.constant 0 : index
    %52 = vector.load %arg6[%c0_55, %c0_56] : memref<128x512xbf16, #tpu.memory_space<vmem>>, vector<128x512xbf16>
    %cst_57 = arith.constant dense<0.000000e+00> : vector<128x512xf32>
    %53 = tpu.matmul %51, %52, %cst_57 {dimension_numbers = #tpu.dot_dimension_numbers<[1], [0], [0], [1], [0, 0, 1, 1], [], []>} : vector<128x128xbf16>, vector<128x512xbf16>, vector<128x512xf32> -> vector<128x512xf32>
    %c0_58 = arith.constant 0 : index
    %c0_59 = arith.constant 0 : index
    %54 = vector.load %arg8[%c0_58, %c0_59] : memref<1x512xf32, #tpu.memory_space<vmem>>, vector<1x512xf32>
    %55 = vector.broadcast %54 : vector<1x512xf32> to vector<128x512xf32>
    %56 = arith.addf %53, %55 : vector<128x512xf32>
    %57 = arith.truncf %56 : vector<128x512xf32> to vector<128x512xbf16>
    %c0_60 = arith.constant 0 : index
    %c0_61 = arith.constant 0 : index
    %58 = vector.load %arg18[%c0_60, %c0_61] : memref<128x512xbf16, #tpu.memory_space<vmem>>, vector<128x512xbf16>
    tpu.vector_store %arg18[%c0_60, %c0_61], %57 {strides = array<i32>} : memref<128x512xbf16, #tpu.memory_space<vmem>>, vector<128x512xbf16>,
    %c0_62 = arith.constant 0 : index
    %c0_63 = arith.constant 0 : index
    %59 = vector.load %arg9[%c0_62, %c0_63] : memref<128x512xbf16, #tpu.memory_space<vmem>>, vector<128x512xbf16>
    %cst_64 = arith.constant dense<0.000000e+00> : vector<128x512xf32>
    %60 = tpu.matmul %51, %59, %cst_64 {dimension_numbers = #tpu.dot_dimension_numbers<[1], [0], [0], [1], [0, 0, 1, 1], [], []>} : vector<128x128xbf16>, vector<128x512xbf16>, vector<128x512xf32> -> vector<128x512xf32>
    %c0_65 = arith.constant 0 : index
    %c0_66 = arith.constant 0 : index
    %61 = vector.load %arg11[%c0_65, %c0_66] : memref<1x512xf32, #tpu.memory_space<vmem>>, vector<1x512xf32>
    %62 = vector.broadcast %61 : vector<1x512xf32> to vector<128x512xf32>
    %63 = arith.addf %60, %62 : vector<128x512xf32>
    %64 = arith.truncf %63 : vector<128x512xf32> to vector<128x512xbf16>
    %c0_67 = arith.constant 0 : index
    %c0_68 = arith.constant 0 : index
    %65 = vector.load %arg19[%c0_67, %c0_68] : memref<128x512xbf16, #tpu.memory_space<vmem>>, vector<128x512xbf16>
    tpu.vector_store %arg19[%c0_67, %c0_68], %64 {strides = array<i32>} : memref<128x512xbf16, #tpu.memory_space<vmem>>, vector<128x512xbf16>,
    %c0_69 = arith.constant 0 : index
    %c0_70 = arith.constant 0 : index
    %66 = vector.load %arg7[%c0_69, %c0_70] : memref<128x512xbf16, #tpu.memory_space<vmem>>, vector<128x512xbf16>
    %c0_71 = arith.constant 0 : index
    %c0_72 = arith.constant 0 : index
    %67 = vector.load %arg10[%c0_71, %c0_72] : memref<128x512xbf16, #tpu.memory_space<vmem>>, vector<128x512xbf16>
    %cst_73 = arith.constant 0.000000e+00 : f32
    %68 = vector.broadcast %cst_73 : f32 to vector<16x128xf32>
    %c0_74 = arith.constant 0 : index
    %c0_75 = arith.constant 0 : index
    %69 = vector.load %arg18[%c0_74, %c0_75] : memref<128x512xbf16, #tpu.memory_space<vmem>>, vector<16x512xbf16>
    %70 = arith.extf %69 : vector<16x512xbf16> to vector<16x512xf32>
    %71 = arith.truncf %68 : vector<16x128xf32> to vector<16x128xbf16>
    %cst_76 = arith.constant dense<0.000000e+00> : vector<16x512xf32>
    %72 = tpu.matmul %71, %66, %cst_76 {dimension_numbers = #tpu.dot_dimension_numbers<[1], [0], [0], [1], [0, 0, 1, 1], [], []>} : vector<16x128xbf16>, vector<128x512xbf16>, vector<16x512xf32> -> vector<16x512xf32>
    %73 = arith.addf %70, %72 : vector<16x512xf32>
    %74 = vector.extract_strided_slice %73 {offsets = [0, 0], sizes = [16, 384], strides = [1, 1]} : vector<16x512xf32> to vector<16x384xf32>
    %75 = arith.negf %74 : vector<16x384xf32>
    %76 = math.exp %75 : vector<16x384xf32>
    %cst_77 = arith.constant 1.000000e+00 : f32
    %77 = vector.broadcast %cst_77 : f32 to vector<16x384xf32>
    %78 = arith.addf %77, %76 : vector<16x384xf32>
    %79 = arith.divf %77, %78 : vector<16x384xf32>
    %80 = vector.extract_strided_slice %79 {offsets = [0, 0], sizes = [16, 128], strides = [1, 1]} : vector<16x384xf32> to vector<16x128xf32>
    %81 = vector.extract_strided_slice %79 {offsets = [0, 128], sizes = [16, 128], strides = [1, 1]} : vector<16x384xf32> to vector<16x128xf32>
    %82 = vector.extract_strided_slice %79 {offsets = [0, 256], sizes = [16, 128], strides = [1, 1]} : vector<16x384xf32> to vector<16x128xf32>
    %83 = vector.extract_strided_slice %73 {offsets = [0, 384], sizes = [16, 128], strides = [1, 1]} : vector<16x512xf32> to vector<16x128xf32>
    %84 = math.tanh %83 : vector<16x128xf32>
    %85 = arith.mulf %81, %68 : vector<16x128xf32>
    %86 = arith.mulf %80, %84 : vector<16x128xf32>
    %87 = arith.addf %85, %86 : vector<16x128xf32>
    %88 = math.tanh %87 : vector<16x128xf32>
    %89 = arith.mulf %82, %88 : vector<16x128xf32>
    %90 = arith.truncf %89 : vector<16x128xf32> to vector<16x128xbf16>
    %c0_78 = arith.constant 0 : index
    %c0_79 = arith.constant 0 : index
    %91 = vector.load %arg20[%c0_78, %c0_79] : memref<128x128xbf16, #tpu.memory_space<vmem>>, vector<16x128xbf16>
    tpu.vector_store %arg20[%c0_78, %c0_79], %90 {strides = array<i32>} : memref<128x128xbf16, #tpu.memory_space<vmem>>, vector<16x128xbf16>,
    %c112 = arith.constant 112 : index
    %c0_80 = arith.constant 0 : index
    %92 = vector.load %arg19[%c112, %c0_80] : memref<128x512xbf16, #tpu.memory_space<vmem>>, vector<16x512xbf16>
    %93 = arith.extf %92 : vector<16x512xbf16> to vector<16x512xf32>
    %94 = arith.truncf %68 : vector<16x128xf32> to vector<16x128xbf16>
    %cst_81 = arith.constant dense<0.000000e+00> : vector<16x512xf32>
    %95 = tpu.matmul %94, %67, %cst_81 {dimension_numbers = #tpu.dot_dimension_numbers<[1], [0], [0], [1], [0, 0, 1, 1], [], []>} : vector<16x128xbf16>, vector<128x512xbf16>, vector<16x512xf32> -> vector<16x512xf32>
    %96 = arith.addf %93, %95 : vector<16x512xf32>
    %97 = vector.extract_strided_slice %96 {offsets = [0, 0], sizes = [16, 384], strides = [1, 1]} : vector<16x512xf32> to vector<16x384xf32>
    %98 = arith.negf %97 : vector<16x384xf32>
    %99 = math.exp %98 : vector<16x384xf32>
    %cst_82 = arith.constant 1.000000e+00 : f32
    %100 = vector.broadcast %cst_82 : f32 to vector<16x384xf32>
    %101 = arith.addf %100, %99 : vector<16x384xf32>
    %102 = arith.divf %100, %101 : vector<16x384xf32>
    %103 = vector.extract_strided_slice %102 {offsets = [0, 0], sizes = [16, 128], strides = [1, 1]} : vector<16x384xf32> to vector<16x128xf32>
    %104 = vector.extract_strided_slice %102 {offsets = [0, 128], sizes = [16, 128], strides = [1, 1]} : vector<16x384xf32> to vector<16x128xf32>
    %105 = vector.extract_strided_slice %102 {offsets = [0, 256], sizes = [16, 128], strides = [1, 1]} : vector<16x384xf32> to vector<16x128xf32>
    %106 = vector.extract_strided_slice %96 {offsets = [0, 384], sizes = [16, 128], strides = [1, 1]} : vector<16x512xf32> to vector<16x128xf32>
    %107 = math.tanh %106 : vector<16x128xf32>
    %108 = arith.mulf %104, %68 : vector<16x128xf32>
    %109 = arith.mulf %103, %107 : vector<16x128xf32>
    %110 = arith.addf %108, %109 : vector<16x128xf32>
    %111 = math.tanh %110 : vector<16x128xf32>
    %112 = arith.mulf %105, %111 : vector<16x128xf32>
    %113 = arith.truncf %112 : vector<16x128xf32> to vector<16x128xbf16>
    %c112_83 = arith.constant 112 : index
    %c0_84 = arith.constant 0 : index
    %114 = vector.load %arg21[%c112_83, %c0_84] : memref<128x128xbf16, #tpu.memory_space<vmem>>, vector<16x128xbf16>
    tpu.vector_store %arg21[%c112_83, %c0_84], %113 {strides = array<i32>} : memref<128x128xbf16, #tpu.memory_space<vmem>>, vector<16x128xbf16>,
    %c16_85 = arith.constant 16 : index
    %c0_86 = arith.constant 0 : index
    %115 = vector.load %arg18[%c16_85, %c0_86] : memref<128x512xbf16, #tpu.memory_space<vmem>>, vector<16x512xbf16>
    %116 = arith.extf %115 : vector<16x512xbf16> to vector<16x512xf32>
    %117 = arith.truncf %89 : vector<16x128xf32> to vector<16x128xbf16>
    %cst_87 = arith.constant dense<0.000000e+00> : vector<16x512xf32>
    %118 = tpu.matmul %117, %66, %cst_87 {dimension_numbers = #tpu.dot_dimension_numbers<[1], [0], [0], [1], [0, 0, 1, 1], [], []>} : vector<16x128xbf16>, vector<128x512xbf16>, vector<16x512xf32> -> vector<16x512xf32>
    %119 = arith.addf %116, %118 : vector<16x512xf32>
    %120 = vector.extract_strided_slice %119 {offsets = [0, 0], sizes = [16, 384], strides = [1, 1]} : vector<16x512xf32> to vector<16x384xf32>
    %121 = arith.negf %120 : vector<16x384xf32>
    %122 = math.exp %121 : vector<16x384xf32>
    %cst_88 = arith.constant 1.000000e+00 : f32
    %123 = vector.broadcast %cst_88 : f32 to vector<16x384xf32>
    %124 = arith.addf %123, %122 : vector<16x384xf32>
    %125 = arith.divf %123, %124 : vector<16x384xf32>
    %126 = vector.extract_strided_slice %125 {offsets = [0, 0], sizes = [16, 128], strides = [1, 1]} : vector<16x384xf32> to vector<16x128xf32>
    %127 = vector.extract_strided_slice %125 {offsets = [0, 128], sizes = [16, 128], strides = [1, 1]} : vector<16x384xf32> to vector<16x128xf32>
    %128 = vector.extract_strided_slice %125 {offsets = [0, 256], sizes = [16, 128], strides = [1, 1]} : vector<16x384xf32> to vector<16x128xf32>
    %129 = vector.extract_strided_slice %119 {offsets = [0, 384], sizes = [16, 128], strides = [1, 1]} : vector<16x512xf32> to vector<16x128xf32>
    %130 = math.tanh %129 : vector<16x128xf32>
    %131 = arith.mulf %127, %87 : vector<16x128xf32>
    %132 = arith.mulf %126, %130 : vector<16x128xf32>
    %133 = arith.addf %131, %132 : vector<16x128xf32>
    %134 = math.tanh %133 : vector<16x128xf32>
    %135 = arith.mulf %128, %134 : vector<16x128xf32>
    %136 = arith.truncf %135 : vector<16x128xf32> to vector<16x128xbf16>
    %c16_89 = arith.constant 16 : index
    %c0_90 = arith.constant 0 : index
    %137 = vector.load %arg20[%c16_89, %c0_90] : memref<128x128xbf16, #tpu.memory_space<vmem>>, vector<16x128xbf16>
    tpu.vector_store %arg20[%c16_89, %c0_90], %136 {strides = array<i32>} : memref<128x128xbf16, #tpu.memory_space<vmem>>, vector<16x128xbf16>,
    %c96 = arith.constant 96 : index
    %c0_91 = arith.constant 0 : index
    %138 = vector.load %arg19[%c96, %c0_91] : memref<128x512xbf16, #tpu.memory_space<vmem>>, vector<16x512xbf16>
    %139 = arith.extf %138 : vector<16x512xbf16> to vector<16x512xf32>
    %140 = arith.truncf %112 : vector<16x128xf32> to vector<16x128xbf16>
    %cst_92 = arith.constant dense<0.000000e+00> : vector<16x512xf32>
    %141 = tpu.matmul %140, %67, %cst_92 {dimension_numbers = #tpu.dot_dimension_numbers<[1], [0], [0], [1], [0, 0, 1, 1], [], []>} : vector<16x128xbf16>, vector<128x512xbf16>, vector<16x512xf32> -> vector<16x512xf32>
    %142 = arith.addf %139, %141 : vector<16x512xf32>
    %143 = vector.extract_strided_slice %142 {offsets = [0, 0], sizes = [16, 384], strides = [1, 1]} : vector<16x512xf32> to vector<16x384xf32>
    %144 = arith.negf %143 : vector<16x384xf32>
    %145 = math.exp %144 : vector<16x384xf32>
    %cst_93 = arith.constant 1.000000e+00 : f32
    %146 = vector.broadcast %cst_93 : f32 to vector<16x384xf32>
    %147 = arith.addf %146, %145 : vector<16x384xf32>
    %148 = arith.divf %146, %147 : vector<16x384xf32>
    %149 = vector.extract_strided_slice %148 {offsets = [0, 0], sizes = [16, 128], strides = [1, 1]} : vector<16x384xf32> to vector<16x128xf32>
    %150 = vector.extract_strided_slice %148 {offsets = [0, 128], sizes = [16, 128], strides = [1, 1]} : vector<16x384xf32> to vector<16x128xf32>
    %151 = vector.extract_strided_slice %148 {offsets = [0, 256], sizes = [16, 128], strides = [1, 1]} : vector<16x384xf32> to vector<16x128xf32>
    %152 = vector.extract_strided_slice %142 {offsets = [0, 384], sizes = [16, 128], strides = [1, 1]} : vector<16x512xf32> to vector<16x128xf32>
    %153 = math.tanh %152 : vector<16x128xf32>
    %154 = arith.mulf %150, %110 : vector<16x128xf32>
    %155 = arith.mulf %149, %153 : vector<16x128xf32>
    %156 = arith.addf %154, %155 : vector<16x128xf32>
    %157 = math.tanh %156 : vector<16x128xf32>
    %158 = arith.mulf %151, %157 : vector<16x128xf32>
    %159 = arith.truncf %158 : vector<16x128xf32> to vector<16x128xbf16>
    %c96_94 = arith.constant 96 : index
    %c0_95 = arith.constant 0 : index
    %160 = vector.load %arg21[%c96_94, %c0_95] : memref<128x128xbf16, #tpu.memory_space<vmem>>, vector<16x128xbf16>
    tpu.vector_store %arg21[%c96_94, %c0_95], %159 {strides = array<i32>} : memref<128x128xbf16, #tpu.memory_space<vmem>>, vector<16x128xbf16>,
    %c32_96 = arith.constant 32 : index
    %c0_97 = arith.constant 0 : index
    %161 = vector.load %arg18[%c32_96, %c0_97] : memref<128x512xbf16, #tpu.memory_space<vmem>>, vector<16x512xbf16>
    %162 = arith.extf %161 : vector<16x512xbf16> to vector<16x512xf32>
    %163 = arith.truncf %135 : vector<16x128xf32> to vector<16x128xbf16>
    %cst_98 = arith.constant dense<0.000000e+00> : vector<16x512xf32>
    %164 = tpu.matmul %163, %66, %cst_98 {dimension_numbers = #tpu.dot_dimension_numbers<[1], [0], [0], [1], [0, 0, 1, 1], [], []>} : vector<16x128xbf16>, vector<128x512xbf16>, vector<16x512xf32> -> vector<16x512xf32>
    %165 = arith.addf %162, %164 : vector<16x512xf32>
    %166 = vector.extract_strided_slice %165 {offsets = [0, 0], sizes = [16, 384], strides = [1, 1]} : vector<16x512xf32> to vector<16x384xf32>
    %167 = arith.negf %166 : vector<16x384xf32>
    %168 = math.exp %167 : vector<16x384xf32>
    %cst_99 = arith.constant 1.000000e+00 : f32
    %169 = vector.broadcast %cst_99 : f32 to vector<16x384xf32>
    %170 = arith.addf %169, %168 : vector<16x384xf32>
    %171 = arith.divf %169, %170 : vector<16x384xf32>
    %172 = vector.extract_strided_slice %171 {offsets = [0, 0], sizes = [16, 128], strides = [1, 1]} : vector<16x384xf32> to vector<16x128xf32>
    %173 = vector.extract_strided_slice %171 {offsets = [0, 128], sizes = [16, 128], strides = [1, 1]} : vector<16x384xf32> to vector<16x128xf32>
    %174 = vector.extract_strided_slice %171 {offsets = [0, 256], sizes = [16, 128], strides = [1, 1]} : vector<16x384xf32> to vector<16x128xf32>
    %175 = vector.extract_strided_slice %165 {offsets = [0, 384], sizes = [16, 128], strides = [1, 1]} : vector<16x512xf32> to vector<16x128xf32>
    %176 = math.tanh %175 : vector<16x128xf32>
    %177 = arith.mulf %173, %133 : vector<16x128xf32>
    %178 = arith.mulf %172, %176 : vector<16x128xf32>
    %179 = arith.addf %177, %178 : vector<16x128xf32>
    %180 = math.tanh %179 : vector<16x128xf32>
    %181 = arith.mulf %174, %180 : vector<16x128xf32>
    %182 = arith.truncf %181 : vector<16x128xf32> to vector<16x128xbf16>
    %c32_100 = arith.constant 32 : index
    %c0_101 = arith.constant 0 : index
    %183 = vector.load %arg20[%c32_100, %c0_101] : memref<128x128xbf16, #tpu.memory_space<vmem>>, vector<16x128xbf16>
    tpu.vector_store %arg20[%c32_100, %c0_101], %182 {strides = array<i32>} : memref<128x128xbf16, #tpu.memory_space<vmem>>, vector<16x128xbf16>,
    %c80 = arith.constant 80 : index
    %c0_102 = arith.constant 0 : index
    %184 = vector.load %arg19[%c80, %c0_102] : memref<128x512xbf16, #tpu.memory_space<vmem>>, vector<16x512xbf16>
    %185 = arith.extf %184 : vector<16x512xbf16> to vector<16x512xf32>
    %186 = arith.truncf %158 : vector<16x128xf32> to vector<16x128xbf16>
    %cst_103 = arith.constant dense<0.000000e+00> : vector<16x512xf32>
    %187 = tpu.matmul %186, %67, %cst_103 {dimension_numbers = #tpu.dot_dimension_numbers<[1], [0], [0], [1], [0, 0, 1, 1], [], []>} : vector<16x128xbf16>, vector<128x512xbf16>, vector<16x512xf32> -> vector<16x512xf32>
    %188 = arith.addf %185, %187 : vector<16x512xf32>
    %189 = vector.extract_strided_slice %188 {offsets = [0, 0], sizes = [16, 384], strides = [1, 1]} : vector<16x512xf32> to vector<16x384xf32>
    %190 = arith.negf %189 : vector<16x384xf32>
    %191 = math.exp %190 : vector<16x384xf32>
    %cst_104 = arith.constant 1.000000e+00 : f32
    %192 = vector.broadcast %cst_104 : f32 to vector<16x384xf32>
    %193 = arith.addf %192, %191 : vector<16x384xf32>
    %194 = arith.divf %192, %193 : vector<16x384xf32>
    %195 = vector.extract_strided_slice %194 {offsets = [0, 0], sizes = [16, 128], strides = [1, 1]} : vector<16x384xf32> to vector<16x128xf32>
    %196 = vector.extract_strided_slice %194 {offsets = [0, 128], sizes = [16, 128], strides = [1, 1]} : vector<16x384xf32> to vector<16x128xf32>
    %197 = vector.extract_strided_slice %194 {offsets = [0, 256], sizes = [16, 128], strides = [1, 1]} : vector<16x384xf32> to vector<16x128xf32>
    %198 = vector.extract_strided_slice %188 {offsets = [0, 384], sizes = [16, 128], strides = [1, 1]} : vector<16x512xf32> to vector<16x128xf32>
    %199 = math.tanh %198 : vector<16x128xf32>
    %200 = arith.mulf %196, %156 : vector<16x128xf32>
    %201 = arith.mulf %195, %199 : vector<16x128xf32>
    %202 = arith.addf %200, %201 : vector<16x128xf32>
    %203 = math.tanh %202 : vector<16x128xf32>
    %204 = arith.mulf %197, %203 : vector<16x128xf32>
    %205 = arith.truncf %204 : vector<16x128xf32> to vector<16x128xbf16>
    %c80_105 = arith.constant 80 : index
    %c0_106 = arith.constant 0 : index
    %206 = vector.load %arg21[%c80_105, %c0_106] : memref<128x128xbf16, #tpu.memory_space<vmem>>, vector<16x128xbf16>
    tpu.vector_store %arg21[%c80_105, %c0_106], %205 {strides = array<i32>} : memref<128x128xbf16, #tpu.memory_space<vmem>>, vector<16x128xbf16>,
    %c48 = arith.constant 48 : index
    %c0_107 = arith.constant 0 : index
    %207 = vector.load %arg18[%c48, %c0_107] : memref<128x512xbf16, #tpu.memory_space<vmem>>, vector<16x512xbf16>
    %208 = arith.extf %207 : vector<16x512xbf16> to vector<16x512xf32>
    %209 = arith.truncf %181 : vector<16x128xf32> to vector<16x128xbf16>
    %cst_108 = arith.constant dense<0.000000e+00> : vector<16x512xf32>
    %210 = tpu.matmul %209, %66, %cst_108 {dimension_numbers = #tpu.dot_dimension_numbers<[1], [0], [0], [1], [0, 0, 1, 1], [], []>} : vector<16x128xbf16>, vector<128x512xbf16>, vector<16x512xf32> -> vector<16x512xf32>
    %211 = arith.addf %208, %210 : vector<16x512xf32>
    %212 = vector.extract_strided_slice %211 {offsets = [0, 0], sizes = [16, 384], strides = [1, 1]} : vector<16x512xf32> to vector<16x384xf32>
    %213 = arith.negf %212 : vector<16x384xf32>
    %214 = math.exp %213 : vector<16x384xf32>
    %cst_109 = arith.constant 1.000000e+00 : f32
    %215 = vector.broadcast %cst_109 : f32 to vector<16x384xf32>
    %216 = arith.addf %215, %214 : vector<16x384xf32>
    %217 = arith.divf %215, %216 : vector<16x384xf32>
    %218 = vector.extract_strided_slice %217 {offsets = [0, 0], sizes = [16, 128], strides = [1, 1]} : vector<16x384xf32> to vector<16x128xf32>
    %219 = vector.extract_strided_slice %217 {offsets = [0, 128], sizes = [16, 128], strides = [1, 1]} : vector<16x384xf32> to vector<16x128xf32>
    %220 = vector.extract_strided_slice %217 {offsets = [0, 256], sizes = [16, 128], strides = [1, 1]} : vector<16x384xf32> to vector<16x128xf32>
    %221 = vector.extract_strided_slice %211 {offsets = [0, 384], sizes = [16, 128], strides = [1, 1]} : vector<16x512xf32> to vector<16x128xf32>
    %222 = math.tanh %221 : vector<16x128xf32>
    %223 = arith.mulf %219, %179 : vector<16x128xf32>
    %224 = arith.mulf %218, %222 : vector<16x128xf32>
    %225 = arith.addf %223, %224 : vector<16x128xf32>
    %226 = math.tanh %225 : vector<16x128xf32>
    %227 = arith.mulf %220, %226 : vector<16x128xf32>
    %228 = arith.truncf %227 : vector<16x128xf32> to vector<16x128xbf16>
    %c48_110 = arith.constant 48 : index
    %c0_111 = arith.constant 0 : index
    %229 = vector.load %arg20[%c48_110, %c0_111] : memref<128x128xbf16, #tpu.memory_space<vmem>>, vector<16x128xbf16>
    tpu.vector_store %arg20[%c48_110, %c0_111], %228 {strides = array<i32>} : memref<128x128xbf16, #tpu.memory_space<vmem>>, vector<16x128xbf16>,
    %c64 = arith.constant 64 : index
    %c0_112 = arith.constant 0 : index
    %230 = vector.load %arg19[%c64, %c0_112] : memref<128x512xbf16, #tpu.memory_space<vmem>>, vector<16x512xbf16>
    %231 = arith.extf %230 : vector<16x512xbf16> to vector<16x512xf32>
    %232 = arith.truncf %204 : vector<16x128xf32> to vector<16x128xbf16>
    %cst_113 = arith.constant dense<0.000000e+00> : vector<16x512xf32>
    %233 = tpu.matmul %232, %67, %cst_113 {dimension_numbers = #tpu.dot_dimension_numbers<[1], [0], [0], [1], [0, 0, 1, 1], [], []>} : vector<16x128xbf16>, vector<128x512xbf16>, vector<16x512xf32> -> vector<16x512xf32>
    %234 = arith.addf %231, %233 : vector<16x512xf32>
    %235 = vector.extract_strided_slice %234 {offsets = [0, 0], sizes = [16, 384], strides = [1, 1]} : vector<16x512xf32> to vector<16x384xf32>
    %236 = arith.negf %235 : vector<16x384xf32>
    %237 = math.exp %236 : vector<16x384xf32>
    %cst_114 = arith.constant 1.000000e+00 : f32
    %238 = vector.broadcast %cst_114 : f32 to vector<16x384xf32>
    %239 = arith.addf %238, %237 : vector<16x384xf32>
    %240 = arith.divf %238, %239 : vector<16x384xf32>
    %241 = vector.extract_strided_slice %240 {offsets = [0, 0], sizes = [16, 128], strides = [1, 1]} : vector<16x384xf32> to vector<16x128xf32>
    %242 = vector.extract_strided_slice %240 {offsets = [0, 128], sizes = [16, 128], strides = [1, 1]} : vector<16x384xf32> to vector<16x128xf32>
    %243 = vector.extract_strided_slice %240 {offsets = [0, 256], sizes = [16, 128], strides = [1, 1]} : vector<16x384xf32> to vector<16x128xf32>
    %244 = vector.extract_strided_slice %234 {offsets = [0, 384], sizes = [16, 128], strides = [1, 1]} : vector<16x512xf32> to vector<16x128xf32>
    %245 = math.tanh %244 : vector<16x128xf32>
    %246 = arith.mulf %242, %202 : vector<16x128xf32>
    %247 = arith.mulf %241, %245 : vector<16x128xf32>
    %248 = arith.addf %246, %247 : vector<16x128xf32>
    %249 = math.tanh %248 : vector<16x128xf32>
    %250 = arith.mulf %243, %249 : vector<16x128xf32>
    %251 = arith.truncf %250 : vector<16x128xf32> to vector<16x128xbf16>
    %c64_115 = arith.constant 64 : index
    %c0_116 = arith.constant 0 : index
    %252 = vector.load %arg21[%c64_115, %c0_116] : memref<128x128xbf16, #tpu.memory_space<vmem>>, vector<16x128xbf16>
    tpu.vector_store %arg21[%c64_115, %c0_116], %251 {strides = array<i32>} : memref<128x128xbf16, #tpu.memory_space<vmem>>, vector<16x128xbf16>,
    %c64_117 = arith.constant 64 : index
    %c0_118 = arith.constant 0 : index
    %253 = vector.load %arg18[%c64_117, %c0_118] : memref<128x512xbf16, #tpu.memory_space<vmem>>, vector<16x512xbf16>
    %254 = arith.extf %253 : vector<16x512xbf16> to vector<16x512xf32>
    %255 = arith.truncf %227 : vector<16x128xf32> to vector<16x128xbf16>
    %cst_119 = arith.constant dense<0.000000e+00> : vector<16x512xf32>
    %256 = tpu.matmul %255, %66, %cst_119 {dimension_numbers = #tpu.dot_dimension_numbers<[1], [0], [0], [1], [0, 0, 1, 1], [], []>} : vector<16x128xbf16>, vector<128x512xbf16>, vector<16x512xf32> -> vector<16x512xf32>
    %257 = arith.addf %254, %256 : vector<16x512xf32>
    %258 = vector.extract_strided_slice %257 {offsets = [0, 0], sizes = [16, 384], strides = [1, 1]} : vector<16x512xf32> to vector<16x384xf32>
    %259 = arith.negf %258 : vector<16x384xf32>
    %260 = math.exp %259 : vector<16x384xf32>
    %cst_120 = arith.constant 1.000000e+00 : f32
    %261 = vector.broadcast %cst_120 : f32 to vector<16x384xf32>
    %262 = arith.addf %261, %260 : vector<16x384xf32>
    %263 = arith.divf %261, %262 : vector<16x384xf32>
    %264 = vector.extract_strided_slice %263 {offsets = [0, 0], sizes = [16, 128], strides = [1, 1]} : vector<16x384xf32> to vector<16x128xf32>
    %265 = vector.extract_strided_slice %263 {offsets = [0, 128], sizes = [16, 128], strides = [1, 1]} : vector<16x384xf32> to vector<16x128xf32>
    %266 = vector.extract_strided_slice %263 {offsets = [0, 256], sizes = [16, 128], strides = [1, 1]} : vector<16x384xf32> to vector<16x128xf32>
    %267 = vector.extract_strided_slice %257 {offsets = [0, 384], sizes = [16, 128], strides = [1, 1]} : vector<16x512xf32> to vector<16x128xf32>
    %268 = math.tanh %267 : vector<16x128xf32>
    %269 = arith.mulf %265, %225 : vector<16x128xf32>
    %270 = arith.mulf %264, %268 : vector<16x128xf32>
    %271 = arith.addf %269, %270 : vector<16x128xf32>
    %272 = math.tanh %271 : vector<16x128xf32>
    %273 = arith.mulf %266, %272 : vector<16x128xf32>
    %274 = arith.truncf %273 : vector<16x128xf32> to vector<16x128xbf16>
    %c64_121 = arith.constant 64 : index
    %c0_122 = arith.constant 0 : index
    %275 = vector.load %arg20[%c64_121, %c0_122] : memref<128x128xbf16, #tpu.memory_space<vmem>>, vector<16x128xbf16>
    tpu.vector_store %arg20[%c64_121, %c0_122], %274 {strides = array<i32>} : memref<128x128xbf16, #tpu.memory_space<vmem>>, vector<16x128xbf16>,
    %c48_123 = arith.constant 48 : index
    %c0_124 = arith.constant 0 : index
    %276 = vector.load %arg19[%c48_123, %c0_124] : memref<128x512xbf16, #tpu.memory_space<vmem>>, vector<16x512xbf16>
    %277 = arith.extf %276 : vector<16x512xbf16> to vector<16x512xf32>
    %278 = arith.truncf %250 : vector<16x128xf32> to vector<16x128xbf16>
    %cst_125 = arith.constant dense<0.000000e+00> : vector<16x512xf32>
    %279 = tpu.matmul %278, %67, %cst_125 {dimension_numbers = #tpu.dot_dimension_numbers<[1], [0], [0], [1], [0, 0, 1, 1], [], []>} : vector<16x128xbf16>, vector<128x512xbf16>, vector<16x512xf32> -> vector<16x512xf32>
    %280 = arith.addf %277, %279 : vector<16x512xf32>
    %281 = vector.extract_strided_slice %280 {offsets = [0, 0], sizes = [16, 384], strides = [1, 1]} : vector<16x512xf32> to vector<16x384xf32>
    %282 = arith.negf %281 : vector<16x384xf32>
    %283 = math.exp %282 : vector<16x384xf32>
    %cst_126 = arith.constant 1.000000e+00 : f32
    %284 = vector.broadcast %cst_126 : f32 to vector<16x384xf32>
    %285 = arith.addf %284, %283 : vector<16x384xf32>
    %286 = arith.divf %284, %285 : vector<16x384xf32>
    %287 = vector.extract_strided_slice %286 {offsets = [0, 0], sizes = [16, 128], strides = [1, 1]} : vector<16x384xf32> to vector<16x128xf32>
    %288 = vector.extract_strided_slice %286 {offsets = [0, 128], sizes = [16, 128], strides = [1, 1]} : vector<16x384xf32> to vector<16x128xf32>
    %289 = vector.extract_strided_slice %286 {offsets = [0, 256], sizes = [16, 128], strides = [1, 1]} : vector<16x384xf32> to vector<16x128xf32>
    %290 = vector.extract_strided_slice %280 {offsets = [0, 384], sizes = [16, 128], strides = [1, 1]} : vector<16x512xf32> to vector<16x128xf32>
    %291 = math.tanh %290 : vector<16x128xf32>
    %292 = arith.mulf %288, %248 : vector<16x128xf32>
    %293 = arith.mulf %287, %291 : vector<16x128xf32>
    %294 = arith.addf %292, %293 : vector<16x128xf32>
    %295 = math.tanh %294 : vector<16x128xf32>
    %296 = arith.mulf %289, %295 : vector<16x128xf32>
    %297 = arith.truncf %296 : vector<16x128xf32> to vector<16x128xbf16>
    %c48_127 = arith.constant 48 : index
    %c0_128 = arith.constant 0 : index
    %298 = vector.load %arg21[%c48_127, %c0_128] : memref<128x128xbf16, #tpu.memory_space<vmem>>, vector<16x128xbf16>
    tpu.vector_store %arg21[%c48_127, %c0_128], %297 {strides = array<i32>} : memref<128x128xbf16, #tpu.memory_space<vmem>>, vector<16x128xbf16>,
    %c80_129 = arith.constant 80 : index
    %c0_130 = arith.constant 0 : index
    %299 = vector.load %arg18[%c80_129, %c0_130] : memref<128x512xbf16, #tpu.memory_space<vmem>>, vector<16x512xbf16>
    %300 = arith.extf %299 : vector<16x512xbf16> to vector<16x512xf32>
    %301 = arith.truncf %273 : vector<16x128xf32> to vector<16x128xbf16>
    %cst_131 = arith.constant dense<0.000000e+00> : vector<16x512xf32>
    %302 = tpu.matmul %301, %66, %cst_131 {dimension_numbers = #tpu.dot_dimension_numbers<[1], [0], [0], [1], [0, 0, 1, 1], [], []>} : vector<16x128xbf16>, vector<128x512xbf16>, vector<16x512xf32> -> vector<16x512xf32>
    %303 = arith.addf %300, %302 : vector<16x512xf32>
    %304 = vector.extract_strided_slice %303 {offsets = [0, 0], sizes = [16, 384], strides = [1, 1]} : vector<16x512xf32> to vector<16x384xf32>
    %305 = arith.negf %304 : vector<16x384xf32>
    %306 = math.exp %305 : vector<16x384xf32>
    %cst_132 = arith.constant 1.000000e+00 : f32
    %307 = vector.broadcast %cst_132 : f32 to vector<16x384xf32>
    %308 = arith.addf %307, %306 : vector<16x384xf32>
    %309 = arith.divf %307, %308 : vector<16x384xf32>
    %310 = vector.extract_strided_slice %309 {offsets = [0, 0], sizes = [16, 128], strides = [1, 1]} : vector<16x384xf32> to vector<16x128xf32>
    %311 = vector.extract_strided_slice %309 {offsets = [0, 128], sizes = [16, 128], strides = [1, 1]} : vector<16x384xf32> to vector<16x128xf32>
    %312 = vector.extract_strided_slice %309 {offsets = [0, 256], sizes = [16, 128], strides = [1, 1]} : vector<16x384xf32> to vector<16x128xf32>
    %313 = vector.extract_strided_slice %303 {offsets = [0, 384], sizes = [16, 128], strides = [1, 1]} : vector<16x512xf32> to vector<16x128xf32>
    %314 = math.tanh %313 : vector<16x128xf32>
    %315 = arith.mulf %311, %271 : vector<16x128xf32>
    %316 = arith.mulf %310, %314 : vector<16x128xf32>
    %317 = arith.addf %315, %316 : vector<16x128xf32>
    %318 = math.tanh %317 : vector<16x128xf32>
    %319 = arith.mulf %312, %318 : vector<16x128xf32>
    %320 = arith.truncf %319 : vector<16x128xf32> to vector<16x128xbf16>
    %c80_133 = arith.constant 80 : index
    %c0_134 = arith.constant 0 : index
    %321 = vector.load %arg20[%c80_133, %c0_134] : memref<128x128xbf16, #tpu.memory_space<vmem>>, vector<16x128xbf16>
    tpu.vector_store %arg20[%c80_133, %c0_134], %320 {strides = array<i32>} : memref<128x128xbf16, #tpu.memory_space<vmem>>, vector<16x128xbf16>,
    %c32_135 = arith.constant 32 : index
    %c0_136 = arith.constant 0 : index
    %322 = vector.load %arg19[%c32_135, %c0_136] : memref<128x512xbf16, #tpu.memory_space<vmem>>, vector<16x512xbf16>
    %323 = arith.extf %322 : vector<16x512xbf16> to vector<16x512xf32>
    %324 = arith.truncf %296 : vector<16x128xf32> to vector<16x128xbf16>
    %cst_137 = arith.constant dense<0.000000e+00> : vector<16x512xf32>
    %325 = tpu.matmul %324, %67, %cst_137 {dimension_numbers = #tpu.dot_dimension_numbers<[1], [0], [0], [1], [0, 0, 1, 1], [], []>} : vector<16x128xbf16>, vector<128x512xbf16>, vector<16x512xf32> -> vector<16x512xf32>
    %326 = arith.addf %323, %325 : vector<16x512xf32>
    %327 = vector.extract_strided_slice %326 {offsets = [0, 0], sizes = [16, 384], strides = [1, 1]} : vector<16x512xf32> to vector<16x384xf32>
    %328 = arith.negf %327 : vector<16x384xf32>
    %329 = math.exp %328 : vector<16x384xf32>
    %cst_138 = arith.constant 1.000000e+00 : f32
    %330 = vector.broadcast %cst_138 : f32 to vector<16x384xf32>
    %331 = arith.addf %330, %329 : vector<16x384xf32>
    %332 = arith.divf %330, %331 : vector<16x384xf32>
    %333 = vector.extract_strided_slice %332 {offsets = [0, 0], sizes = [16, 128], strides = [1, 1]} : vector<16x384xf32> to vector<16x128xf32>
    %334 = vector.extract_strided_slice %332 {offsets = [0, 128], sizes = [16, 128], strides = [1, 1]} : vector<16x384xf32> to vector<16x128xf32>
    %335 = vector.extract_strided_slice %332 {offsets = [0, 256], sizes = [16, 128], strides = [1, 1]} : vector<16x384xf32> to vector<16x128xf32>
    %336 = vector.extract_strided_slice %326 {offsets = [0, 384], sizes = [16, 128], strides = [1, 1]} : vector<16x512xf32> to vector<16x128xf32>
    %337 = math.tanh %336 : vector<16x128xf32>
    %338 = arith.mulf %334, %294 : vector<16x128xf32>
    %339 = arith.mulf %333, %337 : vector<16x128xf32>
    %340 = arith.addf %338, %339 : vector<16x128xf32>
    %341 = math.tanh %340 : vector<16x128xf32>
    %342 = arith.mulf %335, %341 : vector<16x128xf32>
    %343 = arith.truncf %342 : vector<16x128xf32> to vector<16x128xbf16>
    %c32_139 = arith.constant 32 : index
    %c0_140 = arith.constant 0 : index
    %344 = vector.load %arg21[%c32_139, %c0_140] : memref<128x128xbf16, #tpu.memory_space<vmem>>, vector<16x128xbf16>
    tpu.vector_store %arg21[%c32_139, %c0_140], %343 {strides = array<i32>} : memref<128x128xbf16, #tpu.memory_space<vmem>>, vector<16x128xbf16>,
    %c96_141 = arith.constant 96 : index
    %c0_142 = arith.constant 0 : index
    %345 = vector.load %arg18[%c96_141, %c0_142] : memref<128x512xbf16, #tpu.memory_space<vmem>>, vector<16x512xbf16>
    %346 = arith.extf %345 : vector<16x512xbf16> to vector<16x512xf32>
    %347 = arith.truncf %319 : vector<16x128xf32> to vector<16x128xbf16>
    %cst_143 = arith.constant dense<0.000000e+00> : vector<16x512xf32>
    %348 = tpu.matmul %347, %66, %cst_143 {dimension_numbers = #tpu.dot_dimension_numbers<[1], [0], [0], [1], [0, 0, 1, 1], [], []>} : vector<16x128xbf16>, vector<128x512xbf16>, vector<16x512xf32> -> vector<16x512xf32>
    %349 = arith.addf %346, %348 : vector<16x512xf32>
    %350 = vector.extract_strided_slice %349 {offsets = [0, 0], sizes = [16, 384], strides = [1, 1]} : vector<16x512xf32> to vector<16x384xf32>
    %351 = arith.negf %350 : vector<16x384xf32>
    %352 = math.exp %351 : vector<16x384xf32>
    %cst_144 = arith.constant 1.000000e+00 : f32
    %353 = vector.broadcast %cst_144 : f32 to vector<16x384xf32>
    %354 = arith.addf %353, %352 : vector<16x384xf32>
    %355 = arith.divf %353, %354 : vector<16x384xf32>
    %356 = vector.extract_strided_slice %355 {offsets = [0, 0], sizes = [16, 128], strides = [1, 1]} : vector<16x384xf32> to vector<16x128xf32>
    %357 = vector.extract_strided_slice %355 {offsets = [0, 128], sizes = [16, 128], strides = [1, 1]} : vector<16x384xf32> to vector<16x128xf32>
    %358 = vector.extract_strided_slice %355 {offsets = [0, 256], sizes = [16, 128], strides = [1, 1]} : vector<16x384xf32> to vector<16x128xf32>
    %359 = vector.extract_strided_slice %349 {offsets = [0, 384], sizes = [16, 128], strides = [1, 1]} : vector<16x512xf32> to vector<16x128xf32>
    %360 = math.tanh %359 : vector<16x128xf32>
    %361 = arith.mulf %357, %317 : vector<16x128xf32>
    %362 = arith.mulf %356, %360 : vector<16x128xf32>
    %363 = arith.addf %361, %362 : vector<16x128xf32>
    %364 = math.tanh %363 : vector<16x128xf32>
    %365 = arith.mulf %358, %364 : vector<16x128xf32>
    %366 = arith.truncf %365 : vector<16x128xf32> to vector<16x128xbf16>
    %c96_145 = arith.constant 96 : index
    %c0_146 = arith.constant 0 : index
    %367 = vector.load %arg20[%c96_145, %c0_146] : memref<128x128xbf16, #tpu.memory_space<vmem>>, vector<16x128xbf16>
    tpu.vector_store %arg20[%c96_145, %c0_146], %366 {strides = array<i32>} : memref<128x128xbf16, #tpu.memory_space<vmem>>, vector<16x128xbf16>,
    %c16_147 = arith.constant 16 : index
    %c0_148 = arith.constant 0 : index
    %368 = vector.load %arg19[%c16_147, %c0_148] : memref<128x512xbf16, #tpu.memory_space<vmem>>, vector<16x512xbf16>
    %369 = arith.extf %368 : vector<16x512xbf16> to vector<16x512xf32>
    %370 = arith.truncf %342 : vector<16x128xf32> to vector<16x128xbf16>
    %cst_149 = arith.constant dense<0.000000e+00> : vector<16x512xf32>
    %371 = tpu.matmul %370, %67, %cst_149 {dimension_numbers = #tpu.dot_dimension_numbers<[1], [0], [0], [1], [0, 0, 1, 1], [], []>} : vector<16x128xbf16>, vector<128x512xbf16>, vector<16x512xf32> -> vector<16x512xf32>
    %372 = arith.addf %369, %371 : vector<16x512xf32>
    %373 = vector.extract_strided_slice %372 {offsets = [0, 0], sizes = [16, 384], strides = [1, 1]} : vector<16x512xf32> to vector<16x384xf32>
    %374 = arith.negf %373 : vector<16x384xf32>
    %375 = math.exp %374 : vector<16x384xf32>
    %cst_150 = arith.constant 1.000000e+00 : f32
    %376 = vector.broadcast %cst_150 : f32 to vector<16x384xf32>
    %377 = arith.addf %376, %375 : vector<16x384xf32>
    %378 = arith.divf %376, %377 : vector<16x384xf32>
    %379 = vector.extract_strided_slice %378 {offsets = [0, 0], sizes = [16, 128], strides = [1, 1]} : vector<16x384xf32> to vector<16x128xf32>
    %380 = vector.extract_strided_slice %378 {offsets = [0, 128], sizes = [16, 128], strides = [1, 1]} : vector<16x384xf32> to vector<16x128xf32>
    %381 = vector.extract_strided_slice %378 {offsets = [0, 256], sizes = [16, 128], strides = [1, 1]} : vector<16x384xf32> to vector<16x128xf32>
    %382 = vector.extract_strided_slice %372 {offsets = [0, 384], sizes = [16, 128], strides = [1, 1]} : vector<16x512xf32> to vector<16x128xf32>
    %383 = math.tanh %382 : vector<16x128xf32>
    %384 = arith.mulf %380, %340 : vector<16x128xf32>
    %385 = arith.mulf %379, %383 : vector<16x128xf32>
    %386 = arith.addf %384, %385 : vector<16x128xf32>
    %387 = math.tanh %386 : vector<16x128xf32>
    %388 = arith.mulf %381, %387 : vector<16x128xf32>
    %389 = arith.truncf %388 : vector<16x128xf32> to vector<16x128xbf16>
    %c16_151 = arith.constant 16 : index
    %c0_152 = arith.constant 0 : index
    %390 = vector.load %arg21[%c16_151, %c0_152] : memref<128x128xbf16, #tpu.memory_space<vmem>>, vector<16x128xbf16>
    tpu.vector_store %arg21[%c16_151, %c0_152], %389 {strides = array<i32>} : memref<128x128xbf16, #tpu.memory_space<vmem>>, vector<16x128xbf16>,
    %c112_153 = arith.constant 112 : index
    %c0_154 = arith.constant 0 : index
    %391 = vector.load %arg18[%c112_153, %c0_154] : memref<128x512xbf16, #tpu.memory_space<vmem>>, vector<16x512xbf16>
    %392 = arith.extf %391 : vector<16x512xbf16> to vector<16x512xf32>
    %393 = arith.truncf %365 : vector<16x128xf32> to vector<16x128xbf16>
    %cst_155 = arith.constant dense<0.000000e+00> : vector<16x512xf32>
    %394 = tpu.matmul %393, %66, %cst_155 {dimension_numbers = #tpu.dot_dimension_numbers<[1], [0], [0], [1], [0, 0, 1, 1], [], []>} : vector<16x128xbf16>, vector<128x512xbf16>, vector<16x512xf32> -> vector<16x512xf32>
    %395 = arith.addf %392, %394 : vector<16x512xf32>
    %396 = vector.extract_strided_slice %395 {offsets = [0, 0], sizes = [16, 384], strides = [1, 1]} : vector<16x512xf32> to vector<16x384xf32>
    %397 = arith.negf %396 : vector<16x384xf32>
    %398 = math.exp %397 : vector<16x384xf32>
    %cst_156 = arith.constant 1.000000e+00 : f32
    %399 = vector.broadcast %cst_156 : f32 to vector<16x384xf32>
    %400 = arith.addf %399, %398 : vector<16x384xf32>
    %401 = arith.divf %399, %400 : vector<16x384xf32>
    %402 = vector.extract_strided_slice %401 {offsets = [0, 0], sizes = [16, 128], strides = [1, 1]} : vector<16x384xf32> to vector<16x128xf32>
    %403 = vector.extract_strided_slice %401 {offsets = [0, 128], sizes = [16, 128], strides = [1, 1]} : vector<16x384xf32> to vector<16x128xf32>
    %404 = vector.extract_strided_slice %401 {offsets = [0, 256], sizes = [16, 128], strides = [1, 1]} : vector<16x384xf32> to vector<16x128xf32>
    %405 = vector.extract_strided_slice %395 {offsets = [0, 384], sizes = [16, 128], strides = [1, 1]} : vector<16x512xf32> to vector<16x128xf32>
    %406 = math.tanh %405 : vector<16x128xf32>
    %407 = arith.mulf %403, %363 : vector<16x128xf32>
    %408 = arith.mulf %402, %406 : vector<16x128xf32>
    %409 = arith.addf %407, %408 : vector<16x128xf32>
    %410 = math.tanh %409 : vector<16x128xf32>
    %411 = arith.mulf %404, %410 : vector<16x128xf32>
    %412 = arith.truncf %411 : vector<16x128xf32> to vector<16x128xbf16>
    %c112_157 = arith.constant 112 : index
    %c0_158 = arith.constant 0 : index
    %413 = vector.load %arg20[%c112_157, %c0_158] : memref<128x128xbf16, #tpu.memory_space<vmem>>, vector<16x128xbf16>
    tpu.vector_store %arg20[%c112_157, %c0_158], %412 {strides = array<i32>} : memref<128x128xbf16, #tpu.memory_space<vmem>>, vector<16x128xbf16>,
    %c0_159 = arith.constant 0 : index
    %c0_160 = arith.constant 0 : index
    %414 = vector.load %arg19[%c0_159, %c0_160] : memref<128x512xbf16, #tpu.memory_space<vmem>>, vector<16x512xbf16>
    %415 = arith.extf %414 : vector<16x512xbf16> to vector<16x512xf32>
    %416 = arith.truncf %388 : vector<16x128xf32> to vector<16x128xbf16>
    %cst_161 = arith.constant dense<0.000000e+00> : vector<16x512xf32>
    %417 = tpu.matmul %416, %67, %cst_161 {dimension_numbers = #tpu.dot_dimension_numbers<[1], [0], [0], [1], [0, 0, 1, 1], [], []>} : vector<16x128xbf16>, vector<128x512xbf16>, vector<16x512xf32> -> vector<16x512xf32>
    %418 = arith.addf %415, %417 : vector<16x512xf32>
    %419 = vector.extract_strided_slice %418 {offsets = [0, 0], sizes = [16, 384], strides = [1, 1]} : vector<16x512xf32> to vector<16x384xf32>
    %420 = arith.negf %419 : vector<16x384xf32>
    %421 = math.exp %420 : vector<16x384xf32>
    %cst_162 = arith.constant 1.000000e+00 : f32
    %422 = vector.broadcast %cst_162 : f32 to vector<16x384xf32>
    %423 = arith.addf %422, %421 : vector<16x384xf32>
    %424 = arith.divf %422, %423 : vector<16x384xf32>
    %425 = vector.extract_strided_slice %424 {offsets = [0, 0], sizes = [16, 128], strides = [1, 1]} : vector<16x384xf32> to vector<16x128xf32>
    %426 = vector.extract_strided_slice %424 {offsets = [0, 128], sizes = [16, 128], strides = [1, 1]} : vector<16x384xf32> to vector<16x128xf32>
    %427 = vector.extract_strided_slice %424 {offsets = [0, 256], sizes = [16, 128], strides = [1, 1]} : vector<16x384xf32> to vector<16x128xf32>
    %428 = vector.extract_strided_slice %418 {offsets = [0, 384], sizes = [16, 128], strides = [1, 1]} : vector<16x512xf32> to vector<16x128xf32>
    %429 = math.tanh %428 : vector<16x128xf32>
    %430 = arith.mulf %426, %386 : vector<16x128xf32>
    %431 = arith.mulf %425, %429 : vector<16x128xf32>
    %432 = arith.addf %430, %431 : vector<16x128xf32>
    %433 = math.tanh %432 : vector<16x128xf32>
    %434 = arith.mulf %427, %433 : vector<16x128xf32>
    %435 = arith.truncf %434 : vector<16x128xf32> to vector<16x128xbf16>
    %c0_163 = arith.constant 0 : index
    %c0_164 = arith.constant 0 : index
    %436 = vector.load %arg21[%c0_163, %c0_164] : memref<128x128xbf16, #tpu.memory_space<vmem>>, vector<16x128xbf16>
    tpu.vector_store %arg21[%c0_163, %c0_164], %435 {strides = array<i32>} : memref<128x128xbf16, #tpu.memory_space<vmem>>, vector<16x128xbf16>,
    %c0_165 = arith.constant 0 : index
    %c0_166 = arith.constant 0 : index
    %437 = vector.load %arg20[%c0_165, %c0_166] : memref<128x128xbf16, #tpu.memory_space<vmem>>, vector<128x128xbf16>
    %c0_167 = arith.constant 0 : index
    %c0_168 = arith.constant 0 : index
    %438 = vector.load %arg12[%c0_167, %c0_168] : memref<128x128xbf16, #tpu.memory_space<vmem>>, vector<128x128xbf16>
    %cst_169 = arith.constant dense<0.000000e+00> : vector<128x128xf32>
    %439 = tpu.matmul %437, %438, %cst_169 {dimension_numbers = #tpu.dot_dimension_numbers<[1], [0], [0], [1], [0, 0, 1, 1], [], []>} : vector<128x128xbf16>, vector<128x128xbf16>, vector<128x128xf32> -> vector<128x128xf32>
    %c0_170 = arith.constant 0 : index
    %c0_171 = arith.constant 0 : index
    %440 = vector.load %arg21[%c0_170, %c0_171] : memref<128x128xbf16, #tpu.memory_space<vmem>>, vector<128x128xbf16>
    %c0_172 = arith.constant 0 : index
    %c0_173 = arith.constant 0 : index
    %441 = vector.load %arg13[%c0_172, %c0_173] : memref<128x128xbf16, #tpu.memory_space<vmem>>, vector<128x128xbf16>
    %cst_174 = arith.constant dense<0.000000e+00> : vector<128x128xf32>
    %442 = tpu.matmul %440, %441, %cst_174 {dimension_numbers = #tpu.dot_dimension_numbers<[1], [0], [0], [1], [0, 0, 1, 1], [], []>} : vector<128x128xbf16>, vector<128x128xbf16>, vector<128x128xf32> -> vector<128x128xf32>
    %443 = arith.addf %439, %442 : vector<128x128xf32>
    %c0_175 = arith.constant 0 : index
    %c0_176 = arith.constant 0 : index
    %444 = vector.load %arg14[%c0_175, %c0_176] : memref<1x128xf32, #tpu.memory_space<vmem>>, vector<1x128xf32>
    %445 = vector.broadcast %444 : vector<1x128xf32> to vector<128x128xf32>
    %446 = arith.addf %443, %445 : vector<128x128xf32>
    %447 = vector.shape_cast %446 : vector<128x128xf32> to vector<1x8x16x128xf32>
    %c0_177 = arith.constant 0 : index
    %c0_178 = arith.constant 0 : index
    %c0_179 = arith.constant 0 : index
    %c0_180 = arith.constant 0 : index
    %448 = vector.load %arg15[%c0_177, %c0_178, %c0_179, %c0_180] : memref<1x8x16x128xf32, #tpu.memory_space<vmem>>, vector<1x8x16x128xf32>
    tpu.vector_store %arg15[%c0_177, %c0_178, %c0_179, %c0_180], %447 {strides = array<i32>} : memref<1x8x16x128xf32, #tpu.memory_space<vmem>>, vector<1x8x16x128xf32>,
    return
  }
  func.func @transform_0(%arg0: i32) -> (i32, i32, i32, i32) {
    %c0_i32 = arith.constant 0 : i32
    %c0_i32_0 = arith.constant 0 : i32
    %c0_i32_1 = arith.constant 0 : i32
    %c0_i32_2 = arith.constant 0 : i32
    return %arg0, %c0_i32, %c0_i32_0, %c0_i32_1 : i32, i32, i32, i32
  }
  func.func @transform_1(%arg0: i32) -> (i32, i32, i32) {
    %c0_i32 = arith.constant 0 : i32
    %c0_i32_0 = arith.constant 0 : i32
    %c0_i32_1 = arith.constant 0 : i32
    %c0_i32_2 = arith.constant 0 : i32
    return %c0_i32, %c0_i32_0, %c0_i32_1 : i32, i32, i32
  }
  func.func @transform_2(%arg0: i32) -> (i32, i32) {
    %c0_i32 = arith.constant 0 : i32
    %c0_i32_0 = arith.constant 0 : i32
    %c0_i32_1 = arith.constant 0 : i32
    return %c0_i32, %c0_i32_0 : i32, i32
  }
  func.func @transform_3(%arg0: i32) -> (i32, i32, i32) {
    %c0_i32 = arith.constant 0 : i32
    %c0_i32_0 = arith.constant 0 : i32
    %c0_i32_1 = arith.constant 0 : i32
    %c0_i32_2 = arith.constant 0 : i32
    return %c0_i32, %c0_i32_0, %c0_i32_1 : i32, i32, i32
  }
  func.func @transform_4(%arg0: i32) -> (i32, i32) {
    %c0_i32 = arith.constant 0 : i32
    %c0_i32_0 = arith.constant 0 : i32
    %c0_i32_1 = arith.constant 0 : i32
    return %c0_i32, %c0_i32_0 : i32, i32
  }
  func.func @transform_5(%arg0: i32) -> (i32, i32) {
    %c0_i32 = arith.constant 0 : i32
    %c0_i32_0 = arith.constant 0 : i32
    %c0_i32_1 = arith.constant 0 : i32
    return %c0_i32, %c0_i32_0 : i32, i32
  }
  func.func @transform_6(%arg0: i32) -> (i32, i32) {
    %c0_i32 = arith.constant 0 : i32
    %c0_i32_0 = arith.constant 0 : i32
    %c0_i32_1 = arith.constant 0 : i32
    return %c0_i32, %c0_i32_0 : i32, i32
  }
  func.func @transform_7(%arg0: i32) -> (i32, i32) {
    %c0_i32 = arith.constant 0 : i32
    %c0_i32_0 = arith.constant 0 : i32
    %c0_i32_1 = arith.constant 0 : i32
    return %c0_i32, %c0_i32_0 : i32, i32
  }
  func.func @transform_8(%arg0: i32) -> (i32, i32) {
    %c0_i32 = arith.constant 0 : i32
    %c0_i32_0 = arith.constant 0 : i32
    %c0_i32_1 = arith.constant 0 : i32
    return %c0_i32, %c0_i32_0 : i32, i32
  }
  func.func @transform_9(%arg0: i32) -> (i32, i32) {
    %c0_i32 = arith.constant 0 : i32
    %c0_i32_0 = arith.constant 0 : i32
    %c0_i32_1 = arith.constant 0 : i32
    return %c0_i32, %c0_i32_0 : i32, i32
  }
  func.func @transform_10(%arg0: i32) -> (i32, i32) {
    %c0_i32 = arith.constant 0 : i32
    %c0_i32_0 = arith.constant 0 : i32
    %c0_i32_1 = arith.constant 0 : i32
    return %c0_i32, %c0_i32_0 : i32, i32
  }
  func.func @transform_11(%arg0: i32) -> (i32, i32) {
    %c0_i32 = arith.constant 0 : i32
    %c0_i32_0 = arith.constant 0 : i32
    %c0_i32_1 = arith.constant 0 : i32
    return %c0_i32, %c0_i32_0 : i32, i32
  }
  func.func @transform_12(%arg0: i32) -> (i32, i32) {
    %c0_i32 = arith.constant 0 : i32
    %c0_i32_0 = arith.constant 0 : i32
    %c0_i32_1 = arith.constant 0 : i32
    return %c0_i32, %c0_i32_0 : i32, i32
  }
  func.func @transform_13(%arg0: i32) -> (i32, i32) {
    %c0_i32 = arith.constant 0 : i32
    %c0_i32_0 = arith.constant 0 : i32
    %c0_i32_1 = arith.constant 0 : i32
    return %c0_i32, %c0_i32_0 : i32, i32
  }
  func.func @transform_14(%arg0: i32) -> (i32, i32, i32, i32) {
    %c0_i32 = arith.constant 0 : i32
    %c0_i32_0 = arith.constant 0 : i32
    %c0_i32_1 = arith.constant 0 : i32
    %c0_i32_2 = arith.constant 0 : i32
    return %arg0, %c0_i32, %c0_i32_0, %c0_i32_1 : i32, i32, i32, i32
  }
}

</mosaic_0001>

<bundles_post_ra>
// kernel: tpu_custom_call.1
= control target key start
LH: loop header
LB: loop body
LE: loop exit
PB: predicated region body
PF: predicated region fallthrough
CT: control target
= control target key end

     0   :  { %19 = vsyncpa [#allocation9], 0  ;;  %s10359_s0 = inlined_call_operand.hbm [shape: bf16[1,8,16,32], index: 0, kind: input, shape index: {}]   ;;  %s10360_s1 = inlined_call_operand.hbm [shape: bf16[3,32,128], index: 1, kind: input, shape index: {}]   ;;  %s10361_s2 = inlined_call_operand.vmem [shape: f32[1,128], index: 2, kind: input, shape index: {}]   ;;  %s10362_s3 = inlined_call_operand.hbm [shape: bf16[3,128,128], index: 3, kind: input, shape index: {}]   ;;  %s10363_s4 = inlined_call_operand.hbm [shape: f32[1,128], index: 4, kind: input, shape index: {}]   ;;  %s10364_s5 = inlined_call_operand.hbm [shape: bf16[128,512], index: 5, kind: input, shape index: {}]   ;;  %s10365_s6 = inlined_call_operand.hbm [shape: bf16[128,512], index: 6, kind: input, shape index: {}]   ;;  %s10366_s7 = inlined_call_operand.vmem [shape: f32[1,512], index: 7, kind: input, shape index: {}]   ;;  %s10367_s8 = inlined_call_operand.hbm [shape: bf16[128,512], index: 8, kind: input, shape index: {}]   ;;  %s10368_s9 = inlined_call_operand.hbm [shape: bf16[128,512], index: 9, kind: input, shape index: {}]   ;;  %s10369_s10 = inlined_call_operand.vmem [shape: f32[1,512], index: 10, kind: input, shape index: {}]   ;;  %s10370_s11 = inlined_call_operand.hbm [shape: bf16[128,128], index: 11, kind: input, shape index: {}]   ;;  %s10371_s12 = inlined_call_operand.hbm [shape: bf16[128,128], index: 12, kind: input, shape index: {}]   ;;  %s10372_s13 = inlined_call_operand.vmem [shape: f32[1,128], index: 13, kind: input, shape index: {}]   ;;  %s10373_s14 = inlined_call_operand.hbm [shape: f32[1,8,16,128], index: 14, kind: output, shape index: {}]  }
   0x1   :  { %20 = vsyncpa [#allocation12], 0 }
   0x2   :  { %21 = vsyncpa [#allocation15], 0 }
   0x3   :  { %22 = vsyncpa [#allocation18], 0 }
   0x4   :  { %23 = vsyncpa [#allocation21], 0 }
   0x5   :  { %24 = vsyncpa [#allocation24], 0 }
   0x6   :  { %25 = vsyncpa [#allocation10], 0  ;;  %s8571_s29 = smov [#allocation11]   ;;  %s8572_s15 = smov [#allocation14]  }
   0x7   :  { %s43_s30 = sshll.u32 %s8571_s29, 4  ;;  %s70_s16 = sshll.u32 %s8572_s15, 4  ;;  %s44_s30 = int_to_ptr.vmem [resolvable:$true] %s43_s30  ;;  %s71_s16 = int_to_ptr.vmem [resolvable:$true] %s70_s16 }
   0x8   :  { %s8345_s17 = scalar_lea.vmem %s44_s30, 768  ;;  %p8350_p1 = scmp.lt.s32.totalorder %s44_s30, %s44_s30 }
   0x9   :  { %p8346_p0 = scmp.ne.s32.totalorder %s44_s30, %s8345_s17  ;;  %p8351_p2 = scmp.lt.s32.totalorder %s8345_s17, %s8345_s17 }
   0xb   :  { %p8352_p3 = por %p8351_p2, %p8350_p1 }
   0xd   :  { %p8353_p4 = pnand %p8352_p3, %p8346_p0 }
   0xf   :  { %8356 = shalt.err (!%p8353_p4)
}
  0x10   :  { %s8573_s18 = smov 64   ;;  %s8574_s19 = smov 4  }
  0x11   :  { %49 = dma.hbm_to_vmem [thread:$0]  %s10360_s1, 768, %s44_s30, [#allocation12], %s8573_s18, %s8573_s18, %s8574_s19  }
  0x12   :  { %s8365_s22 = scalar_lea.vmem %s71_s16, 16  ;;  %s8369_s23 = scalar_lea.vmem %s71_s16, 32 }
  0x13   :  { %p8366_p5 = scmp.ne.s32.totalorder %s71_s16, %s8365_s22  ;;  %p8370_p6 = scmp.lt.s32.totalorder %s71_s16, %s71_s16 }
  0x14   :  { %p8371_p7 = scmp.lt.s32.totalorder %s8369_s23, %s8365_s22 }
  0x16   :  { %p8372_p8 = por %p8371_p7, %p8370_p6 }
  0x18   :  { %p8373_p9 = pnand %p8372_p8, %p8366_p5 }
  0x1a   :  { %8376 = shalt.err (!%p8373_p9)
}
  0x1b   :  { %73 = dma.hbm_to_vmem [thread:$0]  %s10363_s4, 16, %s71_s16, [#allocation15]  }
  0x1c   :  { %s8575_s26 = smov [#allocation17]   ;;  %s8576_s28 = smov [#allocation20]  }
  0x1d   :  { %s91_s27 = sshll.u32 %s8575_s26, 4  ;;  %s117_s29 = sshll.u32 %s8576_s28, 4  ;;  %s92_s27 = int_to_ptr.vmem [resolvable:$true] %s91_s27  ;;  %s118_s29 = int_to_ptr.vmem [resolvable:$true] %s117_s29 }
  0x1e   :  { %s8385_s15 = scalar_lea.vmem %s92_s27, 4096  ;;  %p8390_p11 = scmp.lt.s32.totalorder %s92_s27, %s92_s27 }
  0x1f   :  { %p8386_p10 = scmp.ne.s32.totalorder %s92_s27, %s8385_s15  ;;  %p8391_p12 = scmp.lt.s32.totalorder %s8385_s15, %s8385_s15 }
  0x21   :  { %p8392_p13 = por %p8391_p12, %p8390_p11 }
  0x23   :  { %p8393_p0 = pnand %p8392_p13, %p8386_p10 }
  0x25   :  { %8396 = shalt.err (!%p8393_p0)
}
  0x26   :  { %s8577_s1 = smov 256   ;;  %s8578_s30 = smov 16  }
  0x27   :  { %97 = dma.hbm_to_vmem [thread:$0]  %s10365_s6, 4096, %s92_s27, [#allocation18], %s8577_s1, %s8577_s1, %s8578_s30  }
  0x28   :  { %s8405_s16 = scalar_lea.vmem %s118_s29, 4096  ;;  %p8410_p2 = scmp.lt.s32.totalorder %s118_s29, %s118_s29 }
  0x29   :  { %p8406_p1 = scmp.ne.s32.totalorder %s118_s29, %s8405_s16  ;;  %p8411_p3 = scmp.lt.s32.totalorder %s8405_s16, %s8405_s16 }
  0x2b   :  { %p8412_p4 = por %p8411_p3, %p8410_p2 }
  0x2d   :  { %p8413_p5 = pnand %p8412_p4, %p8406_p1 }
  0x2f   :  { %8416 = shalt.err (!%p8413_p5)
}
  0x30   :  { %123 = dma.hbm_to_vmem [thread:$0]  %s10368_s9, 4096, %s118_s29, [#allocation21], %s8577_s1, %s8577_s1, %s8578_s30  }
  0x31   :  { %s8579_s22 = smov [#allocation8]   ;;  %s8580_s24 = smov [#allocation13]  }
  0x32   :  { %s31_s23 = sshll.u32 %s8579_s22, 4  ;;  %s57_s25 = sshll.u32 %s8580_s24, 4  ;;  %s32_s23 = int_to_ptr.vmem [resolvable:$true] %s31_s23  ;;  %s58_s25 = int_to_ptr.vmem [resolvable:$true] %s57_s25 }
  0x33   :  { %s8425_s6 = scalar_lea.vmem %s32_s23, 1024  ;;  %p8430_p7 = scmp.lt.s32.totalorder %s32_s23, %s32_s23 }
  0x34   :  { %p8426_p6 = scmp.ne.s32.totalorder %s32_s23, %s8425_s6  ;;  %p8431_p8 = scmp.lt.s32.totalorder %s8425_s6, %s8425_s6 }
  0x36   :  { %p8432_p9 = por %p8431_p8, %p8430_p7 }
  0x38   :  { %p8433_p10 = pnand %p8432_p9, %p8426_p6 }
  0x3a   :  { %8436 = shalt.err (!%p8433_p10)
}
  0x3b   :  { %37 = dma.hbm_to_vmem [thread:$0]  %s10359_s0, 1024, %s32_s23, [#allocation9], %s8573_s18, %s8573_s18, %s8574_s19  }
  0x3c   :  { %s8445_s9 = scalar_lea.vmem %s58_s25, 3072  ;;  %p8450_p12 = scmp.lt.s32.totalorder %s58_s25, %s58_s25 }
  0x3d   :  { %p8446_p11 = scmp.ne.s32.totalorder %s58_s25, %s8445_s9  ;;  %p8451_p13 = scmp.lt.s32.totalorder %s8445_s9, %s8445_s9 }
  0x3f   :  { %p8452_p0 = por %p8451_p13, %p8450_p12 }
  0x41   :  { %p8453_p1 = pnand %p8452_p0, %p8446_p11 }
  0x43   :  { %8456 = shalt.err (!%p8453_p1)
}
  0x44   :  { %63 = dma.hbm_to_vmem [thread:$0]  %s10362_s3, 3072, %s58_s25, [#allocation12], %s8573_s18, %s8573_s18, %s8574_s19  }
  0x45   :  { %s8581_s15 = smov [#allocation16]   ;;  %s8582_s4 = smov [#allocation19]  }
  0x46   :  { %s79_s17 = sshll.u32 %s8581_s15, 4  ;;  %s105_s16 = sshll.u32 %s8582_s4, 4  ;;  %s80_s17 = int_to_ptr.vmem [resolvable:$true] %s79_s17  ;;  %s106_s16 = int_to_ptr.vmem [resolvable:$true] %s105_s16 }
  0x47   :  { %s8465_s0 = scalar_lea.vmem %s80_s17, 4096  ;;  %p8470_p3 = scmp.lt.s32.totalorder %s80_s17, %s80_s17 }
  0x48   :  { %p8466_p2 = scmp.ne.s32.totalorder %s80_s17, %s8465_s0  ;;  %p8471_p4 = scmp.lt.s32.totalorder %s8465_s0, %s8465_s0 }
  0x4a   :  { %p8472_p5 = por %p8471_p4, %p8470_p3 }
  0x4c   :  { %p8473_p6 = pnand %p8472_p5, %p8466_p2 }
  0x4e   :  { %8476 = shalt.err (!%p8473_p6)
}
  0x4f   :  { %85 = dma.hbm_to_vmem [thread:$0]  %s10364_s5, 4096, %s80_s17, [#allocation15], %s8577_s1, %s8577_s1, %s8578_s30  }
  0x50   :  { %s8485_s3 = scalar_lea.vmem %s106_s16, 4096  ;;  %p8490_p8 = scmp.lt.s32.totalorder %s106_s16, %s106_s16 }
  0x51   :  { %p8486_p7 = scmp.ne.s32.totalorder %s106_s16, %s8485_s3  ;;  %p8491_p9 = scmp.lt.s32.totalorder %s8485_s3, %s8485_s3 }
  0x53   :  { %p8492_p10 = por %p8491_p9, %p8490_p8 }
  0x55   :  { %p8493_p11 = pnand %p8492_p10, %p8486_p7 }
  0x57   :  { %8496 = shalt.err (!%p8493_p11)
}
  0x58   :  { %111 = dma.hbm_to_vmem [thread:$0]  %s10367_s8, 4096, %s106_s16, [#allocation18], %s8577_s1, %s8577_s1, %s8578_s30  }
  0x59   :  { %s8583_s24 = smov [#allocation22]   ;;  %s8584_s6 = smov [#allocation23]  }
  0x5a   :  { %s131_s25 = sshll.u32 %s8583_s24, 4  ;;  %s143_s26 = sshll.u32 %s8584_s6, 4  ;;  %s132_s25 = int_to_ptr.vmem [resolvable:$true] %s131_s25  ;;  %s144_s26 = int_to_ptr.vmem [resolvable:$true] %s143_s26 }
  0x5b   :  { %s8505_s5 = scalar_lea.vmem %s132_s25, 1024  ;;  %p8510_p13 = scmp.lt.s32.totalorder %s132_s25, %s132_s25 }
  0x5c   :  { %p8506_p12 = scmp.ne.s32.totalorder %s132_s25, %s8505_s5  ;;  %p8511_p0 = scmp.lt.s32.totalorder %s8505_s5, %s8505_s5 }
  0x5e   :  { %p8512_p1 = por %p8511_p0, %p8510_p13 }
  0x60   :  { %p8513_p2 = pnand %p8512_p1, %p8506_p12 }
  0x62   :  { %8516 = shalt.err (!%p8513_p2)
}
  0x63   :  { %137 = dma.hbm_to_vmem [thread:$0]  %s10370_s11, 1024, %s132_s25, [#allocation21], %s8573_s18, %s8573_s18, %s8574_s19  }
  0x64   :  { %s8525_s8 = scalar_lea.vmem %s144_s26, 1024  ;;  %p8530_p4 = scmp.lt.s32.totalorder %s144_s26, %s144_s26 }
  0x65   :  { %p8526_p3 = scmp.ne.s32.totalorder %s144_s26, %s8525_s8  ;;  %p8531_p5 = scmp.lt.s32.totalorder %s8525_s8, %s8525_s8 }
  0x67   :  { %p8532_p6 = por %p8531_p5, %p8530_p4 }
  0x69   :  { %p8533_p7 = pnand %p8532_p6, %p8526_p3 }
  0x6b   :  { %8536 = shalt.err (!%p8533_p7)
}
  0x6c   :  { %149 = dma.hbm_to_vmem [thread:$0]  %s10371_s12, 1024, %s144_s26, [#allocation24], %s8573_s18, %s8573_s18, %s8574_s19  }
  0x6d   :  { %8557 = dma.done.wait [#allocation9], 1024  }
  0x6e   :  { %8558 = vsyncadd [#allocation9], 4294966272 }
  0x6f   :  { %8559 = dma.done.wait [#allocation12], 3840  }
  0x70   :  { %8560 = vsyncadd [#allocation12], 4294963456 }
  0x71   :  { %8561 = dma.done.wait [#allocation15], 4112  }
  0x72   :  { %8562 = vsyncadd [#allocation15], 4294963184 }
  0x73   :  { %8563 = dma.done.wait [#allocation18], 8192  }
  0x74   :  { %8564 = vsyncadd [#allocation18], 4294959104 }
  0x75   :  { %8565 = dma.done.wait [#allocation21], 5120  }
  0x76   :  { %8566 = vsyncadd [#allocation21], 4294962176 }
  0x77   :  { %8567 = dma.done.wait [#allocation24], 1024  }
  0x78   :  { %8568 = vsyncadd [#allocation24], 4294966272  ;;  %vm183_vm0 = vcmask 257024   ;;  %v10374_v0 = vmov 0   ;;  %v7386_v1 = vld [vmem:[#allocation11 + $0x18] sm:$0xff]   ;;  %v7387_v2 = vld [vmem:[#allocation11 + $0x8] sm:$0xff]  }
  0x79   :  { %184 = vst.msk [vmem:[#allocation2] sm:$0xf] %vm183_vm0, %v10374_v0  ;;  %185 = vst.msk [vmem:[#allocation2 + $0x4] sm:$0xf] %vm183_vm0, %v10374_v0  ;;  %7148 = vmatprep.subr.bf16.mxu0 %v7386_v1  ;;  %v7388_v3 = vld [vmem:[#allocation11 + $0x10] sm:$0xff]   ;;  %7168 = vmatprep.subr.bf16.mxu1 %v7387_v2  ;;  %v7389_v4 = vld [vmem:[#allocation11] sm:$0xff]  }
  0x7a   :  { %186 = vst.msk [vmem:[#allocation2 + $0x48] sm:$0xf] %vm183_vm0, %v10374_v0  ;;  %187 = vst.msk [vmem:[#allocation2 + $0x4c] sm:$0xf] %vm183_vm0, %v10374_v0  ;;  %7149 = vmatpush3.bf16.msra.mxu0 %v7386_v1  ;;  %vm301_vm1 = vcmask 261120   ;;  %7169 = vmatpush3.bf16.msra.mxu1 %v7387_v2  ;;  %v7392_v8 = vld [vmem:[#allocation11 + $0x28] sm:$0xff]  }
  0x7b   :  { %717 = vst [vmem:[#allocation3] sm:$0xf] %v10374_v0  ;;  %718 = vst [vmem:[#allocation3 + $0x4] sm:$0xf] %v10374_v0  ;;  %7150 = vmatprep.subr.bf16.mxu0 %v7388_v3  ;;  %v188_v5 = vld [vmem:[#allocation8] sm:$0xf]  ;;  %7170 = vmatprep.subr.bf16.mxu1 %v7389_v4 }
  0x7c   :  { %719 = vst [vmem:[#allocation3 + $0x48] sm:$0xf] %v10374_v0  ;;  %720 = vst [vmem:[#allocation3 + $0x4c] sm:$0xf] %v10374_v0  ;;  %v189_v6 = vld [vmem:[#allocation8 + $0x4] sm:$0xf] }
  0x7d   :  { %204 = vst.msk [vmem:[#allocation2 + $0x8] sm:$0xf] %vm183_vm0, %v188_v5  ;;  %205 = vst.msk [vmem:[#allocation2 + $0xc] sm:$0xf] %vm183_vm0, %v189_v6  ;;  %v190_v9 = vld [vmem:[#allocation8 + $0x8] sm:$0xf] }
  0x7e   :  { %7151 = vmatpush3.bf16.msra.mxu0 %v7388_v3  ;;  %v191_v10 = vld [vmem:[#allocation8 + $0xc] sm:$0xf]  ;;  %206 = vst.msk [vmem:[#allocation2 + $0x10] sm:$0xf] %vm183_vm0, %v190_v9  ;;  %v192_v11 = vld [vmem:[#allocation8 + $0x10] sm:$0xf]  ;;  %7171 = vmatpush3.bf16.msra.mxu1 %v7389_v4 }
  0x7f   :  { %v193_v12 = vld [vmem:[#allocation8 + $0x14] sm:$0xf]  ;;  %7188 = vmatprep.subr.bf16.mxu0 %v7392_v8  ;;  %207 = vst.msk [vmem:[#allocation2 + $0x14] sm:$0xf] %vm183_vm0, %v191_v10  ;;  %208 = vst.msk [vmem:[#allocation2 + $0x18] sm:$0xf] %vm183_vm0, %v192_v11 }
  0x80   :  { %v7391_v7 = vld [vmem:[#allocation2] sm:$0xff]   ;;  %209 = vst.msk [vmem:[#allocation2 + $0x1c] sm:$0xf] %vm183_vm0, %v193_v12  ;;  %v194_v13 = vld [vmem:[#allocation8 + $0x18] sm:$0xf]  ;;  %v7403_v33 = vld [vmem:[#allocation13 + $0x38] sm:$0xff]  }
  0x81   :  { %7172 = vmatprep.mubr.msk.bf16.mxu1 %vm301_vm1, %v7391_v7  ;;  %v195_v14 = vld [vmem:[#allocation8 + $0x1c] sm:$0xf]  ;;  %v196_v15 = vld [vmem:[#allocation8 + $0x20] sm:$0xf]  ;;  %210 = vst.msk [vmem:[#allocation2 + $0x20] sm:$0xf] %vm183_vm0, %v194_v13 }
  0x82   :  { %211 = vst.msk [vmem:[#allocation2 + $0x24] sm:$0xf] %vm183_vm0, %v195_v14  ;;  %v197_v16 = vld [vmem:[#allocation8 + $0x24] sm:$0xf]  ;;  %212 = vst.msk [vmem:[#allocation2 + $0x28] sm:$0xf] %vm183_vm0, %v196_v15 }
  0x83   :  { %213 = vst.msk [vmem:[#allocation2 + $0x2c] sm:$0xf] %vm183_vm0, %v197_v16  ;;  %v198_v17 = vld [vmem:[#allocation8 + $0x28] sm:$0xf]  ;;  %v199_v18 = vld [vmem:[#allocation8 + $0x2c] sm:$0xf] }
  0x84   :  { %214 = vst.msk [vmem:[#allocation2 + $0x30] sm:$0xf] %vm183_vm0, %v198_v17  ;;  %215 = vst.msk [vmem:[#allocation2 + $0x34] sm:$0xf] %vm183_vm0, %v199_v18  ;;  %v200_v19 = vld [vmem:[#allocation8 + $0x30] sm:$0xf] }
  0x85   :  { %v201_v20 = vld [vmem:[#allocation8 + $0x34] sm:$0xf]  ;;  %v202_v21 = vld [vmem:[#allocation8 + $0x38] sm:$0xf]  ;;  %v7390_v22 = vld [vmem:[#allocation2 + $0x8] sm:$0xff]  }
  0x86   :  { %216 = vst.msk [vmem:[#allocation2 + $0x38] sm:$0xf] %vm183_vm0, %v200_v19  ;;  %217 = vst.msk [vmem:[#allocation2 + $0x3c] sm:$0xf] %vm183_vm0, %v201_v20  ;;  %v203_v23 = vld [vmem:[#allocation8 + $0x3c] sm:$0xf]  ;;  %7152 = vmatprep.mubr.msk.bf16.mxu0 %vm301_vm1, %v7390_v22  ;;  %7173 = vmatmul.mubr.msk.bf16.vlgmr.msra.gmra.mxu1 %vm301_vm1, %v7390_v22 }
  0x87   :  { %218 = vst.msk [vmem:[#allocation2 + $0x40] sm:$0xf] %vm183_vm0, %v202_v21  ;;  %v7397_v24 = vld [vmem:[#allocation11 + $0x20] sm:$0xff]   ;;  %219 = vst.msk [vmem:[#allocation2 + $0x44] sm:$0xf] %vm183_vm0, %v203_v23  ;;  %v7393_v25 = vld [vmem:[#allocation2 + $0x10] sm:$0xff]  }
  0x88   :  { %v7394_v26 = vld [vmem:[#allocation2 + $0x18] sm:$0xff]   ;;  %7153 = vmatmul.mubr.msk.bf16.vlgmr.msra.gmra.mxu0 %vm301_vm1, %v7393_v25  ;;  %7176 = vmatprep.mubr.msk.bf16.mxu1 %vm301_vm1, %v7393_v25  ;;  %v7401_v32 = vld [vmem:[#allocation2 + $0x48] sm:$0xff]   ;;  %v7405_v35 = vld [vmem:[#allocation13 + $0x30] sm:$0xff]  }
  0x89   :  { %7189 = vmatpush3.bf16.msra.mxu0 %v7392_v8  ;;  %7156 = vmatprep.mubr.msk.bf16.mxu0 %vm301_vm1, %v7394_v26  ;;  %v7395_v27 = vld [vmem:[#allocation2 + $0x20] sm:$0xff]   ;;  %v7402_v34 = vld [vmem:[#allocation13 + $0x78] sm:$0xff]   ;;  %v7407_v37 = vld [vmem:[#allocation13 + $0x28] sm:$0xff]  }
  0x8a   :  { %7190 = vmatprep.subr.bf16.mxu0 %v7397_v24  ;;  %v7396_v28 = vld [vmem:[#allocation2 + $0x28] sm:$0xff]   ;;  %7208 = vmatprep.subr.bf16.mxu1 %v7402_v34  ;;  %v7404_v36 = vld [vmem:[#allocation13 + $0x70] sm:$0xff]   ;;  %v7406_v38 = vld [vmem:[#allocation13 + $0x68] sm:$0xff]  }
  0x8b   :  { %v7398_v29 = vld [vmem:[#allocation2 + $0x30] sm:$0xff]   ;;  %7209 = vmatpush3.bf16.msra.mxu1 %v7402_v34  ;;  %v7411_v41 = vld [vmem:[#allocation13 + $0x18] sm:$0xff]   ;;  %v7413_v43 = vld [vmem:[#allocation13 + $0x10] sm:$0xff]  }
  0x8c   :  { %7210 = vmatprep.subr.bf16.mxu1 %v7404_v36  ;;  %v7409_v39 = vld [vmem:[#allocation13 + $0x20] sm:$0xff]   ;;  %v7410_v42 = vld [vmem:[#allocation13 + $0x58] sm:$0xff]   ;;  %v7412_v44 = vld [vmem:[#allocation13 + $0x50] sm:$0xff]  }
  0x8d   :  { %7191 = vmatpush3.bf16.msra.mxu0 %v7397_v24  ;;  %v7399_v30 = vld [vmem:[#allocation2 + $0x38] sm:$0xff]   ;;  %v7408_v40 = vld [vmem:[#allocation13 + $0x60] sm:$0xff]   ;;  %v8773_v50 = vld [vmem:[#allocation13 + $0xb8] sm:$0xff]  }
  0x8e   :  { %7177 = vmatmul.mubr.msk.bf16.gmra.mxu1 %vm301_vm1, %v7394_v26  ;;  %v7400_v31 = vld [vmem:[#allocation2 + $0x40] sm:$0xff]   ;;  %7240 = vmatprep.subr.bf16.mxu0 %v7403_v33  ;;  %v7415_v45 = vld [vmem:[#allocation13 + $0x8] sm:$0xff]   ;;  %v7417_v47 = vld [vmem:[#allocation13] sm:$0xff]  }
  0x8f   :  { %7180 = vmatprep.mubr.msk.bf16.mxu1 %vm301_vm1, %v7395_v27  ;;  %7211 = vmatpush3.bf16.msra.mxu1 %v7404_v36  ;;  %v7414_v46 = vld [vmem:[#allocation13 + $0x48] sm:$0xff]   ;;  %v7416_v48 = vld [vmem:[#allocation13 + $0x40] sm:$0xff]   ;;  %v8789_v18 = vld [vmem:[%s10361_s2] ss:$0 sm:$0xff] }
  0x90   :  { %7157 = vmatmul.mubr.msk.bf16.gmra.mxu0 %vm301_vm1, %v7395_v27  ;;  %7212 = vmatprep.subr.bf16.mxu1 %v7406_v38  ;;  %v7418_v49 = vld [vmem:[#allocation3] sm:$0xff]  }
  0x91   :  { %7160 = vmatprep.mubr.msk.bf16.mxu0 %vm301_vm1, %v7396_v28 }
  0x93   :  { %7213 = vmatpush3.bf16.msra.mxu1 %v7406_v38 }
  0x94   :  { %7214 = vmatprep.subr.bf16.mxu1 %v7408_v40 }
  0x96   :  { %7181 = vmatmul.mubr.msk.bf16.gmra.mxu1 %vm301_vm1, %v7396_v28 }
  0x97   :  { %7184 = vmatprep.mubr.msk.bf16.mxu1 %vm301_vm1, %v7398_v29  ;;  %7215 = vmatpush3.bf16.msra.mxu1 %v7408_v40 }
  0x98   :  { %7161 = vmatmul.mubr.msk.bf16.gmra.mxu0 %vm301_vm1, %v7398_v29  ;;  %7216 = vmatprep.subr.bf16.mxu1 %v7410_v42 }
  0x99   :  { %7164 = vmatprep.mubr.msk.bf16.mxu0 %vm301_vm1, %v7399_v30 }
  0x9b   :  { %7217 = vmatpush3.bf16.msra.mxu1 %v7410_v42 }
  0x9c   :  { %7218 = vmatprep.subr.bf16.mxu1 %v7412_v44 }
  0x9e   :  { %7185 = vmatmul.mubr.msk.bf16.gmra.mxu1 %vm301_vm1, %v7399_v30 }
  0x9f   :  { %7219 = vmatpush3.bf16.msra.mxu1 %v7412_v44 }
  0xa0   :  { %7165 = vmatmul.mubr.msk.bf16.gmra.mxu0 %vm301_vm1, %v7400_v31  ;;  %7220 = vmatprep.subr.bf16.mxu1 %v7414_v46 }
  0xa1   :  { %7192 = vmatprep.mubr.msk.bf16.mxu0 %vm301_vm1, %v7393_v25 }
  0xa3   :  { %7221 = vmatpush3.bf16.msra.mxu1 %v7414_v46 }
  0xa4   :  { %7222 = vmatprep.subr.bf16.mxu1 %v7416_v48 }
  0xa7   :  { %7223 = vmatpush3.bf16.msra.mxu1 %v7416_v48 }
  0xa8   :  { %7193 = vmatmul.mubr.msk.bf16.vlgmr.msra.gmra.mxu0 %vm301_vm1, %v7394_v26  ;;  %7272 = vmatprep.subr.bf16.mxu1 %v8773_v50 }
  0xa9   :  { %7196 = vmatprep.mubr.msk.bf16.mxu0 %vm301_vm1, %v7395_v27  ;;  %7241 = vmatpush3.bf16.msra.mxu0 %v7403_v33 }
  0xaa   :  { %7242 = vmatprep.subr.bf16.mxu0 %v7405_v35 }
  0xad   :  { %7243 = vmatpush3.bf16.msra.mxu0 %v7405_v35 }
  0xae   :  { %7244 = vmatprep.subr.bf16.mxu0 %v7407_v37 }
  0xb0   :  { %7197 = vmatmul.mubr.msk.bf16.gmra.mxu0 %vm301_vm1, %v7396_v28 }
  0xb1   :  { %7200 = vmatprep.mubr.msk.bf16.mxu0 %vm301_vm1, %v7398_v29  ;;  %7245 = vmatpush3.bf16.msra.mxu0 %v7407_v37 }
  0xb2   :  { %7246 = vmatprep.subr.bf16.mxu0 %v7409_v39 }
  0xb5   :  { %7247 = vmatpush3.bf16.msra.mxu0 %v7409_v39 }
  0xb6   :  { %7248 = vmatprep.subr.bf16.mxu0 %v7411_v41 }
  0xb8   :  { %7201 = vmatmul.mubr.msk.bf16.gmra.mxu0 %vm301_vm1, %v7399_v30 }
  0xb9   :  { %7204 = vmatprep.mubr.msk.bf16.mxu0 %vm301_vm1, %v7400_v31  ;;  %7249 = vmatpush3.bf16.msra.mxu0 %v7411_v41 }
  0xba   :  { %7250 = vmatprep.subr.bf16.mxu0 %v7413_v43 }
  0xbd   :  { %7251 = vmatpush3.bf16.msra.mxu0 %v7413_v43 }
  0xbe   :  { %7252 = vmatprep.subr.bf16.mxu0 %v7415_v45 }
  0xc0   :  { %7205 = vmatmul.mubr.msk.bf16.gmra.mxu0 %vm301_vm1, %v7401_v32 }
  0xc1   :  { %7253 = vmatpush3.bf16.msra.mxu0 %v7415_v45  ;;  %7256 = vmatprep.mubr.bf16.mxu0 %v7418_v49 }
  0xc2   :  { %7254 = vmatprep.subr.bf16.mxu0 %v7417_v47 }
  0xc5   :  { %7255 = vmatpush3.bf16.msra.mxu0 %v7417_v47 }
 0x146   :  { %v7174_v51 = vpop.f32.mrf.mxu1 }
 0x148   :  { %v7154_v52 = vpop.f32.mrf.mxu0  ;;  %v477_v54 = vpop.f32.mrf.mxu1 }
 0x149   :  { %v486_v13 = vadd.f32 %v7174_v51, %v7154_v52 }
 0x14a   :  { %v360_v53 = vpop.f32.mrf.mxu0  ;;  %v7175_v56 = vpop.f32.mrf.mxu1 }
 0x14b   :  { %v478_v15 = vadd.f32 %v477_v54, %v360_v53 }
 0x14c   :  { %v7155_v55 = vpop.f32.mrf.mxu0  ;;  %v480_v59 = vpop.f32.mrf.mxu1 }
 0x14d   :  { %v489_v20 = vadd.f32 %v7175_v56, %v7155_v55 }
 0x14e   :  { %v363_v57 = vpop.f32.mrf.mxu0  ;;  %v7178_v62 = vpop.f32.mrf.mxu1 }
 0x14f   :  { %v481_v23 = vadd.f32 %v480_v59, %v363_v57 }
 0x150   :  { %v7158_v58 = vpop.f32.mrf.mxu0  ;;  %v493_v2 = vpop.f32.mrf.mxu1 }
 0x151   :  { %v502_v28 = vadd.f32 %v7178_v62, %v7158_v58 }
 0x152   :  { %v376_v60 = vpop.f32.mrf.mxu0  ;;  %v7179_v5 = vpop.f32.mrf.mxu1 }
 0x153   :  { %v494_v32 = vadd.f32 %v493_v2, %v376_v60 }
 0x154   :  { %v7159_v61 = vpop.f32.mrf.mxu0  ;;  %v496_v8 = vpop.f32.mrf.mxu1 }
 0x155   :  { %v505_v38 = vadd.f32 %v7179_v5, %v7159_v61 }
 0x156   :  { %v379_v63 = vpop.f32.mrf.mxu0  ;;  %v7182_v11 = vpop.f32.mrf.mxu1 }
 0x157   :  { %v497_v46 = vadd.f32 %v496_v8, %v379_v63 }
 0x158   :  { %v7162_v1 = vpop.f32.mrf.mxu0  ;;  %v509_v17 = vpop.f32.mrf.mxu1 }
 0x159   :  { %v518_v53 = vadd.f32 %v7182_v11, %v7162_v1 }
 0x15a   :  { %v392_v3 = vpop.f32.mrf.mxu0  ;;  %v7183_v26 = vpop.f32.mrf.mxu1 }
 0x15b   :  { %v510_v57 = vadd.f32 %v509_v17, %v392_v3 }
 0x15c   :  { %v7163_v4 = vpop.f32.mrf.mxu0  ;;  %v512_v39 = vpop.f32.mrf.mxu1 }
 0x15d   :  { %v521_v63 = vadd.f32 %v7183_v26, %v7163_v4  ;;  %v7422_v26 = vld [vmem:[#allocation13 + $0xb0] sm:$0xff]  }
 0x15e   :  { %v8776_v6 = vpop.f32.mrf.mxu0  ;;  %v7186_v51 = vpop.f32.mrf.mxu1 }
 0x160   :  { %v8778_v7 = vpop.f32.mrf.mxu0  ;;  %v525_v2 = vpop.f32.mrf.mxu1 }
 0x162   :  { %v8780_v9 = vpop.f32.mrf.mxu0 }
 0x164   :  { %v8782_v10 = vpop.f32.mrf.mxu0 }
 0x166   :  { %v8784_v12 = vpop.f32.mrf.mxu0 }
 0x168   :  { %v7194_v14 = vpop.f32.mrf.mxu0 }
 0x169   :  { %v664_v16 = vadd.f32 %v7194_v14, %v486_v13 }
 0x16a   :  { %v599_v19 = vpop.f32.mrf.mxu0 }
 0x16b   :  { %v662_v21 = vadd.f32 %v599_v19, %v478_v15  ;;  %v687_v24 = vadd.f32 %v8789_v18, %v664_v16  ;;  %v513_v15 = vadd.f32 %v512_v39, %v8776_v6  ;;  %v7187_v19 = vpop.f32.mrf.mxu1  ;;  %v526_v6 = vadd.f32 %v525_v2, %v8780_v9 }
 0x16c   :  { %v7195_v22 = vpop.f32.mrf.mxu0 }
 0x16d   :  { %v665_v25 = vadd.f32 %v7195_v22, %v489_v20  ;;  %v685_v29 = vadd.f32 %v8789_v18, %v662_v21  ;;  %v703_v34 = vmax.f32 %v687_v24, 0.0  ;;  %v534_v22 = vadd.f32 %v7186_v51, %v8778_v7 }
 0x16e   :  { %v602_v27 = vpop.f32.mrf.mxu0  ;;  %v537_v7 = vadd.f32 %v7187_v19, %v8782_v10  ;;  %v7454_v19 = vld [vmem:[#allocation16 + $0xcc] ss:$16 sps:$4 sm:$0xff]  }
 0x16f   :  { %v688_v30 = vadd.f32 %v8789_v18, %v665_v25  ;;  %v663_v31 = vadd.f32 %v602_v27, %v481_v23  ;;  %v701_v41 = vmax.f32 %v685_v29, 0.0 }
 0x170   :  { %v7198_v33 = vpop.f32.mrf.mxu0 }
 0x171   :  { %v704_v35 = vmax.f32 %v688_v30, 0.0  ;;  %v686_v36 = vadd.f32 %v8789_v18, %v663_v31  ;;  %v668_v37 = vadd.f32 %v7198_v33, %v502_v28 }
 0x172   :  { %v615_v40 = vpop.f32.mrf.mxu0 }
 0x173   :  { %v6904_v42 = vpack.c.bf16 %v704_v35, %v703_v34  ;;  %v702_v43 = vmax.f32 %v686_v36, 0.0  ;;  %v666_v44 = vadd.f32 %v615_v40, %v494_v32  ;;  %v691_v48 = vadd.f32 %v8789_v18, %v668_v37  ;;  %v528_v32 = vpop.f32.mrf.mxu1  ;;  %v7424_v37 = vld [vmem:[#allocation13 + $0xa8] sm:$0xff]  }
 0x174   :  { %v7199_v45 = vpop.f32.mrf.mxu0  ;;  %v529_v39 = vadd.f32 %v528_v32, %v8784_v12  ;;  %v7478_v32 = vld [vmem:[#allocation16 + $0x4c] ss:$16 sps:$4 sm:$0xff]  }
 0x175   :  { %7017 = vst [vmem:[#allocation3 + $0x10] sm:$0xff] %v6904_v42   ;;  %v6899_v47 = vpack.c.bf16 %v702_v43, %v701_v41  ;;  %v669_v49 = vadd.f32 %v7199_v45, %v505_v38  ;;  %v689_v54 = vadd.f32 %v8789_v18, %v666_v44  ;;  %v707_v59 = vmax.f32 %v691_v48, 0.0  ;;  %v7426_v43 = vld [vmem:[#allocation13 + $0xa0] sm:$0xff]  }
 0x176   :  { %v618_v52 = vpop.f32.mrf.mxu0 }
 0x177   :  { %7016 = vst [vmem:[#allocation3 + $0x8] sm:$0xff] %v6899_v47   ;;  %v692_v55 = vadd.f32 %v8789_v18, %v669_v49  ;;  %v667_v56 = vadd.f32 %v618_v52, %v497_v46  ;;  %v705_v8 = vmax.f32 %v689_v54, 0.0  ;;  %v7428_v54 = vld [vmem:[#allocation13 + $0x98] sm:$0xff]  }
 0x178   :  { %v7202_v58 = vpop.f32.mrf.mxu0 }
 0x179   :  { %v708_v60 = vmax.f32 %v692_v55, 0.0  ;;  %v690_v61 = vadd.f32 %v8789_v18, %v667_v56  ;;  %v672_v62 = vadd.f32 %v7202_v58, %v518_v53  ;;  %v7430_v56 = vld [vmem:[#allocation13 + $0x90] sm:$0xff]  }
 0x17a   :  { %v631_v5 = vpop.f32.mrf.mxu0 }
 0x17b   :  { %v6914_v13 = vpack.c.bf16 %v708_v60, %v707_v59  ;;  %v706_v14 = vmax.f32 %v690_v61, 0.0  ;;  %v670_v1 = vadd.f32 %v631_v5, %v510_v57  ;;  %v695_v3 = vadd.f32 %v8789_v18, %v672_v62  ;;  %v7435_v59 = vld [vmem:[#allocation13 + $0x80] sm:$0xff]  }
 0x17c   :  { %v7203_v11 = vpop.f32.mrf.mxu0  ;;  %v7421_v25 = vld [vmem:[#allocation3 + $0x10] sm:$0xff]  }
 0x17d   :  { %7019 = vst [vmem:[#allocation3 + $0x20] sm:$0xff] %v6914_v13   ;;  %v6909_v16 = vpack.c.bf16 %v706_v14, %v705_v8  ;;  %v673_v17 = vadd.f32 %v7203_v11, %v521_v63  ;;  %v693_v4 = vadd.f32 %v8789_v18, %v670_v1  ;;  %v711_v28 = vmax.f32 %v695_v3, 0.0  ;;  %v7434_v62 = vld [vmem:[#allocation3 + $0x10] sm:$0xff]   ;;  %v7442_v1 = vld [vmem:[#allocation3 + $0x48] sm:$0xff]  }
 0x17e   :  { %v634_v20 = vpop.f32.mrf.mxu0  ;;  %v7419_v21 = vld [vmem:[#allocation3 + $0x8] sm:$0xff]  }
 0x17f   :  { %7018 = vst [vmem:[#allocation3 + $0x18] sm:$0xff] %v6909_v16   ;;  %v696_v23 = vadd.f32 %v8789_v18, %v673_v17  ;;  %v671_v24 = vadd.f32 %v634_v20, %v513_v15  ;;  %7224 = vmatprep.mubr.bf16.mxu1 %v7419_v21  ;;  %7257 = vmatmul.mubr.bf16.vlgmr.msra.gmra.mxu0 %v7419_v21  ;;  %v709_v34 = vmax.f32 %v693_v4, 0.0  ;;  %v7445_v11 = vld [vmem:[#allocation16 + $0xe4] ss:$16 sps:$4 sm:$0xff]   ;;  %v7448_v15 = vld [vmem:[#allocation16 + $0xec] ss:$16 sps:$4 sm:$0xff]  }
 0x180   :  { %v7206_v27 = vpop.f32.mrf.mxu0  ;;  %7225 = vmatmul.mubr.bf16.vlgmr.msra.gmra.mxu1 %v7421_v25  ;;  %7260 = vmatprep.mubr.bf16.mxu0 %v7421_v25  ;;  %v7443_v16 = vld [vmem:[#allocation16 + $0xe0] ss:$16 sps:$4 sm:$0xff]   ;;  %v7446_v3 = vld [vmem:[#allocation16 + $0xe8] ss:$16 sps:$4 sm:$0xff]   ;;  %v7451_v17 = vld [vmem:[#allocation16 + $0xc4] ss:$16 sps:$4 sm:$0xff]  }
 0x181   :  { %v712_v29 = vmax.f32 %v696_v23, 0.0  ;;  %v694_v30 = vadd.f32 %v8789_v18, %v671_v24  ;;  %v676_v31 = vadd.f32 %v7206_v27, %v534_v22  ;;  %7273 = vmatpush3.bf16.msra.mxu1 %v8773_v50  ;;  %1699 = vmatprep.subr.bf16.mxu0 %v7445_v11  ;;  %v7449_v20 = vld [vmem:[#allocation16 + $0xc0] ss:$16 sps:$4 sm:$0xff]   ;;  %v7452_v21 = vld [vmem:[#allocation16 + $0xc8] ss:$16 sps:$4 sm:$0xff]  }
 0x182   :  { %v647_v33 = vpop.f32.mrf.mxu0  ;;  %7274 = vmatprep.subr.bf16.mxu1 %v7422_v26  ;;  %1700 = vmatpush1.bf16.msra.mxu0 %v7443_v16  ;;  %v7457_v22 = vld [vmem:[#allocation16 + $0xa4] ss:$16 sps:$4 sm:$0xff]   ;;  %v7460_v4 = vld [vmem:[#allocation16 + $0xac] ss:$16 sps:$4 sm:$0xff]   ;;  %v7455_v23 = vld [vmem:[#allocation16 + $0xa0] ss:$16 sps:$4 sm:$0xff]  }
 0x183   :  { %v6924_v35 = vpack.c.bf16 %v712_v29, %v711_v28  ;;  %v710_v36 = vmax.f32 %v694_v30, 0.0  ;;  %v674_v9 = vadd.f32 %v647_v33, %v526_v6  ;;  %v699_v41 = vadd.f32 %v8789_v18, %v676_v31  ;;  %1701 = vmatprep.subr.bf16.mxu0 %v7451_v17  ;;  %v7458_v24 = vld [vmem:[#allocation16 + $0xa8] ss:$16 sps:$4 sm:$0xff]   ;;  %v7463_v25 = vld [vmem:[#allocation16 + $0x84] ss:$16 sps:$4 sm:$0xff]  }
 0x184   :  { %v7207_v38 = vpop.f32.mrf.mxu0  ;;  %v7425_v47 = vld [vmem:[#allocation3 + $0x20] sm:$0xff]   ;;  %v7464_v27 = vld [vmem:[#allocation16 + $0x88] ss:$16 sps:$4 sm:$0xff]  }
 0x185   :  { %7021 = vst [vmem:[#allocation3 + $0x30] sm:$0xff] %v6924_v35   ;;  %v6919_v40 = vpack.c.bf16 %v710_v36, %v709_v34  ;;  %v677_v42 = vadd.f32 %v7207_v38, %v537_v7  ;;  %7275 = vmatpush3.bf16.msra.mxu1 %v7422_v26  ;;  %v697_v50 = vadd.f32 %v8789_v18, %v674_v9  ;;  %v715_v12 = vmax.f32 %v699_v41, 0.0  ;;  %v7437_v2 = vld [vmem:[#allocation3 + $0x20] sm:$0xff]   ;;  %v7470_v31 = vld [vmem:[#allocation16 + $0x68] ss:$16 sps:$4 sm:$0xff]  }
 0x186   :  { %v650_v10 = vpop.f32.mrf.mxu0  ;;  %v7423_v44 = vld [vmem:[#allocation3 + $0x18] sm:$0xff]   ;;  %7276 = vmatprep.subr.bf16.mxu1 %v7424_v37  ;;  %1702 = vmatpush1.bf16.msra.mxu0 %v7449_v20  ;;  %v7461_v6 = vld [vmem:[#allocation16 + $0x80] ss:$16 sps:$4 sm:$0xff]  }
 0x187   :  { %7020 = vst [vmem:[#allocation3 + $0x28] sm:$0xff] %v6919_v40   ;;  %v700_v45 = vadd.f32 %v8789_v18, %v677_v42  ;;  %v675_v46 = vadd.f32 %v650_v10, %v529_v39  ;;  %7228 = vmatprep.mubr.bf16.mxu1 %v7423_v44  ;;  %7261 = vmatmul.mubr.bf16.gmra.mxu0 %v7423_v44  ;;  %v713_v51 = vmax.f32 %v697_v50, 0.0  ;;  %v7436_v63 = vld [vmem:[#allocation3 + $0x18] sm:$0xff]   ;;  %v7467_v30 = vld [vmem:[#allocation16 + $0x60] ss:$16 sps:$4 sm:$0xff]  }
 0x188   :  { %7229 = vmatmul.mubr.bf16.gmra.mxu1 %v7425_v47  ;;  %7264 = vmatprep.mubr.bf16.mxu0 %v7425_v47  ;;  %v7466_v26 = vld [vmem:[#allocation16 + $0x8c] ss:$16 sps:$4 sm:$0xff]   ;;  %v7469_v28 = vld [vmem:[#allocation16 + $0x64] ss:$16 sps:$4 sm:$0xff]   ;;  %v7473_v33 = vld [vmem:[#allocation16 + $0x40] ss:$16 sps:$4 sm:$0xff]  }
 0x189   :  { %v716_v48 = vmax.f32 %v700_v45, 0.0  ;;  %v698_v49 = vadd.f32 %v8789_v18, %v675_v46  ;;  %7277 = vmatpush3.bf16.msra.mxu1 %v7424_v37  ;;  %v7432_v18 = vld [vmem:[#allocation13 + $0x88] sm:$0xff]   ;;  %1703 = vmatprep.subr.bf16.mxu0 %v7457_v22  ;;  %v7479_v9 = vld [vmem:[#allocation16 + $0x20] ss:$16 sps:$4 sm:$0xff]  }
 0x18a   :  { %7278 = vmatprep.subr.bf16.mxu1 %v7426_v43  ;;  %1704 = vmatpush1.bf16.msra.mxu0 %v7455_v23  ;;  %v7472_v29 = vld [vmem:[#allocation16 + $0x6c] ss:$16 sps:$4 sm:$0xff]   ;;  %v7475_v7 = vld [vmem:[#allocation16 + $0x44] ss:$16 sps:$4 sm:$0xff]   ;;  %v7476_v34 = vld [vmem:[#allocation16 + $0x48] ss:$16 sps:$4 sm:$0xff]  }
 0x18b   :  { %v6934_v52 = vpack.c.bf16 %v716_v48, %v715_v12  ;;  %v714_v53 = vmax.f32 %v698_v49, 0.0  ;;  %1705 = vmatprep.subr.bf16.mxu0 %v7463_v25  ;;  %v7481_v35 = vld [vmem:[#allocation16 + $0x24] ss:$16 sps:$4 sm:$0xff]   ;;  %v7484_v36 = vld [vmem:[#allocation16 + $0x2c] ss:$16 sps:$4 sm:$0xff]  }
 0x18c   :  { %v7429_v58 = vld [vmem:[#allocation3 + $0x30] sm:$0xff]   ;;  %v7482_v37 = vld [vmem:[#allocation16 + $0x28] ss:$16 sps:$4 sm:$0xff]  }
 0x18d   :  { %7023 = vst [vmem:[#allocation3 + $0x40] sm:$0xff] %v6934_v52   ;;  %v6929_v55 = vpack.c.bf16 %v714_v53, %v713_v51  ;;  %7279 = vmatpush3.bf16.msra.mxu1 %v7426_v43  ;;  %v7439_v8 = vld [vmem:[#allocation3 + $0x30] sm:$0xff]   ;;  %v7488_v41 = vld [vmem:[#allocation16 + $0x8] ss:$16 sps:$4 sm:$0xff]  }
 0x18e   :  { %v7427_v57 = vld [vmem:[#allocation3 + $0x28] sm:$0xff]   ;;  %7280 = vmatprep.subr.bf16.mxu1 %v7428_v54  ;;  %1706 = vmatpush1.bf16.msra.mxu0 %v7461_v6  ;;  %v7485_v40 = vld [vmem:[#allocation16] ss:$16 sps:$4 sm:$0xff]  }
 0x18f   :  { %7022 = vst [vmem:[#allocation3 + $0x38] sm:$0xff] %v6929_v55   ;;  %7232 = vmatprep.mubr.bf16.mxu1 %v7427_v57  ;;  %7265 = vmatmul.mubr.bf16.gmra.mxu0 %v7427_v57  ;;  %v7438_v5 = vld [vmem:[#allocation3 + $0x28] sm:$0xff]  }
 0x190   :  { %7233 = vmatmul.mubr.bf16.gmra.mxu1 %v7429_v58  ;;  %7268 = vmatprep.mubr.bf16.mxu0 %v7429_v58  ;;  %v7487_v38 = vld [vmem:[#allocation16 + $0x4] ss:$16 sps:$4 sm:$0xff]   ;;  %v7490_v39 = vld [vmem:[#allocation16 + $0xc] ss:$16 sps:$4 sm:$0xff]  }
 0x191   :  { %7281 = vmatpush3.bf16.msra.mxu1 %v7428_v54  ;;  %1707 = vmatprep.subr.bf16.mxu0 %v7469_v28  ;;  %v7493_v42 = vld [vmem:[#allocation19 + $0xe4] ss:$16 sps:$4 sm:$0xff]   ;;  %v7502_v43 = vld [vmem:[#allocation19 + $0xec] ss:$16 sps:$4 sm:$0xff]  }
 0x192   :  { %7282 = vmatprep.subr.bf16.mxu1 %v7430_v56  ;;  %1708 = vmatpush1.bf16.msra.mxu0 %v7467_v30 }
 0x193   :  { %1709 = vmatprep.subr.bf16.mxu0 %v7475_v7 }
 0x194   :  { %v7433_v61 = vld [vmem:[#allocation3 + $0x40] sm:$0xff]  }
 0x195   :  { %7283 = vmatpush3.bf16.msra.mxu1 %v7430_v56  ;;  %v7441_v14 = vld [vmem:[#allocation3 + $0x40] sm:$0xff]  }
 0x196   :  { %v7431_v60 = vld [vmem:[#allocation3 + $0x38] sm:$0xff]   ;;  %7284 = vmatprep.subr.bf16.mxu1 %v7432_v18  ;;  %1710 = vmatpush1.bf16.msra.mxu0 %v7473_v33 }
 0x197   :  { %7236 = vmatprep.mubr.bf16.mxu1 %v7431_v60  ;;  %7269 = vmatmul.mubr.bf16.gmra.mxu0 %v7431_v60  ;;  %v7440_v13 = vld [vmem:[#allocation3 + $0x38] sm:$0xff]  }
 0x198   :  { %7237 = vmatmul.mubr.bf16.gmra.mxu1 %v7433_v61  ;;  %1731 = vmatprep.mubr.bf16.mxu0 %v10374_v0  ;;  %v7496_v33 = vld [vmem:[#allocation19 + $0xc4] ss:$16 sps:$4 sm:$0xff]  }
 0x199   :  { %7285 = vmatpush3.bf16.msra.mxu1 %v7432_v18  ;;  %7288 = vmatprep.mubr.bf16.mxu1 %v7434_v62 }
 0x19a   :  { %7286 = vmatprep.subr.bf16.mxu1 %v7435_v59  ;;  %1711 = vmatprep.subr.bf16.mxu0 %v7481_v35  ;;  %v7500_v35 = vld [vmem:[#allocation19 + $0xe8] ss:$16 sps:$4 sm:$0xff]  }
 0x19b   :  { %1712 = vmatpush1.bf16.msra.mxu0 %v7479_v9 }
 0x19c   :  { %1713 = vmatprep.subr.bf16.mxu0 %v7487_v38 }
 0x19d   :  { %7287 = vmatpush3.bf16.msra.mxu1 %v7435_v59 }
 0x19e   :  { %1812 = vmatprep.subr.bf16.mxu1 %v7448_v15 }
 0x19f   :  { %1714 = vmatpush1.bf16.msra.mxu0 %v7485_v40  ;;  %v7494_v40 = vld [vmem:[#allocation19 + $0xc0] ss:$16 sps:$4 sm:$0xff]  }
 0x1a0   :  { %7289 = vmatmul.mubr.bf16.vlgmr.msra.gmra.mxu1 %v7436_v63  ;;  %2363 = vmatprep.subr.bf16.mxu0 %v7493_v42 }
 0x1a1   :  { %7292 = vmatprep.mubr.bf16.mxu1 %v7437_v2  ;;  %1813 = vmatpush1.bf16.msra.mxu1 %v7446_v3  ;;  %v8843_v3 = vld [vmem:[#allocation14] ss:$0 sm:$0xff] }
 0x1a2   :  { %1814 = vmatprep.subr.bf16.mxu1 %v7454_v19 }
 0x1a5   :  { %1815 = vmatpush1.bf16.msra.mxu1 %v7452_v21 }
 0x1a6   :  { %1816 = vmatprep.subr.bf16.mxu1 %v7460_v4 }
 0x1a8   :  { %7293 = vmatmul.mubr.bf16.gmra.mxu1 %v7438_v5 }
 0x1a9   :  { %7296 = vmatprep.mubr.bf16.mxu1 %v7439_v8  ;;  %1817 = vmatpush1.bf16.msra.mxu1 %v7458_v24 }
 0x1aa   :  { %1818 = vmatprep.subr.bf16.mxu1 %v7466_v26 }
 0x1ad   :  { %1819 = vmatpush1.bf16.msra.mxu1 %v7464_v27 }
 0x1ae   :  { %1820 = vmatprep.subr.bf16.mxu1 %v7472_v29 }
 0x1b0   :  { %7297 = vmatmul.mubr.bf16.gmra.mxu1 %v7440_v13 }
 0x1b1   :  { %7300 = vmatprep.mubr.bf16.mxu1 %v7441_v14  ;;  %1821 = vmatpush1.bf16.msra.mxu1 %v7470_v31  ;;  %v7491_v31 = vld [vmem:[#allocation19 + $0xe0] ss:$16 sps:$4 sm:$0xff]  }
 0x1b2   :  { %1822 = vmatprep.subr.bf16.mxu1 %v7478_v32 }
 0x1b5   :  { %1823 = vmatpush1.bf16.msra.mxu1 %v7476_v34 }
 0x1b6   :  { %1824 = vmatprep.subr.bf16.mxu1 %v7484_v36 }
 0x1b8   :  { %7301 = vmatmul.mubr.bf16.gmra.mxu1 %v7442_v1 }
 0x1b9   :  { %1844 = vmatprep.mubr.bf16.mxu1 %v10374_v0  ;;  %1825 = vmatpush1.bf16.msra.mxu1 %v7482_v37  ;;  %v7508_v37 = vld [vmem:[#allocation19 + $0xcc] ss:$16 sps:$4 sm:$0xff]  }
 0x1ba   :  { %1826 = vmatprep.subr.bf16.mxu1 %v7490_v39 }
 0x1bd   :  { %1827 = vmatpush1.bf16.msra.mxu1 %v7488_v41 }
 0x1be   :  { %2476 = vmatprep.subr.bf16.mxu1 %v7502_v43 }
 0x23f   :  { %v7258_v10 = vpop.f32.mrf.mxu0 }
 0x240   :  { %v7226_v44 = vpop.f32.mrf.mxu1 }
 0x241   :  { %v1149_v45 = vpop.f32.mrf.mxu0  ;;  %v1158_v23 = vadd.f32 %v7258_v10, %v7226_v44  ;;  %v7499_v10 = vld [vmem:[#allocation19 + $0xa4] ss:$16 sps:$4 sm:$0xff]  }
 0x242   :  { %v998_v50 = vpop.f32.mrf.mxu1 }
 0x243   :  { %v7259_v12 = vpop.f32.mrf.mxu0  ;;  %v1150_v13 = vadd.f32 %v1149_v45, %v998_v50  ;;  %v7506_v50 = vld [vmem:[#allocation19 + $0xc8] ss:$16 sps:$4 sm:$0xff]  }
 0x244   :  { %v7227_v46 = vpop.f32.mrf.mxu1 }
 0x245   :  { %v1152_v51 = vpop.f32.mrf.mxu0  ;;  %v1161_v19 = vadd.f32 %v7259_v12, %v7227_v46 }
 0x246   :  { %v1001_v47 = vpop.f32.mrf.mxu1 }
 0x247   :  { %v8819_v54 = vpop.f32.mrf.mxu0  ;;  %v1153_v16 = vadd.f32 %v1152_v51, %v1001_v47 }
 0x248   :  { %v8815_v48 = vpop.f32.mrf.mxu1 }
 0x249   :  { %v1165_v57 = vpop.f32.mrf.mxu0 }
 0x24a   :  { %v1014_v49 = vpop.f32.mrf.mxu1 }
 0x24b   :  { %v8829_v59 = vpop.f32.mrf.mxu0  ;;  %v1166_v41 = vadd.f32 %v1165_v57, %v1014_v49  ;;  %v7514_v57 = vld [vmem:[#allocation19 + $0xac] ss:$16 sps:$4 sm:$0xff]  }
 0x24c   :  { %v8817_v52 = vpop.f32.mrf.mxu1 }
 0x24d   :  { %v1168_v62 = vpop.f32.mrf.mxu0 }
 0x24e   :  { %v1017_v53 = vpop.f32.mrf.mxu1 }
 0x24f   :  { %v8839_v5 = vpop.f32.mrf.mxu0  ;;  %v1169_v36 = vadd.f32 %v1168_v62, %v1017_v53  ;;  %v7497_v53 = vld [vmem:[#allocation19 + $0xa0] ss:$16 sps:$4 sm:$0xff]  }
 0x250   :  { %v8821_v55 = vpop.f32.mrf.mxu1 }
 0x251   :  { %v8841_v11 = vpop.f32.mrf.mxu0 }
 0x252   :  { %v8823_v56 = vpop.f32.mrf.mxu1 }
 0x253   :  { %v8846_v22 = vpop.f32.mrf.mxu0 }
 0x254   :  { %v8825_v58 = vpop.f32.mrf.mxu1 }
 0x255   :  { %v8851_v29 = vpop.f32.mrf.mxu0 }
 0x256   :  { %v8827_v18 = vpop.f32.mrf.mxu1 }
 0x257   :  { %v7270_v38 = vpop.f32.mrf.mxu0 }
 0x258   :  { %v8831_v60 = vpop.f32.mrf.mxu1 }
 0x259   :  { %v8865_v47 = vpop.f32.mrf.mxu0 }
 0x25a   :  { %v8833_v61 = vpop.f32.mrf.mxu1 }
 0x25c   :  { %v8835_v63 = vpop.f32.mrf.mxu1 }
 0x25e   :  { %v8837_v2 = vpop.f32.mrf.mxu1 }
 0x260   :  { %v7290_v8 = vpop.f32.mrf.mxu1 }
 0x261   :  { %v1424_v6 = vadd.f32 %v7290_v8, %v1158_v23  ;;  %v7505_v8 = vld [vmem:[#allocation19 + $0x84] ss:$16 sps:$4 sm:$0xff]  }
 0x262   :  { %v1359_v14 = vpop.f32.mrf.mxu1 }
 0x263   :  { %v1422_v1 = vadd.f32 %v1359_v14, %v1150_v13  ;;  %v1447_v9 = vadd.f32 %v8843_v3, %v1424_v6  ;;  %v7512_v13 = vld [vmem:[#allocation19 + $0xa8] ss:$16 sps:$4 sm:$0xff]   ;;  %v1177_v14 = vadd.f32 %v8829_v59, %v8817_v52 }
 0x264   :  { %v7291_v15 = vpop.f32.mrf.mxu1 }
 0x265   :  { %v1445_v20 = vadd.f32 %v8843_v3, %v1422_v1  ;;  %v1425_v24 = vadd.f32 %v7291_v15, %v1161_v19  ;;  %v1463_v45 = vmax.f32 %v1447_v9, 0.0  ;;  %v1206_v1 = vadd.f32 %v7270_v38, %v8831_v60  ;;  %v7503_v60 = vld [vmem:[#allocation19 + $0x80] ss:$16 sps:$4 sm:$0xff]   ;;  %v7529_v9 = vld [vmem:[#allocation19 + $0x4c] ss:$16 sps:$4 sm:$0xff]  }
 0x266   :  { %v1362_v17 = vpop.f32.mrf.mxu1 }
 0x267   :  { %v1423_v21 = vadd.f32 %v1362_v17, %v1153_v16  ;;  %v1461_v27 = vmax.f32 %v1445_v20, 0.0  ;;  %v1448_v7 = vadd.f32 %v8843_v3, %v1425_v24  ;;  %v7520_v16 = vld [vmem:[#allocation19 + $0x8c] ss:$16 sps:$4 sm:$0xff]   ;;  %v7271_v17 = vpop.f32.mrf.mxu0  ;;  %v1174_v20 = vadd.f32 %v8819_v54, %v8815_v48  ;;  %v7511_v24 = vld [vmem:[#allocation19 + $0x64] ss:$16 sps:$4 sm:$0xff]  }
 0x268   :  { %v8848_v4 = vpop.f32.mrf.mxu1 }
 0x269   :  { %v1446_v25 = vadd.f32 %v8843_v3, %v1423_v21  ;;  %v1464_v42 = vmax.f32 %v1448_v7, 0.0  ;;  %v1428_v6 = vadd.f32 %v8848_v4, %v1174_v20  ;;  %v7509_v7 = vld [vmem:[#allocation19 + $0x60] ss:$16 sps:$4 sm:$0xff]  }
 0x26a   :  { %v1375_v26 = vpop.f32.mrf.mxu1 }
 0x26b   :  { %v1462_v28 = vmax.f32 %v1446_v25, 0.0  ;;  %v1426_v46 = vadd.f32 %v1375_v26, %v1166_v41  ;;  %v8869_v51 = vpack.c.bf16 %v1464_v42, %v1463_v45  ;;  %v7518_v25 = vld [vmem:[#allocation19 + $0x88] ss:$16 sps:$4 sm:$0xff]   ;;  %v1209_v26 = vadd.f32 %v7271_v17, %v8835_v63  ;;  %v7523_v42 = vld [vmem:[#allocation19 + $0x24] ss:$16 sps:$4 sm:$0xff]  }
 0x26c   :  { %v7295_v30 = vpop.f32.mrf.mxu1  ;;  %v1185_v63 = vadd.f32 %v8851_v29, %v8827_v18  ;;  %v1451_v4 = vadd.f32 %v8843_v3, %v1428_v6  ;;  %v7515_v29 = vld [vmem:[#allocation19 + $0x40] ss:$16 sps:$4 sm:$0xff]  }
 0x26d   :  { %v8854_v32 = vpack.c.bf16 %v1462_v28, %v1461_v27  ;;  %v1449_v15 = vadd.f32 %v8843_v3, %v1426_v46  ;;  %v1429_v21 = vadd.f32 %v7295_v30, %v1177_v14  ;;  %v7521_v46 = vld [vmem:[#allocation19 + $0x20] ss:$16 sps:$4 sm:$0xff]  }
 0x26e   :  { %v1378_v34 = vpop.f32.mrf.mxu1 }
 0x26f   :  { %1732 = vmatmul.mubr.bf16.vlgmr.msra.gmra.mxu0 %v8854_v32  ;;  %1845 = vmatmul.mubr.bf16.vlgmr.msra.gmra.mxu1 %v8854_v32  ;;  %v1427_v43 = vadd.f32 %v1378_v34, %v1169_v36  ;;  %v1465_v27 = vmax.f32 %v1449_v15, 0.0  ;;  %v1452_v48 = vadd.f32 %v8843_v3, %v1429_v21  ;;  %v7517_v34 = vld [vmem:[#allocation19 + $0x44] ss:$16 sps:$4 sm:$0xff]   ;;  %v7530_v15 = vld [vmem:[#allocation19] ss:$16 sps:$4 sm:$0xff]  }
 0x270   :  { %2364 = vmatpush1.bf16.msra.mxu0 %v7491_v31  ;;  %v8859_v39 = vpop.f32.mrf.mxu1  ;;  %1741 = vmatprep.mubr.bf16.mxu0 %v10374_v0 }
 0x271   :  { %1854 = vmatprep.mubr.bf16.mxu1 %v10374_v0  ;;  %2365 = vmatprep.subr.bf16.mxu0 %v7496_v33  ;;  %v1450_v49 = vadd.f32 %v8843_v3, %v1427_v43  ;;  %v7526_v33 = vld [vmem:[#allocation19 + $0x6c] ss:$16 sps:$4 sm:$0xff]   ;;  %v1468_v38 = vmax.f32 %v1452_v48, 0.0  ;;  %v7527_v43 = vld [vmem:[#allocation19 + $0x48] ss:$16 sps:$4 sm:$0xff]  }
 0x272   :  { %v8863_v44 = vpop.f32.mrf.mxu1  ;;  %2477 = vmatpush1.bf16.msra.mxu1 %v7500_v35  ;;  %v7524_v35 = vld [vmem:[#allocation19 + $0x68] ss:$16 sps:$4 sm:$0xff]   ;;  %v8961_v48 = vld [vmem:[#allocation17 + $0xcc] ss:$16 sps:$4 sm:$0xff]  }
 0x273   :  { %2478 = vmatprep.subr.bf16.mxu1 %v7508_v37  ;;  %v1466_v52 = vmax.f32 %v1450_v49, 0.0  ;;  %v1182_v37 = vadd.f32 %v8841_v11, %v8823_v56  ;;  %v7535_v49 = vld [vmem:[#allocation19 + $0x2c] ss:$16 sps:$4 sm:$0xff]  }
 0x274   :  { %v8867_v12 = vpop.f32.mrf.mxu1  ;;  %2366 = vmatpush1.bf16.msra.mxu0 %v7494_v40 }
 0x275   :  { %2367 = vmatprep.subr.bf16.mxu0 %v7499_v10  ;;  %v8887_v54 = vpack.c.bf16 %v1466_v52, %v1465_v27  ;;  %v1467_v10 = vmax.f32 %v1451_v4, 0.0  ;;  %v8993_v4 = vld [vmem:[#allocation17 + $0x80] ss:$16 sps:$4 sm:$0xff]  }
 0x276   :  { %v1394_v62 = vpop.f32.mrf.mxu1  ;;  %2479 = vmatpush1.bf16.msra.mxu1 %v7506_v50  ;;  %v1430_v50 = vadd.f32 %v8863_v44, %v1182_v37  ;;  %v7538_v44 = vld [vmem:[#allocation19 + $0xc] ss:$16 sps:$4 sm:$0xff]  }
 0x277   :  { %1742 = vmatmul.mubr.bf16.gmra.mxu0 %v8869_v51  ;;  %1855 = vmatmul.mubr.bf16.gmra.mxu1 %v8869_v51  ;;  %v1431_v40 = vadd.f32 %v1394_v62, %v1185_v63  ;;  %v8903_v56 = vpack.c.bf16 %v1468_v38, %v1467_v10  ;;  %v1193_v62 = vadd.f32 %v8846_v22, %v8825_v58  ;;  %v7536_v58 = vld [vmem:[#allocation19 + $0x8] ss:$16 sps:$4 sm:$0xff]   ;;  %v8916_v22 = vld [vmem:[#allocation17 + $0xe4] ss:$16 sps:$4 sm:$0xff]   ;;  %v8988_v63 = vld [vmem:[#allocation17 + $0x8c] ss:$16 sps:$4 sm:$0xff]  }
 0x278   :  { %v7302_v19 = vpop.f32.mrf.mxu1  ;;  %1751 = vmatprep.mubr.bf16.mxu0 %v10374_v0  ;;  %1864 = vmatprep.mubr.bf16.mxu1 %v10374_v0  ;;  %v9006_v37 = vld [vmem:[#allocation17 + $0x6c] ss:$16 sps:$4 sm:$0xff]   ;;  %v9009_v38 = vld [vmem:[#allocation17 + $0x44] ss:$16 sps:$4 sm:$0xff]  }
 0x279   :  { %v1436_v59 = vadd.f32 %v7302_v19, %v1206_v1  ;;  %2368 = vmatpush1.bf16.msra.mxu0 %v7497_v53  ;;  %2480 = vmatprep.subr.bf16.mxu1 %v7514_v57  ;;  %v1454_v11 = vadd.f32 %v8843_v3, %v1431_v40  ;;  %v7532_v53 = vld [vmem:[#allocation19 + $0x4] ss:$16 sps:$4 sm:$0xff]   ;;  %v7533_v57 = vld [vmem:[#allocation19 + $0x28] ss:$16 sps:$4 sm:$0xff]   ;;  %v1433_v14 = vadd.f32 %v8867_v12, %v1193_v62  ;;  %v1200_v19 = vpop.f32.mrf.mxu0 }
 0x27a   :  { %v8882_v23 = vpop.f32.mrf.mxu1  ;;  %2369 = vmatprep.subr.bf16.mxu0 %v7505_v8  ;;  %2481 = vmatpush1.bf16.msra.mxu1 %v7512_v13  ;;  %v1453_v8 = vadd.f32 %v8843_v3, %v1430_v50  ;;  %v1190_v13 = vadd.f32 %v8839_v5, %v8821_v55  ;;  %v8922_v55 = vld [vmem:[#allocation17 + $0xec] ss:$16 sps:$4 sm:$0xff]   ;;  %v1201_v12 = vadd.f32 %v1200_v19, %v8837_v2  ;;  %v9012_v40 = vld [vmem:[#allocation17 + $0x68] ss:$16 sps:$4 sm:$0xff]   ;;  %v9038_v10 = vld [vmem:[#allocation17 + $0x4] ss:$16 sps:$4 sm:$0xff]  }
 0x27b   :  { %2482 = vmatprep.subr.bf16.mxu1 %v7520_v16  ;;  %v1459_v30 = vadd.f32 %v8843_v3, %v1436_v59  ;;  %v1470_v1 = vmax.f32 %v1454_v11, 0.0  ;;  %v1456_v20 = vadd.f32 %v8843_v3, %v1433_v14  ;;  %v9040_v50 = vld [vmem:[#allocation17 + $0x28] ss:$16 sps:$4 sm:$0xff]   ;;  %v9044_v11 = vld [vmem:[#allocation17 + $0xc] ss:$16 sps:$4 sm:$0xff]  }
 0x27c   :  { %v7303_v28 = vpop.f32.mrf.mxu1  ;;  %v1432_v16 = vadd.f32 %v8859_v39, %v1190_v13  ;;  %v1469_v17 = vmax.f32 %v1453_v8, 0.0  ;;  %v1198_v39 = vadd.f32 %v8865_v47, %v8833_v61  ;;  %v7592_v62 = vld [vmem:[#allocation20 + $0xe8] ss:$16 sps:$4 sm:$0xff]   ;;  %v7593_v8 = vld [vmem:[#allocation20 + $0xc4] ss:$16 sps:$4 sm:$0xff]  }
 0x27d   :  { %v1437_v31 = vadd.f32 %v7303_v28, %v1209_v26  ;;  %2370 = vmatpush1.bf16.msra.mxu0 %v7503_v60  ;;  %v1475_v41 = vmax.f32 %v1459_v30, 0.0  ;;  %v1472_v59 = vmax.f32 %v1456_v20, 0.0  ;;  %v8957_v28 = vld [vmem:[#allocation17 + $0xe8] ss:$16 sps:$4 sm:$0xff]   ;;  %v8965_v30 = vld [vmem:[#allocation17 + $0xc0] ss:$16 sps:$4 sm:$0xff]  }
 0x27e   :  { %2371 = vmatprep.subr.bf16.mxu0 %v7511_v24  ;;  %2483 = vmatpush1.bf16.msra.mxu1 %v7518_v25  ;;  %v8920_v21 = vpack.c.bf16 %v1470_v1, %v1469_v17  ;;  %v1410_v5 = vpop.f32.mrf.mxu1  ;;  %v1455_v52 = vadd.f32 %v8843_v3, %v1432_v16  ;;  %v1434_v2 = vadd.f32 %v8882_v23, %v1198_v39  ;;  %v8955_v23 = vld [vmem:[#allocation17 + $0xc4] ss:$16 sps:$4 sm:$0xff]   ;;  %v7597_v13 = vld [vmem:[#allocation20 + $0xc0] ss:$16 sps:$4 sm:$0xff]   ;;  %v7598_v14 = vld [vmem:[#allocation20 + $0xc8] ss:$16 sps:$4 sm:$0xff]  }
 0x27f   :  { %v1460_v36 = vadd.f32 %v8843_v3, %v1437_v31  ;;  %1752 = vmatmul.mubr.bf16.gmra.mxu0 %v8887_v54  ;;  %1865 = vmatmul.mubr.bf16.gmra.mxu1 %v8887_v54  ;;  %v1435_v60 = vadd.f32 %v1410_v5, %v1201_v12  ;;  %v8969_v31 = vld [vmem:[#allocation17 + $0xa4] ss:$16 sps:$4 sm:$0xff]   ;;  %v7607_v17 = vld [vmem:[#allocation20 + $0x8c] ss:$16 sps:$4 sm:$0xff]   ;;  %v7609_v19 = vld [vmem:[#allocation20 + $0x80] ss:$16 sps:$4 sm:$0xff]  }
 0x280   :  { %1761 = vmatprep.mubr.bf16.mxu0 %v10374_v0  ;;  %1874 = vmatprep.mubr.bf16.mxu1 %v10374_v0  ;;  %v1471_v24 = vmax.f32 %v1455_v52, 0.0  ;;  %v1457_v6 = vadd.f32 %v8843_v3, %v1434_v2  ;;  %v7599_v1 = vld [vmem:[#allocation20 + $0xa4] ss:$16 sps:$4 sm:$0xff]   ;;  %v7610_v20 = vld [vmem:[#allocation20 + $0x88] ss:$16 sps:$4 sm:$0xff]  }
 0x281   :  { %v1476_v18 = vmax.f32 %v1460_v36, 0.0  ;;  %2372 = vmatpush1.bf16.msra.mxu0 %v7509_v7  ;;  %2484 = vmatprep.subr.bf16.mxu1 %v7526_v33  ;;  %v1458_v26 = vadd.f32 %v8843_v3, %v1435_v60  ;;  %v8953_v3 = vld [vmem:[#allocation17 + $0xe0] ss:$16 sps:$4 sm:$0xff]   ;;  %v8972_v7 = vld [vmem:[#allocation17 + $0xc8] ss:$16 sps:$4 sm:$0xff]  }
 0x282   :  { %2373 = vmatprep.subr.bf16.mxu0 %v7517_v34  ;;  %2485 = vmatpush1.bf16.msra.mxu1 %v7524_v35  ;;  %v8935_v25 = vpack.c.bf16 %v1472_v59, %v1471_v24  ;;  %v1473_v47 = vmax.f32 %v1457_v6, 0.0  ;;  %v8979_v33 = vld [vmem:[#allocation17 + $0xac] ss:$16 sps:$4 sm:$0xff]   ;;  %v8981_v34 = vld [vmem:[#allocation17 + $0x84] ss:$16 sps:$4 sm:$0xff]  }
 0x283   :  { %v8901_v45 = vpack.c.bf16 %v1476_v18, %v1475_v41  ;;  %2486 = vmatprep.subr.bf16.mxu1 %v7529_v9  ;;  %v1474_v61 = vmax.f32 %v1458_v26, 0.0  ;;  %v8984_v35 = vld [vmem:[#allocation17 + $0xa8] ss:$16 sps:$4 sm:$0xff]   ;;  %v8997_v36 = vld [vmem:[#allocation17 + $0x64] ss:$16 sps:$4 sm:$0xff]  }
 0x284   :  { %v9000_v9 = vld [vmem:[#allocation17 + $0x88] ss:$16 sps:$4 sm:$0xff]   ;;  %v9016_v41 = vld [vmem:[#allocation17 + $0x4c] ss:$16 sps:$4 sm:$0xff]   ;;  %v9021_v18 = vld [vmem:[#allocation17 + $0x40] ss:$16 sps:$4 sm:$0xff]  }
 0x285   :  { %2374 = vmatpush1.bf16.msra.mxu0 %v7515_v29  ;;  %v8943_v27 = vpack.c.bf16 %v1474_v61, %v1473_v47  ;;  %v9025_v29 = vld [vmem:[#allocation17 + $0x24] ss:$16 sps:$4 sm:$0xff]   ;;  %v7613_v5 = vld [vmem:[#allocation20 + $0x6c] ss:$16 sps:$4 sm:$0xff]   ;;  %v7615_v12 = vld [vmem:[#allocation20 + $0x60] ss:$16 sps:$4 sm:$0xff]  }
 0x286   :  { %2375 = vmatprep.subr.bf16.mxu0 %v7523_v42  ;;  %2487 = vmatpush1.bf16.msra.mxu1 %v7527_v43  ;;  %v9028_v42 = vld [vmem:[#allocation17 + $0x48] ss:$16 sps:$4 sm:$0xff]   ;;  %v9034_v43 = vld [vmem:[#allocation17 + $0x2c] ss:$16 sps:$4 sm:$0xff]   ;;  %v7605_v16 = vld [vmem:[#allocation20 + $0x84] ss:$16 sps:$4 sm:$0xff]  }
 0x287   :  { %1762 = vmatmul.mubr.bf16.gmra.mxu0 %v8903_v56  ;;  %1875 = vmatmul.mubr.bf16.gmra.mxu1 %v8903_v56  ;;  %v7616_v52 = vld [vmem:[#allocation20 + $0x68] ss:$16 sps:$4 sm:$0xff]   ;;  %v7617_v39 = vld [vmem:[#allocation20 + $0x44] ss:$16 sps:$4 sm:$0xff]   ;;  %v7619_v59 = vld [vmem:[#allocation20 + $0x4c] ss:$16 sps:$4 sm:$0xff]  }
 0x288   :  { %1771 = vmatprep.mubr.bf16.mxu0 %v10374_v0  ;;  %1884 = vmatprep.mubr.bf16.mxu1 %v10374_v0  ;;  %v7621_v60 = vld [vmem:[#allocation20 + $0x40] ss:$16 sps:$4 sm:$0xff]   ;;  %v7622_v24 = vld [vmem:[#allocation20 + $0x48] ss:$16 sps:$4 sm:$0xff]   ;;  %v7623_v2 = vld [vmem:[#allocation20 + $0x24] ss:$16 sps:$4 sm:$0xff]  }
 0x289   :  { %2376 = vmatpush1.bf16.msra.mxu0 %v7521_v46  ;;  %2488 = vmatprep.subr.bf16.mxu1 %v7535_v49  ;;  %v9050_v46 = vld [vmem:[#allocation17] ss:$16 sps:$4 sm:$0xff]   ;;  %v9054_v49 = vld [vmem:[#allocation17 + $0x8] ss:$16 sps:$4 sm:$0xff]   ;;  %v7629_v61 = vld [vmem:[#allocation20 + $0x4] ss:$16 sps:$4 sm:$0xff]  }
 0x28a   :  { %2377 = vmatprep.subr.bf16.mxu0 %v7532_v53  ;;  %2489 = vmatpush1.bf16.msra.mxu1 %v7533_v57  ;;  %v9056_v53 = vld [vmem:[#allocation20 + $0xe4] ss:$16 sps:$4 sm:$0xff]   ;;  %v7591_v57 = vld [vmem:[#allocation20 + $0xe0] ss:$16 sps:$4 sm:$0xff]   ;;  %v7628_v6 = vld [vmem:[#allocation20 + $0x28] ss:$16 sps:$4 sm:$0xff]  }
 0x28b   :  { %2490 = vmatprep.subr.bf16.mxu1 %v7538_v44  ;;  %v7595_v44 = vld [vmem:[#allocation20 + $0xcc] ss:$16 sps:$4 sm:$0xff]   ;;  %v7627_v26 = vld [vmem:[#allocation20 + $0x20] ss:$16 sps:$4 sm:$0xff]  }
 0x28c   :  { %v7631_v47 = vld [vmem:[#allocation20 + $0xc] ss:$16 sps:$4 sm:$0xff]  }
 0x28d   :  { %2378 = vmatpush1.bf16.msra.mxu0 %v7530_v15  ;;  %v7603_v15 = vld [vmem:[#allocation20 + $0xa0] ss:$16 sps:$4 sm:$0xff]  }
 0x28e   :  { %2491 = vmatpush1.bf16.msra.mxu1 %v7536_v58  ;;  %3049 = vmatprep.subr.bf16.mxu0 %v8916_v22  ;;  %v7604_v58 = vld [vmem:[#allocation20 + $0xa8] ss:$16 sps:$4 sm:$0xff]  }
 0x28f   :  { %1772 = vmatmul.mubr.bf16.gmra.mxu0 %v8920_v21  ;;  %1885 = vmatmul.mubr.bf16.gmra.mxu1 %v8920_v21 }
 0x290   :  { %1781 = vmatprep.mubr.bf16.mxu0 %v10374_v0  ;;  %1894 = vmatprep.mubr.bf16.mxu1 %v10374_v0 }
 0x291   :  { %3092 = vmatprep.subr.bf16.mxu1 %v8922_v55 }
 0x297   :  { %1782 = vmatmul.mubr.bf16.gmra.mxu0 %v8935_v25  ;;  %1895 = vmatmul.mubr.bf16.gmra.mxu1 %v8935_v25 }
 0x298   :  { %1791 = vmatprep.mubr.bf16.mxu0 %v10374_v0  ;;  %1904 = vmatprep.mubr.bf16.mxu1 %v10374_v0 }
 0x29f   :  { %1792 = vmatmul.mubr.bf16.gmra.mxu0 %v8943_v27  ;;  %1905 = vmatmul.mubr.bf16.gmra.mxu1 %v8943_v27 }
 0x2a0   :  { %1801 = vmatprep.mubr.bf16.mxu0 %v10374_v0  ;;  %1914 = vmatprep.mubr.bf16.mxu1 %v10374_v0 }
 0x2a7   :  { %1802 = vmatmul.mubr.bf16.gmra.mxu0 %v8901_v45  ;;  %1915 = vmatmul.mubr.bf16.gmra.mxu1 %v8901_v45 }
 0x2a8   :  { %2395 = vmatprep.mubr.bf16.mxu0 %v10374_v0  ;;  %2508 = vmatprep.mubr.bf16.mxu1 %v10374_v0 }
 0x2af   :  { %2396 = vmatmul.mubr.bf16.vlgmr.msra.gmra.mxu0 %v8854_v32  ;;  %2509 = vmatmul.mubr.bf16.vlgmr.msra.gmra.mxu1 %v8854_v32  ;;  %v8977_v32 = vld [vmem:[#allocation17 + $0xa0] ss:$16 sps:$4 sm:$0xff]  }
 0x2b0   :  { %3050 = vmatpush1.bf16.msra.mxu0 %v8953_v3  ;;  %2405 = vmatprep.mubr.bf16.mxu0 %v10374_v0 }
 0x2b1   :  { %2518 = vmatprep.mubr.bf16.mxu1 %v10374_v0  ;;  %3051 = vmatprep.subr.bf16.mxu0 %v8955_v23 }
 0x2b2   :  { %3093 = vmatpush1.bf16.msra.mxu1 %v8957_v28 }
 0x2b3   :  { %3094 = vmatprep.subr.bf16.mxu1 %v8961_v48 }
 0x2b4   :  { %3052 = vmatpush1.bf16.msra.mxu0 %v8965_v30 }
 0x2b5   :  { %3053 = vmatprep.subr.bf16.mxu0 %v8969_v31 }
 0x2b6   :  { %3095 = vmatpush1.bf16.msra.mxu1 %v8972_v7 }
 0x2b7   :  { %2406 = vmatmul.mubr.bf16.gmra.mxu0 %v8869_v51  ;;  %2519 = vmatmul.mubr.bf16.gmra.mxu1 %v8869_v51  ;;  %v9004_v51 = vld [vmem:[#allocation17 + $0x60] ss:$16 sps:$4 sm:$0xff]  }
 0x2b8   :  { %2415 = vmatprep.mubr.bf16.mxu0 %v10374_v0  ;;  %2528 = vmatprep.mubr.bf16.mxu1 %v10374_v0 }
 0x2b9   :  { %3054 = vmatpush1.bf16.msra.mxu0 %v8977_v32  ;;  %3096 = vmatprep.subr.bf16.mxu1 %v8979_v33 }
 0x2ba   :  { %3055 = vmatprep.subr.bf16.mxu0 %v8981_v34  ;;  %3097 = vmatpush1.bf16.msra.mxu1 %v8984_v35 }
 0x2bb   :  { %3098 = vmatprep.subr.bf16.mxu1 %v8988_v63 }
 0x2bd   :  { %3056 = vmatpush1.bf16.msra.mxu0 %v8993_v4 }
 0x2be   :  { %3057 = vmatprep.subr.bf16.mxu0 %v8997_v36  ;;  %3099 = vmatpush1.bf16.msra.mxu1 %v9000_v9 }
 0x2bf   :  { %2416 = vmatmul.mubr.bf16.gmra.mxu0 %v8887_v54  ;;  %2529 = vmatmul.mubr.bf16.gmra.mxu1 %v8887_v54  ;;  %v9032_v54 = vld [vmem:[#allocation17 + $0x20] ss:$16 sps:$4 sm:$0xff]  }
 0x2c0   :  { %2425 = vmatprep.mubr.bf16.mxu0 %v10374_v0  ;;  %2538 = vmatprep.mubr.bf16.mxu1 %v10374_v0 }
 0x2c1   :  { %3058 = vmatpush1.bf16.msra.mxu0 %v9004_v51  ;;  %3100 = vmatprep.subr.bf16.mxu1 %v9006_v37 }
 0x2c2   :  { %3059 = vmatprep.subr.bf16.mxu0 %v9009_v38  ;;  %3101 = vmatpush1.bf16.msra.mxu1 %v9012_v40 }
 0x2c3   :  { %3102 = vmatprep.subr.bf16.mxu1 %v9016_v41 }
 0x2c5   :  { %3060 = vmatpush1.bf16.msra.mxu0 %v9021_v18 }
 0x2c6   :  { %3061 = vmatprep.subr.bf16.mxu0 %v9025_v29  ;;  %3103 = vmatpush1.bf16.msra.mxu1 %v9028_v42 }
 0x2c7   :  { %2426 = vmatmul.mubr.bf16.gmra.mxu0 %v8903_v56  ;;  %2539 = vmatmul.mubr.bf16.gmra.mxu1 %v8903_v56  ;;  %v9060_v56 = vld [vmem:[#allocation20 + $0xec] ss:$16 sps:$4 sm:$0xff]  }
 0x2c8   :  { %2435 = vmatprep.mubr.bf16.mxu0 %v10374_v0  ;;  %2548 = vmatprep.mubr.bf16.mxu1 %v10374_v0 }
 0x2c9   :  { %3062 = vmatpush1.bf16.msra.mxu0 %v9032_v54  ;;  %3104 = vmatprep.subr.bf16.mxu1 %v9034_v43 }
 0x2ca   :  { %3063 = vmatprep.subr.bf16.mxu0 %v9038_v10  ;;  %3105 = vmatpush1.bf16.msra.mxu1 %v9040_v50 }
 0x2cb   :  { %3106 = vmatprep.subr.bf16.mxu1 %v9044_v11 }
 0x2cd   :  { %3064 = vmatpush1.bf16.msra.mxu0 %v9050_v46 }
 0x2ce   :  { %3107 = vmatpush1.bf16.msra.mxu1 %v9054_v49  ;;  %3373 = vmatprep.subr.bf16.mxu0 %v9056_v53 }
 0x2cf   :  { %2436 = vmatmul.mubr.bf16.gmra.mxu0 %v8920_v21  ;;  %2549 = vmatmul.mubr.bf16.gmra.mxu1 %v8920_v21  ;;  %v7611_v21 = vld [vmem:[#allocation20 + $0x64] ss:$16 sps:$4 sm:$0xff]  }
 0x2d0   :  { %2445 = vmatprep.mubr.bf16.mxu0 %v10374_v0  ;;  %2558 = vmatprep.mubr.bf16.mxu1 %v10374_v0 }
 0x2d1   :  { %3416 = vmatprep.subr.bf16.mxu1 %v9060_v56 }
 0x2d7   :  { %2446 = vmatmul.mubr.bf16.gmra.mxu0 %v8935_v25  ;;  %2559 = vmatmul.mubr.bf16.gmra.mxu1 %v8935_v25  ;;  %v7625_v25 = vld [vmem:[#allocation20 + $0x2c] ss:$16 sps:$4 sm:$0xff]  }
 0x2d8   :  { %2455 = vmatprep.mubr.bf16.mxu0 %v10374_v0  ;;  %2568 = vmatprep.mubr.bf16.mxu1 %v10374_v0 }
 0x2df   :  { %2456 = vmatmul.mubr.bf16.gmra.mxu0 %v8943_v27  ;;  %2569 = vmatmul.mubr.bf16.gmra.mxu1 %v8943_v27  ;;  %v7633_v27 = vld [vmem:[#allocation20] ss:$16 sps:$4 sm:$0xff]  }
 0x2e0   :  { %2465 = vmatprep.mubr.bf16.mxu0 %v10374_v0  ;;  %2578 = vmatprep.mubr.bf16.mxu1 %v10374_v0 }
 0x2e7   :  { %2466 = vmatmul.mubr.bf16.gmra.mxu0 %v8901_v45  ;;  %2579 = vmatmul.mubr.bf16.gmra.mxu1 %v8901_v45  ;;  %v7601_v45 = vld [vmem:[#allocation20 + $0xac] ss:$16 sps:$4 sm:$0xff]  }
 0x2e8   :  { %3081 = vmatprep.mubr.bf16.mxu0 %v10374_v0  ;;  %3124 = vmatprep.mubr.bf16.mxu1 %v10374_v0 }
 0x2ef   :  { %3082 = vmatmul.mubr.bf16.vlgmr.msra.gmra.mxu0 %v10374_v0  ;;  %3125 = vmatmul.mubr.bf16.vlgmr.msra.gmra.mxu1 %v10374_v0 }
 0x2f0   :  { %3374 = vmatpush1.bf16.msra.mxu0 %v7591_v57  ;;  %3417 = vmatpush1.bf16.msra.mxu1 %v7592_v62  ;;  %v7634_v57 = vld [vmem:[#allocation20 + $0x8] ss:$16 sps:$4 sm:$0xff]  }
 0x2f1   :  { %3375 = vmatprep.subr.bf16.mxu0 %v7593_v8  ;;  %3418 = vmatprep.subr.bf16.mxu1 %v7595_v44 }
 0x2f2   :  { %3405 = vmatprep.mubr.bf16.mxu0 %v10374_v0  ;;  %3448 = vmatprep.mubr.bf16.mxu1 %v10374_v0 }
 0x2f4   :  { %3376 = vmatpush1.bf16.msra.mxu0 %v7597_v13  ;;  %3419 = vmatpush1.bf16.msra.mxu1 %v7598_v14 }
 0x2f5   :  { %3377 = vmatprep.subr.bf16.mxu0 %v7599_v1  ;;  %3420 = vmatprep.subr.bf16.mxu1 %v7601_v45 }
 0x2f8   :  { %3378 = vmatpush1.bf16.msra.mxu0 %v7603_v15  ;;  %3421 = vmatpush1.bf16.msra.mxu1 %v7604_v58 }
 0x2f9   :  { %3379 = vmatprep.subr.bf16.mxu0 %v7605_v16  ;;  %3422 = vmatprep.subr.bf16.mxu1 %v7607_v17 }
 0x2fc   :  { %3380 = vmatpush1.bf16.msra.mxu0 %v7609_v19  ;;  %3423 = vmatpush1.bf16.msra.mxu1 %v7610_v20 }
 0x2fd   :  { %3381 = vmatprep.subr.bf16.mxu0 %v7611_v21  ;;  %3424 = vmatprep.subr.bf16.mxu1 %v7613_v5 }
 0x300   :  { %3382 = vmatpush1.bf16.msra.mxu0 %v7615_v12  ;;  %3425 = vmatpush1.bf16.msra.mxu1 %v7616_v52 }
 0x301   :  { %3383 = vmatprep.subr.bf16.mxu0 %v7617_v39  ;;  %3426 = vmatprep.subr.bf16.mxu1 %v7619_v59 }
 0x304   :  { %3384 = vmatpush1.bf16.msra.mxu0 %v7621_v60  ;;  %3427 = vmatpush1.bf16.msra.mxu1 %v7622_v24 }
 0x305   :  { %3385 = vmatprep.subr.bf16.mxu0 %v7623_v2  ;;  %3428 = vmatprep.subr.bf16.mxu1 %v7625_v25 }
 0x308   :  { %3386 = vmatpush1.bf16.msra.mxu0 %v7627_v26  ;;  %3429 = vmatpush1.bf16.msra.mxu1 %v7628_v6 }
 0x309   :  { %3387 = vmatprep.subr.bf16.mxu0 %v7629_v61  ;;  %3430 = vmatprep.subr.bf16.mxu1 %v7631_v47 }
 0x30c   :  { %3388 = vmatpush1.bf16.msra.mxu0 %v7633_v27  ;;  %3431 = vmatpush1.bf16.msra.mxu1 %v7634_v57 }
 0x30d   :  { %3537 = vmatprep.subr.bf16.mxu0 %v8916_v22  ;;  %3580 = vmatprep.subr.bf16.mxu1 %v8922_v55  ;;  %v1519_v22 = vlaneseq }
 0x30f   :  { %3406 = vmatmul.mubr.bf16.vlgmr.msra.gmra.mxu0 %v10374_v0  ;;  %3449 = vmatmul.mubr.bf16.vlgmr.msra.gmra.mxu1 %v10374_v0  ;;  %v9115_v55 = vshrl.u32 %v1519_v22, 7 }
 0x310   :  { %3538 = vmatpush1.bf16.msra.mxu0 %v8953_v3  ;;  %3581 = vmatpush1.bf16.msra.mxu1 %v8957_v28 }
 0x311   :  { %3539 = vmatprep.subr.bf16.mxu0 %v8955_v23  ;;  %3582 = vmatprep.subr.bf16.mxu1 %v8961_v48  ;;  %v1521_v3 = vsub.s32 0, %v9115_v55  ;;  %v1529_v23 = vsub.s32 2, %v9115_v55  ;;  %v1525_v28 = vsub.s32 1, %v9115_v55  ;;  %v1533_v48 = vsub.s32 3, %v9115_v55 }
 0x312   :  { %3569 = vmatprep.mubr.bf16.mxu0 %v10374_v0  ;;  %3612 = vmatprep.mubr.bf16.mxu1 %v10374_v0 }
 0x314   :  { %3540 = vmatpush1.bf16.msra.mxu0 %v8965_v30  ;;  %3583 = vmatpush1.bf16.msra.mxu1 %v8972_v7  ;;  %v1517_v30 = vld [vmem:[%s10366_s7] sm:$0xf] }
 0x315   :  { %3541 = vmatprep.subr.bf16.mxu0 %v8969_v31  ;;  %3584 = vmatprep.subr.bf16.mxu1 %v8979_v33  ;;  %v9134_v31 = vrot.slane %v1517_v30, %v1521_v3  ;;  %v9138_v7 = vrot.slane %v1517_v30, %v1529_v23  ;;  %v9146_v33 = vrot.slane %v1517_v30, %v1533_v48 }
 0x318   :  { %3542 = vmatpush1.bf16.msra.mxu0 %v8977_v32  ;;  %3585 = vmatpush1.bf16.msra.mxu1 %v8984_v35  ;;  %v9142_v32 = vrot.slane %v1517_v30, %v1525_v28 }
 0x319   :  { %3543 = vmatprep.subr.bf16.mxu0 %v8981_v34  ;;  %3586 = vmatprep.subr.bf16.mxu1 %v8988_v63 }
 0x31c   :  { %3544 = vmatpush1.bf16.msra.mxu0 %v8993_v4  ;;  %3587 = vmatpush1.bf16.msra.mxu1 %v9000_v9 }
 0x31d   :  { %3545 = vmatprep.subr.bf16.mxu0 %v8997_v36  ;;  %3588 = vmatprep.subr.bf16.mxu1 %v9006_v37 }
 0x320   :  { %3546 = vmatpush1.bf16.msra.mxu0 %v9004_v51  ;;  %3589 = vmatpush1.bf16.msra.mxu1 %v9012_v40 }
 0x321   :  { %3547 = vmatprep.subr.bf16.mxu0 %v9009_v38  ;;  %3590 = vmatprep.subr.bf16.mxu1 %v9016_v41 }
 0x324   :  { %3548 = vmatpush1.bf16.msra.mxu0 %v9021_v18  ;;  %3591 = vmatpush1.bf16.msra.mxu1 %v9028_v42 }
 0x325   :  { %3549 = vmatprep.subr.bf16.mxu0 %v9025_v29  ;;  %3592 = vmatprep.subr.bf16.mxu1 %v9034_v43 }
 0x328   :  { %3550 = vmatpush1.bf16.msra.mxu0 %v9032_v54  ;;  %3593 = vmatpush1.bf16.msra.mxu1 %v9040_v50 }
 0x329   :  { %3551 = vmatprep.subr.bf16.mxu0 %v9038_v10  ;;  %3594 = vmatprep.subr.bf16.mxu1 %v9044_v11 }
 0x32c   :  { %3552 = vmatpush1.bf16.msra.mxu0 %v9050_v46  ;;  %3595 = vmatpush1.bf16.msra.mxu1 %v9054_v49 }
 0x32d   :  { %3701 = vmatprep.subr.bf16.mxu0 %v9056_v53  ;;  %3744 = vmatprep.subr.bf16.mxu1 %v9060_v56 }
 0x32f   :  { %v1733_v34 = vpop.f32.mrf.mxu0  ;;  %v1846_v35 = vpop.f32.mrf.mxu1 }
 0x330   :  { %v1734_v36 = vadd.f32 %v1733_v34, %v9134_v31  ;;  %v1847_v9 = vadd.f32 %v1846_v35, %v9138_v7 }
 0x331   :  { %v1735_v63 = vpop.f32.mrf.mxu0  ;;  %v1848_v4 = vpop.f32.mrf.mxu1 }
 0x332   :  { %v1736_v51 = vadd.f32 %v1735_v63, %v9142_v32  ;;  %v1849_v37 = vadd.f32 %v1848_v4, %v9146_v33 }
 0x333   :  { %v9152_v38 = vpop.f32.mrf.mxu0  ;;  %v9154_v40 = vpop.f32.mrf.mxu1 }
 0x334   :  { %v9156_v41 = vpack.c.bf16 %v1736_v51, %v1734_v36  ;;  %v9158_v18 = vpack.c.bf16 %v1849_v37, %v1847_v9 }
 0x335   :  { %v9160_v29 = vpop.f32.mrf.mxu0  ;;  %v9162_v42 = vpop.f32.mrf.mxu1 }
 0x337   :  { %v1743_v54 = vpop.f32.mrf.mxu0  ;;  %v1856_v43 = vpop.f32.mrf.mxu1 }
 0x338   :  { %v1744_v10 = vadd.f32 %v1743_v54, %v9134_v31  ;;  %v1857_v50 = vadd.f32 %v1856_v43, %v9138_v7 }
 0x339   :  { %v1745_v11 = vpop.f32.mrf.mxu0  ;;  %v1858_v46 = vpop.f32.mrf.mxu1 }
 0x33a   :  { %v1746_v49 = vadd.f32 %v1745_v11, %v9142_v32  ;;  %v1859_v53 = vadd.f32 %v1858_v46, %v9146_v33 }
 0x33b   :  { %v1747_v56 = vpop.f32.mrf.mxu0  ;;  %v1860_v62 = vpop.f32.mrf.mxu1 }
 0x33c   :  { %v9168_v8 = vpack.c.bf16 %v1746_v49, %v1744_v10  ;;  %v9170_v44 = vpack.c.bf16 %v1859_v53, %v1857_v50  ;;  %v1748_v13 = vadd.f32 %v1747_v56, %v9134_v31  ;;  %v1861_v14 = vadd.f32 %v1860_v62, %v9138_v7 }
 0x33d   :  { %v1749_v1 = vpop.f32.mrf.mxu0  ;;  %v1862_v45 = vpop.f32.mrf.mxu1 }
 0x33e   :  { %v1750_v15 = vadd.f32 %v1749_v1, %v9142_v32  ;;  %v1863_v58 = vadd.f32 %v1862_v45, %v9146_v33 }
 0x33f   :  { %v1753_v16 = vpop.f32.mrf.mxu0  ;;  %v1866_v17 = vpop.f32.mrf.mxu1 }
 0x340   :  { %v9176_v19 = vpack.c.bf16 %v1750_v15, %v1748_v13  ;;  %v9178_v20 = vpack.c.bf16 %v1863_v58, %v1861_v14  ;;  %v1754_v21 = vadd.f32 %v1753_v16, %v9134_v31  ;;  %v1867_v5 = vadd.f32 %v1866_v17, %v9138_v7 }
 0x341   :  { %v1755_v12 = vpop.f32.mrf.mxu0  ;;  %v1868_v52 = vpop.f32.mrf.mxu1 }
 0x342   :  { %v1756_v39 = vadd.f32 %v1755_v12, %v9142_v32  ;;  %v1869_v59 = vadd.f32 %v1868_v52, %v9146_v33 }
 0x343   :  { %v1757_v60 = vpop.f32.mrf.mxu0  ;;  %v1870_v24 = vpop.f32.mrf.mxu1 }
 0x344   :  { %v9184_v2 = vpack.c.bf16 %v1756_v39, %v1754_v21  ;;  %v9186_v25 = vpack.c.bf16 %v1869_v59, %v1867_v5  ;;  %v1758_v26 = vadd.f32 %v1757_v60, %v9134_v31  ;;  %v1871_v6 = vadd.f32 %v1870_v24, %v9138_v7 }
 0x345   :  { %v1759_v61 = vpop.f32.mrf.mxu0  ;;  %v1872_v47 = vpop.f32.mrf.mxu1 }
 0x346   :  { %10543 = vst [vmem:[#allocation33_spill] sm:$0xff] %v9184_v2  ;;  %10544 = vst [vmem:[#allocation34_spill] sm:$0xff] %v9186_v25  ;;  %v1760_v27 = vadd.f32 %v1759_v61, %v9142_v32  ;;  %v1873_v57 = vadd.f32 %v1872_v47, %v9146_v33  ;;  %v9605_v25 = vld [vmem:[#allocation17 + $0x60] ss:$16 sps:$4 sm:$0xff]   ;;  %v9611_v2 = vld [vmem:[#allocation17 + $0x44] ss:$16 sps:$4 sm:$0xff]  }
 0x347   :  { %v1763_v22 = vpop.f32.mrf.mxu0  ;;  %v1876_v30 = vpop.f32.mrf.mxu1  ;;  %10607 = vst [vmem:[#allocation96_spill] sm:$0xff] %v9605_v25  ;;  %10609 = vst [vmem:[#allocation98_spill] sm:$0xff] %v9611_v2 }
 0x348   :  { %v9192_v34 = vpack.c.bf16 %v1760_v27, %v1758_v26  ;;  %v9194_v35 = vpack.c.bf16 %v1873_v57, %v1871_v6  ;;  %v1764_v63 = vadd.f32 %v1763_v22, %v9134_v31  ;;  %v1877_v4 = vadd.f32 %v1876_v30, %v9138_v7 }
 0x349   :  { %v1765_v36 = vpop.f32.mrf.mxu0  ;;  %v1878_v9 = vpop.f32.mrf.mxu1 }
 0x34a   :  { %10545 = vst [vmem:[#allocation35_spill] sm:$0xff] %v9192_v34  ;;  %10546 = vst [vmem:[#allocation36_spill] sm:$0xff] %v9194_v35  ;;  %v1766_v51 = vadd.f32 %v1765_v36, %v9142_v32  ;;  %v1879_v37 = vadd.f32 %v1878_v9, %v9146_v33  ;;  %v9602_v35 = vld [vmem:[#allocation17 + $0x6c] ss:$16 sps:$4 sm:$0xff]   ;;  %v9608_v34 = vld [vmem:[#allocation17 + $0x68] ss:$16 sps:$4 sm:$0xff]  }
 0x34b   :  { %v1767_v54 = vpop.f32.mrf.mxu0  ;;  %v1880_v43 = vpop.f32.mrf.mxu1  ;;  %10606 = vst [vmem:[#allocation95_spill] sm:$0xff] %v9602_v35  ;;  %10608 = vst [vmem:[#allocation97_spill] sm:$0xff] %v9608_v34 }
 0x34c   :  { %v9200_v10 = vpack.c.bf16 %v1766_v51, %v1764_v63  ;;  %v9202_v50 = vpack.c.bf16 %v1879_v37, %v1877_v4  ;;  %v1768_v11 = vadd.f32 %v1767_v54, %v9134_v31  ;;  %v1881_v46 = vadd.f32 %v1880_v43, %v9138_v7 }
 0x34d   :  { %v1769_v49 = vpop.f32.mrf.mxu0  ;;  %v1882_v53 = vpop.f32.mrf.mxu1 }
 0x34e   :  { %10547 = vst [vmem:[#allocation37_spill] sm:$0xff] %v9200_v10  ;;  %10548 = vst [vmem:[#allocation38_spill] sm:$0xff] %v9202_v50  ;;  %v1770_v56 = vadd.f32 %v1769_v49, %v9142_v32  ;;  %v1883_v62 = vadd.f32 %v1882_v53, %v9146_v33  ;;  %v9558_v50 = vld [vmem:[#allocation17 + $0xe8] ss:$16 sps:$4 sm:$0xff]   ;;  %v9587_v10 = vld [vmem:[#allocation17 + $0x84] ss:$16 sps:$4 sm:$0xff]  }
 0x34f   :  { %v1773_v13 = vpop.f32.mrf.mxu0  ;;  %v1886_v14 = vpop.f32.mrf.mxu1  ;;  %10592 = vst [vmem:[#allocation81_spill] sm:$0xff] %v9558_v50  ;;  %10601 = vst [vmem:[#allocation90_spill] sm:$0xff] %v9587_v10 }
 0x350   :  { %v9208_v1 = vpack.c.bf16 %v1770_v56, %v1768_v11  ;;  %v9210_v45 = vpack.c.bf16 %v1883_v62, %v1881_v46  ;;  %v1774_v15 = vadd.f32 %v1773_v13, %v9134_v31  ;;  %v1887_v58 = vadd.f32 %v1886_v14, %v9138_v7 }
 0x351   :  { %v1775_v16 = vpop.f32.mrf.mxu0  ;;  %v1888_v17 = vpop.f32.mrf.mxu1 }
 0x352   :  { %10549 = vst [vmem:[#allocation39_spill] sm:$0xff] %v9208_v1  ;;  %10550 = vst [vmem:[#allocation40_spill] sm:$0xff] %v9210_v45  ;;  %v1776_v21 = vadd.f32 %v1775_v16, %v9142_v32  ;;  %v1889_v5 = vadd.f32 %v1888_v17, %v9146_v33  ;;  %v9555_v45 = vld [vmem:[#allocation17 + $0xe0] ss:$16 sps:$4 sm:$0xff]   ;;  %v9584_v1 = vld [vmem:[#allocation17 + $0xa8] ss:$16 sps:$4 sm:$0xff]  }
 0x353   :  { %v1777_v12 = vpop.f32.mrf.mxu0  ;;  %v1890_v52 = vpop.f32.mrf.mxu1  ;;  %10600 = vst [vmem:[#allocation89_spill] sm:$0xff] %v9584_v1 }
 0x354   :  { %v9216_v39 = vpack.c.bf16 %v1776_v21, %v1774_v15  ;;  %v9218_v59 = vpack.c.bf16 %v1889_v5, %v1887_v58  ;;  %v1778_v60 = vadd.f32 %v1777_v12, %v9134_v31  ;;  %v1891_v24 = vadd.f32 %v1890_v52, %v9138_v7 }
 0x355   :  { %v1779_v26 = vpop.f32.mrf.mxu0  ;;  %v1892_v6 = vpop.f32.mrf.mxu1 }
 0x356   :  { %10551 = vst [vmem:[#allocation41_spill] sm:$0xff] %v9216_v39  ;;  %10552 = vst [vmem:[#allocation42_spill] sm:$0xff] %v9218_v59  ;;  %v1780_v61 = vadd.f32 %v1779_v26, %v9142_v32  ;;  %v1893_v47 = vadd.f32 %v1892_v6, %v9146_v33  ;;  %v9543_v59 = vld [vmem:[#allocation20] ss:$16 sps:$4 sm:$0xff]  }
 0x357   :  { %v1783_v27 = vpop.f32.mrf.mxu0  ;;  %v1896_v57 = vpop.f32.mrf.mxu1 }
 0x358   :  { %v9224_v22 = vpack.c.bf16 %v1780_v61, %v1778_v60  ;;  %v9226_v30 = vpack.c.bf16 %v1893_v47, %v1891_v24  ;;  %v1784_v63 = vadd.f32 %v1783_v27, %v9134_v31  ;;  %v1897_v4 = vadd.f32 %v1896_v57, %v9138_v7 }
 0x359   :  { %v1785_v36 = vpop.f32.mrf.mxu0  ;;  %v1898_v9 = vpop.f32.mrf.mxu1 }
 0x35a   :  { %10553 = vst [vmem:[#allocation43_spill] sm:$0xff] %v9224_v22  ;;  %10554 = vst [vmem:[#allocation44_spill] sm:$0xff] %v9226_v30  ;;  %v1786_v51 = vadd.f32 %v1785_v36, %v9142_v32  ;;  %v1899_v37 = vadd.f32 %v1898_v9, %v9146_v33  ;;  %v9546_v22 = vld [vmem:[#allocation20 + $0x8] ss:$16 sps:$4 sm:$0xff]  }
 0x35b   :  { %v1787_v54 = vpop.f32.mrf.mxu0  ;;  %v1900_v43 = vpop.f32.mrf.mxu1 }
 0x35c   :  { %v9232_v11 = vpack.c.bf16 %v1786_v51, %v1784_v63  ;;  %v9234_v46 = vpack.c.bf16 %v1899_v37, %v1897_v4  ;;  %v1788_v49 = vadd.f32 %v1787_v54, %v9134_v31  ;;  %v1901_v53 = vadd.f32 %v1900_v43, %v9138_v7 }
 0x35d   :  { %v1789_v56 = vpop.f32.mrf.mxu0  ;;  %v1902_v62 = vpop.f32.mrf.mxu1 }
 0x35e   :  { %10555 = vst [vmem:[#allocation45_spill] sm:$0xff] %v9232_v11  ;;  %10556 = vst [vmem:[#allocation46_spill] sm:$0xff] %v9234_v46  ;;  %v1790_v13 = vadd.f32 %v1789_v56, %v9142_v32  ;;  %v1903_v14 = vadd.f32 %v1902_v62, %v9146_v33  ;;  %v2181_v56 = vld [vmem:[%s10369_s10] sm:$0xf]  ;;  %v2882_v46 = vunpack.c.h.bf16 %v9156_v41 }
 0x35f   :  { %v1793_v15 = vpop.f32.mrf.mxu0  ;;  %v1906_v58 = vpop.f32.mrf.mxu1 }
 0x360   :  { %v9240_v16 = vpack.c.bf16 %v1790_v13, %v1788_v49  ;;  %v9242_v17 = vpack.c.bf16 %v1903_v14, %v1901_v53  ;;  %v1794_v21 = vadd.f32 %v1793_v15, %v9134_v31  ;;  %v1907_v5 = vadd.f32 %v1906_v58, %v9138_v7 }
 0x361   :  { %v1795_v12 = vpop.f32.mrf.mxu0  ;;  %v1908_v52 = vpop.f32.mrf.mxu1 }
 0x362   :  { %10557 = vst [vmem:[#allocation47_spill] sm:$0xff] %v9240_v16  ;;  %10558 = vst [vmem:[#allocation48_spill] sm:$0xff] %v9242_v17  ;;  %v1796_v60 = vadd.f32 %v1795_v12, %v9142_v32  ;;  %v1909_v24 = vadd.f32 %v1908_v52, %v9146_v33  ;;  %v9273_v12 = vrot.slane %v2181_v56, %v1529_v23 }
 0x363   :  { %v1797_v26 = vpop.f32.mrf.mxu0  ;;  %v1910_v6 = vpop.f32.mrf.mxu1  ;;  %v9289_v23 = vrot.slane %v2181_v56, %v1533_v48 }
 0x364   :  { %v9248_v61 = vpack.c.bf16 %v1796_v60, %v1794_v21  ;;  %v9250_v47 = vpack.c.bf16 %v1909_v24, %v1907_v5  ;;  %v1798_v27 = vadd.f32 %v1797_v26, %v9134_v31  ;;  %v1911_v57 = vadd.f32 %v1910_v6, %v9138_v7 }
 0x365   :  { %v1799_v63 = vpop.f32.mrf.mxu0  ;;  %v1912_v4 = vpop.f32.mrf.mxu1  ;;  %v9269_v5 = vrot.slane %v2181_v56, %v1521_v3  ;;  %v9285_v3 = vrot.slane %v2181_v56, %v1525_v28 }
 0x366   :  { %10559 = vst [vmem:[#allocation49_spill] sm:$0xff] %v9248_v61  ;;  %10560 = vst [vmem:[#allocation50_spill] sm:$0xff] %v9250_v47  ;;  %v1800_v36 = vadd.f32 %v1799_v63, %v9142_v32  ;;  %v1913_v9 = vadd.f32 %v1912_v4, %v9146_v33 }
 0x367   :  { %v1803_v51 = vpop.f32.mrf.mxu0  ;;  %v1916_v37 = vpop.f32.mrf.mxu1 }
 0x368   :  { %v9256_v54 = vpack.c.bf16 %v1800_v36, %v1798_v27  ;;  %v9258_v43 = vpack.c.bf16 %v1913_v9, %v1911_v57  ;;  %v1804_v49 = vadd.f32 %v1803_v51, %v9134_v31  ;;  %v1917_v53 = vadd.f32 %v1916_v37, %v9138_v7 }
 0x369   :  { %v1805_v62 = vpop.f32.mrf.mxu0  ;;  %v1918_v13 = vpop.f32.mrf.mxu1 }
 0x36a   :  { %10561 = vst [vmem:[#allocation51_spill] sm:$0xff] %v9256_v54  ;;  %10562 = vst [vmem:[#allocation52_spill] sm:$0xff] %v9258_v43  ;;  %v1806_v14 = vadd.f32 %v1805_v62, %v9142_v32  ;;  %v1919_v15 = vadd.f32 %v1918_v13, %v9146_v33 }
 0x36b   :  { %v1807_v58 = vpop.f32.mrf.mxu0  ;;  %v1920_v21 = vpop.f32.mrf.mxu1 }
 0x36c   :  { %v9275_v52 = vpack.c.bf16 %v1806_v14, %v1804_v49  ;;  %v9277_v60 = vpack.c.bf16 %v1919_v15, %v1917_v53  ;;  %v1808_v24 = vadd.f32 %v1807_v58, %v9134_v31  ;;  %v1921_v26 = vadd.f32 %v1920_v21, %v9138_v7 }
 0x36d   :  { %v1809_v6 = vpop.f32.mrf.mxu0  ;;  %v1922_v27 = vpop.f32.mrf.mxu1 }
 0x36e   :  { %10563 = vst [vmem:[#allocation53_spill] sm:$0xff] %v9275_v52  ;;  %10564 = vst [vmem:[#allocation54_spill] sm:$0xff] %v9277_v60  ;;  %v1810_v57 = vadd.f32 %v1809_v6, %v9142_v32  ;;  %v1923_v63 = vadd.f32 %v1922_v27, %v9146_v33 }
 0x36f   :  { %v2397_v4 = vpop.f32.mrf.mxu0  ;;  %v2510_v36 = vpop.f32.mrf.mxu1 }
 0x370   :  { %v9291_v9 = vpack.c.bf16 %v1810_v57, %v1808_v24  ;;  %v9293_v51 = vpack.c.bf16 %v1923_v63, %v1921_v26  ;;  %v2398_v37 = vadd.f32 %v2397_v4, %v9269_v5  ;;  %v2511_v49 = vadd.f32 %v2510_v36, %v9273_v12 }
 0x371   :  { %v2399_v53 = vpop.f32.mrf.mxu0  ;;  %v2512_v62 = vpop.f32.mrf.mxu1 }
 0x372   :  { %10565 = vst [vmem:[#allocation55_spill] sm:$0xff] %v9291_v9  ;;  %10566 = vst [vmem:[#allocation56_spill] sm:$0xff] %v9293_v51  ;;  %v2400_v13 = vadd.f32 %v2399_v53, %v9285_v3  ;;  %v2513_v28 = vadd.f32 %v2512_v62, %v9289_v23 }
 0x373   :  { %v2401_v14 = vpop.f32.mrf.mxu0  ;;  %v2514_v55 = vpop.f32.mrf.mxu1 }
 0x374   :  { %v9299_v48 = vpack.c.bf16 %v2400_v13, %v2398_v37  ;;  %v9301_v56 = vpack.c.bf16 %v2513_v28, %v2511_v49  ;;  %v2402_v15 = vadd.f32 %v2401_v14, %v9269_v5  ;;  %v2515_v58 = vadd.f32 %v2514_v55, %v9273_v12 }
 0x375   :  { %v2403_v21 = vpop.f32.mrf.mxu0  ;;  %v2516_v24 = vpop.f32.mrf.mxu1 }
 0x376   :  { %10567 = vst [vmem:[#allocation57_spill] sm:$0xff] %v9299_v48  ;;  %10568 = vst [vmem:[#allocation58_spill] sm:$0xff] %v9301_v56  ;;  %v2404_v26 = vadd.f32 %v2403_v21, %v9285_v3  ;;  %v2517_v6 = vadd.f32 %v2516_v24, %v9289_v23 }
 0x377   :  { %v2407_v27 = vpop.f32.mrf.mxu0  ;;  %v2520_v57 = vpop.f32.mrf.mxu1 }
 0x378   :  { %v9307_v63 = vpack.c.bf16 %v2404_v26, %v2402_v15  ;;  %v9309_v4 = vpack.c.bf16 %v2517_v6, %v2515_v58  ;;  %v2408_v36 = vadd.f32 %v2407_v27, %v9269_v5  ;;  %v2521_v37 = vadd.f32 %v2520_v57, %v9273_v12 }
 0x379   :  { %v2409_v49 = vpop.f32.mrf.mxu0  ;;  %v2522_v53 = vpop.f32.mrf.mxu1 }
 0x37a   :  { %10569 = vst [vmem:[#allocation59_spill] sm:$0xff] %v9307_v63  ;;  %10570 = vst [vmem:[#allocation60_spill] sm:$0xff] %v9309_v4  ;;  %v2410_v62 = vadd.f32 %v2409_v49, %v9285_v3  ;;  %v2523_v13 = vadd.f32 %v2522_v53, %v9289_v23 }
 0x37b   :  { %v2411_v28 = vpop.f32.mrf.mxu0  ;;  %v2524_v14 = vpop.f32.mrf.mxu1 }
 0x37c   :  { %v9315_v55 = vpack.c.bf16 %v2410_v62, %v2408_v36  ;;  %v9317_v21 = vpack.c.bf16 %v2523_v13, %v2521_v37  ;;  %v2412_v15 = vadd.f32 %v2411_v28, %v9269_v5  ;;  %v2525_v58 = vadd.f32 %v2524_v14, %v9273_v12 }
 0x37d   :  { %v2413_v24 = vpop.f32.mrf.mxu0  ;;  %v2526_v26 = vpop.f32.mrf.mxu1 }
 0x37e   :  { %10571 = vst [vmem:[#allocation61_spill] sm:$0xff] %v9315_v55  ;;  %10572 = vst [vmem:[#allocation62_spill] sm:$0xff] %v9317_v21  ;;  %v2414_v6 = vadd.f32 %v2413_v24, %v9285_v3  ;;  %v2527_v27 = vadd.f32 %v2526_v26, %v9289_v23 }
 0x37f   :  { %v2417_v57 = vpop.f32.mrf.mxu0  ;;  %v2530_v49 = vpop.f32.mrf.mxu1 }
 0x380   :  { %v9323_v0 = vpack.c.bf16 %v2414_v6, %v2412_v15  ;;  %v9325_v53 = vpack.c.bf16 %v2527_v27, %v2525_v58  ;;  %v2418_v36 = vadd.f32 %v2417_v57, %v9269_v5  ;;  %v2531_v37 = vadd.f32 %v2530_v49, %v9273_v12 }
 0x381   :  { %v2419_v62 = vpop.f32.mrf.mxu0  ;;  %v2532_v13 = vpop.f32.mrf.mxu1 }
 0x382   :  { %10573 = vst [vmem:[#allocation63_spill] sm:$0xff] %v9323_v0  ;;  %10574 = vst [vmem:[#allocation64_spill] sm:$0xff] %v9325_v53  ;;  %v2420_v28 = vadd.f32 %v2419_v62, %v9285_v3  ;;  %v2533_v14 = vadd.f32 %v2532_v13, %v9289_v23 }
 0x383   :  { %v2421_v4 = vpop.f32.mrf.mxu0  ;;  %v2534_v24 = vpop.f32.mrf.mxu1 }
 0x384   :  { %v9331_v56 = vpack.c.bf16 %v2420_v28, %v2418_v36  ;;  %v9333_v26 = vpack.c.bf16 %v2533_v14, %v2531_v37  ;;  %v2422_v15 = vadd.f32 %v2421_v4, %v9269_v5  ;;  %v2535_v58 = vadd.f32 %v2534_v24, %v9273_v12 }
 0x385   :  { %v2423_v6 = vpop.f32.mrf.mxu0  ;;  %v2536_v27 = vpop.f32.mrf.mxu1 }
 0x386   :  { %10575 = vst [vmem:[#allocation65_spill] sm:$0xff] %v9331_v56  ;;  %10576 = vst [vmem:[#allocation66_spill] sm:$0xff] %v9333_v26  ;;  %v2424_v57 = vadd.f32 %v2423_v6, %v9285_v3  ;;  %v2537_v49 = vadd.f32 %v2536_v27, %v9289_v23 }
 0x387   :  { %v2427_v63 = vpop.f32.mrf.mxu0  ;;  %v2540_v62 = vpop.f32.mrf.mxu1 }
 0x388   :  { %v9339_v48 = vpack.c.bf16 %v2424_v57, %v2422_v15  ;;  %v9341_v13 = vpack.c.bf16 %v2537_v49, %v2535_v58  ;;  %v2428_v36 = vadd.f32 %v2427_v63, %v9269_v5  ;;  %v2541_v37 = vadd.f32 %v2540_v62, %v9273_v12 }
 0x389   :  { %v2429_v28 = vpop.f32.mrf.mxu0  ;;  %v2542_v4 = vpop.f32.mrf.mxu1 }
 0x38a   :  { %10577 = vst [vmem:[#allocation67_spill] sm:$0xff] %v9339_v48  ;;  %10578 = vst [vmem:[#allocation68_spill] sm:$0xff] %v9341_v13  ;;  %v2430_v14 = vadd.f32 %v2429_v28, %v9285_v3  ;;  %v2543_v24 = vadd.f32 %v2542_v4, %v9289_v23 }
 0x38b   :  { %v2431_v51 = vpop.f32.mrf.mxu0  ;;  %v2544_v6 = vpop.f32.mrf.mxu1 }
 0x38c   :  { %v9347_v60 = vpack.c.bf16 %v2430_v14, %v2428_v36  ;;  %v9349_v27 = vpack.c.bf16 %v2543_v24, %v2541_v37  ;;  %v2432_v15 = vadd.f32 %v2431_v51, %v9269_v5  ;;  %v2545_v58 = vadd.f32 %v2544_v6, %v9273_v12 }
 0x38d   :  { %v2433_v57 = vpop.f32.mrf.mxu0  ;;  %v2546_v63 = vpop.f32.mrf.mxu1 }
 0x38e   :  { %10579 = vst [vmem:[#allocation69_spill] sm:$0xff] %v9347_v60  ;;  %10580 = vst [vmem:[#allocation70_spill] sm:$0xff] %v9349_v27  ;;  %v2434_v49 = vadd.f32 %v2433_v57, %v9285_v3  ;;  %v2547_v62 = vadd.f32 %v2546_v63, %v9289_v23 }
 0x38f   :  { %v2437_v9 = vpop.f32.mrf.mxu0  ;;  %v2550_v28 = vpop.f32.mrf.mxu1 }
 0x390   :  { %v9355_v52 = vpack.c.bf16 %v2434_v49, %v2432_v15  ;;  %v9357_v4 = vpack.c.bf16 %v2547_v62, %v2545_v58  ;;  %v2438_v36 = vadd.f32 %v2437_v9, %v9269_v5  ;;  %v2551_v37 = vadd.f32 %v2550_v28, %v9273_v12 }
 0x391   :  { %v2439_v14 = vpop.f32.mrf.mxu0  ;;  %v2552_v51 = vpop.f32.mrf.mxu1 }
 0x392   :  { %10581 = vst [vmem:[#allocation71_spill] sm:$0xff] %v9355_v52  ;;  %10582 = vst [vmem:[#allocation72_spill] sm:$0xff] %v9357_v4  ;;  %v2440_v24 = vadd.f32 %v2439_v14, %v9285_v3  ;;  %v2553_v6 = vadd.f32 %v2552_v51, %v9289_v23 }
 0x393   :  { %v2441_v53 = vpop.f32.mrf.mxu0  ;;  %v2554_v57 = vpop.f32.mrf.mxu1 }
 0x394   :  { %v9363_v21 = vpack.c.bf16 %v2440_v24, %v2438_v36  ;;  %v9365_v63 = vpack.c.bf16 %v2553_v6, %v2551_v37  ;;  %v2442_v15 = vadd.f32 %v2441_v53, %v9269_v5  ;;  %v2555_v58 = vadd.f32 %v2554_v57, %v9273_v12 }
 0x395   :  { %v2443_v49 = vpop.f32.mrf.mxu0  ;;  %v2556_v9 = vpop.f32.mrf.mxu1 }
 0x396   :  { %10583 = vst [vmem:[#allocation73_spill] sm:$0xff] %v9363_v21  ;;  %10584 = vst [vmem:[#allocation74_spill] sm:$0xff] %v9365_v63  ;;  %v2444_v62 = vadd.f32 %v2443_v49, %v9285_v3  ;;  %v2557_v28 = vadd.f32 %v2556_v9, %v9289_v23  ;;  %v9549_v63 = vld [vmem:[#allocation17 + $0xe4] ss:$16 sps:$4 sm:$0xff]  }
 0x397   :  { %v2447_v0 = vpop.f32.mrf.mxu0  ;;  %v2560_v14 = vpop.f32.mrf.mxu1 }
 0x398   :  { %v9371_v55 = vpack.c.bf16 %v2444_v62, %v2442_v15  ;;  %v9373_v51 = vpack.c.bf16 %v2557_v28, %v2555_v58  ;;  %v2448_v36 = vadd.f32 %v2447_v0, %v9269_v5  ;;  %v2561_v37 = vadd.f32 %v2560_v14, %v9273_v12 }
 0x399   :  { %v2449_v24 = vpop.f32.mrf.mxu0  ;;  %v2562_v53 = vpop.f32.mrf.mxu1 }
 0x39a   :  { %10585 = vst [vmem:[#allocation75_spill] sm:$0xff] %v9371_v55  ;;  %10586 = vst [vmem:[#allocation76_spill] sm:$0xff] %v9373_v51  ;;  %v2450_v6 = vadd.f32 %v2449_v24, %v9285_v3  ;;  %v2563_v57 = vadd.f32 %v2562_v53, %v9289_v23  ;;  %v9552_v55 = vld [vmem:[#allocation17 + $0xec] ss:$16 sps:$4 sm:$0xff]  }
 0x39b   :  { %v2451_v43 = vpop.f32.mrf.mxu0  ;;  %v2564_v49 = vpop.f32.mrf.mxu1 }
 0x39c   :  { %v9379_v47 = vpack.c.bf16 %v2450_v6, %v2448_v36  ;;  %v9381_v9 = vpack.c.bf16 %v2563_v57, %v2561_v37  ;;  %v2452_v15 = vadd.f32 %v2451_v43, %v9269_v5  ;;  %v2565_v58 = vadd.f32 %v2564_v49, %v9273_v12 }
 0x39d   :  { %v2453_v62 = vpop.f32.mrf.mxu0  ;;  %v2566_v0 = vpop.f32.mrf.mxu1 }
 0x39e   :  { %10587 = vst [vmem:[#allocation77_spill] sm:$0xff] %v9379_v47  ;;  %10588 = vst [vmem:[#allocation78_spill] sm:$0xff] %v9381_v9  ;;  %v2454_v28 = vadd.f32 %v2453_v62, %v9285_v3  ;;  %v2567_v14 = vadd.f32 %v2566_v0, %v9289_v23  ;;  %v9593_v9 = vld [vmem:[#allocation17 + $0x80] ss:$16 sps:$4 sm:$0xff]   ;;  %v9599_v47 = vld [vmem:[#allocation17 + $0x64] ss:$16 sps:$4 sm:$0xff]  }
 0x39f   :  { %v2457_v54 = vpop.f32.mrf.mxu0  ;;  %v2570_v24 = vpop.f32.mrf.mxu1  ;;  %10603 = vst [vmem:[#allocation92_spill] sm:$0xff] %v9593_v9  ;;  %10605 = vst [vmem:[#allocation94_spill] sm:$0xff] %v9599_v47 }
 0x3a0   :  { %v9387_v61 = vpack.c.bf16 %v2454_v28, %v2452_v15  ;;  %v9389_v53 = vpack.c.bf16 %v2567_v14, %v2565_v58  ;;  %v2458_v36 = vadd.f32 %v2457_v54, %v9269_v5  ;;  %v2571_v37 = vadd.f32 %v2570_v24, %v9273_v12 }
 0x3a1   :  { %v2459_v6 = vpop.f32.mrf.mxu0  ;;  %v2572_v43 = vpop.f32.mrf.mxu1 }
 0x3a2   :  { %10589 = vst [vmem:[#allocation79_spill] sm:$0xff] %v9387_v61  ;;  %10590 = vst [vmem:[#allocation80_spill] sm:$0xff] %v9389_v53  ;;  %v2460_v57 = vadd.f32 %v2459_v6, %v9285_v3  ;;  %v2573_v49 = vadd.f32 %v2572_v43, %v9289_v23  ;;  %v9590_v53 = vld [vmem:[#allocation17 + $0x8c] ss:$16 sps:$4 sm:$0xff]   ;;  %v9596_v61 = vld [vmem:[#allocation17 + $0x88] ss:$16 sps:$4 sm:$0xff]  }
 0x3a3   :  { %v2461_v13 = vpop.f32.mrf.mxu0  ;;  %v2574_v62 = vpop.f32.mrf.mxu1  ;;  %10602 = vst [vmem:[#allocation91_spill] sm:$0xff] %v9590_v53  ;;  %10604 = vst [vmem:[#allocation93_spill] sm:$0xff] %v9596_v61 }
 0x3a4   :  { %v9395_v26 = vpack.c.bf16 %v2460_v57, %v2458_v36  ;;  %v9397_v0 = vpack.c.bf16 %v2573_v49, %v2571_v37  ;;  %v2462_v15 = vadd.f32 %v2461_v13, %v9269_v5  ;;  %v2575_v58 = vadd.f32 %v2574_v62, %v9273_v12 }
 0x3a5   :  { %v2463_v28 = vpop.f32.mrf.mxu0  ;;  %v2576_v54 = vpop.f32.mrf.mxu1  ;;  %v1740_v13 = vadd.f32 %v9160_v29, %v9142_v32  ;;  %v1853_v32 = vadd.f32 %v9162_v42, %v9146_v33  ;;  %v2883_v33 = vunpack.c.l.bf16 %v9158_v18 }
 0x3a6   :  { %v2464_v14 = vadd.f32 %v2463_v28, %v9285_v3  ;;  %v2577_v24 = vadd.f32 %v2576_v54, %v9289_v23  ;;  %v1738_v28 = vadd.f32 %v9152_v38, %v9134_v31  ;;  %v1851_v31 = vadd.f32 %v9154_v40, %v9138_v7 }
 0x3a7   :  { %v9403_v48 = vpop.f32.mrf.mxu0  ;;  %v9405_v6 = vpop.f32.mrf.mxu1  ;;  %v2884_v40 = vunpack.c.h.bf16 %v9158_v18 }
 0x3a8   :  { %v9407_v43 = vpack.c.bf16 %v2464_v14, %v2462_v15  ;;  %v9409_v36 = vpack.c.bf16 %v2577_v24, %v2575_v58  ;;  %v6802_v15 = vpack.c.bf16 %v1740_v13, %v1738_v28  ;;  %v2881_v58 = vunpack.c.l.bf16 %v9156_v41 }
 0x3a9   :  { %v2469_v37 = vpop.f32.mrf.mxu0  ;;  %v9411_v57 = vpop.f32.mrf.mxu1 }
 0x3aa   :  { %v2885_v4 = vunpack.c.l.bf16 %v6802_v15  ;;  %v2886_v52 = vunpack.c.h.bf16 %v6802_v15 }
 0x3ab   :  { %v9415_v49 = vpop.f32.mrf.mxu0  ;;  %v9417_v62 = vpop.f32.mrf.mxu1 }
 0x3ad   :  { %v2473_v54 = vpop.f32.mrf.mxu0  ;;  %v9421_v56 = vpop.f32.mrf.mxu1 }
 0x3af   :  { %v3083_v14 = vpop.f32.mrf.mxu0  ;;  %v3126_v17 = vpop.f32.mrf.mxu1 }
 0x3b0   :  { %v3135_v24 = vadd.f32 %v3083_v14, %v2881_v58  ;;  %v6803_v58 = vpack.c.bf16 %v1853_v32, %v1851_v31 }
 0x3b1   :  { %v3085_v29 = vpop.f32.mrf.mxu0  ;;  %v3128_v28 = vpop.f32.mrf.mxu1 }
 0x3b2   :  { %v6591_v16 = vmul.f32 -1.442695, %v3135_v24  ;;  %v3136_v11 = vadd.f32 %v3085_v29, %v2882_v46  ;;  %v3137_v24 = vadd.f32 %v3126_v17, %v2883_v33  ;;  %v2887_v29 = vunpack.c.l.bf16 %v6803_v58 }
 0x3b3   :  { %v3087_v38 = vpop.f32.mrf.mxu0  ;;  %v3130_v42 = vpop.f32.mrf.mxu1  ;;  %v2888_v31 = vunpack.c.h.bf16 %v6803_v58  ;;  %v2474_v33 = vadd.f32 %v2473_v54, %v9285_v3 }
 0x3b4   :  { %7667 = vpow2.f32 %v6591_v16  ;;  %v6592_v13 = vmul.f32 -1.442695, %v3136_v11  ;;  %v3139_v27 = vadd.f32 %v3087_v38, %v2885_v4  ;;  %v3141_v7 = vadd.f32 %v3130_v42, %v2887_v29 }
 0x3b5   :  { %v3089_v14 = vpop.f32.mrf.mxu0  ;;  %v6593_v11 = vmul.f32 -1.442695, %v3137_v24  ;;  %v3138_v16 = vadd.f32 %v3128_v28, %v2884_v40  ;;  %v3132_v15 = vpop.f32.mrf.mxu1  ;;  %v2468_v28 = vadd.f32 %v9403_v48, %v9269_v5  ;;  %v2472_v42 = vadd.f32 %v9415_v49, %v9269_v5 }
 0x3b6   :  { %7669 = vpow2.f32 %v6592_v13  ;;  %v6594_v41 = vmul.f32 -1.442695, %v3139_v27  ;;  %v3140_v60 = vadd.f32 %v3089_v14, %v2886_v52  ;;  %v6596_v4 = vmul.f32 -1.442695, %v3141_v7 }
 0x3b7   :  { %v3142_v38 = vadd.f32 %v3132_v15, %v2888_v31  ;;  %v2470_v13 = vadd.f32 %v2469_v37, %v9285_v3  ;;  %v6862_v24 = vpack.c.bf16 %v2474_v33, %v2472_v42  ;;  %v2583_v48 = vadd.f32 %v9411_v57, %v9289_v23 }
 0x3b8   :  { %7671 = vpow2.f32 %v6594_v41  ;;  %v6595_v46 = vmul.f32 -1.442695, %v3140_v60  ;;  %v2581_v5 = vadd.f32 %v9405_v6, %v9273_v12  ;;  %v2587_v57 = vadd.f32 %v9421_v56, %v9289_v23 }
 0x3b9   :  { %v6860_v58 = vpack.c.bf16 %v2470_v13, %v2468_v28  ;;  %v3209_v54 = vunpack.c.l.bf16 %v6862_v24 }
 0x3ba   :  { %7673 = vpow2.f32 %v6595_v46  ;;  %v6861_v28 = vpack.c.bf16 %v2583_v48, %v2581_v5 }
 0x3bb   :  { %7675 = vpow2.f32 %v6593_v11  ;;  %v3205_v29 = vunpack.c.l.bf16 %v6860_v58 }
 0x3bc   :  { %7677 = vtanh.f32 %v3138_v16  ;;  %v3206_v16 = vunpack.c.h.bf16 %v6860_v58  ;;  %v3210_v58 = vunpack.c.h.bf16 %v6862_v24  ;;  %v3207_v24 = vunpack.c.l.bf16 %v6861_v28 }
 0x3bd   :  { %7679 = vpow2.f32 %v6596_v4 }
 0x3c1   :  { %v7668_v32 = vpop.eup %7667 }
 0x3c2   :  { %v3161_v27 = vadd.f32 1.0, %v7668_v32 }
 0x3c3   :  { %v7670_v52 = vpop.eup %7669 }
 0x3c4   :  { %7681 = vrcp.f32 %v3161_v27  ;;  %v3162_v60 = vadd.f32 1.0, %v7670_v52 }
 0x3c5   :  { %v7672_v17 = vpop.eup %7671 }
 0x3c6   :  { %7683 = vrcp.f32 %v3162_v60  ;;  %v3164_v14 = vadd.f32 1.0, %v7672_v17 }
 0x3c7   :  { %v7674_v18 = vpop.eup %7673  ;;  %7685 = vtanh.f32 %v3142_v38 }
 0x3c8   :  { %7687 = vrcp.f32 %v3164_v14  ;;  %v3165_v41 = vadd.f32 1.0, %v7674_v18  ;;  %v7676_v46 = vpop.eup %7675 }
 0x3c9   :  { %v7678_v37 = vpop.eup %7677  ;;  %v3163_v49 = vadd.f32 1.0, %v7676_v46 }
 0x3ca   :  { %7689 = vrcp.f32 %v3165_v41  ;;  %v7680_v40 = vpop.eup %7679 }
 0x3cb   :  { %v3166_v52 = vadd.f32 1.0, %v7680_v40 }
 0x3cf   :  { %v3407_v7 = vpop.f32.mrf.mxu0  ;;  %v3450_v41 = vpop.f32.mrf.mxu1 }
 0x3d0   :  { %v3459_v11 = vadd.f32 %v3407_v7, %v3205_v29  ;;  %v2585_v7 = vadd.f32 %v9417_v62, %v9273_v12  ;;  %v3208_v62 = vunpack.c.h.bf16 %v6861_v28 }
 0x3d1   :  { %v7682_v4 = vpop.eup %7681  ;;  %v3409_v15 = vpop.f32.mrf.mxu0 }
 0x3d2   :  { %v3183_v32 = vmul.f32 %v7682_v4, %v7678_v37  ;;  %v6631_v31 = vmul.f32 -1.442695, %v3459_v11  ;;  %v3460_v3 = vadd.f32 %v3409_v15, %v3206_v16  ;;  %v3452_v11 = vpop.f32.mrf.mxu1  ;;  %v6863_v23 = vpack.c.bf16 %v2587_v57, %v2585_v7  ;;  %v9457_v7 = vld [vmem:[#allocation20 + $0xc4] ss:$16 sps:$4 sm:$0xff]  }
 0x3d3   :  { %v7684_v27 = vpop.eup %7683  ;;  %v3411_v38 = vpop.f32.mrf.mxu0  ;;  %v3461_v4 = vadd.f32 %v3450_v41, %v3207_v24 }
 0x3d4   :  { %v7686_v60 = vpop.eup %7685  ;;  %v3181_v17 = vmul.f32 0.0, %v7684_v27  ;;  %7691 = vpow2.f32 %v6631_v31  ;;  %v6632_v13 = vmul.f32 -1.442695, %v3460_v3  ;;  %v3463_v14 = vadd.f32 %v3411_v38, %v3209_v54  ;;  %v3454_v48 = vpop.f32.mrf.mxu1 }
 0x3d5   :  { %v7688_v18 = vpop.eup %7687  ;;  %v3413_v33 = vpop.f32.mrf.mxu0  ;;  %v3211_v15 = vunpack.c.l.bf16 %v6863_v23  ;;  %v3462_v27 = vadd.f32 %v3452_v11, %v3208_v62 }
 0x3d6   :  { %v9443_v42 = vadd.f32 %v3183_v32, %v3181_v17  ;;  %v3184_v29 = vmul.f32 %v7688_v18, %v7686_v60  ;;  %7693 = vpow2.f32 %v6632_v13  ;;  %v6634_v6 = vmul.f32 -1.442695, %v3463_v14  ;;  %v3456_v5 = vpop.f32.mrf.mxu1 }
 0x3d7   :  { %v7690_v46 = vpop.eup %7689  ;;  %7695 = vrcp.f32 %v3163_v49  ;;  %v3464_v37 = vadd.f32 %v3413_v33, %v3210_v58  ;;  %v6633_v32 = vmul.f32 -1.442695, %v3461_v4  ;;  %v3465_v31 = vadd.f32 %v3454_v48, %v3211_v15  ;;  %v9465_v4 = vld [vmem:[#allocation20 + $0xc0] ss:$16 sps:$4 sm:$0xff]   ;;  %v9468_v48 = vld [vmem:[#allocation20 + $0xc8] ss:$16 sps:$4 sm:$0xff]  }
 0x3d8   :  { %7697 = vrcp.f32 %v3166_v52  ;;  %v3182_v40 = vmul.f32 0.0, %v7690_v46  ;;  %v3212_v60 = vunpack.c.h.bf16 %v6863_v23  ;;  %v9451_v46 = vld [vmem:[#allocation20 + $0xe0] ss:$16 sps:$4 sm:$0xff]  }
 0x3d9   :  { %7699 = vpow2.f32 %v6634_v6  ;;  %v6635_v16 = vmul.f32 -1.442695, %v3464_v37  ;;  %v6636_v38 = vmul.f32 -1.442695, %v3465_v31  ;;  %v9454_v37 = vld [vmem:[#allocation20 + $0xe8] ss:$16 sps:$4 sm:$0xff]  }
 0x3da   :  { %7701 = vtanh.f32 %v9443_v42  ;;  %v9448_v56 = vadd.f32 %v3184_v29, %v3182_v40  ;;  %v3466_v14 = vadd.f32 %v3456_v5, %v3212_v60  ;;  %v9460_v40 = vld [vmem:[#allocation20 + $0xcc] ss:$16 sps:$4 sm:$0xff]   ;;  %v9471_v31 = vld [vmem:[#allocation20 + $0xa4] ss:$16 sps:$4 sm:$0xff]  }
 0x3db   :  { %7703 = vpow2.f32 %v6635_v16  ;;  %v10591_v16 = vmov 0  }
 0x3dc   :  { %7705 = vtanh.f32 %v9448_v56 }
 0x3dd   :  { %7707 = vpow2.f32 %v6633_v32 }
 0x3e1   :  { %v7692_v12 = vpop.eup %7691 }
 0x3e2   :  { %v3485_v3 = vadd.f32 1.0, %v7692_v12  ;;  %v9474_v12 = vld [vmem:[#allocation20 + $0xac] ss:$16 sps:$4 sm:$0xff]  }
 0x3e3   :  { %v7694_v54 = vpop.eup %7693 }
 0x3e4   :  { %v7696_v49 = vpop.eup %7695  ;;  %v3486_v52 = vadd.f32 1.0, %v7694_v54  ;;  %7709 = vrcp.f32 %v3485_v3 }
 0x3e5   :  { %v7698_v17 = vpop.eup %7697 }
 0x3e6   :  { %v7700_v13 = vpop.eup %7699  ;;  %7711 = vrcp.f32 %v3486_v52  ;;  %v9479_v52 = vld [vmem:[#allocation20 + $0xa0] ss:$16 sps:$4 sm:$0xff]  }
 0x3e7   :  { %v7702_v18 = vpop.eup %7701  ;;  %7713 = vtanh.f32 %v3462_v27  ;;  %v3488_v57 = vadd.f32 1.0, %v7700_v13  ;;  %v9485_v13 = vld [vmem:[#allocation20 + $0x84] ss:$16 sps:$4 sm:$0xff]  }
 0x3e8   :  { %v7704_v41 = vpop.eup %7703  ;;  %7715 = vpow2.f32 %v6636_v38  ;;  %v3189_v33 = vmul.f32 %v7702_v18, %v7696_v49  ;;  %v9482_v38 = vld [vmem:[#allocation20 + $0xa8] ss:$16 sps:$4 sm:$0xff]  }
 0x3e9   :  { %v7706_v28 = vpop.eup %7705  ;;  %7717 = vrcp.f32 %v3488_v57  ;;  %v3489_v58 = vadd.f32 1.0, %v7704_v41 }
 0x3ea   :  { %7719 = vtanh.f32 %v3466_v14  ;;  %v3190_v29 = vmul.f32 %v7706_v28, %v7698_v17  ;;  %v7708_v11 = vpop.eup %7707  ;;  %v9488_v14 = vld [vmem:[#allocation20 + $0x8c] ss:$16 sps:$4 sm:$0xff]   ;;  %v9494_v28 = vld [vmem:[#allocation20 + $0x80] ss:$16 sps:$4 sm:$0xff]  }
 0x3eb   :  { %7721 = vrcp.f32 %v3489_v58  ;;  %v3487_v27 = vadd.f32 1.0, %v7708_v11  ;;  %v9497_v58 = vld [vmem:[#allocation20 + $0x88] ss:$16 sps:$4 sm:$0xff]  }
 0x3ec   :  { %v3191_v6 = vpack.c.bf16 %v3190_v29, %v3189_v33  ;;  %v9500_v33 = vld [vmem:[#allocation20 + $0x64] ss:$16 sps:$4 sm:$0xff]   ;;  %v9503_v29 = vld [vmem:[#allocation20 + $0x6c] ss:$16 sps:$4 sm:$0xff]   ;;  %v9510_v11 = vld [vmem:[#allocation20 + $0x68] ss:$16 sps:$4 sm:$0xff]  }
 0x3ed   :  { %7723 = vrcp.f32 %v3487_v27  ;;  %v9531_v27 = vld [vmem:[#allocation20 + $0x20] ss:$16 sps:$4 sm:$0xff]  }
 0x3ee   :  { %6940 = vst [vmem:[#allocation6] sm:$0xff] %v3191_v6   ;;  %3570 = vmatmul.mubr.bf16.vlgmr.msra.gmra.mxu0 %v3191_v6  ;;  %3613 = vmatmul.mubr.bf16.vlgmr.msra.gmra.mxu1 %v3191_v6  ;;  %v9507_v6 = vld [vmem:[#allocation20 + $0x60] ss:$16 sps:$4 sm:$0xff]  }
 0x3ef   :  { %3702 = vmatpush1.bf16.msra.mxu0 %v9451_v46  ;;  %3745 = vmatpush1.bf16.msra.mxu1 %v9454_v37 }
 0x3f0   :  { %3703 = vmatprep.subr.bf16.mxu0 %v9457_v7  ;;  %3746 = vmatprep.subr.bf16.mxu1 %v9460_v40 }
 0x3f1   :  { %3733 = vmatprep.mubr.bf16.mxu0 %v10591_v16  ;;  %3776 = vmatprep.mubr.bf16.mxu1 %v10591_v16  ;;  %v7710_v23 = vpop.eup %7709 }
 0x3f3   :  { %v7712_v24 = vpop.eup %7711  ;;  %3704 = vmatpush1.bf16.msra.mxu0 %v9465_v4  ;;  %3747 = vmatpush1.bf16.msra.mxu1 %v9468_v48 }
 0x3f4   :  { %v7714_v15 = vpop.eup %7713  ;;  %v3505_v32 = vmul.f32 0.0, %v7712_v24  ;;  %3705 = vmatprep.subr.bf16.mxu0 %v9471_v31  ;;  %3748 = vmatprep.subr.bf16.mxu1 %v9474_v12  ;;  %v9516_v24 = vld [vmem:[#allocation20 + $0x4c] ss:$16 sps:$4 sm:$0xff]  }
 0x3f5   :  { %v7716_v62 = vpop.eup %7715  ;;  %v3507_v3 = vmul.f32 %v7714_v15, %v7710_v23  ;;  %v9513_v23 = vld [vmem:[#allocation20 + $0x44] ss:$16 sps:$4 sm:$0xff]   ;;  %v9519_v15 = vld [vmem:[#allocation20 + $0x40] ss:$16 sps:$4 sm:$0xff]  }
 0x3f6   :  { %v7718_v54 = vpop.eup %7717  ;;  %v3490_v17 = vadd.f32 1.0, %v7716_v62  ;;  %v9525_v62 = vld [vmem:[#allocation20 + $0x24] ss:$16 sps:$4 sm:$0xff]  }
 0x3f7   :  { %v7720_v5 = vpop.eup %7719  ;;  %v9477_v49 = vadd.f32 %v3507_v3, %v3505_v32  ;;  %3706 = vmatpush1.bf16.msra.mxu0 %v9479_v52  ;;  %3749 = vmatpush1.bf16.msra.mxu1 %v9482_v38  ;;  %v9522_v32 = vld [vmem:[#allocation20 + $0x48] ss:$16 sps:$4 sm:$0xff]   ;;  %v9528_v3 = vld [vmem:[#allocation20 + $0x2c] ss:$16 sps:$4 sm:$0xff]  }
 0x3f8   :  { %v7722_v60 = vpop.eup %7721  ;;  %3707 = vmatprep.subr.bf16.mxu0 %v9485_v13  ;;  %3750 = vmatprep.subr.bf16.mxu1 %v9488_v14  ;;  %v3508_v57 = vmul.f32 %v7720_v5, %v7718_v54  ;;  %v9534_v5 = vld [vmem:[#allocation20 + $0x28] ss:$16 sps:$4 sm:$0xff]  }
 0x3f9   :  { %v3506_v18 = vmul.f32 0.0, %v7722_v60  ;;  %7725 = vtanh.f32 %v9477_v49 }
 0x3fa   :  { %7727 = vrcp.f32 %v3490_v17  ;;  %v7724_v54 = vpop.eup %7723  ;;  %v9537_v17 = vld [vmem:[#allocation20 + $0x4] ss:$16 sps:$4 sm:$0xff]  }
 0x3fb   :  { %v9492_v41 = vadd.f32 %v3508_v57, %v3506_v18  ;;  %3708 = vmatpush1.bf16.msra.mxu0 %v9494_v28  ;;  %3751 = vmatpush1.bf16.msra.mxu1 %v9497_v58  ;;  %v9540_v18 = vld [vmem:[#allocation20 + $0xc] ss:$16 sps:$4 sm:$0xff]  }
 0x3fc   :  { %3709 = vmatprep.subr.bf16.mxu0 %v9500_v33  ;;  %3752 = vmatprep.subr.bf16.mxu1 %v9503_v29 }
 0x3fd   :  { %7729 = vtanh.f32 %v9492_v41 }
 0x3ff   :  { %3710 = vmatpush1.bf16.msra.mxu0 %v9507_v6  ;;  %3753 = vmatpush1.bf16.msra.mxu1 %v9510_v11 }
 0x400   :  { %3711 = vmatprep.subr.bf16.mxu0 %v9513_v23  ;;  %3754 = vmatprep.subr.bf16.mxu1 %v9516_v24 }
 0x403   :  { %3712 = vmatpush1.bf16.msra.mxu0 %v9519_v15  ;;  %3755 = vmatpush1.bf16.msra.mxu1 %v9522_v32 }
 0x404   :  { %3713 = vmatprep.subr.bf16.mxu0 %v9525_v62  ;;  %3756 = vmatprep.subr.bf16.mxu1 %v9528_v3 }
 0x406   :  { %v7726_v60 = vpop.eup %7725 }
 0x407   :  { %3714 = vmatpush1.bf16.msra.mxu0 %v9531_v27  ;;  %3757 = vmatpush1.bf16.msra.mxu1 %v9534_v5  ;;  %v7728_v57 = vpop.eup %7727  ;;  %v3513_v39 = vmul.f32 %v7726_v60, %v7724_v54  ;;  %v9564_v54 = vld [vmem:[#allocation17 + $0xcc] ss:$16 sps:$4 sm:$0xff]  }
 0x408   :  { %3715 = vmatprep.subr.bf16.mxu0 %v9537_v17  ;;  %3758 = vmatprep.subr.bf16.mxu1 %v9540_v18  ;;  %10594 = vst [vmem:[#allocation83_spill] sm:$0xff] %v9564_v54  ;;  %v9578_v60 = vld [vmem:[#allocation17 + $0xac] ss:$16 sps:$4 sm:$0xff]  }
 0x409   :  { %10598 = vst [vmem:[#allocation87_spill] sm:$0xff] %v9578_v60 }
 0x40a   :  { %v7730_v30 = vpop.eup %7729 }
 0x40b   :  { %3716 = vmatpush1.bf16.msra.mxu0 %v9543_v59  ;;  %3759 = vmatpush1.bf16.msra.mxu1 %v9546_v22  ;;  %v3514_v51 = vmul.f32 %v7730_v30, %v7728_v57  ;;  %v9561_v30 = vld [vmem:[#allocation17 + $0xc4] ss:$16 sps:$4 sm:$0xff]   ;;  %v9581_v57 = vld [vmem:[#allocation17 + $0xa0] ss:$16 sps:$4 sm:$0xff]  }
 0x40c   :  { %3865 = vmatprep.subr.bf16.mxu0 %v9549_v63  ;;  %3908 = vmatprep.subr.bf16.mxu1 %v9552_v55  ;;  %10593 = vst [vmem:[#allocation82_spill] sm:$0xff] %v9561_v30  ;;  %10599 = vst [vmem:[#allocation88_spill] sm:$0xff] %v9581_v57 }
 0x40d   :  { %v3515_v21 = vpack.c.bf16 %v3514_v51, %v3513_v39  ;;  %v9569_v39 = vld [vmem:[#allocation17 + $0xc0] ss:$16 sps:$4 sm:$0xff]   ;;  %v9575_v51 = vld [vmem:[#allocation17 + $0xa4] ss:$16 sps:$4 sm:$0xff]  }
 0x40e   :  { %10595 = vst [vmem:[#allocation84_spill] sm:$0xff] %v9569_v39  ;;  %10597 = vst [vmem:[#allocation86_spill] sm:$0xff] %v9575_v51 }
 0x40f   :  { %7024 = vst [vmem:[#allocation7 + $0x38] sm:$0xff] %v3515_v21   ;;  %3734 = vmatmul.mubr.bf16.vlgmr.msra.gmra.mxu0 %v3515_v21  ;;  %3777 = vmatmul.mubr.bf16.vlgmr.msra.gmra.mxu1 %v3515_v21  ;;  %v9572_v21 = vld [vmem:[#allocation17 + $0xc8] ss:$16 sps:$4 sm:$0xff]  }
 0x410   :  { %3866 = vmatpush1.bf16.msra.mxu0 %v9555_v45  ;;  %3909 = vmatpush1.bf16.msra.mxu1 %v9558_v50  ;;  %10596 = vst [vmem:[#allocation85_spill] sm:$0xff] %v9572_v21 }
 0x411   :  { %3867 = vmatprep.subr.bf16.mxu0 %v9561_v30  ;;  %3910 = vmatprep.subr.bf16.mxu1 %v9564_v54 }
 0x412   :  { %3897 = vmatprep.mubr.bf16.mxu0 %v10591_v16  ;;  %3940 = vmatprep.mubr.bf16.mxu1 %v10591_v16 }
 0x414   :  { %3868 = vmatpush1.bf16.msra.mxu0 %v9569_v39  ;;  %3911 = vmatpush1.bf16.msra.mxu1 %v9572_v21  ;;  %v3534_v21 = vunpack.c.h.bf16 %v9176_v19 }
 0x415   :  { %3869 = vmatprep.subr.bf16.mxu0 %v9575_v51  ;;  %3912 = vmatprep.subr.bf16.mxu1 %v9578_v60 }
 0x418   :  { %3870 = vmatpush1.bf16.msra.mxu0 %v9581_v57  ;;  %3913 = vmatpush1.bf16.msra.mxu1 %v9584_v1 }
 0x419   :  { %3871 = vmatprep.subr.bf16.mxu0 %v9587_v10  ;;  %3914 = vmatprep.subr.bf16.mxu1 %v9590_v53  ;;  %v3530_v53 = vunpack.c.h.bf16 %v9168_v8 }
 0x41c   :  { %3872 = vmatpush1.bf16.msra.mxu0 %v9593_v9  ;;  %3915 = vmatpush1.bf16.msra.mxu1 %v9596_v61  ;;  %v9614_v61 = vld [vmem:[#allocation17 + $0x4c] ss:$16 sps:$4 sm:$0xff]  }
 0x41d   :  { %3873 = vmatprep.subr.bf16.mxu0 %v9599_v47  ;;  %3916 = vmatprep.subr.bf16.mxu1 %v9602_v35  ;;  %10610 = vst [vmem:[#allocation99_spill] sm:$0xff] %v9614_v61  ;;  %v9617_v47 = vld [vmem:[#allocation17 + $0x40] ss:$16 sps:$4 sm:$0xff]   ;;  %v9620_v35 = vld [vmem:[#allocation17 + $0x48] ss:$16 sps:$4 sm:$0xff]  }
 0x41e   :  { %10611 = vst [vmem:[#allocation100_spill] sm:$0xff] %v9617_v47  ;;  %10612 = vst [vmem:[#allocation101_spill] sm:$0xff] %v9620_v35 }
 0x420   :  { %3874 = vmatpush1.bf16.msra.mxu0 %v9605_v25  ;;  %3917 = vmatpush1.bf16.msra.mxu1 %v9608_v34  ;;  %v9623_v25 = vld [vmem:[#allocation17 + $0x24] ss:$16 sps:$4 sm:$0xff]   ;;  %v9626_v34 = vld [vmem:[#allocation17 + $0x2c] ss:$16 sps:$4 sm:$0xff]  }
 0x421   :  { %3875 = vmatprep.subr.bf16.mxu0 %v9611_v2  ;;  %3918 = vmatprep.subr.bf16.mxu1 %v9614_v61  ;;  %10613 = vst [vmem:[#allocation102_spill] sm:$0xff] %v9623_v25  ;;  %10614 = vst [vmem:[#allocation103_spill] sm:$0xff] %v9626_v34  ;;  %v9629_v2 = vld [vmem:[#allocation17 + $0x20] ss:$16 sps:$4 sm:$0xff]   ;;  %v9632_v61 = vld [vmem:[#allocation17 + $0x28] ss:$16 sps:$4 sm:$0xff]  }
 0x422   :  { %10615 = vst [vmem:[#allocation104_spill] sm:$0xff] %v9629_v2  ;;  %10616 = vst [vmem:[#allocation105_spill] sm:$0xff] %v9632_v61 }
 0x424   :  { %3876 = vmatpush1.bf16.msra.mxu0 %v9617_v47  ;;  %3919 = vmatpush1.bf16.msra.mxu1 %v9620_v35  ;;  %v9635_v47 = vld [vmem:[#allocation17 + $0x4] ss:$16 sps:$4 sm:$0xff]   ;;  %v9638_v35 = vld [vmem:[#allocation17 + $0xc] ss:$16 sps:$4 sm:$0xff]  }
 0x425   :  { %3877 = vmatprep.subr.bf16.mxu0 %v9623_v25  ;;  %3920 = vmatprep.subr.bf16.mxu1 %v9626_v34  ;;  %10617 = vst [vmem:[#allocation106_spill] sm:$0xff] %v9635_v47  ;;  %10618 = vst [vmem:[#allocation107_spill] sm:$0xff] %v9638_v35  ;;  %v9641_v25 = vld [vmem:[#allocation17] ss:$16 sps:$4 sm:$0xff]   ;;  %v9644_v34 = vld [vmem:[#allocation17 + $0x8] ss:$16 sps:$4 sm:$0xff]  }
 0x426   :  { %10619 = vst [vmem:[#allocation108_spill] sm:$0xff] %v9641_v25  ;;  %10620 = vst [vmem:[#allocation109_spill] sm:$0xff] %v9644_v34 }
 0x428   :  { %3878 = vmatpush1.bf16.msra.mxu0 %v9629_v2  ;;  %3921 = vmatpush1.bf16.msra.mxu1 %v9632_v61  ;;  %v9647_v2 = vld [vmem:[#allocation20 + $0xe4] ss:$16 sps:$4 sm:$0xff]   ;;  %v9650_v61 = vld [vmem:[#allocation20 + $0xec] ss:$16 sps:$4 sm:$0xff]  }
 0x429   :  { %3879 = vmatprep.subr.bf16.mxu0 %v9635_v47  ;;  %3922 = vmatprep.subr.bf16.mxu1 %v9638_v35  ;;  %10621 = vst [vmem:[#allocation110_spill] sm:$0xff] %v9647_v2  ;;  %10622 = vst [vmem:[#allocation111_spill] sm:$0xff] %v9650_v61  ;;  %v3529_v47 = vunpack.c.l.bf16 %v9168_v8 }
 0x42c   :  { %3880 = vmatpush1.bf16.msra.mxu0 %v9641_v25  ;;  %3923 = vmatpush1.bf16.msra.mxu1 %v9644_v34  ;;  %v3533_v34 = vunpack.c.l.bf16 %v9176_v19 }
 0x42d   :  { %4029 = vmatprep.subr.bf16.mxu0 %v9647_v2  ;;  %4072 = vmatprep.subr.bf16.mxu1 %v9650_v61 }
 0x4ae   :  { %v3571_v9 = vpop.f32.mrf.mxu0  ;;  %v3614_v1 = vpop.f32.mrf.mxu1 }
 0x4af   :  { %v3623_v35 = vadd.f32 %v3571_v9, %v3529_v47  ;;  %v3531_v47 = vunpack.c.l.bf16 %v9170_v44 }
 0x4b0   :  { %v3573_v10 = vpop.f32.mrf.mxu0  ;;  %v3616_v61 = vpop.f32.mrf.mxu1 }
 0x4b1   :  { %v6639_v25 = vmul.f32 -1.442695, %v3623_v35  ;;  %v3624_v57 = vadd.f32 %v3573_v10, %v3530_v53  ;;  %v3625_v35 = vadd.f32 %v3614_v1, %v3531_v47  ;;  %v3535_v10 = vunpack.c.l.bf16 %v9178_v20 }
 0x4b2   :  { %v3575_v60 = vpop.f32.mrf.mxu0  ;;  %v3618_v9 = vpop.f32.mrf.mxu1 }
 0x4b3   :  { %7731 = vpow2.f32 %v6639_v25  ;;  %v6640_v51 = vmul.f32 -1.442695, %v3624_v57  ;;  %v3627_v2 = vadd.f32 %v3575_v60, %v3533_v34  ;;  %v3532_v25 = vunpack.c.h.bf16 %v9170_v44 }
 0x4b4   :  { %v3577_v39 = vpop.f32.mrf.mxu0  ;;  %v3629_v53 = vadd.f32 %v3618_v9, %v3535_v10  ;;  %v6641_v34 = vmul.f32 -1.442695, %v3625_v35  ;;  %v3620_v19 = vpop.f32.mrf.mxu1  ;;  %v3693_v35 = vunpack.c.l.bf16 %v9395_v26 }
 0x4b5   :  { %7733 = vpow2.f32 %v6640_v51  ;;  %v6642_v54 = vmul.f32 -1.442695, %v3627_v2  ;;  %v3628_v30 = vadd.f32 %v3577_v39, %v3534_v21  ;;  %v3626_v60 = vadd.f32 %v3616_v61, %v3532_v25 }
 0x4b6   :  { %v6644_v51 = vmul.f32 -1.442695, %v3629_v53  ;;  %v3536_v2 = vunpack.c.h.bf16 %v9178_v20  ;;  %v3694_v53 = vunpack.c.h.bf16 %v9395_v26  ;;  %v3698_v26 = vunpack.c.h.bf16 %v9407_v43 }
 0x4b7   :  { %7735 = vpow2.f32 %v6642_v54  ;;  %v6643_v8 = vmul.f32 -1.442695, %v3628_v30 }
 0x4b8   :  { %v3630_v30 = vadd.f32 %v3620_v19, %v3536_v2 }
 0x4b9   :  { %7737 = vpow2.f32 %v6643_v8 }
 0x4ba   :  { %7739 = vpow2.f32 %v6641_v34 }
 0x4bb   :  { %7741 = vtanh.f32 %v3626_v60 }
 0x4c0   :  { %v7732_v57 = vpop.eup %7731 }
 0x4c1   :  { %v3649_v39 = vadd.f32 1.0, %v7732_v57 }
 0x4c2   :  { %v7734_v21 = vpop.eup %7733 }
 0x4c3   :  { %7743 = vrcp.f32 %v3649_v39  ;;  %v3650_v1 = vadd.f32 1.0, %v7734_v21  ;;  %v3697_v39 = vunpack.c.l.bf16 %v9407_v43  ;;  %v3695_v43 = vunpack.c.l.bf16 %v9397_v0 }
 0x4c4   :  { %v7736_v54 = vpop.eup %7735  ;;  %7745 = vpow2.f32 %v6644_v51 }
 0x4c5   :  { %7747 = vrcp.f32 %v3650_v1  ;;  %v3652_v47 = vadd.f32 1.0, %v7736_v54 }
 0x4c6   :  { %v7738_v44 = vpop.eup %7737  ;;  %7749 = vtanh.f32 %v3630_v30 }
 0x4c7   :  { %7751 = vrcp.f32 %v3652_v47  ;;  %v3653_v61 = vadd.f32 1.0, %v7738_v44  ;;  %v7740_v8 = vpop.eup %7739 }
 0x4c8   :  { %v7742_v20 = vpop.eup %7741  ;;  %v3651_v30 = vadd.f32 1.0, %v7740_v8 }
 0x4c9   :  { %7753 = vrcp.f32 %v3653_v61 }
 0x4cf   :  { %v3735_v9 = vpop.f32.mrf.mxu0  ;;  %v3778_v44 = vpop.f32.mrf.mxu1 }
 0x4d0   :  { %v7744_v10 = vpop.eup %7743  ;;  %v3787_v25 = vadd.f32 %v3735_v9, %v3693_v35 }
 0x4d1   :  { %v7746_v34 = vpop.eup %7745  ;;  %v3671_v60 = vmul.f32 %v7744_v10, %v7742_v20  ;;  %v3737_v19 = vpop.f32.mrf.mxu0 }
 0x4d2   :  { %v7748_v57 = vpop.eup %7747  ;;  %v6647_v51 = vmul.f32 -1.442695, %v3787_v25  ;;  %v3788_v2 = vadd.f32 %v3737_v19, %v3694_v53  ;;  %v3654_v53 = vadd.f32 1.0, %v7746_v34  ;;  %v3780_v8 = vpop.f32.mrf.mxu1  ;;  %v3789_v34 = vadd.f32 %v3778_v44, %v3695_v43 }
 0x4d3   :  { %v7750_v21 = vpop.eup %7749  ;;  %v3669_v1 = vmul.f32 %v7748_v57, %v9443_v42  ;;  %v3739_v54 = vpop.f32.mrf.mxu0 }
 0x4d4   :  { %v7752_v47 = vpop.eup %7751  ;;  %7755 = vpow2.f32 %v6647_v51  ;;  %v6648_v61 = vmul.f32 -1.442695, %v3788_v2  ;;  %v3791_v35 = vadd.f32 %v3739_v54, %v3697_v39  ;;  %v3696_v2 = vunpack.c.h.bf16 %v9397_v0 }
 0x4d5   :  { %v9666_v9 = vadd.f32 %v3671_v60, %v3669_v1  ;;  %v3672_v20 = vmul.f32 %v7752_v47, %v7750_v21  ;;  %v3741_v10 = vpop.f32.mrf.mxu0  ;;  %v3782_v60 = vpop.f32.mrf.mxu1  ;;  %v3699_v39 = vunpack.c.l.bf16 %v9409_v36  ;;  %v6649_v1 = vmul.f32 -1.442695, %v3789_v34 }
 0x4d6   :  { %v7754_v25 = vpop.eup %7753  ;;  %7757 = vpow2.f32 %v6648_v61  ;;  %v6650_v19 = vmul.f32 -1.442695, %v3791_v35  ;;  %v3792_v50 = vadd.f32 %v3741_v10, %v3698_v26  ;;  %v3700_v47 = vunpack.c.h.bf16 %v9409_v36 }
 0x4d7   :  { %7759 = vrcp.f32 %v3651_v30  ;;  %v3670_v42 = vmul.f32 %v7754_v25, %v9448_v56  ;;  %v3790_v56 = vadd.f32 %v3780_v8, %v3696_v2  ;;  %v3793_v21 = vadd.f32 %v3782_v60, %v3699_v39 }
 0x4d8   :  { %7761 = vtanh.f32 %v9666_v9  ;;  %v6651_v57 = vmul.f32 -1.442695, %v3792_v50  ;;  %v3784_v50 = vpop.f32.mrf.mxu1 }
 0x4d9   :  { %v9670_v51 = vadd.f32 %v3672_v20, %v3670_v42  ;;  %7763 = vpow2.f32 %v6650_v19  ;;  %v6652_v35 = vmul.f32 -1.442695, %v3793_v21  ;;  %v3794_v10 = vadd.f32 %v3784_v50, %v3700_v47 }
 0x4da   :  { %7765 = vrcp.f32 %v3654_v53 }
 0x4db   :  { %7767 = vtanh.f32 %v9670_v51 }
 0x4dc   :  { %7769 = vpow2.f32 %v6651_v57 }
 0x4dd   :  { %7771 = vtanh.f32 %v3790_v56 }
 0x4e1   :  { %v7756_v30 = vpop.eup %7755 }
 0x4e2   :  { %v3813_v54 = vadd.f32 1.0, %v7756_v30 }
 0x4e3   :  { %v7758_v61 = vpop.eup %7757 }
 0x4e4   :  { %v7760_v26 = vpop.eup %7759  ;;  %7773 = vrcp.f32 %v3813_v54  ;;  %v3814_v20 = vadd.f32 1.0, %v7758_v61 }
 0x4e5   :  { %v7762_v44 = vpop.eup %7761  ;;  %7775 = vpow2.f32 %v6649_v1 }
 0x4e6   :  { %v7764_v0 = vpop.eup %7763  ;;  %7777 = vrcp.f32 %v3814_v20  ;;  %v3677_v8 = vmul.f32 %v7762_v44, %v7760_v26 }
 0x4e7   :  { %v7766_v25 = vpop.eup %7765  ;;  %v3816_v53 = vadd.f32 1.0, %v7764_v0  ;;  %7779 = vpow2.f32 %v6652_v35 }
 0x4e8   :  { %v7768_v19 = vpop.eup %7767  ;;  %7781 = vtanh.f32 %v3794_v10 }
 0x4e9   :  { %v7770_v42 = vpop.eup %7769  ;;  %7783 = vrcp.f32 %v3816_v53  ;;  %v3678_v36 = vmul.f32 %v7768_v19, %v7766_v25 }
 0x4ea   :  { %v3817_v57 = vadd.f32 1.0, %v7770_v42  ;;  %v7772_v60 = vpop.eup %7771  ;;  %v10623_v42 = vld [vmem:[#allocation81_spill] sm:$0xff] }
 0x4eb   :  { %v3679_v43 = vpack.c.bf16 %v3678_v36, %v3677_v8  ;;  %v10624_v8 = vld [vmem:[#allocation82_spill] sm:$0xff]  ;;  %v10625_v36 = vld [vmem:[#allocation83_spill] sm:$0xff] }
 0x4ec   :  { %7785 = vrcp.f32 %v3817_v57  ;;  %v10626_v57 = vld [vmem:[#allocation84_spill] sm:$0xff] }
 0x4ed   :  { %7025 = vst [vmem:[#allocation6 + $0x8] sm:$0xff] %v3679_v43   ;;  %3898 = vmatmul.mubr.bf16.vlgmr.msra.gmra.mxu0 %v3679_v43  ;;  %3941 = vmatmul.mubr.bf16.vlgmr.msra.gmra.mxu1 %v3679_v43  ;;  %v10627_v43 = vld [vmem:[#allocation85_spill] sm:$0xff] }
 0x4ee   :  { %4030 = vmatpush1.bf16.msra.mxu0 %v9451_v46  ;;  %4073 = vmatpush1.bf16.msra.mxu1 %v9454_v37 }
 0x4ef   :  { %4031 = vmatprep.subr.bf16.mxu0 %v9457_v7  ;;  %4074 = vmatprep.subr.bf16.mxu1 %v9460_v40 }
 0x4f0   :  { %4061 = vmatprep.mubr.bf16.mxu0 %v10591_v16  ;;  %4104 = vmatprep.mubr.bf16.mxu1 %v10591_v16 }
 0x4f1   :  { %v7774_v34 = vpop.eup %7773 }
 0x4f2   :  { %v7776_v2 = vpop.eup %7775  ;;  %v3835_v39 = vmul.f32 %v7774_v34, %v7772_v60  ;;  %4032 = vmatpush1.bf16.msra.mxu0 %v9465_v4  ;;  %4075 = vmatpush1.bf16.msra.mxu1 %v9468_v48  ;;  %v10628_v60 = vld [vmem:[#allocation86_spill] sm:$0xff]  ;;  %v10629_v34 = vld [vmem:[#allocation87_spill] sm:$0xff] }
 0x4f3   :  { %v7778_v56 = vpop.eup %7777  ;;  %4033 = vmatprep.subr.bf16.mxu0 %v9471_v31  ;;  %4076 = vmatprep.subr.bf16.mxu1 %v9474_v12  ;;  %v3815_v47 = vadd.f32 1.0, %v7776_v2  ;;  %v10630_v2 = vld [vmem:[#allocation88_spill] sm:$0xff] }
 0x4f4   :  { %v7780_v21 = vpop.eup %7779  ;;  %v3833_v30 = vmul.f32 %v7778_v56, %v9477_v49  ;;  %v10632_v56 = vld [vmem:[#allocation90_spill] sm:$0xff] }
 0x4f5   :  { %v7782_v1 = vpop.eup %7781  ;;  %v3818_v26 = vadd.f32 1.0, %v7780_v21  ;;  %7787 = vrcp.f32 %v3815_v47  ;;  %v10633_v21 = vld [vmem:[#allocation91_spill] sm:$0xff] }
 0x4f6   :  { %v7784_v50 = vpop.eup %7783  ;;  %v9688_v54 = vadd.f32 %v3835_v39, %v3833_v30  ;;  %4034 = vmatpush1.bf16.msra.mxu0 %v9479_v52  ;;  %4077 = vmatpush1.bf16.msra.mxu1 %v9482_v38  ;;  %v10631_v39 = vld [vmem:[#allocation89_spill] sm:$0xff]  ;;  %v10634_v30 = vld [vmem:[#allocation92_spill] sm:$0xff]  ;;  %v10637_v47 = vld [vmem:[#allocation95_spill] sm:$0xff] }
 0x4f7   :  { %v3836_v61 = vmul.f32 %v7784_v50, %v7782_v1  ;;  %4035 = vmatprep.subr.bf16.mxu0 %v9485_v13  ;;  %4078 = vmatprep.subr.bf16.mxu1 %v9488_v14  ;;  %v10635_v1 = vld [vmem:[#allocation93_spill] sm:$0xff]  ;;  %v10636_v50 = vld [vmem:[#allocation94_spill] sm:$0xff] }
 0x4f8   :  { %7789 = vtanh.f32 %v9688_v54 }
 0x4f9   :  { %v7786_v35 = vpop.eup %7785  ;;  %7791 = vrcp.f32 %v3818_v26  ;;  %v10640_v26 = vld [vmem:[#allocation98_spill] sm:$0xff] }
 0x4fa   :  { %v3834_v20 = vmul.f32 %v7786_v35, %v9492_v41  ;;  %4036 = vmatpush1.bf16.msra.mxu0 %v9494_v28  ;;  %4079 = vmatpush1.bf16.msra.mxu1 %v9497_v58  ;;  %v10639_v35 = vld [vmem:[#allocation97_spill] sm:$0xff] }
 0x4fb   :  { %4037 = vmatprep.subr.bf16.mxu0 %v9500_v33  ;;  %4080 = vmatprep.subr.bf16.mxu1 %v9503_v29 }
 0x4fc   :  { %v9700_v49 = vadd.f32 %v3836_v61, %v3834_v20  ;;  %v10638_v61 = vld [vmem:[#allocation96_spill] sm:$0xff]  ;;  %v10641_v20 = vld [vmem:[#allocation99_spill] sm:$0xff] }
 0x4fe   :  { %7793 = vtanh.f32 %v9700_v49  ;;  %4038 = vmatpush1.bf16.msra.mxu0 %v9507_v6  ;;  %4081 = vmatpush1.bf16.msra.mxu1 %v9510_v11 }
 0x4ff   :  { %4039 = vmatprep.subr.bf16.mxu0 %v9513_v23  ;;  %4082 = vmatprep.subr.bf16.mxu1 %v9516_v24 }
 0x502   :  { %4040 = vmatpush1.bf16.msra.mxu0 %v9519_v15  ;;  %4083 = vmatpush1.bf16.msra.mxu1 %v9522_v32  ;;  %v7788_v41 = vpop.eup %7787 }
 0x503   :  { %4041 = vmatprep.subr.bf16.mxu0 %v9525_v62  ;;  %4084 = vmatprep.subr.bf16.mxu1 %v9528_v3 }
 0x505   :  { %v7790_v10 = vpop.eup %7789 }
 0x506   :  { %4042 = vmatpush1.bf16.msra.mxu0 %v9531_v27  ;;  %4085 = vmatpush1.bf16.msra.mxu1 %v9534_v5  ;;  %v7792_v44 = vpop.eup %7791  ;;  %v3841_v25 = vmul.f32 %v7790_v10, %v7788_v41  ;;  %v10642_v41 = vld [vmem:[#allocation100_spill] sm:$0xff]  ;;  %v10643_v10 = vld [vmem:[#allocation101_spill] sm:$0xff] }
 0x507   :  { %4043 = vmatprep.subr.bf16.mxu0 %v9537_v17  ;;  %4086 = vmatprep.subr.bf16.mxu1 %v9540_v18 }
 0x50a   :  { %4044 = vmatpush1.bf16.msra.mxu0 %v9543_v59  ;;  %4087 = vmatpush1.bf16.msra.mxu1 %v9546_v22 }
 0x50b   :  { %v7794_v0 = vpop.eup %7793  ;;  %4193 = vmatprep.subr.bf16.mxu0 %v9549_v63  ;;  %4236 = vmatprep.subr.bf16.mxu1 %v9552_v55 }
 0x50c   :  { %v3842_v53 = vmul.f32 %v7794_v0, %v7792_v44  ;;  %v10644_v44 = vld [vmem:[#allocation102_spill] sm:$0xff]  ;;  %v10645_v0 = vld [vmem:[#allocation103_spill] sm:$0xff] }
 0x50e   :  { %v3843_v19 = vpack.c.bf16 %v3842_v53, %v3841_v25  ;;  %v10646_v25 = vld [vmem:[#allocation104_spill] sm:$0xff]  ;;  %v10647_v53 = vld [vmem:[#allocation105_spill] sm:$0xff] }
 0x510   :  { %7026 = vst [vmem:[#allocation7 + $0x30] sm:$0xff] %v3843_v19   ;;  %4062 = vmatmul.mubr.bf16.vlgmr.msra.gmra.mxu0 %v3843_v19  ;;  %4105 = vmatmul.mubr.bf16.vlgmr.msra.gmra.mxu1 %v3843_v19  ;;  %v10648_v19 = vld [vmem:[#allocation106_spill] sm:$0xff] }
 0x511   :  { %4194 = vmatpush1.bf16.msra.mxu0 %v9555_v45  ;;  %4237 = vmatpush1.bf16.msra.mxu1 %v10623_v42 }
 0x512   :  { %4195 = vmatprep.subr.bf16.mxu0 %v10624_v8  ;;  %4238 = vmatprep.subr.bf16.mxu1 %v10625_v36 }
 0x513   :  { %4225 = vmatprep.mubr.bf16.mxu0 %v10591_v16  ;;  %4268 = vmatprep.mubr.bf16.mxu1 %v10591_v16 }
 0x515   :  { %4196 = vmatpush1.bf16.msra.mxu0 %v10626_v57  ;;  %4239 = vmatpush1.bf16.msra.mxu1 %v10627_v43 }
 0x516   :  { %4197 = vmatprep.subr.bf16.mxu0 %v10628_v60  ;;  %4240 = vmatprep.subr.bf16.mxu1 %v10629_v34 }
 0x519   :  { %4198 = vmatpush1.bf16.msra.mxu0 %v10630_v2  ;;  %4241 = vmatpush1.bf16.msra.mxu1 %v10631_v39 }
 0x51a   :  { %4199 = vmatprep.subr.bf16.mxu0 %v10632_v56  ;;  %4242 = vmatprep.subr.bf16.mxu1 %v10633_v21 }
 0x51d   :  { %4200 = vmatpush1.bf16.msra.mxu0 %v10634_v30  ;;  %4243 = vmatpush1.bf16.msra.mxu1 %v10635_v1  ;;  %v10655_v30 = vld [vmem:[#allocation35_spill] sm:$0xff] }
 0x51e   :  { %4201 = vmatprep.subr.bf16.mxu0 %v10636_v50  ;;  %4244 = vmatprep.subr.bf16.mxu1 %v10637_v47 }
 0x521   :  { %4202 = vmatpush1.bf16.msra.mxu0 %v10638_v61  ;;  %4245 = vmatpush1.bf16.msra.mxu1 %v10639_v35  ;;  %v10649_v61 = vld [vmem:[#allocation107_spill] sm:$0xff]  ;;  %v10650_v35 = vld [vmem:[#allocation108_spill] sm:$0xff] }
 0x522   :  { %4203 = vmatprep.subr.bf16.mxu0 %v10640_v26  ;;  %4246 = vmatprep.subr.bf16.mxu1 %v10641_v20  ;;  %v10651_v26 = vld [vmem:[#allocation109_spill] sm:$0xff]  ;;  %v10652_v20 = vld [vmem:[#allocation110_spill] sm:$0xff] }
 0x525   :  { %4204 = vmatpush1.bf16.msra.mxu0 %v10642_v41  ;;  %4247 = vmatpush1.bf16.msra.mxu1 %v10643_v10  ;;  %v10653_v41 = vld [vmem:[#allocation111_spill] sm:$0xff]  ;;  %v10654_v10 = vld [vmem:[#allocation33_spill] sm:$0xff] }
 0x526   :  { %4205 = vmatprep.subr.bf16.mxu0 %v10644_v44  ;;  %4248 = vmatprep.subr.bf16.mxu1 %v10645_v0  ;;  %v3857_v44 = vunpack.c.l.bf16 %v10654_v10 }
 0x529   :  { %4206 = vmatpush1.bf16.msra.mxu0 %v10646_v25  ;;  %4249 = vmatpush1.bf16.msra.mxu1 %v10647_v53  ;;  %v3858_v25 = vunpack.c.h.bf16 %v10654_v10 }
 0x52a   :  { %4207 = vmatprep.subr.bf16.mxu0 %v10648_v19  ;;  %4250 = vmatprep.subr.bf16.mxu1 %v10649_v61  ;;  %v3861_v61 = vunpack.c.l.bf16 %v10655_v30 }
 0x52d   :  { %4208 = vmatpush1.bf16.msra.mxu0 %v10650_v35  ;;  %4251 = vmatpush1.bf16.msra.mxu1 %v10651_v26 }
 0x52e   :  { %4357 = vmatprep.subr.bf16.mxu0 %v10652_v20  ;;  %4400 = vmatprep.subr.bf16.mxu1 %v10653_v41  ;;  %v3862_v20 = vunpack.c.h.bf16 %v10655_v30 }
 0x5ad   :  { %v3899_v47 = vpop.f32.mrf.mxu0  ;;  %v3942_v1 = vpop.f32.mrf.mxu1 }
 0x5ae   :  { %v3951_v0 = vadd.f32 %v3899_v47, %v3857_v44  ;;  %v10656_v47 = vld [vmem:[#allocation34_spill] sm:$0xff] }
 0x5af   :  { %v3901_v50 = vpop.f32.mrf.mxu0  ;;  %v3944_v41 = vpop.f32.mrf.mxu1  ;;  %v3859_v44 = vunpack.c.l.bf16 %v10656_v47 }
 0x5b0   :  { %v6655_v53 = vmul.f32 -1.442695, %v3951_v0  ;;  %v3952_v19 = vadd.f32 %v3901_v50, %v3858_v25  ;;  %v10657_v50 = vld [vmem:[#allocation36_spill] sm:$0xff] }
 0x5b1   :  { %v3903_v21 = vpop.f32.mrf.mxu0  ;;  %v3953_v0 = vadd.f32 %v3942_v1, %v3859_v44  ;;  %v3946_v34 = vpop.f32.mrf.mxu1  ;;  %v3863_v25 = vunpack.c.l.bf16 %v10657_v50 }
 0x5b2   :  { %7795 = vpow2.f32 %v6655_v53  ;;  %v6656_v35 = vmul.f32 -1.442695, %v3952_v19  ;;  %v3955_v26 = vadd.f32 %v3903_v21, %v3861_v61  ;;  %v3860_v53 = vunpack.c.h.bf16 %v10656_v47 }
 0x5b3   :  { %v3905_v56 = vpop.f32.mrf.mxu0  ;;  %v3957_v19 = vadd.f32 %v3946_v34, %v3863_v25  ;;  %v6657_v21 = vmul.f32 -1.442695, %v3953_v0  ;;  %v3948_v30 = vpop.f32.mrf.mxu1 }
 0x5b4   :  { %7797 = vpow2.f32 %v6656_v35  ;;  %v6658_v39 = vmul.f32 -1.442695, %v3955_v26  ;;  %v3956_v2 = vadd.f32 %v3905_v56, %v3862_v20  ;;  %v3954_v61 = vadd.f32 %v3944_v41, %v3860_v53 }
 0x5b5   :  { %v6660_v35 = vmul.f32 -1.442695, %v3957_v19  ;;  %v3864_v26 = vunpack.c.h.bf16 %v10657_v50  ;;  %v10658_v50 = vld [vmem:[#allocation77_spill] sm:$0xff] }
 0x5b6   :  { %7799 = vpow2.f32 %v6658_v39  ;;  %v6659_v10 = vmul.f32 -1.442695, %v3956_v2 }
 0x5b7   :  { %v3958_v2 = vadd.f32 %v3948_v30, %v3864_v26  ;;  %v4022_v30 = vunpack.c.h.bf16 %v10658_v50 }
 0x5b8   :  { %7801 = vpow2.f32 %v6659_v10 }
 0x5b9   :  { %7803 = vpow2.f32 %v6657_v21 }
 0x5ba   :  { %7805 = vtanh.f32 %v3954_v61 }
 0x5bf   :  { %v7796_v60 = vpop.eup %7795 }
 0x5c0   :  { %v3977_v56 = vadd.f32 1.0, %v7796_v60  ;;  %v4021_v60 = vunpack.c.l.bf16 %v10658_v50 }
 0x5c1   :  { %v7798_v20 = vpop.eup %7797 }
 0x5c2   :  { %7807 = vrcp.f32 %v3977_v56  ;;  %v3978_v39 = vadd.f32 1.0, %v7798_v20 }
 0x5c3   :  { %v7800_v1 = vpop.eup %7799  ;;  %7809 = vpow2.f32 %v6660_v35 }
 0x5c4   :  { %7811 = vrcp.f32 %v3978_v39  ;;  %v3980_v44 = vadd.f32 1.0, %v7800_v1 }
 0x5c5   :  { %v7802_v47 = vpop.eup %7801  ;;  %7813 = vtanh.f32 %v3958_v2 }
 0x5c6   :  { %7815 = vrcp.f32 %v3980_v44  ;;  %v3981_v34 = vadd.f32 1.0, %v7802_v47  ;;  %v7804_v41 = vpop.eup %7803  ;;  %v10659_v44 = vld [vmem:[#allocation79_spill] sm:$0xff] }
 0x5c7   :  { %v7806_v10 = vpop.eup %7805  ;;  %v3979_v26 = vadd.f32 1.0, %v7804_v41  ;;  %v4025_v47 = vunpack.c.l.bf16 %v10659_v44 }
 0x5c8   :  { %7817 = vrcp.f32 %v3981_v34 }
 0x5cf   :  { %v7808_v0 = vpop.eup %7807 }
 0x5d0   :  { %v7810_v25 = vpop.eup %7809  ;;  %v3999_v53 = vmul.f32 %v7808_v0, %v7806_v10  ;;  %v4063_v19 = vpop.f32.mrf.mxu0  ;;  %v4026_v10 = vunpack.c.h.bf16 %v10659_v44 }
 0x5d1   :  { %v7812_v21 = vpop.eup %7811  ;;  %v4115_v61 = vadd.f32 %v4063_v19, %v4021_v60  ;;  %v3982_v60 = vadd.f32 1.0, %v7810_v25  ;;  %v4106_v41 = vpop.f32.mrf.mxu1 }
 0x5d2   :  { %v7814_v35 = vpop.eup %7813  ;;  %v3997_v56 = vmul.f32 %v7812_v21, %v9666_v9  ;;  %v4065_v20 = vpop.f32.mrf.mxu0 }
 0x5d3   :  { %v7816_v2 = vpop.eup %7815  ;;  %v6663_v39 = vmul.f32 -1.442695, %v4115_v61  ;;  %v4116_v1 = vadd.f32 %v4065_v20, %v4022_v30  ;;  %v4108_v25 = vpop.f32.mrf.mxu1 }
 0x5d4   :  { %v9765_v34 = vadd.f32 %v3999_v53, %v3997_v56  ;;  %v4000_v43 = vmul.f32 %v7816_v2, %v7814_v35  ;;  %v4067_v57 = vpop.f32.mrf.mxu0  ;;  %v10660_v56 = vld [vmem:[#allocation78_spill] sm:$0xff]  ;;  %v10661_v2 = vld [vmem:[#allocation80_spill] sm:$0xff] }
 0x5d5   :  { %v7818_v0 = vpop.eup %7817  ;;  %7819 = vpow2.f32 %v6663_v39  ;;  %v6664_v50 = vmul.f32 -1.442695, %v4116_v1  ;;  %v4119_v19 = vadd.f32 %v4067_v57, %v4025_v47  ;;  %v4023_v57 = vunpack.c.l.bf16 %v10660_v56 }
 0x5d6   :  { %7821 = vrcp.f32 %v3979_v26  ;;  %v3998_v9 = vmul.f32 %v7818_v0, %v9670_v51  ;;  %v4069_v21 = vpop.f32.mrf.mxu0  ;;  %v4024_v51 = vunpack.c.h.bf16 %v10660_v56  ;;  %v4110_v26 = vpop.f32.mrf.mxu1  ;;  %v4027_v39 = vunpack.c.l.bf16 %v10661_v2 }
 0x5d7   :  { %7823 = vtanh.f32 %v9765_v34  ;;  %v6666_v61 = vmul.f32 -1.442695, %v4119_v19  ;;  %v4120_v30 = vadd.f32 %v4069_v21, %v4026_v10  ;;  %v4117_v20 = vadd.f32 %v4106_v41, %v4023_v57 }
 0x5d8   :  { %v9770_v53 = vadd.f32 %v4000_v43, %v3998_v9  ;;  %7825 = vpow2.f32 %v6664_v50  ;;  %v4118_v1 = vadd.f32 %v4108_v25, %v4024_v51  ;;  %v4121_v44 = vadd.f32 %v4110_v26, %v4027_v39 }
 0x5d9   :  { %7827 = vrcp.f32 %v3982_v60  ;;  %v6667_v35 = vmul.f32 -1.442695, %v4120_v30  ;;  %v6665_v0 = vmul.f32 -1.442695, %v4117_v20  ;;  %v4112_v60 = vpop.f32.mrf.mxu1  ;;  %v4028_v19 = vunpack.c.h.bf16 %v10661_v2 }
 0x5da   :  { %7829 = vtanh.f32 %v9770_v53  ;;  %v6668_v21 = vmul.f32 -1.442695, %v4121_v44 }
 0x5db   :  { %7831 = vpow2.f32 %v6666_v61 }
 0x5dc   :  { %7833 = vpow2.f32 %v6667_v35  ;;  %v4122_v35 = vadd.f32 %v4112_v60, %v4028_v19  ;;  %v10684_v60 = vld [vmem:[#allocation106_spill] sm:$0xff]  ;;  %v10686_v19 = vld [vmem:[#allocation108_spill] sm:$0xff] }
 0x5dd   :  { %7835 = vtanh.f32 %v4118_v1 }
 0x5e2   :  { %v7820_v43 = vpop.eup %7819 }
 0x5e3   :  { %v7822_v47 = vpop.eup %7821  ;;  %v4141_v10 = vadd.f32 1.0, %v7820_v43 }
 0x5e4   :  { %v7824_v50 = vpop.eup %7823 }
 0x5e5   :  { %v7826_v9 = vpop.eup %7825  ;;  %7837 = vrcp.f32 %v4141_v10  ;;  %v4005_v25 = vmul.f32 %v7824_v50, %v7822_v47  ;;  %v10682_v10 = vld [vmem:[#allocation104_spill] sm:$0xff]  ;;  %v10685_v50 = vld [vmem:[#allocation107_spill] sm:$0xff] }
 0x5e6   :  { %v7828_v61 = vpop.eup %7827  ;;  %v4142_v30 = vadd.f32 1.0, %v7826_v9  ;;  %7839 = vpow2.f32 %v6665_v0  ;;  %v10683_v0 = vld [vmem:[#allocation105_spill] sm:$0xff] }
 0x5e7   :  { %v7830_v41 = vpop.eup %7829  ;;  %v10687_v9 = vld [vmem:[#allocation109_spill] sm:$0xff] }
 0x5e8   :  { %v7832_v56 = vpop.eup %7831  ;;  %7841 = vrcp.f32 %v4142_v30  ;;  %v4006_v57 = vmul.f32 %v7830_v41, %v7828_v61  ;;  %v10689_v61 = vld [vmem:[#allocation111_spill] sm:$0xff]  ;;  %v10690_v30 = vld [vmem:[#allocation37_spill] sm:$0xff] }
 0x5e9   :  { %v4144_v51 = vadd.f32 1.0, %v7832_v56  ;;  %7843 = vpow2.f32 %v6668_v21  ;;  %v7834_v26 = vpop.eup %7833  ;;  %v10688_v21 = vld [vmem:[#allocation110_spill] sm:$0xff] }
 0x5ea   :  { %7845 = vtanh.f32 %v4122_v35  ;;  %v4007_v20 = vpack.c.bf16 %v4006_v57, %v4005_v25  ;;  %v4145_v39 = vadd.f32 1.0, %v7834_v26  ;;  %v7836_v2 = vpop.eup %7835  ;;  %v4185_v35 = vunpack.c.l.bf16 %v10690_v30 }
 0x5eb   :  { %7847 = vrcp.f32 %v4144_v51  ;;  %v4186_v57 = vunpack.c.h.bf16 %v10690_v30 }
 0x5ec   :  { %7027 = vst [vmem:[#allocation6 + $0x10] sm:$0xff] %v4007_v20   ;;  %4226 = vmatmul.mubr.bf16.vlgmr.msra.gmra.mxu0 %v4007_v20  ;;  %4269 = vmatmul.mubr.bf16.vlgmr.msra.gmra.mxu1 %v4007_v20  ;;  %7849 = vrcp.f32 %v4145_v39  ;;  %v10691_v39 = vld [vmem:[#allocation39_spill] sm:$0xff] }
 0x5ed   :  { %4358 = vmatpush1.bf16.msra.mxu0 %v9451_v46  ;;  %4401 = vmatpush1.bf16.msra.mxu1 %v9454_v37 }
 0x5ee   :  { %4359 = vmatprep.subr.bf16.mxu0 %v9457_v7  ;;  %4402 = vmatprep.subr.bf16.mxu1 %v9460_v40 }
 0x5ef   :  { %4389 = vmatprep.mubr.bf16.mxu0 %v10591_v16  ;;  %4432 = vmatprep.mubr.bf16.mxu1 %v10591_v16 }
 0x5f1   :  { %4360 = vmatpush1.bf16.msra.mxu0 %v9465_v4  ;;  %4403 = vmatpush1.bf16.msra.mxu1 %v9468_v48 }
 0x5f2   :  { %v7838_v1 = vpop.eup %7837  ;;  %4361 = vmatprep.subr.bf16.mxu0 %v9471_v31  ;;  %4404 = vmatprep.subr.bf16.mxu1 %v9474_v12 }
 0x5f3   :  { %v4163_v46 = vmul.f32 %v7838_v1, %v7836_v2  ;;  %v7840_v37 = vpop.eup %7839  ;;  %v4189_v2 = vunpack.c.l.bf16 %v10691_v39 }
 0x5f4   :  { %v4143_v43 = vadd.f32 1.0, %v7840_v37 }
 0x5f5   :  { %v7842_v44 = vpop.eup %7841  ;;  %4362 = vmatpush1.bf16.msra.mxu0 %v9479_v52  ;;  %4405 = vmatpush1.bf16.msra.mxu1 %v9482_v38 }
 0x5f6   :  { %v7844_v7 = vpop.eup %7843  ;;  %v4161_v40 = vmul.f32 %v7842_v44, %v9688_v54  ;;  %4363 = vmatprep.subr.bf16.mxu0 %v9485_v13  ;;  %4406 = vmatprep.subr.bf16.mxu1 %v9488_v14  ;;  %7851 = vrcp.f32 %v4143_v43  ;;  %v10677_v54 = vld [vmem:[#allocation99_spill] sm:$0xff]  ;;  %v10692_v43 = vld [vmem:[#allocation38_spill] sm:$0xff] }
 0x5f7   :  { %v7846_v4 = vpop.eup %7845  ;;  %v4146_v47 = vadd.f32 1.0, %v7844_v7  ;;  %v4190_v7 = vunpack.c.h.bf16 %v10691_v39 }
 0x5f8   :  { %v7848_v48 = vpop.eup %7847  ;;  %v9792_v31 = vadd.f32 %v4163_v46, %v4161_v40 }
 0x5f9   :  { %v4164_v12 = vmul.f32 %v7848_v48, %v7846_v4  ;;  %4364 = vmatpush1.bf16.msra.mxu0 %v9494_v28  ;;  %4407 = vmatpush1.bf16.msra.mxu1 %v9497_v58  ;;  %v7850_v52 = vpop.eup %7849 }
 0x5fa   :  { %4365 = vmatprep.subr.bf16.mxu0 %v9500_v33  ;;  %4408 = vmatprep.subr.bf16.mxu1 %v9503_v29  ;;  %v4162_v38 = vmul.f32 %v7850_v52, %v9700_v49  ;;  %7853 = vtanh.f32 %v9792_v31  ;;  %v10678_v49 = vld [vmem:[#allocation100_spill] sm:$0xff] }
 0x5fb   :  { %7855 = vrcp.f32 %v4146_v47 }
 0x5fc   :  { %v9800_v13 = vadd.f32 %v4164_v12, %v4162_v38  ;;  %v4187_v12 = vunpack.c.l.bf16 %v10692_v43 }
 0x5fd   :  { %4366 = vmatpush1.bf16.msra.mxu0 %v9507_v6  ;;  %4409 = vmatpush1.bf16.msra.mxu1 %v9510_v11 }
 0x5fe   :  { %4367 = vmatprep.subr.bf16.mxu0 %v9513_v23  ;;  %4410 = vmatprep.subr.bf16.mxu1 %v9516_v24  ;;  %7857 = vtanh.f32 %v9800_v13  ;;  %v10666_v23 = vld [vmem:[#allocation88_spill] sm:$0xff]  ;;  %v10668_v24 = vld [vmem:[#allocation90_spill] sm:$0xff] }
 0x601   :  { %4368 = vmatpush1.bf16.msra.mxu0 %v9519_v15  ;;  %4411 = vmatpush1.bf16.msra.mxu1 %v9522_v32  ;;  %v10669_v15 = vld [vmem:[#allocation91_spill] sm:$0xff]  ;;  %v10670_v32 = vld [vmem:[#allocation92_spill] sm:$0xff] }
 0x602   :  { %4369 = vmatprep.subr.bf16.mxu0 %v9525_v62  ;;  %4412 = vmatprep.subr.bf16.mxu1 %v9528_v3  ;;  %v10671_v62 = vld [vmem:[#allocation93_spill] sm:$0xff]  ;;  %v10672_v3 = vld [vmem:[#allocation94_spill] sm:$0xff] }
 0x603   :  { %v7852_v14 = vpop.eup %7851 }
 0x605   :  { %4370 = vmatpush1.bf16.msra.mxu0 %v9531_v27  ;;  %4413 = vmatpush1.bf16.msra.mxu1 %v9534_v5  ;;  %v10673_v27 = vld [vmem:[#allocation95_spill] sm:$0xff]  ;;  %v10674_v5 = vld [vmem:[#allocation96_spill] sm:$0xff] }
 0x606   :  { %4371 = vmatprep.subr.bf16.mxu0 %v9537_v17  ;;  %4414 = vmatprep.subr.bf16.mxu1 %v9540_v18  ;;  %v10675_v17 = vld [vmem:[#allocation97_spill] sm:$0xff]  ;;  %v10676_v18 = vld [vmem:[#allocation98_spill] sm:$0xff] }
 0x607   :  { %v7854_v28 = vpop.eup %7853 }
 0x608   :  { %v7856_v58 = vpop.eup %7855  ;;  %v4169_v29 = vmul.f32 %v7854_v28, %v7852_v14  ;;  %v10693_v14 = vld [vmem:[#allocation40_spill] sm:$0xff] }
 0x609   :  { %4372 = vmatpush1.bf16.msra.mxu0 %v9543_v59  ;;  %4415 = vmatpush1.bf16.msra.mxu1 %v9546_v22  ;;  %v10662_v59 = vld [vmem:[#allocation84_spill] sm:$0xff]  ;;  %v10663_v22 = vld [vmem:[#allocation85_spill] sm:$0xff]  ;;  %v4191_v28 = vunpack.c.l.bf16 %v10693_v14 }
 0x60a   :  { %4521 = vmatprep.subr.bf16.mxu0 %v9549_v63  ;;  %4564 = vmatprep.subr.bf16.mxu1 %v9552_v55  ;;  %v10664_v55 = vld [vmem:[#allocation86_spill] sm:$0xff]  ;;  %v10665_v63 = vld [vmem:[#allocation87_spill] sm:$0xff] }
 0x60b   :  { %v7858_v33 = vpop.eup %7857 }
 0x60c   :  { %v4170_v6 = vmul.f32 %v7858_v33, %v7856_v58  ;;  %v4188_v33 = vunpack.c.h.bf16 %v10692_v43 }
 0x60e   :  { %v4171_v11 = vpack.c.bf16 %v4170_v6, %v4169_v29 }
 0x610   :  { %7028 = vst [vmem:[#allocation7 + $0x28] sm:$0xff] %v4171_v11   ;;  %4390 = vmatmul.mubr.bf16.vlgmr.msra.gmra.mxu0 %v4171_v11  ;;  %4433 = vmatmul.mubr.bf16.vlgmr.msra.gmra.mxu1 %v4171_v11 }
 0x611   :  { %4522 = vmatpush1.bf16.msra.mxu0 %v9555_v45  ;;  %4565 = vmatpush1.bf16.msra.mxu1 %v10623_v42  ;;  %v10667_v45 = vld [vmem:[#allocation89_spill] sm:$0xff] }
 0x612   :  { %4523 = vmatprep.subr.bf16.mxu0 %v10624_v8  ;;  %4566 = vmatprep.subr.bf16.mxu1 %v10625_v36  ;;  %v10679_v42 = vld [vmem:[#allocation101_spill] sm:$0xff]  ;;  %v10680_v8 = vld [vmem:[#allocation102_spill] sm:$0xff]  ;;  %v10681_v36 = vld [vmem:[#allocation103_spill] sm:$0xff] }
 0x613   :  { %4553 = vmatprep.mubr.bf16.mxu0 %v10591_v16  ;;  %4596 = vmatprep.mubr.bf16.mxu1 %v10591_v16 }
 0x615   :  { %4524 = vmatpush1.bf16.msra.mxu0 %v10662_v59  ;;  %4567 = vmatpush1.bf16.msra.mxu1 %v10663_v22 }
 0x616   :  { %4525 = vmatprep.subr.bf16.mxu0 %v10664_v55  ;;  %4568 = vmatprep.subr.bf16.mxu1 %v10665_v63  ;;  %v4192_v55 = vunpack.c.h.bf16 %v10693_v14 }
 0x619   :  { %4526 = vmatpush1.bf16.msra.mxu0 %v10666_v23  ;;  %4569 = vmatpush1.bf16.msra.mxu1 %v10667_v45 }
 0x61a   :  { %4527 = vmatprep.subr.bf16.mxu0 %v10668_v24  ;;  %4570 = vmatprep.subr.bf16.mxu1 %v10669_v15 }
 0x61d   :  { %4528 = vmatpush1.bf16.msra.mxu0 %v10670_v32  ;;  %4571 = vmatpush1.bf16.msra.mxu1 %v10671_v62 }
 0x61e   :  { %4529 = vmatprep.subr.bf16.mxu0 %v10672_v3  ;;  %4572 = vmatprep.subr.bf16.mxu1 %v10673_v27 }
 0x621   :  { %4530 = vmatpush1.bf16.msra.mxu0 %v10674_v5  ;;  %4573 = vmatpush1.bf16.msra.mxu1 %v10675_v17 }
 0x622   :  { %4531 = vmatprep.subr.bf16.mxu0 %v10676_v18  ;;  %4574 = vmatprep.subr.bf16.mxu1 %v10677_v54 }
 0x625   :  { %4532 = vmatpush1.bf16.msra.mxu0 %v10678_v49  ;;  %4575 = vmatpush1.bf16.msra.mxu1 %v10679_v42 }
 0x626   :  { %4533 = vmatprep.subr.bf16.mxu0 %v10680_v8  ;;  %4576 = vmatprep.subr.bf16.mxu1 %v10681_v36  ;;  %v10694_v8 = vld [vmem:[#allocation73_spill] sm:$0xff] }
 0x627   :  { %v4349_v36 = vunpack.c.l.bf16 %v10694_v8 }
 0x629   :  { %4534 = vmatpush1.bf16.msra.mxu0 %v10682_v10  ;;  %4577 = vmatpush1.bf16.msra.mxu1 %v10683_v0 }
 0x62a   :  { %4535 = vmatprep.subr.bf16.mxu0 %v10684_v60  ;;  %4578 = vmatprep.subr.bf16.mxu1 %v10685_v50 }
 0x62d   :  { %4536 = vmatpush1.bf16.msra.mxu0 %v10686_v19  ;;  %4579 = vmatpush1.bf16.msra.mxu1 %v10687_v9 }
 0x62e   :  { %4685 = vmatprep.subr.bf16.mxu0 %v10688_v21  ;;  %4728 = vmatprep.subr.bf16.mxu1 %v10689_v61  ;;  %v4350_v21 = vunpack.c.h.bf16 %v10694_v8  ;;  %v9886_v8 = vld [vmem:[#allocation20 + $0xcc] ss:$16 sps:$4 sm:$0xff]  }
 0x6ac   :  { %v4227_v41 = vpop.f32.mrf.mxu0  ;;  %v4270_v25 = vpop.f32.mrf.mxu1 }
 0x6ad   :  { %v4279_v56 = vadd.f32 %v4227_v41, %v4185_v35  ;;  %v4281_v38 = vadd.f32 %v4270_v25, %v4187_v12 }
 0x6ae   :  { %v4229_v51 = vpop.f32.mrf.mxu0  ;;  %v4272_v37 = vpop.f32.mrf.mxu1 }
 0x6af   :  { %v6671_v26 = vmul.f32 -1.442695, %v4279_v56  ;;  %v4280_v20 = vadd.f32 %v4229_v51, %v4186_v57  ;;  %v6673_v29 = vmul.f32 -1.442695, %v4281_v38  ;;  %v4282_v6 = vadd.f32 %v4272_v37, %v4188_v33  ;;  %v10695_v57 = vld [vmem:[#allocation75_spill] sm:$0xff] }
 0x6b0   :  { %v4231_v1 = vpop.f32.mrf.mxu0  ;;  %v4274_v52 = vpop.f32.mrf.mxu1  ;;  %v4353_v51 = vunpack.c.l.bf16 %v10695_v57 }
 0x6b1   :  { %7859 = vpow2.f32 %v6671_v26  ;;  %v6672_v46 = vmul.f32 -1.442695, %v4280_v20  ;;  %v4283_v44 = vadd.f32 %v4231_v1, %v4189_v2  ;;  %v4285_v58 = vadd.f32 %v4274_v52, %v4191_v28 }
 0x6b2   :  { %v4233_v40 = vpop.f32.mrf.mxu0  ;;  %v4276_v59 = vpop.f32.mrf.mxu1  ;;  %v4354_v1 = vunpack.c.h.bf16 %v10695_v57 }
 0x6b3   :  { %7861 = vpow2.f32 %v6672_v46  ;;  %v6674_v4 = vmul.f32 -1.442695, %v4283_v44  ;;  %v4284_v48 = vadd.f32 %v4233_v40, %v4190_v7  ;;  %v6676_v11 = vmul.f32 -1.442695, %v4285_v58 }
 0x6b4   :  { %v4286_v45 = vadd.f32 %v4276_v59, %v4192_v55 }
 0x6b5   :  { %7863 = vpow2.f32 %v6674_v4  ;;  %v6675_v47 = vmul.f32 -1.442695, %v4284_v48 }
 0x6b7   :  { %7865 = vpow2.f32 %v6675_v47  ;;  %v10697_v47 = vld [vmem:[#allocation76_spill] sm:$0xff] }
 0x6b8   :  { %7867 = vpow2.f32 %v6673_v29  ;;  %v4355_v38 = vunpack.c.l.bf16 %v10697_v47  ;;  %v4356_v55 = vunpack.c.h.bf16 %v10697_v47  ;;  %v9950_v47 = vld [vmem:[#allocation20 + $0x48] ss:$16 sps:$4 sm:$0xff]  }
 0x6b9   :  { %7869 = vtanh.f32 %v4282_v6 }
 0x6ba   :  { %7871 = vpow2.f32 %v6676_v11 }
 0x6be   :  { %v7860_v22 = vpop.eup %7859 }
 0x6bf   :  { %v4305_v63 = vadd.f32 1.0, %v7860_v22 }
 0x6c0   :  { %v7862_v23 = vpop.eup %7861 }
 0x6c1   :  { %7873 = vrcp.f32 %v4305_v63  ;;  %v4306_v24 = vadd.f32 1.0, %v7862_v23 }
 0x6c2   :  { %v7864_v15 = vpop.eup %7863 }
 0x6c3   :  { %7875 = vrcp.f32 %v4306_v24  ;;  %v4308_v32 = vadd.f32 1.0, %v7864_v15 }
 0x6c4   :  { %v7866_v62 = vpop.eup %7865  ;;  %7877 = vtanh.f32 %v4286_v45 }
 0x6c5   :  { %7879 = vrcp.f32 %v4308_v32  ;;  %v4309_v3 = vadd.f32 1.0, %v7866_v62  ;;  %v7868_v27 = vpop.eup %7867 }
 0x6c6   :  { %v7870_v5 = vpop.eup %7869  ;;  %v4307_v42 = vadd.f32 1.0, %v7868_v27 }
 0x6c7   :  { %7881 = vrcp.f32 %v4309_v3  ;;  %v7872_v17 = vpop.eup %7871 }
 0x6c8   :  { %v4310_v60 = vadd.f32 1.0, %v7872_v17  ;;  %7883 = vrcp.f32 %v4307_v42  ;;  %v9883_v42 = vld [vmem:[#allocation20 + $0xc4] ss:$16 sps:$4 sm:$0xff]  }
 0x6ca   :  { %7885 = vrcp.f32 %v4310_v60  ;;  %v9900_v60 = vld [vmem:[#allocation20 + $0xac] ss:$16 sps:$4 sm:$0xff]  }
 0x6ce   :  { %v7874_v18 = vpop.eup %7873 }
 0x6cf   :  { %v4327_v54 = vmul.f32 %v7874_v18, %v7870_v5 }
 0x6d0   :  { %v7876_v49 = vpop.eup %7875  ;;  %v4391_v50 = vpop.f32.mrf.mxu0 }
 0x6d1   :  { %v7878_v10 = vpop.eup %7877  ;;  %v4325_v0 = vmul.f32 %v7876_v49, %v9765_v34  ;;  %v4443_v9 = vadd.f32 %v4391_v50, %v4349_v36  ;;  %v4434_v20 = vpop.f32.mrf.mxu1  ;;  %v9880_v49 = vld [vmem:[#allocation20 + $0xe8] ss:$16 sps:$4 sm:$0xff]   ;;  %v9891_v36 = vld [vmem:[#allocation20 + $0xc0] ss:$16 sps:$4 sm:$0xff]  }
 0x6d2   :  { %v7880_v19 = vpop.eup %7879  ;;  %v4393_v35 = vpop.f32.mrf.mxu0 }
 0x6d3   :  { %v9864_v61 = vadd.f32 %v4327_v54, %v4325_v0  ;;  %v4328_v30 = vmul.f32 %v7880_v19, %v7878_v10  ;;  %v6679_v56 = vmul.f32 -1.442695, %v4443_v9  ;;  %v4444_v25 = vadd.f32 %v4393_v35, %v4350_v21  ;;  %v4436_v40 = vpop.f32.mrf.mxu1  ;;  %v9877_v54 = vld [vmem:[#allocation20 + $0xe0] ss:$16 sps:$4 sm:$0xff]   ;;  %v9894_v10 = vld [vmem:[#allocation20 + $0xc8] ss:$16 sps:$4 sm:$0xff]  }
 0x6d4   :  { %v7882_v41 = vpop.eup %7881  ;;  %v4395_v34 = vpop.f32.mrf.mxu0  ;;  %v9897_v0 = vld [vmem:[#allocation20 + $0xa4] ss:$16 sps:$4 sm:$0xff]   ;;  %v9906_v35 = vld [vmem:[#allocation20 + $0xa8] ss:$16 sps:$4 sm:$0xff]  }
 0x6d5   :  { %v4326_v26 = vmul.f32 %v7882_v41, %v9770_v53  ;;  %7887 = vpow2.f32 %v6679_v56  ;;  %v6680_v39 = vmul.f32 -1.442695, %v4444_v25  ;;  %v4447_v2 = vadd.f32 %v4395_v34, %v4353_v51  ;;  %v10696_v53 = vld [vmem:[#allocation74_spill] sm:$0xff]  ;;  %v4438_v43 = vpop.f32.mrf.mxu1  ;;  %v7884_v14 = vpop.eup %7883  ;;  %v9909_v56 = vld [vmem:[#allocation20 + $0x84] ss:$16 sps:$4 sm:$0xff]  }
 0x6d6   :  { %7889 = vtanh.f32 %v9864_v61  ;;  %v4397_v37 = vpop.f32.mrf.mxu0  ;;  %v4351_v48 = vunpack.c.l.bf16 %v10696_v53  ;;  %v4352_v52 = vunpack.c.h.bf16 %v10696_v53  ;;  %v4449_v58 = vadd.f32 %v4438_v43, %v4355_v38  ;;  %v9912_v25 = vld [vmem:[#allocation20 + $0x8c] ss:$16 sps:$4 sm:$0xff]   ;;  %v9931_v53 = vld [vmem:[#allocation20 + $0x60] ss:$16 sps:$4 sm:$0xff]   ;;  %v9953_v38 = vld [vmem:[#allocation20 + $0x24] ss:$16 sps:$4 sm:$0xff]  }
 0x6d7   :  { %v9870_v46 = vadd.f32 %v4328_v30, %v4326_v26  ;;  %7891 = vpow2.f32 %v6680_v39  ;;  %v6682_v44 = vmul.f32 -1.442695, %v4447_v2  ;;  %v4448_v7 = vadd.f32 %v4397_v37, %v4354_v1  ;;  %v7886_v33 = vpop.eup %7885  ;;  %v4440_v11 = vpop.f32.mrf.mxu1  ;;  %v9903_v30 = vld [vmem:[#allocation20 + $0xa0] ss:$16 sps:$4 sm:$0xff]   ;;  %v9921_v1 = vld [vmem:[#allocation20 + $0x88] ss:$16 sps:$4 sm:$0xff]  }
 0x6d8   :  { %v4445_v12 = vadd.f32 %v4434_v20, %v4351_v48  ;;  %v4446_v28 = vadd.f32 %v4436_v40, %v4352_v52  ;;  %v6684_v23 = vmul.f32 -1.442695, %v4449_v58  ;;  %v4450_v15 = vadd.f32 %v4440_v11, %v4356_v55  ;;  %v9918_v2 = vld [vmem:[#allocation20 + $0x80] ss:$16 sps:$4 sm:$0xff]   ;;  %v9934_v48 = vld [vmem:[#allocation20 + $0x68] ss:$16 sps:$4 sm:$0xff]  }
 0x6d9   :  { %7893 = vtanh.f32 %v9870_v46  ;;  %v6683_v4 = vmul.f32 -1.442695, %v4448_v7  ;;  %v9927_v7 = vld [vmem:[#allocation20 + $0x6c] ss:$16 sps:$4 sm:$0xff]   ;;  %v9962_v58 = vld [vmem:[#allocation20 + $0x28] ss:$16 sps:$4 sm:$0xff]  }
 0x6da   :  { %7895 = vpow2.f32 %v6682_v44  ;;  %v6681_v6 = vmul.f32 -1.442695, %v4445_v12  ;;  %v9924_v44 = vld [vmem:[#allocation20 + $0x64] ss:$16 sps:$4 sm:$0xff]   ;;  %v9943_v52 = vld [vmem:[#allocation20 + $0x4c] ss:$16 sps:$4 sm:$0xff]  }
 0x6db   :  { %7897 = vpow2.f32 %v6683_v4  ;;  %v9940_v12 = vld [vmem:[#allocation20 + $0x44] ss:$16 sps:$4 sm:$0xff]   ;;  %v9974_v11 = vld [vmem:[#allocation20 + $0x8] ss:$16 sps:$4 sm:$0xff]   ;;  %v9980_v55 = vld [vmem:[#allocation17 + $0xec] ss:$16 sps:$4 sm:$0xff]  }
 0x6dc   :  { %7899 = vtanh.f32 %v4446_v28  ;;  %v9959_v28 = vld [vmem:[#allocation20 + $0x20] ss:$16 sps:$4 sm:$0xff]  }
 0x6e2   :  { %v7888_v29 = vpop.eup %7887 }
 0x6e3   :  { %v7890_v59 = vpop.eup %7889  ;;  %v4469_v22 = vadd.f32 1.0, %v7888_v29  ;;  %v9968_v29 = vld [vmem:[#allocation20 + $0xc] ss:$16 sps:$4 sm:$0xff]  }
 0x6e4   :  { %v7892_v63 = vpop.eup %7891  ;;  %v4333_v32 = vmul.f32 %v7890_v59, %v7884_v14  ;;  %v9956_v14 = vld [vmem:[#allocation20 + $0x2c] ss:$16 sps:$4 sm:$0xff]  }
 0x6e5   :  { %7901 = vrcp.f32 %v4469_v22  ;;  %v4470_v24 = vadd.f32 1.0, %v7892_v63  ;;  %v9977_v22 = vld [vmem:[#allocation17 + $0xe4] ss:$16 sps:$4 sm:$0xff]  }
 0x6e6   :  { %v7894_v45 = vpop.eup %7893  ;;  %7903 = vpow2.f32 %v6681_v6  ;;  %v9971_v6 = vld [vmem:[#allocation20] ss:$16 sps:$4 sm:$0xff]  }
 0x6e7   :  { %v4334_v62 = vmul.f32 %v7894_v45, %v7886_v33  ;;  %v7896_v3 = vpop.eup %7895  ;;  %7905 = vrcp.f32 %v4470_v24  ;;  %v9965_v33 = vld [vmem:[#allocation20 + $0x4] ss:$16 sps:$4 sm:$0xff]  }
 0x6e8   :  { %v4472_v27 = vadd.f32 1.0, %v7896_v3  ;;  %7907 = vpow2.f32 %v6684_v23  ;;  %v7898_v17 = vpop.eup %7897  ;;  %v9986_v3 = vld [vmem:[#allocation17 + $0xe8] ss:$16 sps:$4 sm:$0xff]  }
 0x6e9   :  { %v4335_v5 = vpack.c.bf16 %v4334_v62, %v4333_v32  ;;  %7909 = vtanh.f32 %v4450_v15  ;;  %v4473_v18 = vadd.f32 1.0, %v7898_v17  ;;  %v7900_v50 = vpop.eup %7899  ;;  %v9983_v62 = vld [vmem:[#allocation17 + $0xe0] ss:$16 sps:$4 sm:$0xff]  }
 0x6ea   :  { %7911 = vrcp.f32 %v4472_v27  ;;  %v9989_v27 = vld [vmem:[#allocation17 + $0xc4] ss:$16 sps:$4 sm:$0xff]   ;;  %v9997_v17 = vld [vmem:[#allocation17 + $0xc0] ss:$16 sps:$4 sm:$0xff]  }
 0x6eb   :  { %7029 = vst [vmem:[#allocation6 + $0x18] sm:$0xff] %v4335_v5   ;;  %4554 = vmatmul.mubr.bf16.vlgmr.msra.gmra.mxu0 %v4335_v5  ;;  %4597 = vmatmul.mubr.bf16.vlgmr.msra.gmra.mxu1 %v4335_v5  ;;  %7913 = vrcp.f32 %v4473_v18  ;;  %v9992_v5 = vld [vmem:[#allocation17 + $0xcc] ss:$16 sps:$4 sm:$0xff]   ;;  %v10000_v18 = vld [vmem:[#allocation17 + $0xc8] ss:$16 sps:$4 sm:$0xff]  }
 0x6ec   :  { %4686 = vmatpush1.bf16.msra.mxu0 %v9877_v54  ;;  %4729 = vmatpush1.bf16.msra.mxu1 %v9880_v49  ;;  %10698 = vst [vmem:[#allocation81_spill] sm:$0xff] %v10000_v18 }
 0x6ed   :  { %4687 = vmatprep.subr.bf16.mxu0 %v9883_v42  ;;  %4730 = vmatprep.subr.bf16.mxu1 %v9886_v8 }
 0x6ee   :  { %4717 = vmatprep.mubr.bf16.mxu0 %v10591_v16  ;;  %4760 = vmatprep.mubr.bf16.mxu1 %v10591_v16 }
 0x6f0   :  { %4688 = vmatpush1.bf16.msra.mxu0 %v9891_v36  ;;  %4731 = vmatpush1.bf16.msra.mxu1 %v9894_v10 }
 0x6f1   :  { %4689 = vmatprep.subr.bf16.mxu0 %v9897_v0  ;;  %4732 = vmatprep.subr.bf16.mxu1 %v9900_v60 }
 0x6f2   :  { %v7902_v19 = vpop.eup %7901 }
 0x6f3   :  { %v7904_v9 = vpop.eup %7903  ;;  %v4491_v21 = vmul.f32 %v7902_v19, %v7900_v50  ;;  %v10003_v50 = vld [vmem:[#allocation17 + $0xa4] ss:$16 sps:$4 sm:$0xff]   ;;  %v10006_v19 = vld [vmem:[#allocation17 + $0xac] ss:$16 sps:$4 sm:$0xff]  }
 0x6f4   :  { %4690 = vmatpush1.bf16.msra.mxu0 %v9903_v30  ;;  %4733 = vmatpush1.bf16.msra.mxu1 %v9906_v35  ;;  %v7906_v41 = vpop.eup %7905  ;;  %v4471_v20 = vadd.f32 1.0, %v7904_v9  ;;  %10699 = vst [vmem:[#allocation82_spill] sm:$0xff] %v10003_v50  ;;  %10700 = vst [vmem:[#allocation83_spill] sm:$0xff] %v10006_v19  ;;  %v10009_v9 = vld [vmem:[#allocation17 + $0xa0] ss:$16 sps:$4 sm:$0xff]  }
 0x6f5   :  { %4691 = vmatprep.subr.bf16.mxu0 %v9909_v56  ;;  %4734 = vmatprep.subr.bf16.mxu1 %v9912_v25  ;;  %v7908_v57 = vpop.eup %7907  ;;  %v4489_v51 = vmul.f32 %v7906_v41, %v9792_v31  ;;  %10701 = vst [vmem:[#allocation33_spill] sm:$0xff] %v10009_v9  ;;  %v10015_v41 = vld [vmem:[#allocation17 + $0x84] ss:$16 sps:$4 sm:$0xff]  }
 0x6f6   :  { %v7910_v26 = vpop.eup %7909  ;;  %v4474_v40 = vadd.f32 1.0, %v7908_v57  ;;  %7915 = vrcp.f32 %v4471_v20  ;;  %10703 = vst [vmem:[#allocation34_spill] sm:$0xff] %v10015_v41  ;;  %v10018_v57 = vld [vmem:[#allocation17 + $0x8c] ss:$16 sps:$4 sm:$0xff]  }
 0x6f7   :  { %v7912_v34 = vpop.eup %7911  ;;  %v9916_v39 = vadd.f32 %v4491_v21, %v4489_v51  ;;  %v10012_v21 = vld [vmem:[#allocation17 + $0xa8] ss:$16 sps:$4 sm:$0xff]   ;;  %10704 = vst [vmem:[#allocation36_spill] sm:$0xff] %v10018_v57  ;;  %v10021_v51 = vld [vmem:[#allocation17 + $0x80] ss:$16 sps:$4 sm:$0xff]  }
 0x6f8   :  { %4692 = vmatpush1.bf16.msra.mxu0 %v9918_v2  ;;  %4735 = vmatpush1.bf16.msra.mxu1 %v9921_v1  ;;  %v4492_v37 = vmul.f32 %v7912_v34, %v7910_v26  ;;  %v7914_v31 = vpop.eup %7913  ;;  %10702 = vst [vmem:[#allocation35_spill] sm:$0xff] %v10012_v21  ;;  %10705 = vst [vmem:[#allocation77_spill] sm:$0xff] %v10021_v51  ;;  %v10024_v26 = vld [vmem:[#allocation17 + $0x88] ss:$16 sps:$4 sm:$0xff]   ;;  %v10027_v34 = vld [vmem:[#allocation17 + $0x64] ss:$16 sps:$4 sm:$0xff]  }
 0x6f9   :  { %4693 = vmatprep.subr.bf16.mxu0 %v9924_v44  ;;  %4736 = vmatprep.subr.bf16.mxu1 %v9927_v7  ;;  %v4490_v4 = vmul.f32 %v7914_v31, %v9800_v13  ;;  %7917 = vtanh.f32 %v9916_v39  ;;  %v9947_v13 = vld [vmem:[#allocation20 + $0x40] ss:$16 sps:$4 sm:$0xff]   ;;  %10706 = vst [vmem:[#allocation79_spill] sm:$0xff] %v10024_v26  ;;  %10707 = vst [vmem:[#allocation78_spill] sm:$0xff] %v10027_v34  ;;  %v10030_v20 = vld [vmem:[#allocation17 + $0x6c] ss:$16 sps:$4 sm:$0xff]  }
 0x6fa   :  { %7919 = vrcp.f32 %v4474_v40  ;;  %10708 = vst [vmem:[#allocation80_spill] sm:$0xff] %v10030_v20  ;;  %v10036_v31 = vld [vmem:[#allocation17 + $0x68] ss:$16 sps:$4 sm:$0xff]   ;;  %v10039_v40 = vld [vmem:[#allocation17 + $0x44] ss:$16 sps:$4 sm:$0xff]  }
 0x6fb   :  { %v9938_v43 = vadd.f32 %v4492_v37, %v4490_v4  ;;  %v10033_v37 = vld [vmem:[#allocation17 + $0x60] ss:$16 sps:$4 sm:$0xff]   ;;  %10710 = vst [vmem:[#allocation85_spill] sm:$0xff] %v10036_v31  ;;  %10711 = vst [vmem:[#allocation86_spill] sm:$0xff] %v10039_v40  ;;  %v10042_v4 = vld [vmem:[#allocation17 + $0x4c] ss:$16 sps:$4 sm:$0xff]  }
 0x6fc   :  { %4694 = vmatpush1.bf16.msra.mxu0 %v9931_v53  ;;  %4737 = vmatpush1.bf16.msra.mxu1 %v9934_v48  ;;  %10709 = vst [vmem:[#allocation84_spill] sm:$0xff] %v10033_v37  ;;  %10712 = vst [vmem:[#allocation87_spill] sm:$0xff] %v10042_v4 }
 0x6fd   :  { %4695 = vmatprep.subr.bf16.mxu0 %v9940_v12  ;;  %4738 = vmatprep.subr.bf16.mxu1 %v9943_v52  ;;  %7921 = vtanh.f32 %v9938_v43 }
 0x700   :  { %4696 = vmatpush1.bf16.msra.mxu0 %v9947_v13  ;;  %4739 = vmatpush1.bf16.msra.mxu1 %v9950_v47 }
 0x701   :  { %4697 = vmatprep.subr.bf16.mxu0 %v9953_v38  ;;  %4740 = vmatprep.subr.bf16.mxu1 %v9956_v14 }
 0x703   :  { %v7916_v59 = vpop.eup %7915 }
 0x704   :  { %4698 = vmatpush1.bf16.msra.mxu0 %v9959_v28  ;;  %4741 = vmatpush1.bf16.msra.mxu1 %v9962_v58 }
 0x705   :  { %4699 = vmatprep.subr.bf16.mxu0 %v9965_v33  ;;  %4742 = vmatprep.subr.bf16.mxu1 %v9968_v29 }
 0x706   :  { %v7918_v63 = vpop.eup %7917 }
 0x707   :  { %v7920_v23 = vpop.eup %7919  ;;  %v4497_v24 = vmul.f32 %v7918_v63, %v7916_v59  ;;  %v10045_v59 = vld [vmem:[#allocation17 + $0x40] ss:$16 sps:$4 sm:$0xff]   ;;  %v10048_v63 = vld [vmem:[#allocation17 + $0x48] ss:$16 sps:$4 sm:$0xff]  }
 0x708   :  { %4700 = vmatpush1.bf16.msra.mxu0 %v9971_v6  ;;  %4743 = vmatpush1.bf16.msra.mxu1 %v9974_v11  ;;  %10713 = vst [vmem:[#allocation88_spill] sm:$0xff] %v10045_v59  ;;  %10714 = vst [vmem:[#allocation89_spill] sm:$0xff] %v10048_v63 }
 0x709   :  { %4849 = vmatprep.subr.bf16.mxu0 %v9977_v22  ;;  %4892 = vmatprep.subr.bf16.mxu1 %v9980_v55 }
 0x70a   :  { %v7922_v45 = vpop.eup %7921 }
 0x70b   :  { %v4498_v15 = vmul.f32 %v7922_v45, %v7920_v23  ;;  %v10051_v23 = vld [vmem:[#allocation17 + $0x24] ss:$16 sps:$4 sm:$0xff]   ;;  %v10054_v45 = vld [vmem:[#allocation17 + $0x2c] ss:$16 sps:$4 sm:$0xff]  }
 0x70c   :  { %10715 = vst [vmem:[#allocation90_spill] sm:$0xff] %v10051_v23  ;;  %10716 = vst [vmem:[#allocation91_spill] sm:$0xff] %v10054_v45 }
 0x70d   :  { %v4499_v32 = vpack.c.bf16 %v4498_v15, %v4497_v24  ;;  %v10057_v24 = vld [vmem:[#allocation17 + $0x20] ss:$16 sps:$4 sm:$0xff]   ;;  %v10060_v15 = vld [vmem:[#allocation17 + $0x28] ss:$16 sps:$4 sm:$0xff]  }
 0x70e   :  { %10717 = vst [vmem:[#allocation92_spill] sm:$0xff] %v10057_v24  ;;  %10718 = vst [vmem:[#allocation93_spill] sm:$0xff] %v10060_v15 }
 0x70f   :  { %7030 = vst [vmem:[#allocation7 + $0x20] sm:$0xff] %v4499_v32   ;;  %4718 = vmatmul.mubr.bf16.vlgmr.msra.gmra.mxu0 %v4499_v32  ;;  %4761 = vmatmul.mubr.bf16.vlgmr.msra.gmra.mxu1 %v4499_v32  ;;  %v10063_v32 = vld [vmem:[#allocation17 + $0x4] ss:$16 sps:$4 sm:$0xff]  }
 0x710   :  { %4850 = vmatpush1.bf16.msra.mxu0 %v9983_v62  ;;  %4893 = vmatpush1.bf16.msra.mxu1 %v9986_v3  ;;  %10719 = vst [vmem:[#allocation94_spill] sm:$0xff] %v10063_v32 }
 0x711   :  { %4851 = vmatprep.subr.bf16.mxu0 %v9989_v27  ;;  %4894 = vmatprep.subr.bf16.mxu1 %v9992_v5 }
 0x712   :  { %4881 = vmatprep.mubr.bf16.mxu0 %v10591_v16  ;;  %4924 = vmatprep.mubr.bf16.mxu1 %v10591_v16 }
 0x714   :  { %4852 = vmatpush1.bf16.msra.mxu0 %v9997_v17  ;;  %4895 = vmatpush1.bf16.msra.mxu1 %v10000_v18 }
 0x715   :  { %4853 = vmatprep.subr.bf16.mxu0 %v10003_v50  ;;  %4896 = vmatprep.subr.bf16.mxu1 %v10006_v19 }
 0x718   :  { %4854 = vmatpush1.bf16.msra.mxu0 %v10009_v9  ;;  %4897 = vmatpush1.bf16.msra.mxu1 %v10012_v21 }
 0x719   :  { %4855 = vmatprep.subr.bf16.mxu0 %v10015_v41  ;;  %4898 = vmatprep.subr.bf16.mxu1 %v10018_v57 }
 0x71c   :  { %4856 = vmatpush1.bf16.msra.mxu0 %v10021_v51  ;;  %4899 = vmatpush1.bf16.msra.mxu1 %v10024_v26 }
 0x71d   :  { %4857 = vmatprep.subr.bf16.mxu0 %v10027_v34  ;;  %4900 = vmatprep.subr.bf16.mxu1 %v10030_v20  ;;  %v10726_v34 = vld [vmem:[#allocation43_spill] sm:$0xff] }
 0x71e   :  { %v4518_v57 = vunpack.c.h.bf16 %v10726_v34 }
 0x720   :  { %4858 = vmatpush1.bf16.msra.mxu0 %v10033_v37  ;;  %4901 = vmatpush1.bf16.msra.mxu1 %v10036_v31 }
 0x721   :  { %4859 = vmatprep.subr.bf16.mxu0 %v10039_v40  ;;  %4902 = vmatprep.subr.bf16.mxu1 %v10042_v4 }
 0x724   :  { %4860 = vmatpush1.bf16.msra.mxu0 %v10045_v59  ;;  %4903 = vmatpush1.bf16.msra.mxu1 %v10048_v63  ;;  %v10066_v63 = vld [vmem:[#allocation17 + $0xc] ss:$16 sps:$4 sm:$0xff]  }
 0x725   :  { %4861 = vmatprep.subr.bf16.mxu0 %v10051_v23  ;;  %4904 = vmatprep.subr.bf16.mxu1 %v10054_v45  ;;  %10720 = vst [vmem:[#allocation95_spill] sm:$0xff] %v10066_v63  ;;  %v10069_v23 = vld [vmem:[#allocation17] ss:$16 sps:$4 sm:$0xff]   ;;  %v10072_v45 = vld [vmem:[#allocation17 + $0x8] ss:$16 sps:$4 sm:$0xff]  }
 0x726   :  { %10721 = vst [vmem:[#allocation96_spill] sm:$0xff] %v10069_v23  ;;  %10722 = vst [vmem:[#allocation97_spill] sm:$0xff] %v10072_v45 }
 0x728   :  { %4862 = vmatpush1.bf16.msra.mxu0 %v10057_v24  ;;  %4905 = vmatpush1.bf16.msra.mxu1 %v10060_v15  ;;  %v10075_v24 = vld [vmem:[#allocation20 + $0xe4] ss:$16 sps:$4 sm:$0xff]   ;;  %v10078_v15 = vld [vmem:[#allocation20 + $0xec] ss:$16 sps:$4 sm:$0xff]  }
 0x729   :  { %4863 = vmatprep.subr.bf16.mxu0 %v10063_v32  ;;  %4906 = vmatprep.subr.bf16.mxu1 %v10066_v63  ;;  %10723 = vst [vmem:[#allocation98_spill] sm:$0xff] %v10075_v24  ;;  %10724 = vst [vmem:[#allocation99_spill] sm:$0xff] %v10078_v15  ;;  %v10725_v32 = vld [vmem:[#allocation41_spill] sm:$0xff] }
 0x72a   :  { %v4513_v59 = vunpack.c.l.bf16 %v10725_v32  ;;  %v4514_v40 = vunpack.c.h.bf16 %v10725_v32 }
 0x72c   :  { %4864 = vmatpush1.bf16.msra.mxu0 %v10069_v23  ;;  %4907 = vmatpush1.bf16.msra.mxu1 %v10072_v45  ;;  %v4517_v45 = vunpack.c.l.bf16 %v10726_v34 }
 0x72d   :  { %5013 = vmatprep.subr.bf16.mxu0 %v10075_v24  ;;  %5056 = vmatprep.subr.bf16.mxu1 %v10078_v15 }
 0x7ab   :  { %v4555_v4 = vpop.f32.mrf.mxu0  ;;  %v4598_v37 = vpop.f32.mrf.mxu1 }
 0x7ac   :  { %v4607_v63 = vadd.f32 %v4555_v4, %v4513_v59  ;;  %v10727_v4 = vld [vmem:[#allocation42_spill] sm:$0xff] }
 0x7ad   :  { %v4557_v31 = vpop.f32.mrf.mxu0  ;;  %v4600_v15 = vpop.f32.mrf.mxu1  ;;  %v4515_v59 = vunpack.c.l.bf16 %v10727_v4 }
 0x7ae   :  { %v6687_v23 = vmul.f32 -1.442695, %v4607_v63  ;;  %v4608_v20 = vadd.f32 %v4557_v31, %v4514_v40  ;;  %v10728_v31 = vld [vmem:[#allocation44_spill] sm:$0xff] }
 0x7af   :  { %v4559_v26 = vpop.f32.mrf.mxu0  ;;  %v4609_v63 = vadd.f32 %v4598_v37, %v4515_v59  ;;  %v4602_v19 = vpop.f32.mrf.mxu1  ;;  %v4519_v40 = vunpack.c.l.bf16 %v10728_v31 }
 0x7b0   :  { %7923 = vpow2.f32 %v6687_v23  ;;  %v6688_v51 = vmul.f32 -1.442695, %v4608_v20  ;;  %v4611_v24 = vadd.f32 %v4559_v26, %v4517_v45  ;;  %v4516_v23 = vunpack.c.h.bf16 %v10727_v4 }
 0x7b1   :  { %v4561_v41 = vpop.f32.mrf.mxu0  ;;  %v4613_v20 = vadd.f32 %v4602_v19, %v4519_v40  ;;  %v6689_v26 = vmul.f32 -1.442695, %v4609_v63  ;;  %v4604_v34 = vpop.f32.mrf.mxu1 }
 0x7b2   :  { %7925 = vpow2.f32 %v6688_v51  ;;  %v6690_v21 = vmul.f32 -1.442695, %v4611_v24  ;;  %v4612_v9 = vadd.f32 %v4561_v41, %v4518_v57  ;;  %v4610_v45 = vadd.f32 %v4600_v15, %v4516_v23 }
 0x7b3   :  { %v6692_v51 = vmul.f32 -1.442695, %v4613_v20  ;;  %v4520_v24 = vunpack.c.h.bf16 %v10728_v31 }
 0x7b4   :  { %7927 = vpow2.f32 %v6690_v21  ;;  %v6691_v32 = vmul.f32 -1.442695, %v4612_v9 }
 0x7b5   :  { %v4614_v9 = vadd.f32 %v4604_v34, %v4520_v24 }
 0x7b6   :  { %7929 = vpow2.f32 %v6691_v32 }
 0x7b7   :  { %7931 = vpow2.f32 %v6689_v26 }
 0x7b8   :  { %7933 = vtanh.f32 %v4610_v45  ;;  %v10729_v45 = vld [vmem:[#allocation69_spill] sm:$0xff] }
 0x7b9   :  { %v4677_v34 = vunpack.c.l.bf16 %v10729_v45 }
 0x7bd   :  { %v7924_v50 = vpop.eup %7923 }
 0x7be   :  { %v4633_v41 = vadd.f32 1.0, %v7924_v50 }
 0x7bf   :  { %v7926_v57 = vpop.eup %7925 }
 0x7c0   :  { %7935 = vrcp.f32 %v4633_v41  ;;  %v4634_v21 = vadd.f32 1.0, %v7926_v57 }
 0x7c1   :  { %v7928_v37 = vpop.eup %7927  ;;  %7937 = vpow2.f32 %v6692_v51 }
 0x7c2   :  { %7939 = vrcp.f32 %v4634_v21  ;;  %v4636_v59 = vadd.f32 1.0, %v7928_v37 }
 0x7c3   :  { %v7930_v4 = vpop.eup %7929  ;;  %7941 = vtanh.f32 %v4614_v9 }
 0x7c4   :  { %7943 = vrcp.f32 %v4636_v59  ;;  %v4637_v19 = vadd.f32 1.0, %v7930_v4  ;;  %v7932_v15 = vpop.eup %7931  ;;  %v4678_v59 = vunpack.c.h.bf16 %v10729_v45 }
 0x7c5   :  { %v7934_v32 = vpop.eup %7933  ;;  %v4635_v20 = vadd.f32 1.0, %v7932_v15  ;;  %v10730_v15 = vld [vmem:[#allocation71_spill] sm:$0xff] }
 0x7c6   :  { %7945 = vrcp.f32 %v4637_v19 }
 0x7c7   :  { %7947 = vrcp.f32 %v4635_v20 }
 0x7cd   :  { %v7936_v63 = vpop.eup %7935 }
 0x7ce   :  { %v7938_v31 = vpop.eup %7937  ;;  %v4655_v50 = vmul.f32 %v7936_v63, %v7934_v32  ;;  %v4681_v63 = vunpack.c.l.bf16 %v10730_v15 }
 0x7cf   :  { %v7940_v40 = vpop.eup %7939  ;;  %v4719_v24 = vpop.f32.mrf.mxu0  ;;  %v4638_v37 = vadd.f32 1.0, %v7938_v31  ;;  %v4682_v31 = vunpack.c.h.bf16 %v10730_v15 }
 0x7d0   :  { %v7942_v23 = vpop.eup %7941  ;;  %v4653_v26 = vmul.f32 %v7940_v40, %v9864_v61  ;;  %v4771_v9 = vadd.f32 %v4719_v24, %v4677_v34  ;;  %v4762_v61 = vpop.f32.mrf.mxu1  ;;  %v10732_v24 = vld [vmem:[#allocation70_spill] sm:$0xff] }
 0x7d1   :  { %v7944_v51 = vpop.eup %7943  ;;  %v4721_v4 = vpop.f32.mrf.mxu0 }
 0x7d2   :  { %v10091_v41 = vadd.f32 %v4655_v50, %v4653_v26  ;;  %v4656_v57 = vmul.f32 %v7944_v51, %v7942_v23  ;;  %v6695_v32 = vmul.f32 -1.442695, %v4771_v9  ;;  %v4772_v40 = vadd.f32 %v4721_v4, %v4678_v59  ;;  %v4764_v34 = vpop.f32.mrf.mxu1 }
 0x7d3   :  { %v7946_v21 = vpop.eup %7945  ;;  %v4723_v18 = vpop.f32.mrf.mxu0  ;;  %v4679_v9 = vunpack.c.l.bf16 %v10732_v24  ;;  %v4680_v4 = vunpack.c.h.bf16 %v10732_v24 }
 0x7d4   :  { %v4654_v19 = vmul.f32 %v7946_v21, %v9870_v46  ;;  %7949 = vtanh.f32 %v10091_v41  ;;  %v4775_v23 = vadd.f32 %v4723_v18, %v4681_v63  ;;  %v6696_v26 = vmul.f32 -1.442695, %v4772_v40  ;;  %v4766_v21 = vpop.f32.mrf.mxu1 }
 0x7d5   :  { %7951 = vpow2.f32 %v6695_v32  ;;  %v4725_v45 = vpop.f32.mrf.mxu0  ;;  %v4773_v18 = vadd.f32 %v4762_v61, %v4679_v9  ;;  %v4774_v32 = vadd.f32 %v4764_v34, %v4680_v4 }
 0x7d6   :  { %v10097_v50 = vadd.f32 %v4656_v57, %v4654_v19  ;;  %7953 = vrcp.f32 %v4638_v37  ;;  %v6698_v46 = vmul.f32 -1.442695, %v4775_v23  ;;  %v4776_v20 = vadd.f32 %v4725_v45, %v4682_v31  ;;  %v10733_v57 = vld [vmem:[#allocation72_spill] sm:$0xff]  ;;  %v7948_v19 = vpop.eup %7947  ;;  %v4768_v23 = vpop.f32.mrf.mxu1 }
 0x7d7   :  { %v4683_v59 = vunpack.c.l.bf16 %v10733_v57  ;;  %v6697_v40 = vmul.f32 -1.442695, %v4773_v18 }
 0x7d8   :  { %10731 = vst [vmem:[#allocation100_spill] sm:$0xff] %v10097_v50  ;;  %7955 = vtanh.f32 %v10097_v50  ;;  %v6699_v51 = vmul.f32 -1.442695, %v4776_v20 }
 0x7d9   :  { %7957 = vpow2.f32 %v6696_v26  ;;  %v4777_v37 = vadd.f32 %v4766_v21, %v4683_v59 }
 0x7da   :  { %7959 = vpow2.f32 %v6698_v46  ;;  %v4684_v46 = vunpack.c.h.bf16 %v10733_v57 }
 0x7db   :  { %7961 = vpow2.f32 %v6699_v51  ;;  %v6700_v45 = vmul.f32 -1.442695, %v4777_v37 }
 0x7dc   :  { %7963 = vtanh.f32 %v4774_v32  ;;  %v4778_v50 = vadd.f32 %v4768_v23, %v4684_v46 }
 0x7e1   :  { %v7950_v15 = vpop.eup %7949 }
 0x7e2   :  { %v7952_v63 = vpop.eup %7951  ;;  %v4661_v61 = vmul.f32 %v7950_v15, %v7948_v19 }
 0x7e3   :  { %v7954_v31 = vpop.eup %7953  ;;  %v4797_v26 = vadd.f32 1.0, %v7952_v63 }
 0x7e5   :  { %v7956_v20 = vpop.eup %7955  ;;  %7965 = vrcp.f32 %v4797_v26 }
 0x7e6   :  { %v7958_v51 = vpop.eup %7957  ;;  %v4662_v9 = vmul.f32 %v7956_v20, %v7954_v31  ;;  %7967 = vpow2.f32 %v6697_v40 }
 0x7e7   :  { %v4798_v24 = vadd.f32 1.0, %v7958_v51  ;;  %v7960_v21 = vpop.eup %7959  ;;  %7969 = vpow2.f32 %v6700_v45 }
 0x7e8   :  { %v4663_v34 = vpack.c.bf16 %v4662_v9, %v4661_v61  ;;  %v4800_v59 = vadd.f32 1.0, %v7960_v21  ;;  %v7962_v18 = vpop.eup %7961 }
 0x7e9   :  { %7971 = vrcp.f32 %v4798_v24  ;;  %v4801_v57 = vadd.f32 1.0, %v7962_v18  ;;  %v10734_v18 = vld [vmem:[#allocation81_spill] sm:$0xff] }
 0x7ea   :  { %7973 = vtanh.f32 %v4778_v50  ;;  %7031 = vst [vmem:[#allocation6 + $0x20] sm:$0xff] %v4663_v34   ;;  %4882 = vmatmul.mubr.bf16.vlgmr.msra.gmra.mxu0 %v4663_v34  ;;  %4925 = vmatmul.mubr.bf16.vlgmr.msra.gmra.mxu1 %v4663_v34  ;;  %v7964_v50 = vpop.eup %7963 }
 0x7eb   :  { %7975 = vrcp.f32 %v4800_v59  ;;  %5014 = vmatpush1.bf16.msra.mxu0 %v9877_v54  ;;  %5057 = vmatpush1.bf16.msra.mxu1 %v9880_v49 }
 0x7ec   :  { %5015 = vmatprep.subr.bf16.mxu0 %v9883_v42  ;;  %5058 = vmatprep.subr.bf16.mxu1 %v9886_v8  ;;  %7977 = vrcp.f32 %v4801_v57  ;;  %v10735_v57 = vld [vmem:[#allocation82_spill] sm:$0xff] }
 0x7ed   :  { %5045 = vmatprep.mubr.bf16.mxu0 %v10591_v16  ;;  %5088 = vmatprep.mubr.bf16.mxu1 %v10591_v16 }
 0x7ef   :  { %5016 = vmatpush1.bf16.msra.mxu0 %v9891_v36  ;;  %5059 = vmatpush1.bf16.msra.mxu1 %v9894_v10 }
 0x7f0   :  { %5017 = vmatprep.subr.bf16.mxu0 %v9897_v0  ;;  %5060 = vmatprep.subr.bf16.mxu1 %v9900_v60 }
 0x7f2   :  { %v7966_v4 = vpop.eup %7965 }
 0x7f3   :  { %5018 = vmatpush1.bf16.msra.mxu0 %v9903_v30  ;;  %5061 = vmatpush1.bf16.msra.mxu1 %v9906_v35  ;;  %v7968_v37 = vpop.eup %7967  ;;  %v4819_v19 = vmul.f32 %v7966_v4, %v7964_v50  ;;  %v10736_v50 = vld [vmem:[#allocation83_spill] sm:$0xff]  ;;  %v10737_v4 = vld [vmem:[#allocation33_spill] sm:$0xff] }
 0x7f4   :  { %5019 = vmatprep.subr.bf16.mxu0 %v9909_v56  ;;  %5062 = vmatprep.subr.bf16.mxu1 %v9912_v25  ;;  %v7970_v32 = vpop.eup %7969  ;;  %v4799_v31 = vadd.f32 1.0, %v7968_v37  ;;  %v10738_v37 = vld [vmem:[#allocation35_spill] sm:$0xff] }
 0x7f5   :  { %v4802_v20 = vadd.f32 1.0, %v7970_v32  ;;  %v10740_v32 = vld [vmem:[#allocation36_spill] sm:$0xff] }
 0x7f6   :  { %v7972_v15 = vpop.eup %7971  ;;  %7979 = vrcp.f32 %v4799_v31  ;;  %v10745_v31 = vld [vmem:[#allocation84_spill] sm:$0xff] }
 0x7f7   :  { %v7974_v63 = vpop.eup %7973  ;;  %v4817_v40 = vmul.f32 %v7972_v15, %v9916_v39  ;;  %5020 = vmatpush1.bf16.msra.mxu0 %v9918_v2  ;;  %5063 = vmatpush1.bf16.msra.mxu1 %v9921_v1  ;;  %v10741_v15 = vld [vmem:[#allocation77_spill] sm:$0xff] }
 0x7f8   :  { %v7976_v23 = vpop.eup %7975  ;;  %5021 = vmatprep.subr.bf16.mxu0 %v9924_v44  ;;  %5064 = vmatprep.subr.bf16.mxu1 %v9927_v7 }
 0x7f9   :  { %v10124_v26 = vadd.f32 %v4819_v19, %v4817_v40  ;;  %v4820_v45 = vmul.f32 %v7976_v23, %v7974_v63  ;;  %v7978_v46 = vpop.eup %7977  ;;  %v10739_v19 = vld [vmem:[#allocation34_spill] sm:$0xff]  ;;  %v10742_v63 = vld [vmem:[#allocation79_spill] sm:$0xff]  ;;  %v10744_v23 = vld [vmem:[#allocation80_spill] sm:$0xff] }
 0x7fa   :  { %v4818_v51 = vmul.f32 %v7978_v46, %v9938_v43  ;;  %v10743_v40 = vld [vmem:[#allocation78_spill] sm:$0xff] }
 0x7fb   :  { %5022 = vmatpush1.bf16.msra.mxu0 %v9931_v53  ;;  %5065 = vmatpush1.bf16.msra.mxu1 %v9934_v48  ;;  %7981 = vtanh.f32 %v10124_v26  ;;  %v10747_v46 = vld [vmem:[#allocation86_spill] sm:$0xff] }
 0x7fc   :  { %5023 = vmatprep.subr.bf16.mxu0 %v9940_v12  ;;  %5066 = vmatprep.subr.bf16.mxu1 %v9943_v52  ;;  %v10132_v39 = vadd.f32 %v4820_v45, %v4818_v51  ;;  %7983 = vrcp.f32 %v4802_v20  ;;  %v10746_v45 = vld [vmem:[#allocation85_spill] sm:$0xff]  ;;  %v10748_v20 = vld [vmem:[#allocation87_spill] sm:$0xff]  ;;  %v10749_v51 = vld [vmem:[#allocation88_spill] sm:$0xff] }
 0x7fe   :  { %7985 = vtanh.f32 %v10132_v39 }
 0x7ff   :  { %5024 = vmatpush1.bf16.msra.mxu0 %v9947_v13  ;;  %5067 = vmatpush1.bf16.msra.mxu1 %v9950_v47 }
 0x800   :  { %5025 = vmatprep.subr.bf16.mxu0 %v9953_v38  ;;  %5068 = vmatprep.subr.bf16.mxu1 %v9956_v14 }
 0x803   :  { %5026 = vmatpush1.bf16.msra.mxu0 %v9959_v28  ;;  %5069 = vmatpush1.bf16.msra.mxu1 %v9962_v58  ;;  %v7980_v43 = vpop.eup %7979 }
 0x804   :  { %5027 = vmatprep.subr.bf16.mxu0 %v9965_v33  ;;  %5070 = vmatprep.subr.bf16.mxu1 %v9968_v29 }
 0x807   :  { %5028 = vmatpush1.bf16.msra.mxu0 %v9971_v6  ;;  %5071 = vmatpush1.bf16.msra.mxu1 %v9974_v11 }
 0x808   :  { %5177 = vmatprep.subr.bf16.mxu0 %v9977_v22  ;;  %5220 = vmatprep.subr.bf16.mxu1 %v9980_v55  ;;  %v7982_v61 = vpop.eup %7981 }
 0x809   :  { %v7984_v9 = vpop.eup %7983  ;;  %v4825_v21 = vmul.f32 %v7982_v61, %v7980_v43  ;;  %v10750_v43 = vld [vmem:[#allocation89_spill] sm:$0xff]  ;;  %v10751_v61 = vld [vmem:[#allocation90_spill] sm:$0xff] }
 0x80b   :  { %v7986_v24 = vpop.eup %7985 }
 0x80c   :  { %v4826_v34 = vmul.f32 %v7986_v24, %v7984_v9  ;;  %v10752_v9 = vld [vmem:[#allocation91_spill] sm:$0xff]  ;;  %v10753_v24 = vld [vmem:[#allocation92_spill] sm:$0xff] }
 0x80e   :  { %v4827_v59 = vpack.c.bf16 %v4826_v34, %v4825_v21  ;;  %v10754_v21 = vld [vmem:[#allocation93_spill] sm:$0xff]  ;;  %v10755_v34 = vld [vmem:[#allocation94_spill] sm:$0xff] }
 0x810   :  { %7032 = vst [vmem:[#allocation7 + $0x18] sm:$0xff] %v4827_v59   ;;  %5046 = vmatmul.mubr.bf16.vlgmr.msra.gmra.mxu0 %v4827_v59  ;;  %5089 = vmatmul.mubr.bf16.vlgmr.msra.gmra.mxu1 %v4827_v59  ;;  %v10756_v59 = vld [vmem:[#allocation95_spill] sm:$0xff] }
 0x811   :  { %5178 = vmatpush1.bf16.msra.mxu0 %v9983_v62  ;;  %5221 = vmatpush1.bf16.msra.mxu1 %v9986_v3 }
 0x812   :  { %5179 = vmatprep.subr.bf16.mxu0 %v9989_v27  ;;  %5222 = vmatprep.subr.bf16.mxu1 %v9992_v5 }
 0x813   :  { %5209 = vmatprep.mubr.bf16.mxu0 %v10591_v16  ;;  %5252 = vmatprep.mubr.bf16.mxu1 %v10591_v16 }
 0x815   :  { %5180 = vmatpush1.bf16.msra.mxu0 %v9997_v17  ;;  %5223 = vmatpush1.bf16.msra.mxu1 %v10734_v18 }
 0x816   :  { %5181 = vmatprep.subr.bf16.mxu0 %v10735_v57  ;;  %5224 = vmatprep.subr.bf16.mxu1 %v10736_v50 }
 0x819   :  { %5182 = vmatpush1.bf16.msra.mxu0 %v10737_v4  ;;  %5225 = vmatpush1.bf16.msra.mxu1 %v10738_v37 }
 0x81a   :  { %5183 = vmatprep.subr.bf16.mxu0 %v10739_v19  ;;  %5226 = vmatprep.subr.bf16.mxu1 %v10740_v32 }
 0x81d   :  { %5184 = vmatpush1.bf16.msra.mxu0 %v10741_v15  ;;  %5227 = vmatpush1.bf16.msra.mxu1 %v10742_v63  ;;  %v10762_v63 = vld [vmem:[#allocation47_spill] sm:$0xff] }
 0x81e   :  { %5185 = vmatprep.subr.bf16.mxu0 %v10743_v40  ;;  %5228 = vmatprep.subr.bf16.mxu1 %v10744_v23 }
 0x821   :  { %5186 = vmatpush1.bf16.msra.mxu0 %v10745_v31  ;;  %5229 = vmatpush1.bf16.msra.mxu1 %v10746_v45  ;;  %v10757_v45 = vld [vmem:[#allocation96_spill] sm:$0xff] }
 0x822   :  { %5187 = vmatprep.subr.bf16.mxu0 %v10747_v46  ;;  %5230 = vmatprep.subr.bf16.mxu1 %v10748_v20  ;;  %v10758_v46 = vld [vmem:[#allocation97_spill] sm:$0xff]  ;;  %v10759_v20 = vld [vmem:[#allocation98_spill] sm:$0xff] }
 0x825   :  { %5188 = vmatpush1.bf16.msra.mxu0 %v10749_v51  ;;  %5231 = vmatpush1.bf16.msra.mxu1 %v10750_v43  ;;  %v10760_v51 = vld [vmem:[#allocation99_spill] sm:$0xff]  ;;  %v10761_v43 = vld [vmem:[#allocation45_spill] sm:$0xff] }
 0x826   :  { %5189 = vmatprep.subr.bf16.mxu0 %v10751_v61  ;;  %5232 = vmatprep.subr.bf16.mxu1 %v10752_v9  ;;  %v4841_v61 = vunpack.c.l.bf16 %v10761_v43 }
 0x829   :  { %5190 = vmatpush1.bf16.msra.mxu0 %v10753_v24  ;;  %5233 = vmatpush1.bf16.msra.mxu1 %v10754_v21  ;;  %v4842_v24 = vunpack.c.h.bf16 %v10761_v43 }
 0x82a   :  { %5191 = vmatprep.subr.bf16.mxu0 %v10755_v34  ;;  %5234 = vmatprep.subr.bf16.mxu1 %v10756_v59  ;;  %v4845_v59 = vunpack.c.l.bf16 %v10762_v63 }
 0x82d   :  { %5192 = vmatpush1.bf16.msra.mxu0 %v10757_v45  ;;  %5235 = vmatpush1.bf16.msra.mxu1 %v10758_v46 }
 0x82e   :  { %5341 = vmatprep.subr.bf16.mxu0 %v10759_v20  ;;  %5384 = vmatprep.subr.bf16.mxu1 %v10760_v51  ;;  %v4846_v20 = vunpack.c.h.bf16 %v10762_v63 }
 0x8aa   :  { %v4883_v31 = vpop.f32.mrf.mxu0  ;;  %v4926_v40 = vpop.f32.mrf.mxu1 }
 0x8ab   :  { %v4935_v9 = vadd.f32 %v4883_v31, %v4841_v61  ;;  %v10763_v31 = vld [vmem:[#allocation46_spill] sm:$0xff] }
 0x8ac   :  { %v4885_v23 = vpop.f32.mrf.mxu0  ;;  %v4928_v51 = vpop.f32.mrf.mxu1  ;;  %v4843_v61 = vunpack.c.l.bf16 %v10763_v31 }
 0x8ad   :  { %v6703_v21 = vmul.f32 -1.442695, %v4935_v9  ;;  %v4936_v34 = vadd.f32 %v4885_v23, %v4842_v24  ;;  %v10764_v23 = vld [vmem:[#allocation48_spill] sm:$0xff] }
 0x8ae   :  { %v4887_v15 = vpop.f32.mrf.mxu0  ;;  %v4937_v9 = vadd.f32 %v4926_v40, %v4843_v61  ;;  %v4930_v4 = vpop.f32.mrf.mxu1  ;;  %v4847_v24 = vunpack.c.l.bf16 %v10764_v23 }
 0x8af   :  { %7987 = vpow2.f32 %v6703_v21  ;;  %v6704_v45 = vmul.f32 -1.442695, %v4936_v34  ;;  %v4939_v46 = vadd.f32 %v4887_v15, %v4845_v59  ;;  %v4844_v21 = vunpack.c.h.bf16 %v10763_v31 }
 0x8b0   :  { %v4889_v32 = vpop.f32.mrf.mxu0  ;;  %v4941_v34 = vadd.f32 %v4930_v4, %v4847_v24  ;;  %v6705_v15 = vmul.f32 -1.442695, %v4937_v9  ;;  %v4932_v63 = vpop.f32.mrf.mxu1 }
 0x8b1   :  { %7989 = vpow2.f32 %v6704_v45  ;;  %v6706_v19 = vmul.f32 -1.442695, %v4939_v46  ;;  %v4940_v37 = vadd.f32 %v4889_v32, %v4846_v20  ;;  %v4938_v59 = vadd.f32 %v4928_v51, %v4844_v21 }
 0x8b2   :  { %v6708_v45 = vmul.f32 -1.442695, %v4941_v34  ;;  %v4848_v46 = vunpack.c.h.bf16 %v10764_v23 }
 0x8b3   :  { %7991 = vpow2.f32 %v6706_v19  ;;  %v6707_v43 = vmul.f32 -1.442695, %v4940_v37 }
 0x8b4   :  { %v4942_v37 = vadd.f32 %v4932_v63, %v4848_v46 }
 0x8b5   :  { %7993 = vpow2.f32 %v6707_v43 }
 0x8b6   :  { %7995 = vpow2.f32 %v6705_v15 }
 0x8b7   :  { %7997 = vtanh.f32 %v4938_v59 }
 0x8bc   :  { %v7988_v50 = vpop.eup %7987 }
 0x8bd   :  { %v4961_v32 = vadd.f32 1.0, %v7988_v50 }
 0x8be   :  { %v7990_v20 = vpop.eup %7989 }
 0x8bf   :  { %7999 = vrcp.f32 %v4961_v32  ;;  %v4962_v19 = vadd.f32 1.0, %v7990_v20 }
 0x8c0   :  { %v7992_v40 = vpop.eup %7991  ;;  %8001 = vpow2.f32 %v6708_v45  ;;  %v10765_v45 = vld [vmem:[#allocation65_spill] sm:$0xff] }
 0x8c1   :  { %8003 = vrcp.f32 %v4962_v19  ;;  %v4964_v61 = vadd.f32 1.0, %v7992_v40  ;;  %v5005_v46 = vunpack.c.l.bf16 %v10765_v45 }
 0x8c2   :  { %v7994_v31 = vpop.eup %7993  ;;  %8005 = vtanh.f32 %v4942_v37 }
 0x8c3   :  { %8007 = vrcp.f32 %v4964_v61  ;;  %v4965_v4 = vadd.f32 1.0, %v7994_v31  ;;  %v7996_v51 = vpop.eup %7995  ;;  %v5006_v61 = vunpack.c.h.bf16 %v10765_v45  ;;  %v10767_v31 = vld [vmem:[#allocation100_spill] sm:$0xff] }
 0x8c4   :  { %v7998_v43 = vpop.eup %7997  ;;  %v4963_v34 = vadd.f32 1.0, %v7996_v51 }
 0x8c5   :  { %8009 = vrcp.f32 %v4965_v4 }
 0x8c6   :  { %8011 = vrcp.f32 %v4963_v34 }
 0x8cc   :  { %v8000_v9 = vpop.eup %7999 }
 0x8cd   :  { %v8002_v23 = vpop.eup %8001  ;;  %v4983_v50 = vmul.f32 %v8000_v9, %v7998_v43 }
 0x8ce   :  { %v8004_v24 = vpop.eup %8003  ;;  %v4966_v63 = vadd.f32 1.0, %v8002_v23 }
 0x8cf   :  { %v8006_v21 = vpop.eup %8005  ;;  %v4981_v15 = vmul.f32 %v8004_v24, %v10091_v41  ;;  %v10768_v41 = vld [vmem:[#allocation67_spill] sm:$0xff] }
 0x8d0   :  { %v8008_v59 = vpop.eup %8007  ;;  %v5047_v37 = vpop.f32.mrf.mxu0  ;;  %8013 = vrcp.f32 %v4966_v63  ;;  %v5009_v24 = vunpack.c.l.bf16 %v10768_v41  ;;  %v5010_v45 = vunpack.c.h.bf16 %v10768_v41 }
 0x8d1   :  { %v10191_v32 = vadd.f32 %v4983_v50, %v4981_v15  ;;  %v4984_v20 = vmul.f32 %v8008_v59, %v8006_v21  ;;  %v5099_v40 = vadd.f32 %v5047_v37, %v5005_v46  ;;  %v5090_v50 = vpop.f32.mrf.mxu1 }
 0x8d2   :  { %v8010_v19 = vpop.eup %8009  ;;  %v5049_v43 = vpop.f32.mrf.mxu0 }
 0x8d3   :  { %10766 = vst [vmem:[#allocation101_spill] sm:$0xff] %v10191_v32  ;;  %v4982_v4 = vmul.f32 %v8010_v19, %v10767_v31  ;;  %v6711_v51 = vmul.f32 -1.442695, %v5099_v40  ;;  %v5100_v9 = vadd.f32 %v5049_v43, %v5006_v61  ;;  %8015 = vtanh.f32 %v10191_v32  ;;  %v5092_v37 = vpop.f32.mrf.mxu1  ;;  %v10770_v40 = vld [vmem:[#allocation66_spill] sm:$0xff]  ;;  %v10771_v31 = vld [vmem:[#allocation68_spill] sm:$0xff] }
 0x8d4   :  { %v5051_v21 = vpop.f32.mrf.mxu0  ;;  %v5007_v61 = vunpack.c.l.bf16 %v10770_v40  ;;  %v5012_v32 = vunpack.c.h.bf16 %v10771_v31 }
 0x8d5   :  { %v10197_v23 = vadd.f32 %v4984_v20, %v4982_v4  ;;  %8017 = vpow2.f32 %v6711_v51  ;;  %v6712_v15 = vmul.f32 -1.442695, %v5100_v9  ;;  %v5103_v59 = vadd.f32 %v5051_v21, %v5009_v24  ;;  %v5094_v20 = vpop.f32.mrf.mxu1  ;;  %v8012_v9 = vpop.eup %8011 }
 0x8d6   :  { %v5053_v34 = vpop.f32.mrf.mxu0  ;;  %v5011_v4 = vunpack.c.l.bf16 %v10771_v31  ;;  %v5101_v43 = vadd.f32 %v5090_v50, %v5007_v61  ;;  %v5008_v51 = vunpack.c.h.bf16 %v10770_v40  ;;  %v10791_v31 = vld [vmem:[#allocation92_spill] sm:$0xff] }
 0x8d7   :  { %10769 = vst [vmem:[#allocation102_spill] sm:$0xff] %v10197_v23  ;;  %8019 = vtanh.f32 %v10197_v23  ;;  %v6714_v46 = vmul.f32 -1.442695, %v5103_v59  ;;  %v5104_v63 = vadd.f32 %v5053_v34, %v5010_v45 }
 0x8d8   :  { %8021 = vpow2.f32 %v6712_v15  ;;  %v5105_v41 = vadd.f32 %v5094_v20, %v5011_v4  ;;  %v5102_v21 = vadd.f32 %v5092_v37, %v5008_v51  ;;  %v6713_v45 = vmul.f32 -1.442695, %v5101_v43  ;;  %v5096_v15 = vpop.f32.mrf.mxu1  ;;  %v10792_v43 = vld [vmem:[#allocation93_spill] sm:$0xff]  ;;  %v10793_v51 = vld [vmem:[#allocation94_spill] sm:$0xff] }
 0x8d9   :  { %v6715_v19 = vmul.f32 -1.442695, %v5104_v63  ;;  %8023 = vpow2.f32 %v6714_v46  ;;  %v5106_v50 = vadd.f32 %v5096_v15, %v5012_v32  ;;  %v10790_v32 = vld [vmem:[#allocation91_spill] sm:$0xff] }
 0x8da   :  { %v6716_v46 = vmul.f32 -1.442695, %v5105_v41  ;;  %v10795_v41 = vld [vmem:[#allocation96_spill] sm:$0xff] }
 0x8db   :  { %8025 = vpow2.f32 %v6715_v19 }
 0x8dc   :  { %8027 = vtanh.f32 %v5102_v21  ;;  %v10797_v21 = vld [vmem:[#allocation98_spill] sm:$0xff] }
 0x8dd   :  { %v8014_v24 = vpop.eup %8013 }
 0x8e0   :  { %v8016_v23 = vpop.eup %8015 }
 0x8e1   :  { %v4989_v19 = vmul.f32 %v8016_v23, %v8012_v9  ;;  %v10794_v9 = vld [vmem:[#allocation95_spill] sm:$0xff] }
 0x8e2   :  { %v8018_v59 = vpop.eup %8017 }
 0x8e3   :  { %v5125_v63 = vadd.f32 1.0, %v8018_v59  ;;  %v10798_v59 = vld [vmem:[#allocation99_spill] sm:$0xff] }
 0x8e4   :  { %v8020_v34 = vpop.eup %8019 }
 0x8e5   :  { %v4990_v57 = vmul.f32 %v8020_v34, %v8014_v24  ;;  %v8022_v18 = vpop.eup %8021  ;;  %8029 = vrcp.f32 %v5125_v63  ;;  %v10796_v24 = vld [vmem:[#allocation97_spill] sm:$0xff] }
 0x8e6   :  { %8031 = vpow2.f32 %v6713_v45  ;;  %v5126_v40 = vadd.f32 1.0, %v8022_v18  ;;  %v8024_v20 = vpop.eup %8023  ;;  %v10799_v45 = vld [vmem:[#allocation49_spill] sm:$0xff] }
 0x8e7   :  { %v4991_v61 = vpack.c.bf16 %v4990_v57, %v4989_v19  ;;  %8033 = vpow2.f32 %v6716_v46  ;;  %v5128_v37 = vadd.f32 1.0, %v8024_v20  ;;  %v5169_v15 = vunpack.c.l.bf16 %v10799_v45  ;;  %v10800_v20 = vld [vmem:[#allocation51_spill] sm:$0xff] }
 0x8e8   :  { %8035 = vrcp.f32 %v5126_v40  ;;  %v8026_v4 = vpop.eup %8025  ;;  %v5170_v46 = vunpack.c.h.bf16 %v10799_v45 }
 0x8e9   :  { %7033 = vst [vmem:[#allocation6 + $0x28] sm:$0xff] %v4991_v61   ;;  %5210 = vmatmul.mubr.bf16.vlgmr.msra.gmra.mxu0 %v4991_v61  ;;  %5253 = vmatmul.mubr.bf16.vlgmr.msra.gmra.mxu1 %v4991_v61  ;;  %8037 = vtanh.f32 %v5106_v50  ;;  %v5129_v23 = vadd.f32 1.0, %v8026_v4 }
 0x8ea   :  { %5342 = vmatpush1.bf16.msra.mxu0 %v9877_v54  ;;  %5385 = vmatpush1.bf16.msra.mxu1 %v9880_v49  ;;  %8039 = vrcp.f32 %v5128_v37  ;;  %v8028_v54 = vpop.eup %8027  ;;  %v5173_v37 = vunpack.c.l.bf16 %v10800_v20 }
 0x8eb   :  { %5343 = vmatprep.subr.bf16.mxu0 %v9883_v42  ;;  %5386 = vmatprep.subr.bf16.mxu1 %v9886_v8  ;;  %8041 = vrcp.f32 %v5129_v23 }
 0x8ec   :  { %5373 = vmatprep.mubr.bf16.mxu0 %v10591_v16  ;;  %5416 = vmatprep.mubr.bf16.mxu1 %v10591_v16 }
 0x8ee   :  { %5344 = vmatpush1.bf16.msra.mxu0 %v9891_v36  ;;  %5387 = vmatpush1.bf16.msra.mxu1 %v9894_v10 }
 0x8ef   :  { %5345 = vmatprep.subr.bf16.mxu0 %v9897_v0  ;;  %5388 = vmatprep.subr.bf16.mxu1 %v9900_v60 }
 0x8f2   :  { %5346 = vmatpush1.bf16.msra.mxu0 %v9903_v30  ;;  %5389 = vmatpush1.bf16.msra.mxu1 %v9906_v35  ;;  %v8030_v49 = vpop.eup %8029 }
 0x8f3   :  { %5347 = vmatprep.subr.bf16.mxu0 %v9909_v56  ;;  %5390 = vmatprep.subr.bf16.mxu1 %v9912_v25  ;;  %v8032_v42 = vpop.eup %8031  ;;  %v5147_v8 = vmul.f32 %v8030_v49, %v8028_v54  ;;  %v5174_v49 = vunpack.c.h.bf16 %v10800_v20 }
 0x8f4   :  { %v8034_v18 = vpop.eup %8033  ;;  %v5127_v30 = vadd.f32 1.0, %v8032_v42 }
 0x8f5   :  { %v8036_v36 = vpop.eup %8035  ;;  %v5130_v57 = vadd.f32 1.0, %v8034_v18 }
 0x8f6   :  { %5348 = vmatpush1.bf16.msra.mxu0 %v9918_v2  ;;  %5391 = vmatpush1.bf16.msra.mxu1 %v9921_v1  ;;  %v8038_v10 = vpop.eup %8037  ;;  %v5145_v0 = vmul.f32 %v8036_v36, %v10124_v26  ;;  %8043 = vrcp.f32 %v5127_v30  ;;  %v10788_v26 = vld [vmem:[#allocation89_spill] sm:$0xff] }
 0x8f7   :  { %5349 = vmatprep.subr.bf16.mxu0 %v9924_v44  ;;  %5392 = vmatprep.subr.bf16.mxu1 %v9927_v7  ;;  %v8040_v60 = vpop.eup %8039 }
 0x8f8   :  { %v10224_v35 = vadd.f32 %v5147_v8, %v5145_v0  ;;  %v5148_v56 = vmul.f32 %v8040_v60, %v8038_v10  ;;  %v8042_v25 = vpop.eup %8041  ;;  %v10801_v10 = vld [vmem:[#allocation50_spill] sm:$0xff] }
 0x8f9   :  { %v5146_v2 = vmul.f32 %v8042_v25, %v10132_v39  ;;  %v10789_v39 = vld [vmem:[#allocation90_spill] sm:$0xff]  ;;  %v5171_v0 = vunpack.c.l.bf16 %v10801_v10  ;;  %v10802_v25 = vld [vmem:[#allocation52_spill] sm:$0xff] }
 0x8fa   :  { %5350 = vmatpush1.bf16.msra.mxu0 %v9931_v53  ;;  %5393 = vmatpush1.bf16.msra.mxu1 %v9934_v48  ;;  %8045 = vtanh.f32 %v10224_v35 }
 0x8fb   :  { %5351 = vmatprep.subr.bf16.mxu0 %v9940_v12  ;;  %5394 = vmatprep.subr.bf16.mxu1 %v9943_v52  ;;  %v10232_v1 = vadd.f32 %v5148_v56, %v5146_v2  ;;  %8047 = vrcp.f32 %v5130_v57  ;;  %v5175_v57 = vunpack.c.l.bf16 %v10802_v25  ;;  %v5172_v2 = vunpack.c.h.bf16 %v10801_v10  ;;  %v10807_v10 = vld [vmem:[#allocation62_spill] sm:$0xff] }
 0x8fd   :  { %8049 = vtanh.f32 %v10232_v1 }
 0x8fe   :  { %5352 = vmatpush1.bf16.msra.mxu0 %v9947_v13  ;;  %5395 = vmatpush1.bf16.msra.mxu1 %v9950_v47  ;;  %v10772_v47 = vld [vmem:[#allocation81_spill] sm:$0xff] }
 0x8ff   :  { %5353 = vmatprep.subr.bf16.mxu0 %v9953_v38  ;;  %5396 = vmatprep.subr.bf16.mxu1 %v9956_v14  ;;  %v10773_v38 = vld [vmem:[#allocation82_spill] sm:$0xff]  ;;  %v10774_v14 = vld [vmem:[#allocation83_spill] sm:$0xff] }
 0x902   :  { %5354 = vmatpush1.bf16.msra.mxu0 %v9959_v28  ;;  %5397 = vmatpush1.bf16.msra.mxu1 %v9962_v58  ;;  %v10775_v28 = vld [vmem:[#allocation33_spill] sm:$0xff]  ;;  %v10776_v58 = vld [vmem:[#allocation35_spill] sm:$0xff] }
 0x903   :  { %5355 = vmatprep.subr.bf16.mxu0 %v9965_v33  ;;  %5398 = vmatprep.subr.bf16.mxu1 %v9968_v29  ;;  %v8044_v44 = vpop.eup %8043  ;;  %v10777_v33 = vld [vmem:[#allocation34_spill] sm:$0xff]  ;;  %v10778_v29 = vld [vmem:[#allocation36_spill] sm:$0xff] }
 0x906   :  { %5356 = vmatpush1.bf16.msra.mxu0 %v9971_v6  ;;  %5399 = vmatpush1.bf16.msra.mxu1 %v9974_v11  ;;  %v10779_v6 = vld [vmem:[#allocation77_spill] sm:$0xff]  ;;  %v10780_v11 = vld [vmem:[#allocation79_spill] sm:$0xff] }
 0x907   :  { %5505 = vmatprep.subr.bf16.mxu0 %v9977_v22  ;;  %5548 = vmatprep.subr.bf16.mxu1 %v9980_v55  ;;  %v8046_v7 = vpop.eup %8045  ;;  %v10781_v22 = vld [vmem:[#allocation78_spill] sm:$0xff]  ;;  %v10782_v55 = vld [vmem:[#allocation80_spill] sm:$0xff] }
 0x908   :  { %v8048_v53 = vpop.eup %8047  ;;  %v5153_v12 = vmul.f32 %v8046_v7, %v8044_v44 }
 0x90a   :  { %v8050_v48 = vpop.eup %8049 }
 0x90b   :  { %v5154_v52 = vmul.f32 %v8050_v48, %v8048_v53 }
 0x90d   :  { %v5155_v13 = vpack.c.bf16 %v5154_v52, %v5153_v12 }
 0x90f   :  { %7034 = vst [vmem:[#allocation7 + $0x10] sm:$0xff] %v5155_v13   ;;  %5374 = vmatmul.mubr.bf16.vlgmr.msra.gmra.mxu0 %v5155_v13  ;;  %5417 = vmatmul.mubr.bf16.vlgmr.msra.gmra.mxu1 %v5155_v13  ;;  %v5176_v13 = vunpack.c.h.bf16 %v10802_v25 }
 0x910   :  { %5506 = vmatpush1.bf16.msra.mxu0 %v9983_v62  ;;  %5549 = vmatpush1.bf16.msra.mxu1 %v9986_v3  ;;  %v10783_v62 = vld [vmem:[#allocation84_spill] sm:$0xff]  ;;  %v10784_v3 = vld [vmem:[#allocation85_spill] sm:$0xff] }
 0x911   :  { %5507 = vmatprep.subr.bf16.mxu0 %v9989_v27  ;;  %5550 = vmatprep.subr.bf16.mxu1 %v9992_v5  ;;  %v10785_v27 = vld [vmem:[#allocation86_spill] sm:$0xff]  ;;  %v10786_v5 = vld [vmem:[#allocation87_spill] sm:$0xff] }
 0x912   :  { %5537 = vmatprep.mubr.bf16.mxu0 %v10591_v16  ;;  %5580 = vmatprep.mubr.bf16.mxu1 %v10591_v16 }
 0x914   :  { %5508 = vmatpush1.bf16.msra.mxu0 %v9997_v17  ;;  %5551 = vmatpush1.bf16.msra.mxu1 %v10772_v47  ;;  %v10787_v17 = vld [vmem:[#allocation88_spill] sm:$0xff] }
 0x915   :  { %5509 = vmatprep.subr.bf16.mxu0 %v10773_v38  ;;  %5552 = vmatprep.subr.bf16.mxu1 %v10774_v14 }
 0x918   :  { %5510 = vmatpush1.bf16.msra.mxu0 %v10775_v28  ;;  %5553 = vmatpush1.bf16.msra.mxu1 %v10776_v58 }
 0x919   :  { %5511 = vmatprep.subr.bf16.mxu0 %v10777_v33  ;;  %5554 = vmatprep.subr.bf16.mxu1 %v10778_v29 }
 0x91c   :  { %5512 = vmatpush1.bf16.msra.mxu0 %v10779_v6  ;;  %5555 = vmatpush1.bf16.msra.mxu1 %v10780_v11 }
 0x91d   :  { %5513 = vmatprep.subr.bf16.mxu0 %v10781_v22  ;;  %5556 = vmatprep.subr.bf16.mxu1 %v10782_v55 }
 0x920   :  { %5514 = vmatpush1.bf16.msra.mxu0 %v10783_v62  ;;  %5557 = vmatpush1.bf16.msra.mxu1 %v10784_v3 }
 0x921   :  { %5515 = vmatprep.subr.bf16.mxu0 %v10785_v27  ;;  %5558 = vmatprep.subr.bf16.mxu1 %v10786_v5 }
 0x924   :  { %5516 = vmatpush1.bf16.msra.mxu0 %v10787_v17  ;;  %5559 = vmatpush1.bf16.msra.mxu1 %v10788_v26  ;;  %v10803_v17 = vld [vmem:[#allocation101_spill] sm:$0xff] }
 0x925   :  { %5517 = vmatprep.subr.bf16.mxu0 %v10789_v39  ;;  %5560 = vmatprep.subr.bf16.mxu1 %v10790_v32 }
 0x928   :  { %5518 = vmatpush1.bf16.msra.mxu0 %v10791_v31  ;;  %5561 = vmatpush1.bf16.msra.mxu1 %v10792_v43 }
 0x929   :  { %5519 = vmatprep.subr.bf16.mxu0 %v10793_v51  ;;  %5562 = vmatprep.subr.bf16.mxu1 %v10794_v9  ;;  %v10804_v51 = vld [vmem:[#allocation61_spill] sm:$0xff] }
 0x92a   :  { %v5333_v9 = vunpack.c.l.bf16 %v10804_v51 }
 0x92c   :  { %5520 = vmatpush1.bf16.msra.mxu0 %v10795_v41  ;;  %5563 = vmatpush1.bf16.msra.mxu1 %v10796_v24 }
 0x92d   :  { %5669 = vmatprep.subr.bf16.mxu0 %v10797_v21  ;;  %5712 = vmatprep.subr.bf16.mxu1 %v10798_v59  ;;  %v10805_v59 = vld [vmem:[#allocation102_spill] sm:$0xff] }
 0x9a9   :  { %v5211_v34 = vpop.f32.mrf.mxu0  ;;  %v5254_v40 = vpop.f32.mrf.mxu1 }
 0x9aa   :  { %v5263_v63 = vadd.f32 %v5211_v34, %v5169_v15  ;;  %v5265_v30 = vadd.f32 %v5254_v40, %v5171_v0  ;;  %v5334_v34 = vunpack.c.h.bf16 %v10804_v51  ;;  %v5335_v0 = vunpack.c.l.bf16 %v10807_v10  ;;  %v8313_v51 = vld [vmem:[#allocation20 + $0xa4] ss:$16 sps:$4 sm:$0xff]  }
 0x9ab   :  { %v5213_v19 = vpop.f32.mrf.mxu0  ;;  %v5256_v8 = vpop.f32.mrf.mxu1 }
 0x9ac   :  { %v6719_v50 = vmul.f32 -1.442695, %v5263_v63  ;;  %v5264_v61 = vadd.f32 %v5213_v19, %v5170_v46  ;;  %v6721_v7 = vmul.f32 -1.442695, %v5265_v30  ;;  %v5266_v53 = vadd.f32 %v5256_v8, %v5172_v2  ;;  %v10806_v46 = vld [vmem:[#allocation63_spill] sm:$0xff] }
 0x9ad   :  { %v5215_v4 = vpop.f32.mrf.mxu0  ;;  %v5258_v56 = vpop.f32.mrf.mxu1  ;;  %v5337_v19 = vunpack.c.l.bf16 %v10806_v46  ;;  %v5336_v2 = vunpack.c.h.bf16 %v10807_v10 }
 0x9ae   :  { %8051 = vpow2.f32 %v6719_v50  ;;  %v6720_v23 = vmul.f32 -1.442695, %v5264_v61  ;;  %v5267_v54 = vadd.f32 %v5215_v4, %v5173_v37  ;;  %v5269_v44 = vadd.f32 %v5258_v56, %v5175_v57  ;;  %v10808_v56 = vld [vmem:[#allocation64_spill] sm:$0xff] }
 0x9af   :  { %v5217_v42 = vpop.f32.mrf.mxu0  ;;  %v5260_v48 = vpop.f32.mrf.mxu1  ;;  %v5339_v25 = vunpack.c.l.bf16 %v10808_v56 }
 0x9b0   :  { %8053 = vpow2.f32 %v6720_v23  ;;  %v6722_v18 = vmul.f32 -1.442695, %v5267_v54  ;;  %v5268_v36 = vadd.f32 %v5217_v42, %v5174_v49  ;;  %v6724_v52 = vmul.f32 -1.442695, %v5269_v44 }
 0x9b1   :  { %v5270_v14 = vadd.f32 %v5260_v48, %v5176_v13  ;;  %v5338_v54 = vunpack.c.h.bf16 %v10806_v46  ;;  %v8319_v46 = vld [vmem:[#allocation20 + $0x80] ss:$16 sps:$4 sm:$0xff]  }
 0x9b2   :  { %8055 = vpow2.f32 %v6722_v18  ;;  %v6723_v60 = vmul.f32 -1.442695, %v5268_v36 }
 0x9b4   :  { %8057 = vpow2.f32 %v6723_v60 }
 0x9b5   :  { %8059 = vpow2.f32 %v6721_v7 }
 0x9b6   :  { %8061 = vtanh.f32 %v5266_v53 }
 0x9bb   :  { %v8052_v12 = vpop.eup %8051 }
 0x9bc   :  { %v5289_v47 = vadd.f32 1.0, %v8052_v12 }
 0x9bd   :  { %v8054_v38 = vpop.eup %8053 }
 0x9be   :  { %8063 = vrcp.f32 %v5289_v47  ;;  %v5290_v28 = vadd.f32 1.0, %v8054_v38 }
 0x9bf   :  { %v8056_v58 = vpop.eup %8055  ;;  %8065 = vpow2.f32 %v6724_v52 }
 0x9c0   :  { %8067 = vrcp.f32 %v5290_v28  ;;  %v5292_v33 = vadd.f32 1.0, %v8056_v58 }
 0x9c1   :  { %v8058_v29 = vpop.eup %8057  ;;  %8069 = vtanh.f32 %v5270_v14  ;;  %v5340_v14 = vunpack.c.h.bf16 %v10808_v56  ;;  %v8327_v56 = vld [vmem:[#allocation20 + $0x40] ss:$16 sps:$4 sm:$0xff]  }
 0x9c2   :  { %8071 = vrcp.f32 %v5292_v33  ;;  %v5293_v6 = vadd.f32 1.0, %v8058_v29  ;;  %v8060_v11 = vpop.eup %8059 }
 0x9c3   :  { %v8062_v22 = vpop.eup %8061  ;;  %v5291_v32 = vadd.f32 1.0, %v8060_v11 }
 0x9c4   :  { %8073 = vrcp.f32 %v5293_v6 }
 0x9c5   :  { %8075 = vrcp.f32 %v5291_v32  ;;  %v8311_v32 = vld [vmem:[#allocation20 + $0xc0] ss:$16 sps:$4 sm:$0xff]  }
 0x9cb   :  { %v8064_v55 = vpop.eup %8063 }
 0x9cc   :  { %v8066_v62 = vpop.eup %8065  ;;  %v5311_v3 = vmul.f32 %v8064_v55, %v8062_v22 }
 0x9cd   :  { %v8068_v27 = vpop.eup %8067  ;;  %v5294_v24 = vadd.f32 1.0, %v8066_v62 }
 0x9ce   :  { %v8070_v5 = vpop.eup %8069  ;;  %v5309_v26 = vmul.f32 %v8068_v27, %v10803_v17  ;;  %v8308_v27 = vld [vmem:[#allocation20 + $0xe8] ss:$16 sps:$4 sm:$0xff]   ;;  %v8309_v17 = vld [vmem:[#allocation20 + $0xc4] ss:$16 sps:$4 sm:$0xff]  }
 0x9cf   :  { %v8072_v39 = vpop.eup %8071  ;;  %v5375_v21 = vpop.f32.mrf.mxu0 }
 0x9d0   :  { %v10290_v31 = vadd.f32 %v5311_v3, %v5309_v26  ;;  %v5312_v43 = vmul.f32 %v8072_v39, %v8070_v5  ;;  %v5427_v15 = vadd.f32 %v5375_v21, %v5333_v9  ;;  %v5418_v20 = vpop.f32.mrf.mxu1  ;;  %v8307_v3 = vld [vmem:[#allocation20 + $0xe0] ss:$16 sps:$4 sm:$0xff]   ;;  %v8310_v26 = vld [vmem:[#allocation20 + $0xcc] ss:$16 sps:$4 sm:$0xff]  }
 0x9d1   :  { %v8074_v41 = vpop.eup %8073  ;;  %v5377_v63 = vpop.f32.mrf.mxu0  ;;  %v5429_v60 = vadd.f32 %v5418_v20, %v5335_v0  ;;  %v8314_v9 = vld [vmem:[#allocation20 + $0xac] ss:$16 sps:$4 sm:$0xff]   ;;  %v8325_v0 = vld [vmem:[#allocation20 + $0x44] ss:$16 sps:$4 sm:$0xff]  }
 0x9d2   :  { %v5310_v45 = vmul.f32 %v8074_v41, %v10805_v59  ;;  %8077 = vtanh.f32 %v10290_v31  ;;  %v6727_v40 = vmul.f32 -1.442695, %v5427_v15  ;;  %v5428_v61 = vadd.f32 %v5377_v63, %v5334_v34  ;;  %v5420_v18 = vpop.f32.mrf.mxu1  ;;  %v8076_v57 = vpop.eup %8075  ;;  %v8315_v41 = vld [vmem:[#allocation20 + $0xa0] ss:$16 sps:$4 sm:$0xff]   ;;  %v8317_v59 = vld [vmem:[#allocation20 + $0x84] ss:$16 sps:$4 sm:$0xff]  }
 0x9d3   :  { %8079 = vrcp.f32 %v5294_v24  ;;  %v5379_v37 = vpop.f32.mrf.mxu0  ;;  %v6729_v53 = vmul.f32 -1.442695, %v5429_v60  ;;  %v5430_v12 = vadd.f32 %v5420_v18, %v5336_v2  ;;  %v8316_v24 = vld [vmem:[#allocation20 + $0xa8] ss:$16 sps:$4 sm:$0xff]   ;;  %v8322_v20 = vld [vmem:[#allocation20 + $0x6c] ss:$16 sps:$4 sm:$0xff]  }
 0x9d4   :  { %v10297_v50 = vadd.f32 %v5312_v43, %v5310_v45  ;;  %v6728_v4 = vmul.f32 -1.442695, %v5428_v61  ;;  %v5431_v23 = vadd.f32 %v5379_v37, %v5337_v19  ;;  %v5422_v30 = vpop.f32.mrf.mxu1  ;;  %v8312_v43 = vld [vmem:[#allocation20 + $0xc8] ss:$16 sps:$4 sm:$0xff]   ;;  %v8318_v45 = vld [vmem:[#allocation20 + $0x8c] ss:$16 sps:$4 sm:$0xff]  }
 0x9d5   :  { %v5381_v49 = vpop.f32.mrf.mxu0  ;;  %v5433_v44 = vadd.f32 %v5422_v30, %v5339_v25  ;;  %v8320_v19 = vld [vmem:[#allocation20 + $0x88] ss:$16 sps:$4 sm:$0xff]   ;;  %v8321_v61 = vld [vmem:[#allocation20 + $0x64] ss:$16 sps:$4 sm:$0xff]   ;;  %v8326_v60 = vld [vmem:[#allocation20 + $0x4c] ss:$16 sps:$4 sm:$0xff]  }
 0x9d6   :  { %8081 = vtanh.f32 %v10297_v50  ;;  %v6730_v42 = vmul.f32 -1.442695, %v5431_v23  ;;  %v5432_v8 = vadd.f32 %v5381_v49, %v5338_v54  ;;  %v5424_v13 = vpop.f32.mrf.mxu1  ;;  %v8324_v18 = vld [vmem:[#allocation20 + $0x68] ss:$16 sps:$4 sm:$0xff]   ;;  %v8330_v2 = vld [vmem:[#allocation20 + $0x2c] ss:$16 sps:$4 sm:$0xff]  }
 0x9d7   :  { %8083 = vpow2.f32 %v6727_v40  ;;  %v6732_v38 = vmul.f32 -1.442695, %v5433_v44  ;;  %v5434_v6 = vadd.f32 %v5424_v13, %v5340_v14  ;;  %v8328_v25 = vld [vmem:[#allocation20 + $0x48] ss:$16 sps:$4 sm:$0xff]   ;;  %v8331_v44 = vld [vmem:[#allocation20 + $0x20] ss:$16 sps:$4 sm:$0xff]  }
 0x9d8   :  { %8085 = vpow2.f32 %v6728_v4  ;;  %v6731_v36 = vmul.f32 -1.442695, %v5432_v8  ;;  %v8323_v8 = vld [vmem:[#allocation20 + $0x60] ss:$16 sps:$4 sm:$0xff]  }
 0x9d9   :  { %8087 = vpow2.f32 %v6730_v42 }
 0x9da   :  { %8089 = vpow2.f32 %v6731_v36 }
 0x9db   :  { %8091 = vpow2.f32 %v6729_v53  ;;  %v8334_v53 = vld [vmem:[#allocation20 + $0xc] ss:$16 sps:$4 sm:$0xff]  }
 0x9dc   :  { %8093 = vtanh.f32 %v5430_v12  ;;  %v8335_v12 = vld [vmem:[#allocation20] ss:$16 sps:$4 sm:$0xff]  }
 0x9df   :  { %v8078_v7 = vpop.eup %8077 }
 0x9e0   :  { %v8080_v48 = vpop.eup %8079  ;;  %v5317_v28 = vmul.f32 %v8078_v7, %v8076_v57  ;;  %v8329_v57 = vld [vmem:[#allocation20 + $0x24] ss:$16 sps:$4 sm:$0xff]   ;;  %v8332_v7 = vld [vmem:[#allocation20 + $0x28] ss:$16 sps:$4 sm:$0xff]  }
 0x9e3   :  { %v8082_v52 = vpop.eup %8081 }
 0x9e4   :  { %v8084_v47 = vpop.eup %8083  ;;  %v5318_v58 = vmul.f32 %v8082_v52, %v8080_v48  ;;  %v7635_v48 = vld [vmem:[#allocation22 + $0x38] sm:$0xff]  }
 0x9e5   :  { %v5453_v33 = vadd.f32 1.0, %v8084_v47  ;;  %v8086_v29 = vpop.eup %8085  ;;  %v8336_v52 = vld [vmem:[#allocation20 + $0x8] ss:$16 sps:$4 sm:$0xff]  }
 0x9e6   :  { %v5319_v11 = vpack.c.bf16 %v5318_v58, %v5317_v28  ;;  %v5454_v22 = vadd.f32 1.0, %v8086_v29  ;;  %v8088_v55 = vpop.eup %8087  ;;  %v7637_v29 = vld [vmem:[#allocation22 + $0x30] sm:$0xff]  }
 0x9e7   :  { %8095 = vrcp.f32 %v5453_v33  ;;  %v5456_v62 = vadd.f32 1.0, %v8088_v55  ;;  %v8090_v5 = vpop.eup %8089  ;;  %v7640_v55 = vld [vmem:[#allocation22 + $0x18] sm:$0xff]  }
 0x9e8   :  { %8097 = vpow2.f32 %v6732_v38  ;;  %7035 = vst [vmem:[#allocation6 + $0x30] sm:$0xff] %v5319_v11   ;;  %5538 = vmatmul.mubr.bf16.vlgmr.msra.gmra.mxu0 %v5319_v11  ;;  %5581 = vmatmul.mubr.bf16.vlgmr.msra.gmra.mxu1 %v5319_v11  ;;  %v5457_v39 = vadd.f32 1.0, %v8090_v5  ;;  %v8092_v21 = vpop.eup %8091  ;;  %v7638_v11 = vld [vmem:[#allocation22 + $0x28] sm:$0xff]   ;;  %v7644_v5 = vld [vmem:[#allocation6 + $0x8] sm:$0xff]  }
 0x9e9   :  { %8099 = vrcp.f32 %v5454_v22  ;;  %5670 = vmatpush1.bf16.msra.mxu0 %v8307_v3  ;;  %5713 = vmatpush1.bf16.msra.mxu1 %v8308_v27  ;;  %v8094_v15 = vpop.eup %8093  ;;  %v5455_v54 = vadd.f32 1.0, %v8092_v21  ;;  %v7639_v22 = vld [vmem:[#allocation22 + $0x20] sm:$0xff]   ;;  %v7642_v3 = vld [vmem:[#allocation22 + $0x8] sm:$0xff]   ;;  %v7655_v21 = vld [vmem:[#allocation23 + $0x18] sm:$0xff]  }
 0x9ea   :  { %8101 = vtanh.f32 %v5434_v6  ;;  %5671 = vmatprep.subr.bf16.mxu0 %v8309_v17  ;;  %5714 = vmatprep.subr.bf16.mxu1 %v8310_v26  ;;  %v7636_v6 = vld [vmem:[#allocation6] sm:$0xff]   ;;  %v7643_v27 = vld [vmem:[#allocation22] sm:$0xff]  }
 0x9eb   :  { %8103 = vrcp.f32 %v5456_v62  ;;  %5701 = vmatprep.mubr.bf16.mxu0 %v10591_v16  ;;  %5744 = vmatprep.mubr.bf16.mxu1 %v10591_v16  ;;  %v7641_v62 = vld [vmem:[#allocation22 + $0x10] sm:$0xff]   ;;  %v7645_v17 = vld [vmem:[#allocation6 + $0x10] sm:$0xff]   ;;  %v7646_v26 = vld [vmem:[#allocation6 + $0x18] sm:$0xff]  }
 0x9ec   :  { %8105 = vrcp.f32 %v5457_v39  ;;  %v7647_v39 = vld [vmem:[#allocation6 + $0x20] sm:$0xff]  }
 0x9ed   :  { %5672 = vmatpush1.bf16.msra.mxu0 %v8311_v32  ;;  %5715 = vmatpush1.bf16.msra.mxu1 %v8312_v43  ;;  %8107 = vrcp.f32 %v5455_v54  ;;  %v7648_v32 = vld [vmem:[#allocation6 + $0x28] sm:$0xff]  }
 0x9ee   :  { %5673 = vmatprep.subr.bf16.mxu0 %v8313_v51  ;;  %5716 = vmatprep.subr.bf16.mxu1 %v8314_v9  ;;  %v7650_v51 = vld [vmem:[#allocation23 + $0x38] sm:$0xff]   ;;  %v7652_v9 = vld [vmem:[#allocation23 + $0x30] sm:$0xff]  }
 0x9ef   :  { %v7649_v43 = vld [vmem:[#allocation6 + $0x30] sm:$0xff]  }
 0x9f1   :  { %5674 = vmatpush1.bf16.msra.mxu0 %v8315_v41  ;;  %5717 = vmatpush1.bf16.msra.mxu1 %v8316_v24  ;;  %v7653_v41 = vld [vmem:[#allocation23 + $0x28] sm:$0xff]   ;;  %v7654_v24 = vld [vmem:[#allocation23 + $0x20] sm:$0xff]  }
 0x9f2   :  { %5675 = vmatprep.subr.bf16.mxu0 %v8317_v59  ;;  %5718 = vmatprep.subr.bf16.mxu1 %v8318_v45  ;;  %v7656_v59 = vld [vmem:[#allocation23 + $0x10] sm:$0xff]   ;;  %v7657_v45 = vld [vmem:[#allocation23 + $0x8] sm:$0xff]  }
 0x9f4   :  { %v8096_v16 = vpop.eup %8095 }
 0x9f5   :  { %v8098_v34 = vpop.eup %8097  ;;  %v5475_v63 = vmul.f32 %v8096_v16, %v8094_v15  ;;  %5676 = vmatpush1.bf16.msra.mxu0 %v8319_v46  ;;  %5719 = vmatpush1.bf16.msra.mxu1 %v8320_v19  ;;  %v7658_v15 = vld [vmem:[#allocation23] sm:$0xff]  }
 0x9f6   :  { %v8100_v40 = vpop.eup %8099  ;;  %5677 = vmatprep.subr.bf16.mxu0 %v8321_v61  ;;  %5720 = vmatprep.subr.bf16.mxu1 %v8322_v20  ;;  %v5458_v10 = vadd.f32 1.0, %v8098_v34  ;;  %v10809_v16 = vld [vmem:[#allocation53_spill] sm:$0xff] }
 0x9f7   :  { %v8102_v37 = vpop.eup %8101  ;;  %v5473_v4 = vmul.f32 %v8100_v40, %v10224_v35  ;;  %v5497_v34 = vunpack.c.l.bf16 %v10809_v16  ;;  %v5498_v19 = vunpack.c.h.bf16 %v10809_v16 }
 0x9f8   :  { %v8104_v23 = vpop.eup %8103 }
 0x9f9   :  { %v10308_v49 = vadd.f32 %v5475_v63, %v5473_v4  ;;  %v5476_v42 = vmul.f32 %v8104_v23, %v8102_v37  ;;  %5678 = vmatpush1.bf16.msra.mxu0 %v8323_v8  ;;  %5721 = vmatpush1.bf16.msra.mxu1 %v8324_v18  ;;  %v8106_v36 = vpop.eup %8105  ;;  %v10810_v4 = vld [vmem:[#allocation55_spill] sm:$0xff] }
 0x9fa   :  { %5679 = vmatprep.subr.bf16.mxu0 %v8325_v0  ;;  %5722 = vmatprep.subr.bf16.mxu1 %v8326_v60  ;;  %v5474_v30 = vmul.f32 %v8106_v36, %v10232_v1  ;;  %v8333_v1 = vld [vmem:[#allocation20 + $0x4] ss:$16 sps:$4 sm:$0xff]   ;;  %v8108_v13 = vpop.eup %8107  ;;  %v5501_v23 = vunpack.c.l.bf16 %v10810_v4  ;;  %v5502_v18 = vunpack.c.h.bf16 %v10810_v4 }
 0x9fb   :  { %8109 = vtanh.f32 %v10308_v49 }
 0x9fc   :  { %v10312_v35 = vadd.f32 %v5476_v42, %v5474_v30  ;;  %8111 = vrcp.f32 %v5458_v10  ;;  %v10811_v30 = vld [vmem:[#allocation54_spill] sm:$0xff] }
 0x9fd   :  { %5680 = vmatpush1.bf16.msra.mxu0 %v8327_v56  ;;  %5723 = vmatpush1.bf16.msra.mxu1 %v8328_v25  ;;  %v5499_v56 = vunpack.c.l.bf16 %v10811_v30 }
 0x9fe   :  { %5681 = vmatprep.subr.bf16.mxu0 %v8329_v57  ;;  %5724 = vmatprep.subr.bf16.mxu1 %v8330_v2  ;;  %8113 = vtanh.f32 %v10312_v35 }
 0xa01   :  { %5682 = vmatpush1.bf16.msra.mxu0 %v8331_v44  ;;  %5725 = vmatpush1.bf16.msra.mxu1 %v8332_v7  ;;  %v10812_v44 = vld [vmem:[#allocation56_spill] sm:$0xff] }
 0xa02   :  { %5683 = vmatprep.subr.bf16.mxu0 %v8333_v1  ;;  %5726 = vmatprep.subr.bf16.mxu1 %v8334_v53  ;;  %v5503_v7 = vunpack.c.l.bf16 %v10812_v44  ;;  %v5500_v1 = vunpack.c.h.bf16 %v10811_v30 }
 0xa05   :  { %5684 = vmatpush1.bf16.msra.mxu0 %v8335_v12  ;;  %5727 = vmatpush1.bf16.msra.mxu1 %v8336_v52 }
 0xa06   :  { %7336 = vmatprep.subr.bf16.mxu1 %v7635_v48  ;;  %7304 = vmatprep.subr.bf16.mxu0 %v7650_v51 }
 0xa08   :  { %v8110_v47 = vpop.eup %8109 }
 0xa09   :  { %v8112_v38 = vpop.eup %8111  ;;  %v5481_v28 = vmul.f32 %v8110_v47, %v8108_v13 }
 0xa0b   :  { %v8114_v14 = vpop.eup %8113 }
 0xa0c   :  { %v5482_v58 = vmul.f32 %v8114_v14, %v8112_v38  ;;  %v5504_v38 = vunpack.c.h.bf16 %v10812_v44 }
 0xa0e   :  { %v5483_v33 = vpack.c.bf16 %v5482_v58, %v5481_v28 }
 0xa10   :  { %7036 = vst [vmem:[#allocation7 + $0x8] sm:$0xff] %v5483_v33   ;;  %5702 = vmatmul.mubr.bf16.vlgmr.msra.gmra.mxu0 %v5483_v33  ;;  %5745 = vmatmul.mubr.bf16.vlgmr.msra.gmra.mxu1 %v5483_v33 }
 0xa11   :  { %7337 = vmatpush3.bf16.msra.mxu1 %v7635_v48  ;;  %7352 = vmatprep.mubr.bf16.mxu1 %v7636_v6 }
 0xa12   :  { %7338 = vmatprep.subr.bf16.mxu1 %v7637_v29  ;;  %7305 = vmatpush3.bf16.msra.mxu0 %v7650_v51 }
 0xa13   :  { %7306 = vmatprep.subr.bf16.mxu0 %v7652_v9 }
 0xa15   :  { %7339 = vmatpush3.bf16.msra.mxu1 %v7637_v29 }
 0xa16   :  { %7340 = vmatprep.subr.bf16.mxu1 %v7638_v11  ;;  %7307 = vmatpush3.bf16.msra.mxu0 %v7652_v9 }
 0xa17   :  { %7308 = vmatprep.subr.bf16.mxu0 %v7653_v41 }
 0xa19   :  { %7341 = vmatpush3.bf16.msra.mxu1 %v7638_v11 }
 0xa1a   :  { %7342 = vmatprep.subr.bf16.mxu1 %v7639_v22  ;;  %7309 = vmatpush3.bf16.msra.mxu0 %v7653_v41 }
 0xa1b   :  { %7310 = vmatprep.subr.bf16.mxu0 %v7654_v24 }
 0xa1d   :  { %7343 = vmatpush3.bf16.msra.mxu1 %v7639_v22 }
 0xa1e   :  { %7344 = vmatprep.subr.bf16.mxu1 %v7640_v55  ;;  %7311 = vmatpush3.bf16.msra.mxu0 %v7654_v24 }
 0xa1f   :  { %7312 = vmatprep.subr.bf16.mxu0 %v7655_v21 }
 0xa21   :  { %7345 = vmatpush3.bf16.msra.mxu1 %v7640_v55 }
 0xa22   :  { %7346 = vmatprep.subr.bf16.mxu1 %v7641_v62  ;;  %7313 = vmatpush3.bf16.msra.mxu0 %v7655_v21  ;;  %v10813_v21 = vld [vmem:[#allocation57_spill] sm:$0xff] }
 0xa23   :  { %7314 = vmatprep.subr.bf16.mxu0 %v7656_v59 }
 0xa25   :  { %7347 = vmatpush3.bf16.msra.mxu1 %v7641_v62 }
 0xa26   :  { %7348 = vmatprep.subr.bf16.mxu1 %v7642_v3  ;;  %7315 = vmatpush3.bf16.msra.mxu0 %v7656_v59  ;;  %v5661_v59 = vunpack.c.l.bf16 %v10813_v21 }
 0xa27   :  { %7316 = vmatprep.subr.bf16.mxu0 %v7657_v45 }
 0xa29   :  { %7349 = vmatpush3.bf16.msra.mxu1 %v7642_v3 }
 0xa2a   :  { %7350 = vmatprep.subr.bf16.mxu1 %v7643_v27  ;;  %7317 = vmatpush3.bf16.msra.mxu0 %v7657_v45 }
 0xa2b   :  { %7318 = vmatprep.subr.bf16.mxu0 %v7658_v15 }
 0xa2d   :  { %7351 = vmatpush3.bf16.msra.mxu1 %v7643_v27 }
 0xa2e   :  { %7319 = vmatpush3.bf16.msra.mxu0 %v7658_v15 }
 0xa30   :  { %7353 = vmatmul.mubr.bf16.vlgmr.msra.gmra.mxu1 %v7644_v5 }
 0xa31   :  { %7356 = vmatprep.mubr.bf16.mxu1 %v7645_v17 }
 0xa38   :  { %7357 = vmatmul.mubr.bf16.gmra.mxu1 %v7646_v26 }
 0xa39   :  { %7360 = vmatprep.mubr.bf16.mxu1 %v7647_v39 }
 0xa40   :  { %7361 = vmatmul.mubr.bf16.gmra.mxu1 %v7648_v32 }
 0xa41   :  { %7364 = vmatprep.mubr.bf16.mxu1 %v7649_v43 }
 0xaa8   :  { %v5539_v63 = vpop.f32.mrf.mxu0  ;;  %v5582_v20 = vpop.f32.mrf.mxu1 }
 0xaa9   :  { %v5591_v46 = vadd.f32 %v5539_v63, %v5497_v34  ;;  %v5593_v57 = vadd.f32 %v5582_v20, %v5499_v56  ;;  %v5662_v34 = vunpack.c.h.bf16 %v10813_v21 }
 0xaaa   :  { %v5541_v40 = vpop.f32.mrf.mxu0  ;;  %v5584_v10 = vpop.f32.mrf.mxu1 }
 0xaab   :  { %v6735_v61 = vmul.f32 -1.442695, %v5591_v46  ;;  %v5592_v37 = vadd.f32 %v5541_v40, %v5498_v19  ;;  %v6737_v48 = vmul.f32 -1.442695, %v5593_v57  ;;  %v5594_v12 = vadd.f32 %v5584_v10, %v5500_v1 }
 0xaac   :  { %v5543_v54 = vpop.f32.mrf.mxu0  ;;  %v5586_v2 = vpop.f32.mrf.mxu1 }
 0xaad   :  { %8115 = vpow2.f32 %v6735_v61  ;;  %v6736_v42 = vmul.f32 -1.442695, %v5592_v37  ;;  %v5595_v8 = vadd.f32 %v5543_v54, %v5501_v23  ;;  %v5597_v53 = vadd.f32 %v5586_v2, %v5503_v7  ;;  %v10814_v61 = vld [vmem:[#allocation59_spill] sm:$0xff] }
 0xaae   :  { %v5545_v36 = vpop.f32.mrf.mxu0  ;;  %v5588_v52 = vpop.f32.mrf.mxu1  ;;  %v5665_v20 = vunpack.c.l.bf16 %v10814_v61  ;;  %v5666_v54 = vunpack.c.h.bf16 %v10814_v61 }
 0xaaf   :  { %8117 = vpow2.f32 %v6736_v42  ;;  %v6738_v0 = vmul.f32 -1.442695, %v5595_v8  ;;  %v5596_v60 = vadd.f32 %v5545_v36, %v5502_v18  ;;  %v6740_v47 = vmul.f32 -1.442695, %v5597_v53  ;;  %v10815_v36 = vld [vmem:[#allocation58_spill] sm:$0xff] }
 0xab0   :  { %v5598_v58 = vadd.f32 %v5588_v52, %v5504_v38  ;;  %v5663_v10 = vunpack.c.l.bf16 %v10815_v36  ;;  %v5664_v7 = vunpack.c.h.bf16 %v10815_v36 }
 0xab1   :  { %8119 = vpow2.f32 %v6738_v0  ;;  %v6739_v25 = vmul.f32 -1.442695, %v5596_v60 }
 0xab3   :  { %8121 = vpow2.f32 %v6739_v25  ;;  %v10816_v25 = vld [vmem:[#allocation60_spill] sm:$0xff] }
 0xab4   :  { %8123 = vpow2.f32 %v6737_v48  ;;  %v5667_v57 = vunpack.c.l.bf16 %v10816_v25 }
 0xab5   :  { %8125 = vtanh.f32 %v5594_v12 }
 0xaba   :  { %v8116_v13 = vpop.eup %8115 }
 0xabb   :  { %v5617_v14 = vadd.f32 1.0, %v8116_v13 }
 0xabc   :  { %v8118_v28 = vpop.eup %8117 }
 0xabd   :  { %8127 = vrcp.f32 %v5617_v14  ;;  %v5618_v33 = vadd.f32 1.0, %v8118_v28  ;;  %v5668_v28 = vunpack.c.h.bf16 %v10816_v25 }
 0xabe   :  { %v8120_v29 = vpop.eup %8119  ;;  %8129 = vpow2.f32 %v6740_v47 }
 0xabf   :  { %8131 = vrcp.f32 %v5618_v33  ;;  %v5620_v6 = vadd.f32 1.0, %v8120_v29 }
 0xac0   :  { %v8122_v11 = vpop.eup %8121  ;;  %8133 = vtanh.f32 %v5598_v58 }
 0xac1   :  { %8135 = vrcp.f32 %v5620_v6  ;;  %v5621_v22 = vadd.f32 1.0, %v8122_v11  ;;  %v8124_v55 = vpop.eup %8123 }
 0xac2   :  { %v8126_v62 = vpop.eup %8125  ;;  %v5619_v26 = vadd.f32 1.0, %v8124_v55 }
 0xac3   :  { %8137 = vrcp.f32 %v5621_v22 }
 0xac4   :  { %8139 = vrcp.f32 %v5619_v26 }
 0xaca   :  { %v8128_v3 = vpop.eup %8127 }
 0xacb   :  { %v8130_v27 = vpop.eup %8129  ;;  %v5639_v5 = vmul.f32 %v8128_v3, %v8126_v62 }
 0xacc   :  { %v8132_v17 = vpop.eup %8131  ;;  %v5622_v24 = vadd.f32 1.0, %v8130_v27 }
 0xacd   :  { %v8134_v39 = vpop.eup %8133  ;;  %v5637_v32 = vmul.f32 %v8132_v17, %v10290_v31 }
 0xace   :  { %v8136_v43 = vpop.eup %8135 }
 0xacf   :  { %v5641_v51 = vadd.f32 %v5639_v5, %v5637_v32  ;;  %v5640_v9 = vmul.f32 %v8136_v43, %v8134_v39 }
 0xad0   :  { %v8138_v41 = vpop.eup %8137  ;;  %v5703_v15 = vpop.f32.mrf.mxu0 }
 0xad1   :  { %8141 = vtanh.f32 %v5641_v51  ;;  %v5638_v45 = vmul.f32 %v8138_v41, %v10297_v50  ;;  %v5755_v16 = vadd.f32 %v5703_v15, %v5661_v59  ;;  %v5746_v31 = vpop.f32.mrf.mxu1  ;;  %v8140_v56 = vpop.eup %8139 }
 0xad2   :  { %v5705_v46 = vpop.f32.mrf.mxu0  ;;  %8143 = vrcp.f32 %v5622_v24  ;;  %v5757_v60 = vadd.f32 %v5746_v31, %v5663_v10 }
 0xad3   :  { %v5642_v63 = vadd.f32 %v5640_v9, %v5638_v45  ;;  %v6743_v19 = vmul.f32 -1.442695, %v5755_v16  ;;  %v5756_v40 = vadd.f32 %v5705_v46, %v5662_v34  ;;  %v5748_v42 = vpop.f32.mrf.mxu1 }
 0xad4   :  { %v5707_v37 = vpop.f32.mrf.mxu0  ;;  %v6745_v53 = vmul.f32 -1.442695, %v5757_v60  ;;  %v5758_v12 = vadd.f32 %v5748_v42, %v5664_v7  ;;  %v7666_v42 = vld [vmem:[#allocation7 + $0x38] sm:$0xff]  }
 0xad5   :  { %8145 = vtanh.f32 %v5642_v63  ;;  %v6744_v4 = vmul.f32 -1.442695, %v5756_v40  ;;  %v5759_v23 = vadd.f32 %v5707_v37, %v5665_v20  ;;  %v5750_v30 = vpop.f32.mrf.mxu1  ;;  %v7660_v37 = vld [vmem:[#allocation7 + $0x8] sm:$0xff]  }
 0xad6   :  { %8147 = vpow2.f32 %v6743_v19  ;;  %v5709_v50 = vpop.f32.mrf.mxu0  ;;  %v5761_v1 = vadd.f32 %v5750_v30, %v5667_v57  ;;  %v10338_v57 = vld [vmem:[%s10372_s13] ss:$0 sm:$0xff]  ;;  %s8586_s13 = smov [#allocation25]  }
 0xad7   :  { %8149 = vpow2.f32 %v6744_v4  ;;  %v6746_v8 = vmul.f32 -1.442695, %v5759_v23  ;;  %v5760_v18 = vadd.f32 %v5709_v50, %v5666_v54  ;;  %v5752_v13 = vpop.f32.mrf.mxu1  ;;  %v7661_v4 = vld [vmem:[#allocation7 + $0x10] sm:$0xff]   ;;  %v7662_v23 = vld [vmem:[#allocation7 + $0x18] sm:$0xff]   ;;  %v7663_v54 = vld [vmem:[#allocation7 + $0x20] sm:$0xff]   ;;  %s6315_s29 = sshll.u32 %s8586_s13, 4  ;;  %s6316_s29 = int_to_ptr.vmem [resolvable:$true] %s6315_s29 }
 0xad8   :  { %v6748_v14 = vmul.f32 -1.442695, %v5761_v1  ;;  %v5762_v6 = vadd.f32 %v5752_v13, %v5668_v28  ;;  %v7665_v50 = vld [vmem:[#allocation7 + $0x30] sm:$0xff]   ;;  %s8537_s15 = scalar_lea.vmem %s6316_s29, 2048  ;;  %p8542_p9 = scmp.lt.s32.totalorder %s6316_s29, %s6316_s29 }
 0xad9   :  { %8151 = vpow2.f32 %v6746_v8  ;;  %v6747_v0 = vmul.f32 -1.442695, %v5760_v18  ;;  %p8538_p8 = scmp.ne.s32.totalorder %s6316_s29, %s8537_s15  ;;  %p8543_p10 = scmp.lt.s32.totalorder %s8537_s15, %s8537_s15 }
 0xadb   :  { %8153 = vpow2.f32 %v6747_v0  ;;  %p8544_p11 = por %p8543_p10, %p8542_p9 }
 0xadc   :  { %8155 = vpow2.f32 %v6745_v53 }
 0xadd   :  { %8157 = vtanh.f32 %v5758_v12  ;;  %p8545_p12 = pnand %p8544_p11, %p8538_p8 }
 0xade   :  { %v8142_v2 = vpop.eup %8141 }
 0xadf   :  { %v5645_v44 = vmul.f32 %v8142_v2, %v8140_v56  ;;  %v8144_v48 = vpop.eup %8143 }
 0xae2   :  { %v8146_v52 = vpop.eup %8145 }
 0xae3   :  { %v8148_v47 = vpop.eup %8147  ;;  %v5646_v38 = vmul.f32 %v8146_v52, %v8144_v48 }
 0xae4   :  { %v5781_v58 = vadd.f32 1.0, %v8148_v47  ;;  %v8150_v33 = vpop.eup %8149 }
 0xae5   :  { %v7009_v29 = vpack.c.bf16 %v5646_v38, %v5645_v44  ;;  %v5782_v11 = vadd.f32 1.0, %v8150_v33 }
 0xae6   :  { %8159 = vrcp.f32 %v5781_v58  ;;  %v8152_v22 = vpop.eup %8151 }
 0xae7   :  { %7037 = vst [vmem:[#allocation6 + $0x38] sm:$0xff] %v7009_v29   ;;  %8161 = vpow2.f32 %v6748_v14  ;;  %v5784_v55 = vadd.f32 1.0, %v8152_v22 }
 0xae8   :  { %8163 = vrcp.f32 %v5782_v11  ;;  %v8154_v62 = vpop.eup %8153 }
 0xae9   :  { %8165 = vtanh.f32 %v5762_v6  ;;  %v5785_v3 = vadd.f32 1.0, %v8154_v62  ;;  %v8156_v5 = vpop.eup %8155 }
 0xaea   :  { %8167 = vrcp.f32 %v5784_v55  ;;  %v8158_v17 = vpop.eup %8157  ;;  %v5783_v51 = vadd.f32 1.0, %v8156_v5 }
 0xaeb   :  { %8169 = vrcp.f32 %v5785_v3 }
 0xaec   :  { %8171 = vrcp.f32 %v5783_v51 }
 0xaee   :  { %v7651_v27 = vld [vmem:[#allocation6 + $0x38] sm:$0xff]  }
 0xaef   :  { %7365 = vmatmul.mubr.bf16.gmra.mxu1 %v7651_v27 }
 0xaf0   :  { %v7354_v8 = vpop.f32.mrf.mxu1 }
 0xaf2   :  { %v6208_v18 = vpop.f32.mrf.mxu1 }
 0xaf3   :  { %v8160_v26 = vpop.eup %8159 }
 0xaf4   :  { %v8162_v39 = vpop.eup %8161  ;;  %v5803_v32 = vmul.f32 %v8160_v26, %v8158_v17  ;;  %v7355_v36 = vpop.f32.mrf.mxu1 }
 0xaf5   :  { %v8164_v43 = vpop.eup %8163  ;;  %v5786_v15 = vadd.f32 1.0, %v8162_v39 }
 0xaf6   :  { %v8166_v9 = vpop.eup %8165  ;;  %v5801_v41 = vmul.f32 %v8164_v43, %v10308_v49  ;;  %v6211_v10 = vpop.f32.mrf.mxu1 }
 0xaf7   :  { %v8168_v24 = vpop.eup %8167 }
 0xaf8   :  { %v5805_v21 = vadd.f32 %v5803_v32, %v5801_v41  ;;  %v5804_v59 = vmul.f32 %v8168_v24, %v8166_v9  ;;  %v8170_v45 = vpop.eup %8169  ;;  %v7358_v0 = vpop.f32.mrf.mxu1 }
 0xaf9   :  { %v5802_v16 = vmul.f32 %v8170_v45, %v10312_v35  ;;  %v8172_v63 = vpop.eup %8171  ;;  %v7664_v35 = vld [vmem:[#allocation7 + $0x28] sm:$0xff]  }
 0xafa   :  { %8173 = vtanh.f32 %v5805_v21  ;;  %v6224_v60 = vpop.f32.mrf.mxu1 }
 0xafb   :  { %v5806_v34 = vadd.f32 %v5804_v59, %v5802_v16  ;;  %8175 = vrcp.f32 %v5786_v15 }
 0xafc   :  { %v7359_v30 = vpop.f32.mrf.mxu1 }
 0xafd   :  { %8177 = vtanh.f32 %v5806_v34 }
 0xafe   :  { %v6227_v56 = vpop.f32.mrf.mxu1 }
 0xb00   :  { %v7362_v53 = vpop.f32.mrf.mxu1 }
 0xb02   :  { %v6240_v14 = vpop.f32.mrf.mxu1 }
 0xb04   :  { %v7363_v22 = vpop.f32.mrf.mxu1 }
 0xb06   :  { %v6243_v26 = vpop.f32.mrf.mxu1 }
 0xb07   :  { %v8174_v46 = vpop.eup %8173 }
 0xb08   :  { %v5809_v19 = vmul.f32 %v8174_v46, %v8172_v63  ;;  %v8176_v31 = vpop.eup %8175 }
 0xb0a   :  { %v8178_v40 = vpop.eup %8177 }
 0xb0b   :  { %v5810_v61 = vmul.f32 %v8178_v40, %v8176_v31 }
 0xb0d   :  { %v7014_v20 = vpack.c.bf16 %v5810_v61, %v5809_v19 }
 0xb0f   :  { %7015 = vst [vmem:[#allocation7] sm:$0xff] %v7014_v20  }
 0xb16   :  { %v7659_v49 = vld [vmem:[#allocation7] sm:$0xff]  }
 0xb17   :  { %7320 = vmatprep.mubr.bf16.mxu0 %v7659_v49 }
 0xb18   :  { %7321 = vmatmul.mubr.bf16.vlgmr.msra.gmra.mxu0 %v7660_v37 }
 0xb19   :  { %7324 = vmatprep.mubr.bf16.mxu0 %v7661_v4 }
 0xb20   :  { %7325 = vmatmul.mubr.bf16.gmra.mxu0 %v7662_v23 }
 0xb21   :  { %7328 = vmatprep.mubr.bf16.mxu0 %v7663_v54 }
 0xb28   :  { %7329 = vmatmul.mubr.bf16.gmra.mxu0 %v7664_v35 }
 0xb29   :  { %7332 = vmatprep.mubr.bf16.mxu0 %v7665_v50 }
 0xb30   :  { %7333 = vmatmul.mubr.bf16.gmra.mxu0 %v7666_v42 }
 0xbaf   :  { %v7366_v51 = vpop.f32.mrf.mxu1 }
 0xbb1   :  { %v6256_v15 = vpop.f32.mrf.mxu1 }
 0xbb3   :  { %v7367_v40 = vpop.f32.mrf.mxu1 }
 0xbb5   :  { %v6259_v54 = vpop.f32.mrf.mxu1 }
 0xbd8   :  { %v7322_v25 = vpop.f32.mrf.mxu0 }
 0xbd9   :  { %v6217_v2 = vadd.f32 %v7354_v8, %v7322_v25 }
 0xbda   :  { %v6015_v44 = vpop.f32.mrf.mxu0 }
 0xbdb   :  { %v6280_v7 = vadd.f32 %v10338_v57, %v6217_v2  ;;  %v6209_v1 = vadd.f32 %v6208_v18, %v6015_v44 }
 0xbdc   :  { %v7323_v48 = vpop.f32.mrf.mxu0 }
 0xbdd   :  { %6296 = vst [vmem:[#allocation25 + $0x10] sm:$0xff] %v6280_v7  ;;  %v6278_v12 = vadd.f32 %v10338_v57, %v6209_v1  ;;  %v6220_v52 = vadd.f32 %v7355_v36, %v7323_v48 }
 0xbde   :  { %v6018_v13 = vpop.f32.mrf.mxu0 }
 0xbdf   :  { %6294 = vst [vmem:[#allocation25] sm:$0xff] %v6278_v12  ;;  %v6281_v47 = vadd.f32 %v10338_v57, %v6220_v52  ;;  %v6212_v38 = vadd.f32 %v6211_v10, %v6018_v13 }
 0xbe0   :  { %v7326_v28 = vpop.f32.mrf.mxu0 }
 0xbe1   :  { %6297 = vst [vmem:[#allocation25 + $0x18] sm:$0xff] %v6281_v47  ;;  %v6279_v58 = vadd.f32 %v10338_v57, %v6212_v38  ;;  %v6233_v33 = vadd.f32 %v7358_v0, %v7326_v28 }
 0xbe2   :  { %v6031_v29 = vpop.f32.mrf.mxu0 }
 0xbe3   :  { %6295 = vst [vmem:[#allocation25 + $0x8] sm:$0xff] %v6279_v58  ;;  %v6284_v6 = vadd.f32 %v10338_v57, %v6233_v33  ;;  %v6225_v11 = vadd.f32 %v6224_v60, %v6031_v29 }
 0xbe4   :  { %v7327_v55 = vpop.f32.mrf.mxu0 }
 0xbe5   :  { %6300 = vst [vmem:[#allocation25 + $0x30] sm:$0xff] %v6284_v6  ;;  %v6282_v62 = vadd.f32 %v10338_v57, %v6225_v11  ;;  %v6236_v3 = vadd.f32 %v7359_v30, %v7327_v55 }
 0xbe6   :  { %v6034_v27 = vpop.f32.mrf.mxu0 }
 0xbe7   :  { %6298 = vst [vmem:[#allocation25 + $0x20] sm:$0xff] %v6282_v62  ;;  %v6285_v5 = vadd.f32 %v10338_v57, %v6236_v3  ;;  %v6228_v17 = vadd.f32 %v6227_v56, %v6034_v27 }
 0xbe8   :  { %v7330_v39 = vpop.f32.mrf.mxu0 }
 0xbe9   :  { %6301 = vst [vmem:[#allocation25 + $0x38] sm:$0xff] %v6285_v5  ;;  %v6283_v32 = vadd.f32 %v10338_v57, %v6228_v17  ;;  %v6249_v43 = vadd.f32 %v7362_v53, %v7330_v39 }
 0xbea   :  { %v6047_v9 = vpop.f32.mrf.mxu0 }
 0xbeb   :  { %6299 = vst [vmem:[#allocation25 + $0x28] sm:$0xff] %v6283_v32  ;;  %v6288_v41 = vadd.f32 %v10338_v57, %v6249_v43  ;;  %v6241_v24 = vadd.f32 %v6240_v14, %v6047_v9 }
 0xbec   :  { %v7331_v21 = vpop.f32.mrf.mxu0 }
 0xbed   :  { %6304 = vst [vmem:[#allocation25 + $0x50] sm:$0xff] %v6288_v41  ;;  %v6286_v59 = vadd.f32 %v10338_v57, %v6241_v24  ;;  %v6252_v45 = vadd.f32 %v7363_v22, %v7331_v21 }
 0xbee   :  { %v6050_v16 = vpop.f32.mrf.mxu0 }
 0xbef   :  { %6302 = vst [vmem:[#allocation25 + $0x40] sm:$0xff] %v6286_v59  ;;  %v6289_v34 = vadd.f32 %v10338_v57, %v6252_v45  ;;  %v6244_v63 = vadd.f32 %v6243_v26, %v6050_v16 }
 0xbf0   :  { %v7334_v46 = vpop.f32.mrf.mxu0 }
 0xbf1   :  { %6305 = vst [vmem:[#allocation25 + $0x58] sm:$0xff] %v6289_v34  ;;  %v6287_v19 = vadd.f32 %v10338_v57, %v6244_v63  ;;  %v6265_v31 = vadd.f32 %v7366_v51, %v7334_v46 }
 0xbf2   :  { %v6063_v61 = vpop.f32.mrf.mxu0 }
 0xbf3   :  { %6303 = vst [vmem:[#allocation25 + $0x48] sm:$0xff] %v6287_v19  ;;  %v6292_v20 = vadd.f32 %v10338_v57, %v6265_v31  ;;  %v6257_v49 = vadd.f32 %v6256_v15, %v6063_v61 }
 0xbf4   :  { %v7335_v37 = vpop.f32.mrf.mxu0 }
 0xbf5   :  { %6308 = vst [vmem:[#allocation25 + $0x70] sm:$0xff] %v6292_v20  ;;  %v6290_v4 = vadd.f32 %v10338_v57, %v6257_v49  ;;  %v6268_v23 = vadd.f32 %v7367_v40, %v7335_v37 }
 0xbf6   :  { %v6066_v35 = vpop.f32.mrf.mxu0 }
 0xbf7   :  { %6306 = vst [vmem:[#allocation25 + $0x60] sm:$0xff] %v6290_v4  ;;  %v6293_v50 = vadd.f32 %v10338_v57, %v6268_v23  ;;  %v6260_v42 = vadd.f32 %v6259_v54, %v6066_v35 }
 0xbf9   :  { %6309 = vst [vmem:[#allocation25 + $0x78] sm:$0xff] %v6293_v50  ;;  %v6291_v8 = vadd.f32 %v10338_v57, %v6260_v42 }
 0xbfb   :  { %6307 = vst [vmem:[#allocation25 + $0x68] sm:$0xff] %v6291_v8 }
 0xbfc   :  { %8548 = shalt.err (!%p8545_p12)
}
 0xbfd   :  { %s8587_s17 = smov 128   ;;  %s8588_s4 = smov 8  }
 0xbfe   :  { %6321 = dma.vmem_to_hbm [thread:$0]  %s6316_s29, 2048, %s10373_s14, [#allocation10], %s8587_s17, %s8587_s17, %s8588_s4  }
 0xbff   :  { %8569 = dma.done.wait [#allocation10], 2048  }
 0xc00   :  { %8570 = vsyncadd [#allocation10], 4294965248 }
 0xc01   :  { %6325 = vsyncpa [#allocation9], 1 }
 0xc02   :  { %6326 = vsyncpa [#allocation12], 1 }
 0xc03   :  { %6327 = vsyncpa [#allocation15], 1 }
 0xc04   :  { %6328 = vsyncpa [#allocation18], 1 }
 0xc05   :  { %6329 = vsyncpa [#allocation21], 1 }
 0xc06   :  { %6330 = vsyncpa [#allocation24], 1 }
 0xc07   :  { %6331 = vsyncpa [#allocation10], 1 }

</bundles_post_ra>
